<compile_context>
chip_gen: v5e
topology: v5e:2x2
jax: 0.10.0
libtpu: 0.0.40
codegen_flags: <defaults>
</compile_context>

<pallas_src>
import jax
import jax.numpy as jnp
from jax.experimental import pallas as pl
from jax.experimental.pallas import tpu as pltpu

BLOCK_COUNTS = (1, 1, 1, 1)          # full ResNet-152: (3, 8, 36, 3)
STAGE_PLANES = (64, 128, 256, 512)   # bottleneck "planes"; out channels = planes * 4
EXPANSION = 4
BN_EPS = 1e-5

LANE = 128
SUBLANE = 8
MAX_TM = 256                          # M-tile cap (keeps acc scratch small on all gens)
TN_CANDIDATES = (256, 128)
TK_CANDIDATES = (512, 256, 128)
VMEM_LIMIT_BYTES = 32 * 1024 * 1024   # within default scoped limit on v6e/v7x, explicit on v5e


def _round_up(x, m):
    return (x + m - 1) // m * m


def _pick_tile(dim, candidates):
    for c in candidates:
        if dim % c == 0:
            return c
    return dim


# ---------------------------------------------------------------------------
# Pallas kernels
# ---------------------------------------------------------------------------
def _make_mm_kernel(act: str, has_res: bool):
    """Tiled matmul with K-reduction accumulator + bias (+ residual) + activation."""
    def kernel(*refs):
        if has_res:
            x_ref, w_ref, b_ref, r_ref, o_ref, acc_ref = refs
        else:
            x_ref, w_ref, b_ref, o_ref, acc_ref = refs
        k = pl.program_id(2)

        @pl.when(k == 0)
        def _init():
            acc_ref[...] = jnp.zeros_like(acc_ref)

        acc_ref[...] += jnp.dot(x_ref[...], w_ref[...],
                                preferred_element_type=jnp.float32)

        @pl.when(k == pl.num_programs(2) - 1)
        def _finalize():
            y = acc_ref[...] + b_ref[...].astype(jnp.float32)
            if has_res:
                y = y + r_ref[...].astype(jnp.float32)
            if act == "relu":
                y = jnp.maximum(y, 0.0)
            elif act == "sigmoid":
                y = jax.nn.sigmoid(y)
            o_ref[...] = y.astype(o_ref.dtype)
    return kernel


_MM_KERNELS = {
    (act, has_res): _make_mm_kernel(act, has_res)
    for act in ("none", "relu", "sigmoid")
    for has_res in (False, True)
}


def _maxpool_kernel(x_ref, o_ref):
    # x_ref: (H+2, W+2, B, C) padded with -inf; window dims lead so the nine shifted
    # slices only index untiled (leading) dims.  Computes the stride-1 3x3 max; the
    # stride-2 decimation happens on the (4x smaller) result outside.
    x = x_ref[...]
    hp, wp, b, c = x.shape
    h, w = hp - 2, wp - 2
    acc = jax.lax.slice(x, (0, 0, 0, 0), (h, w, b, c))
    for i in range(3):
        for j in range(3):
            if i == 0 and j == 0:
                continue
            acc = jnp.maximum(acc, jax.lax.slice(x, (i, j, 0, 0), (i + h, j + w, b, c)))
    o_ref[...] = acc


def _avgpool_kernel(x_ref, o_ref):
    # x_ref: (B, H*W, C); global average pool over the spatial axis, f32 accumulate.
    o_ref[...] = jnp.mean(x_ref[...].astype(jnp.float32), axis=1)


def _vmem_spec():
    return pl.BlockSpec(memory_space=pltpu.MemorySpace.VMEM)


# ---------------------------------------------------------------------------
# Fused tiled matmul wrapper
# ---------------------------------------------------------------------------
def fused_matmul(x, layer, residual=None, act="none", out_dtype=jnp.bfloat16):
    """act((x @ w) + bias [+ residual]); w already BN-scale-folded, 128-padded, bf16."""
    m, k_dim = x.shape
    kp, np_ = layer["w"].shape
    n = layer["n"]

    mp = _round_up(m, SUBLANE)
    if mp > MAX_TM:
        mp = _round_up(m, MAX_TM)
        tm = MAX_TM
    else:
        tm = mp
    tn = _pick_tile(np_, TN_CANDIDATES)
    tk = _pick_tile(kp, TK_CANDIDATES)

    xp = x.astype(jnp.bfloat16)
    if mp != m or kp != k_dim:
        xp = jnp.pad(xp, ((0, mp - m), (0, kp - k_dim)))

    has_res = residual is not None
    args = [xp, layer["w"], layer["bias"]]
    in_specs = [
        pl.BlockSpec((tm, tk), lambda i, j, kk: (i, kk)),
        pl.BlockSpec((tk, tn), lambda i, j, kk: (kk, j)),
        pl.BlockSpec((1, tn), lambda i, j, kk: (0, j)),
    ]
    if has_res:
        rm, rn = residual.shape
        rp = residual.astype(jnp.bfloat16)
        if mp != rm or np_ != rn:
            rp = jnp.pad(rp, ((0, mp - rm), (0, np_ - rn)))
        args.append(rp)
        in_specs.append(pl.BlockSpec((tm, tn), lambda i, j, kk: (i, j)))

    grid = (mp // tm, np_ // tn, kp // tk)
    out_bytes = mp * np_ * (2 if out_dtype == jnp.bfloat16 else 4)
    cost = pl.CostEstimate(
        flops=2 * mp * np_ * kp,
        transcendentals=mp * np_ if act == "sigmoid" else 0,
        bytes_accessed=int(xp.size) * 2 + int(layer["w"].size) * 2 + out_bytes,
    )

    out = pl.pallas_call(
        _MM_KERNELS[(act, has_res)],
        out_shape=jax.ShapeDtypeStruct((mp, np_), out_dtype),
        grid_spec=pltpu.PrefetchScalarGridSpec(
            num_scalar_prefetch=0,
            grid=grid,
            in_specs=in_specs,
            out_specs=pl.BlockSpec((tm, tn), lambda i, j, kk: (i, j)),
            scratch_shapes=[pltpu.VMEM((tm, tn), jnp.float32)],
        ),
        compiler_params=pltpu.CompilerParams(
            dimension_semantics=("parallel", "parallel", "arbitrary"),
            vmem_limit_bytes=VMEM_LIMIT_BYTES,
        ),
        cost_estimate=cost,
    )(*args)
    return out[:m, :n]


# ---------------------------------------------------------------------------
# Conv / pooling wrappers
# ---------------------------------------------------------------------------
def _im2col(x, kh, kw, stride, pad):
    # TODO(synk): generate windows inside the matmul kernel (tap-axis grid reduction over
    # shifted NHWC views) to avoid this kh*kw HBM expansion for 3x3/7x7 convs.
    b, h, w, c = x.shape
    xp = jnp.pad(x, ((0, 0), (pad, pad), (pad, pad), (0, 0)))
    ho = (h + 2 * pad - kh) // stride + 1
    wo = (w + 2 * pad - kw) // stride + 1
    cols = []
    for i in range(kh):
        for j in range(kw):
            cols.append(xp[:, i:i + stride * ho:stride, j:j + stride * wo:stride, :])
    patches = jnp.stack(cols, axis=3)                      # (B, Ho, Wo, kh*kw, C)
    return patches.reshape(b * ho * wo, kh * kw * c), (b, ho, wo)


def conv_bn(x, layer, k, stride, pad, act="relu", residual=None):
    b = x.shape[0]
    if k == 1:
        xs = x[:, ::stride, ::stride, :] if stride != 1 else x   # 1x1 conv: no im2col
        _, ho, wo, c = xs.shape
        lhs = xs.reshape(b * ho * wo, c)
    else:
        lhs, (_, ho, wo) = _im2col(x, k, k, stride, pad)
    res = None
    if residual is not None:
        res = residual.reshape(b * ho * wo, residual.shape[-1])
    y = fused_matmul(lhs, layer, residual=res, act=act, out_dtype=jnp.bfloat16)
    return y.reshape(b, ho, wo, -1)


def maxpool_3x3_s2_p1(x):
    b, h, w, c = x.shape
    xp = jnp.pad(x, ((0, 0), (1, 1), (1, 1), (0, 0)), constant_values=-jnp.inf)
    xp = jnp.transpose(xp, (1, 2, 0, 3))                   # (Hp, Wp, B, C)
    full = pl.pallas_call(
        _maxpool_kernel,
        out_shape=jax.ShapeDtypeStruct((h, w, b, c), x.dtype),
        in_specs=[_vmem_spec()],
        out_specs=_vmem_spec(),
    )(xp)
    return jnp.transpose(full, (2, 0, 1, 3))[:, ::2, ::2, :]


def global_avgpool(x):
    b, h, w, c = x.shape
    return pl.pallas_call(
        _avgpool_kernel,
        out_shape=jax.ShapeDtypeStruct((b, c), jnp.float32),
        in_specs=[_vmem_spec()],
        out_specs=_vmem_spec(),
    )(x.reshape(b, h * w, c))


# ---------------------------------------------------------------------------
# Deterministic parameter construction (synthetic; no checkpoint load)
# ---------------------------------------------------------------------------
def _pack_layer(w, scale, bias, cout):
    """Fold BN scale into W, pad K/N to 128-lane multiples, cast W to bf16 once."""
    kc = w.shape[0]
    kp = _round_up(kc, LANE)
    np_ = _round_up(cout, LANE)
    w_folded = w * scale[None, :]
    wp = jnp.pad(w_folded, ((0, kp - kc), (0, np_ - cout))).astype(jnp.bfloat16)
    bp = jnp.pad(bias, (0, np_ - cout)).reshape(1, np_).astype(jnp.float32)
    return {"w": wp, "bias": bp, "n": cout}


def _conv_bn_params(key, cin, cout, k):
    kw_, kg, kb, km, kv = jax.random.split(key, 5)
    fan_in = cin * k * k
    w = jax.random.normal(kw_, (k * k * cin, cout), jnp.float32) * (2.0 / fan_in) ** 0.5
    gamma = 1.0 + 0.1 * jax.random.normal(kg, (cout,), jnp.float32)
    beta = 0.1 * jax.random.normal(kb, (cout,), jnp.float32)
    running_mean = 0.1 * jax.random.normal(km, (cout,), jnp.float32)
    running_var = jnp.abs(1.0 + 0.1 * jax.random.normal(kv, (cout,), jnp.float32))
    scale = gamma / jnp.sqrt(running_var + BN_EPS)         # eval-mode BN folded
    bias = beta - running_mean * scale
    return _pack_layer(w, scale, bias, cout)


def _linear_params(key, cin, cout):
    kw_, kb = jax.random.split(key)
    bound = 1.0 / (cin ** 0.5)
    w = jax.random.uniform(kw_, (cin, cout), jnp.float32, -bound, bound)
    b = jax.random.uniform(kb, (cout,), jnp.float32, -bound, bound)
    return _pack_layer(w, jnp.ones((cout,), jnp.float32), b, cout)


def init_price_model_params(key, num_ftrs=0, hidden_units=None):
    keys = iter(jax.random.split(key, 512))
    params = {"stem": _conv_bn_params(next(keys), 3, 64, 7)}
    stages = []
    in_c = 64
    for stage_idx, (planes, n_blocks) in enumerate(zip(STAGE_PLANES, BLOCK_COUNTS)):
        blocks = []
        stage_stride = 1 if stage_idx == 0 else 2
        for b_idx in range(n_blocks):
            s = stage_stride if b_idx == 0 else 1
            out_c = planes * EXPANSION
            blk = {
                "conv1": _conv_bn_params(next(keys), in_c, planes, 1),
                "conv2": _conv_bn_params(next(keys), planes, planes, 3),
                "conv3": _conv_bn_params(next(keys), planes, out_c, 1),
                "stride": s,
            }
            if s != 1 or in_c != out_c:
                blk["downsample"] = _conv_bn_params(next(keys), in_c, out_c, 1)
            blocks.append(blk)
            in_c = out_c
        stages.append(blocks)
    params["stages"] = stages

    fc = []
    if hidden_units:
        units = [2048 + num_ftrs] + list(hidden_units)
        for ins, outs in zip(units[:-1], units[1:]):
            fc.append(_linear_params(next(keys), ins, outs))
        fc.append(_linear_params(next(keys), units[-1], 1))
    else:
        fc.append(_linear_params(next(keys), 2048 + num_ftrs, 1))
    params["fc"] = fc
    params["hidden_units"] = hidden_units
    return params


# ---------------------------------------------------------------------------
# Forward pass (mirrors PriceModel.forward)
# ---------------------------------------------------------------------------
def _bottleneck(x, blk):
    identity = x
    out = conv_bn(x, blk["conv1"], 1, 1, 0, act="relu")
    out = conv_bn(out, blk["conv2"], 3, blk["stride"], 1, act="relu")
    if "downsample" in blk:
        identity = conv_bn(x, blk["downsample"], 1, blk["stride"], 0, act="none")
    # conv3 + BN + residual add + ReLU fused in one Pallas call (torchvision order).
    return conv_bn(out, blk["conv3"], 1, 1, 0, act="relu", residual=identity)


def price_model_forward(params, images_nchw, ftrs):
    # images: (B, 3, H, W) NCHW (PyTorch convention); ftrs: (B, num_ftrs)
    x = jnp.transpose(images_nchw, (0, 2, 3, 1)).astype(jnp.bfloat16)   # -> NHWC bf16
    x = conv_bn(x, params["stem"], 7, 2, 3, act="relu")
    x = maxpool_3x3_s2_p1(x)
    for blocks in params["stages"]:
        for blk in blocks:
            x = _bottleneck(x, blk)
    feat = global_avgpool(x)                              # (B, 2048) == cnn(images), fc=Identity
    z = jnp.concatenate([feat, ftrs.astype(jnp.float32)], axis=1)   # K padded to 128x inside
    fc = params["fc"]
    if params["hidden_units"]:
        for layer in fc[:-1]:
            z = fused_matmul(z, layer, act="sigmoid", out_dtype=jnp.float32)
        out = fused_matmul(z, fc[-1], act="none", out_dtype=jnp.float32)
    else:
        out = fused_matmul(z, fc[0], act="none", out_dtype=jnp.float32)
    return out                                            # (B, 1)


if __name__ == "__main__":
    key = jax.random.PRNGKey(0)
    k_params, k_img, k_ftrs = jax.random.split(key, 3)

    num_ftrs = 4
    hidden_units = [32]            # exercises the Linear+Sigmoid ... +Linear(…,1) head
    batch, spatial = 2, 16

    params = init_price_model_params(k_params, num_ftrs=num_ftrs, hidden_units=hidden_units)
    images = jax.random.normal(k_img, (batch, 3, spatial, spatial), jnp.float32)
    ftrs = jax.random.normal(k_ftrs, (batch, num_ftrs), jnp.float32)

    forward = jax.jit(lambda imgs, f: price_model_forward(params, imgs, f))
    out = jax.block_until_ready(forward(images, ftrs))
    assert out.shape == (batch, 1) and out.dtype == jnp.float32
    print("KERNEL_OK")
</pallas_src>

<mosaic_0001>
module attributes {stable_mosaic.version = 11 : i64} {
  func.func @kernel(%arg0: i32, %arg1: i32, %arg2: i32, %arg3: memref<128x256xbf16, #tpu.memory_space<vmem>>, %arg4: memref<256x128xbf16, #tpu.memory_space<vmem>>, %arg5: memref<1x128xf32, #tpu.memory_space<vmem>>, %arg6: memref<128x128xbf16, #tpu.memory_space<vmem>>, %arg7: memref<128x128xf32, #tpu.memory_space<vmem>>) attributes {dimension_semantics = [#tpu.dimension_semantics<parallel>, #tpu.dimension_semantics<parallel>, #tpu.dimension_semantics<arbitrary>], iteration_bounds = array<i64: 1, 1, 1>, scalar_prefetch = 0 : i64, scratch_operands = 1 : i64, tpu.core_type = #tpu.core_type<tc>, window_params = [{transform_indices = @transform_0, window_bounds = array<i64: 128, 256>}, {transform_indices = @transform_1, window_bounds = array<i64: 256, 128>}, {transform_indices = @transform_2, window_bounds = array<i64: 1, 128>}, {transform_indices = @transform_3, window_bounds = array<i64: 128, 128>}]} {
    %c0_i32 = arith.constant 0 : i32
    %0 = arith.cmpi eq, %arg2, %c0_i32 : i32
    %1 = arith.extui %0 : i1 to i32
    %c0_i32_0 = arith.constant 0 : i32
    %2 = arith.cmpi ne, %1, %c0_i32_0 : i32
    scf.if %2 {
      %cst_10 = arith.constant 0.000000e+00 : f32
      %12 = vector.broadcast %cst_10 : f32 to vector<128x128xf32>
      %c0_11 = arith.constant 0 : index
      %c0_12 = arith.constant 0 : index
      %13 = vector.load %arg7[%c0_11, %c0_12] : memref<128x128xf32, #tpu.memory_space<vmem>>, vector<128x128xf32>
      tpu.vector_store %arg7[%c0_11, %c0_12], %12 {strides = array<i32>} : memref<128x128xf32, #tpu.memory_space<vmem>>, vector<128x128xf32>,
    } else {
    }
    %c0 = arith.constant 0 : index
    %c0_1 = arith.constant 0 : index
    %3 = vector.load %arg7[%c0, %c0_1] : memref<128x128xf32, #tpu.memory_space<vmem>>, vector<128x128xf32>
    %c0_2 = arith.constant 0 : index
    %c0_3 = arith.constant 0 : index
    %4 = vector.load %arg3[%c0_2, %c0_3] : memref<128x256xbf16, #tpu.memory_space<vmem>>, vector<128x256xbf16>
    %c0_4 = arith.constant 0 : index
    %c0_5 = arith.constant 0 : index
    %5 = vector.load %arg4[%c0_4, %c0_5] : memref<256x128xbf16, #tpu.memory_space<vmem>>, vector<256x128xbf16>
    %cst = arith.constant dense<0.000000e+00> : vector<128x128xf32>
    %6 = tpu.matmul %4, %5, %cst {dimension_numbers = #tpu.dot_dimension_numbers<[1], [0], [0], [1], [0, 0, 1, 1], [], []>} : vector<128x256xbf16>, vector<256x128xbf16>, vector<128x128xf32> -> vector<128x128xf32>
    %7 = arith.addf %3, %6 : vector<128x128xf32>
    %c0_6 = arith.constant 0 : index
    %c0_7 = arith.constant 0 : index
    %8 = vector.load %arg7[%c0_6, %c0_7] : memref<128x128xf32, #tpu.memory_space<vmem>>, vector<128x128xf32>
    tpu.vector_store %arg7[%c0_6, %c0_7], %7 {strides = array<i32>} : memref<128x128xf32, #tpu.memory_space<vmem>>, vector<128x128xf32>,
    %c0_i32_8 = arith.constant 0 : i32
    %9 = arith.cmpi eq, %arg2, %c0_i32_8 : i32
    %10 = arith.extui %9 : i1 to i32
    %c0_i32_9 = arith.constant 0 : i32
    %11 = arith.cmpi ne, %10, %c0_i32_9 : i32
    scf.if %11 {
      %c0_10 = arith.constant 0 : index
      %c0_11 = arith.constant 0 : index
      %12 = vector.load %arg7[%c0_10, %c0_11] : memref<128x128xf32, #tpu.memory_space<vmem>>, vector<128x128xf32>
      %c0_12 = arith.constant 0 : index
      %c0_13 = arith.constant 0 : index
      %13 = vector.load %arg5[%c0_12, %c0_13] : memref<1x128xf32, #tpu.memory_space<vmem>>, vector<1x128xf32>
      %14 = vector.broadcast %13 : vector<1x128xf32> to vector<128x128xf32>
      %15 = arith.addf %12, %14 : vector<128x128xf32>
      %cst_14 = arith.constant 0.000000e+00 : f32
      %16 = vector.broadcast %cst_14 : f32 to vector<128x128xf32>
      %17 = arith.maximumf %15, %16 : vector<128x128xf32>
      %18 = arith.truncf %17 : vector<128x128xf32> to vector<128x128xbf16>
      %c0_15 = arith.constant 0 : index
      %c0_16 = arith.constant 0 : index
      %19 = vector.load %arg6[%c0_15, %c0_16] : memref<128x128xbf16, #tpu.memory_space<vmem>>, vector<128x128xbf16>
      tpu.vector_store %arg6[%c0_15, %c0_16], %18 {strides = array<i32>} : memref<128x128xbf16, #tpu.memory_space<vmem>>, vector<128x128xbf16>,
    } else {
    }
    return
  }
  func.func @transform_0(%arg0: i32, %arg1: i32, %arg2: i32) -> (i32, i32) {
    %c0_i32 = arith.constant 0 : i32
    return %arg0, %arg2 : i32, i32
  }
  func.func @transform_1(%arg0: i32, %arg1: i32, %arg2: i32) -> (i32, i32) {
    %c0_i32 = arith.constant 0 : i32
    return %arg2, %arg1 : i32, i32
  }
  func.func @transform_2(%arg0: i32, %arg1: i32, %arg2: i32) -> (i32, i32) {
    %c0_i32 = arith.constant 0 : i32
    %c0_i32_0 = arith.constant 0 : i32
    return %c0_i32, %arg1 : i32, i32
  }
  func.func @transform_3(%arg0: i32, %arg1: i32, %arg2: i32) -> (i32, i32) {
    %c0_i32 = arith.constant 0 : i32
    return %arg0, %arg1 : i32, i32
  }
}

module attributes {stable_mosaic.version = 11 : i64} {
  func.func @kernel(%arg0: i32, %arg1: i32, %arg2: i32, %arg3: memref<32x128xbf16, #tpu.memory_space<vmem>>, %arg4: memref<128x128xbf16, #tpu.memory_space<vmem>>, %arg5: memref<1x128xf32, #tpu.memory_space<vmem>>, %arg6: memref<32x128xbf16, #tpu.memory_space<vmem>>, %arg7: memref<32x128xf32, #tpu.memory_space<vmem>>) attributes {dimension_semantics = [#tpu.dimension_semantics<parallel>, #tpu.dimension_semantics<parallel>, #tpu.dimension_semantics<arbitrary>], iteration_bounds = array<i64: 1, 1, 1>, scalar_prefetch = 0 : i64, scratch_operands = 1 : i64, tpu.core_type = #tpu.core_type<tc>, window_params = [{transform_indices = @transform_0, window_bounds = array<i64: 32, 128>}, {transform_indices = @transform_1, window_bounds = array<i64: 128, 128>}, {transform_indices = @transform_2, window_bounds = array<i64: 1, 128>}, {transform_indices = @transform_3, window_bounds = array<i64: 32, 128>}]} {
    %c0_i32 = arith.constant 0 : i32
    %0 = arith.cmpi eq, %arg2, %c0_i32 : i32
    %1 = arith.extui %0 : i1 to i32
    %c0_i32_0 = arith.constant 0 : i32
    %2 = arith.cmpi ne, %1, %c0_i32_0 : i32
    scf.if %2 {
      %cst_10 = arith.constant 0.000000e+00 : f32
      %12 = vector.broadcast %cst_10 : f32 to vector<32x128xf32>
      %c0_11 = arith.constant 0 : index
      %c0_12 = arith.constant 0 : index
      %13 = vector.load %arg7[%c0_11, %c0_12] : memref<32x128xf32, #tpu.memory_space<vmem>>, vector<32x128xf32>
      tpu.vector_store %arg7[%c0_11, %c0_12], %12 {strides = array<i32>} : memref<32x128xf32, #tpu.memory_space<vmem>>, vector<32x128xf32>,
    } else {
    }
    %c0 = arith.constant 0 : index
    %c0_1 = arith.constant 0 : index
    %3 = vector.load %arg7[%c0, %c0_1] : memref<32x128xf32, #tpu.memory_space<vmem>>, vector<32x128xf32>
    %c0_2 = arith.constant 0 : index
    %c0_3 = arith.constant 0 : index
    %4 = vector.load %arg3[%c0_2, %c0_3] : memref<32x128xbf16, #tpu.memory_space<vmem>>, vector<32x128xbf16>
    %c0_4 = arith.constant 0 : index
    %c0_5 = arith.constant 0 : index
    %5 = vector.load %arg4[%c0_4, %c0_5] : memref<128x128xbf16, #tpu.memory_space<vmem>>, vector<128x128xbf16>
    %cst = arith.constant dense<0.000000e+00> : vector<32x128xf32>
    %6 = tpu.matmul %4, %5, %cst {dimension_numbers = #tpu.dot_dimension_numbers<[1], [0], [0], [1], [0, 0, 1, 1], [], []>} : vector<32x128xbf16>, vector<128x128xbf16>, vector<32x128xf32> -> vector<32x128xf32>
    %7 = arith.addf %3, %6 : vector<32x128xf32>
    %c0_6 = arith.constant 0 : index
    %c0_7 = arith.constant 0 : index
    %8 = vector.load %arg7[%c0_6, %c0_7] : memref<32x128xf32, #tpu.memory_space<vmem>>, vector<32x128xf32>
    tpu.vector_store %arg7[%c0_6, %c0_7], %7 {strides = array<i32>} : memref<32x128xf32, #tpu.memory_space<vmem>>, vector<32x128xf32>,
    %c0_i32_8 = arith.constant 0 : i32
    %9 = arith.cmpi eq, %arg2, %c0_i32_8 : i32
    %10 = arith.extui %9 : i1 to i32
    %c0_i32_9 = arith.constant 0 : i32
    %11 = arith.cmpi ne, %10, %c0_i32_9 : i32
    scf.if %11 {
      %c0_10 = arith.constant 0 : index
      %c0_11 = arith.constant 0 : index
      %12 = vector.load %arg7[%c0_10, %c0_11] : memref<32x128xf32, #tpu.memory_space<vmem>>, vector<32x128xf32>
      %c0_12 = arith.constant 0 : index
      %c0_13 = arith.constant 0 : index
      %13 = vector.load %arg5[%c0_12, %c0_13] : memref<1x128xf32, #tpu.memory_space<vmem>>, vector<1x128xf32>
      %14 = vector.broadcast %13 : vector<1x128xf32> to vector<32x128xf32>
      %15 = arith.addf %12, %14 : vector<32x128xf32>
      %cst_14 = arith.constant 0.000000e+00 : f32
      %16 = vector.broadcast %cst_14 : f32 to vector<32x128xf32>
      %17 = arith.maximumf %15, %16 : vector<32x128xf32>
      %18 = arith.truncf %17 : vector<32x128xf32> to vector<32x128xbf16>
      %c0_15 = arith.constant 0 : index
      %c0_16 = arith.constant 0 : index
      %19 = vector.load %arg6[%c0_15, %c0_16] : memref<32x128xbf16, #tpu.memory_space<vmem>>, vector<32x128xbf16>
      tpu.vector_store %arg6[%c0_15, %c0_16], %18 {strides = array<i32>} : memref<32x128xbf16, #tpu.memory_space<vmem>>, vector<32x128xbf16>,
    } else {
    }
    return
  }
  func.func @transform_0(%arg0: i32, %arg1: i32, %arg2: i32) -> (i32, i32) {
    %c0_i32 = arith.constant 0 : i32
    return %arg0, %arg2 : i32, i32
  }
  func.func @transform_1(%arg0: i32, %arg1: i32, %arg2: i32) -> (i32, i32) {
    %c0_i32 = arith.constant 0 : i32
    return %arg2, %arg1 : i32, i32
  }
  func.func @transform_2(%arg0: i32, %arg1: i32, %arg2: i32) -> (i32, i32) {
    %c0_i32 = arith.constant 0 : i32
    %c0_i32_0 = arith.constant 0 : i32
    return %c0_i32, %arg1 : i32, i32
  }
  func.func @transform_3(%arg0: i32, %arg1: i32, %arg2: i32) -> (i32, i32) {
    %c0_i32 = arith.constant 0 : i32
    return %arg0, %arg1 : i32, i32
  }
}

module attributes {stable_mosaic.version = 11 : i64} {
  func.func @_maxpool_kernel(%arg0: memref<10x10x2x64xbf16, #tpu.memory_space<vmem>>, %arg1: memref<8x8x2x64xbf16, #tpu.memory_space<vmem>>) attributes {dimension_semantics = [], scalar_prefetch = 0 : i64, scratch_operands = 0 : i64, tpu.core_type = #tpu.core_type<tc>} {
    %c0 = arith.constant 0 : index
    %c0_0 = arith.constant 0 : index
    %c0_1 = arith.constant 0 : index
    %c0_2 = arith.constant 0 : index
    %0 = vector.load %arg0[%c0, %c0_0, %c0_1, %c0_2] : memref<10x10x2x64xbf16, #tpu.memory_space<vmem>>, vector<10x10x2x64xbf16>
    %1 = vector.extract_strided_slice %0 {offsets = [0, 0, 0, 0], sizes = [8, 8, 2, 64], strides = [1, 1, 1, 1]} : vector<10x10x2x64xbf16> to vector<8x8x2x64xbf16>
    %2 = vector.extract_strided_slice %0 {offsets = [0, 1, 0, 0], sizes = [8, 8, 2, 64], strides = [1, 1, 1, 1]} : vector<10x10x2x64xbf16> to vector<8x8x2x64xbf16>
    %3 = arith.maximumf %1, %2 : vector<8x8x2x64xbf16>
    %4 = vector.extract_strided_slice %0 {offsets = [0, 2, 0, 0], sizes = [8, 8, 2, 64], strides = [1, 1, 1, 1]} : vector<10x10x2x64xbf16> to vector<8x8x2x64xbf16>
    %5 = arith.maximumf %3, %4 : vector<8x8x2x64xbf16>
    %6 = vector.extract_strided_slice %0 {offsets = [1, 0, 0, 0], sizes = [8, 8, 2, 64], strides = [1, 1, 1, 1]} : vector<10x10x2x64xbf16> to vector<8x8x2x64xbf16>
    %7 = arith.maximumf %5, %6 : vector<8x8x2x64xbf16>
    %8 = vector.extract_strided_slice %0 {offsets = [1, 1, 0, 0], sizes = [8, 8, 2, 64], strides = [1, 1, 1, 1]} : vector<10x10x2x64xbf16> to vector<8x8x2x64xbf16>
    %9 = arith.maximumf %7, %8 : vector<8x8x2x64xbf16>
    %10 = vector.extract_strided_slice %0 {offsets = [1, 2, 0, 0], sizes = [8, 8, 2, 64], strides = [1, 1, 1, 1]} : vector<10x10x2x64xbf16> to vector<8x8x2x64xbf16>
    %11 = arith.maximumf %9, %10 : vector<8x8x2x64xbf16>
    %12 = vector.extract_strided_slice %0 {offsets = [2, 0, 0, 0], sizes = [8, 8, 2, 64], strides = [1, 1, 1, 1]} : vector<10x10x2x64xbf16> to vector<8x8x2x64xbf16>
    %13 = arith.maximumf %11, %12 : vector<8x8x2x64xbf16>
    %14 = vector.extract_strided_slice %0 {offsets = [2, 1, 0, 0], sizes = [8, 8, 2, 64], strides = [1, 1, 1, 1]} : vector<10x10x2x64xbf16> to vector<8x8x2x64xbf16>
    %15 = arith.maximumf %13, %14 : vector<8x8x2x64xbf16>
    %16 = vector.extract_strided_slice %0 {offsets = [2, 2, 0, 0], sizes = [8, 8, 2, 64], strides = [1, 1, 1, 1]} : vector<10x10x2x64xbf16> to vector<8x8x2x64xbf16>
    %17 = arith.maximumf %15, %16 : vector<8x8x2x64xbf16>
    %c0_3 = arith.constant 0 : index
    %c0_4 = arith.constant 0 : index
    %c0_5 = arith.constant 0 : index
    %c0_6 = arith.constant 0 : index
    %18 = vector.load %arg1[%c0_3, %c0_4, %c0_5, %c0_6] : memref<8x8x2x64xbf16, #tpu.memory_space<vmem>>, vector<8x8x2x64xbf16>
    tpu.vector_store %arg1[%c0_3, %c0_4, %c0_5, %c0_6], %17 {strides = array<i32>} : memref<8x8x2x64xbf16, #tpu.memory_space<vmem>>, vector<8x8x2x64xbf16>,
    return
  }
}

module attributes {stable_mosaic.version = 11 : i64} {
  func.func @kernel(%arg0: i32, %arg1: i32, %arg2: i32, %arg3: memref<32x128xbf16, #tpu.memory_space<vmem>>, %arg4: memref<128x128xbf16, #tpu.memory_space<vmem>>, %arg5: memref<1x128xf32, #tpu.memory_space<vmem>>, %arg6: memref<32x128xbf16, #tpu.memory_space<vmem>>, %arg7: memref<32x128xf32, #tpu.memory_space<vmem>>) attributes {dimension_semantics = [#tpu.dimension_semantics<parallel>, #tpu.dimension_semantics<parallel>, #tpu.dimension_semantics<arbitrary>], iteration_bounds = array<i64: 1, 1, 5>, scalar_prefetch = 0 : i64, scratch_operands = 1 : i64, tpu.core_type = #tpu.core_type<tc>, window_params = [{transform_indices = @transform_0, window_bounds = array<i64: 32, 128>}, {transform_indices = @transform_1, window_bounds = array<i64: 128, 128>}, {transform_indices = @transform_2, window_bounds = array<i64: 1, 128>}, {transform_indices = @transform_3, window_bounds = array<i64: 32, 128>}]} {
    %c0_i32 = arith.constant 0 : i32
    %0 = arith.cmpi eq, %arg2, %c0_i32 : i32
    %1 = arith.extui %0 : i1 to i32
    %c0_i32_0 = arith.constant 0 : i32
    %2 = arith.cmpi ne, %1, %c0_i32_0 : i32
    scf.if %2 {
      %cst_9 = arith.constant 0.000000e+00 : f32
      %12 = vector.broadcast %cst_9 : f32 to vector<32x128xf32>
      %c0_10 = arith.constant 0 : index
      %c0_11 = arith.constant 0 : index
      %13 = vector.load %arg7[%c0_10, %c0_11] : memref<32x128xf32, #tpu.memory_space<vmem>>, vector<32x128xf32>
      tpu.vector_store %arg7[%c0_10, %c0_11], %12 {strides = array<i32>} : memref<32x128xf32, #tpu.memory_space<vmem>>, vector<32x128xf32>,
    } else {
    }
    %c0 = arith.constant 0 : index
    %c0_1 = arith.constant 0 : index
    %3 = vector.load %arg7[%c0, %c0_1] : memref<32x128xf32, #tpu.memory_space<vmem>>, vector<32x128xf32>
    %c0_2 = arith.constant 0 : index
    %c0_3 = arith.constant 0 : index
    %4 = vector.load %arg3[%c0_2, %c0_3] : memref<32x128xbf16, #tpu.memory_space<vmem>>, vector<32x128xbf16>
    %c0_4 = arith.constant 0 : index
    %c0_5 = arith.constant 0 : index
    %5 = vector.load %arg4[%c0_4, %c0_5] : memref<128x128xbf16, #tpu.memory_space<vmem>>, vector<128x128xbf16>
    %cst = arith.constant dense<0.000000e+00> : vector<32x128xf32>
    %6 = tpu.matmul %4, %5, %cst {dimension_numbers = #tpu.dot_dimension_numbers<[1], [0], [0], [1], [0, 0, 1, 1], [], []>} : vector<32x128xbf16>, vector<128x128xbf16>, vector<32x128xf32> -> vector<32x128xf32>
    %7 = arith.addf %3, %6 : vector<32x128xf32>
    %c0_6 = arith.constant 0 : index
    %c0_7 = arith.constant 0 : index
    %8 = vector.load %arg7[%c0_6, %c0_7] : memref<32x128xf32, #tpu.memory_space<vmem>>, vector<32x128xf32>
    tpu.vector_store %arg7[%c0_6, %c0_7], %7 {strides = array<i32>} : memref<32x128xf32, #tpu.memory_space<vmem>>, vector<32x128xf32>,
    %c4_i32 = arith.constant 4 : i32
    %9 = arith.cmpi eq, %arg2, %c4_i32 : i32
    %10 = arith.extui %9 : i1 to i32
    %c0_i32_8 = arith.constant 0 : i32
    %11 = arith.cmpi ne, %10, %c0_i32_8 : i32
    scf.if %11 {
      %c0_9 = arith.constant 0 : index
      %c0_10 = arith.constant 0 : index
      %12 = vector.load %arg7[%c0_9, %c0_10] : memref<32x128xf32, #tpu.memory_space<vmem>>, vector<32x128xf32>
      %c0_11 = arith.constant 0 : index
      %c0_12 = arith.constant 0 : index
      %13 = vector.load %arg5[%c0_11, %c0_12] : memref<1x128xf32, #tpu.memory_space<vmem>>, vector<1x128xf32>
      %14 = vector.broadcast %13 : vector<1x128xf32> to vector<32x128xf32>
      %15 = arith.addf %12, %14 : vector<32x128xf32>
      %cst_13 = arith.constant 0.000000e+00 : f32
      %16 = vector.broadcast %cst_13 : f32 to vector<32x128xf32>
      %17 = arith.maximumf %15, %16 : vector<32x128xf32>
      %18 = arith.truncf %17 : vector<32x128xf32> to vector<32x128xbf16>
      %c0_14 = arith.constant 0 : index
      %c0_15 = arith.constant 0 : index
      %19 = vector.load %arg6[%c0_14, %c0_15] : memref<32x128xbf16, #tpu.memory_space<vmem>>, vector<32x128xbf16>
      tpu.vector_store %arg6[%c0_14, %c0_15], %18 {strides = array<i32>} : memref<32x128xbf16, #tpu.memory_space<vmem>>, vector<32x128xbf16>,
    } else {
    }
    return
  }
  func.func @transform_0(%arg0: i32, %arg1: i32, %arg2: i32) -> (i32, i32) {
    %c0_i32 = arith.constant 0 : i32
    return %arg0, %arg2 : i32, i32
  }
  func.func @transform_1(%arg0: i32, %arg1: i32, %arg2: i32) -> (i32, i32) {
    %c0_i32 = arith.constant 0 : i32
    return %arg2, %arg1 : i32, i32
  }
  func.func @transform_2(%arg0: i32, %arg1: i32, %arg2: i32) -> (i32, i32) {
    %c0_i32 = arith.constant 0 : i32
    %c0_i32_0 = arith.constant 0 : i32
    return %c0_i32, %arg1 : i32, i32
  }
  func.func @transform_3(%arg0: i32, %arg1: i32, %arg2: i32) -> (i32, i32) {
    %c0_i32 = arith.constant 0 : i32
    return %arg0, %arg1 : i32, i32
  }
}

module attributes {stable_mosaic.version = 11 : i64} {
  func.func @kernel(%arg0: i32, %arg1: i32, %arg2: i32, %arg3: memref<32x128xbf16, #tpu.memory_space<vmem>>, %arg4: memref<128x256xbf16, #tpu.memory_space<vmem>>, %arg5: memref<1x256xf32, #tpu.memory_space<vmem>>, %arg6: memref<32x256xbf16, #tpu.memory_space<vmem>>, %arg7: memref<32x256xf32, #tpu.memory_space<vmem>>) attributes {dimension_semantics = [#tpu.dimension_semantics<parallel>, #tpu.dimension_semantics<parallel>, #tpu.dimension_semantics<arbitrary>], iteration_bounds = array<i64: 1, 1, 1>, scalar_prefetch = 0 : i64, scratch_operands = 1 : i64, tpu.core_type = #tpu.core_type<tc>, window_params = [{transform_indices = @transform_0, window_bounds = array<i64: 32, 128>}, {transform_indices = @transform_1, window_bounds = array<i64: 128, 256>}, {transform_indices = @transform_2, window_bounds = array<i64: 1, 256>}, {transform_indices = @transform_3, window_bounds = array<i64: 32, 256>}]} {
    %c0_i32 = arith.constant 0 : i32
    %0 = arith.cmpi eq, %arg2, %c0_i32 : i32
    %1 = arith.extui %0 : i1 to i32
    %c0_i32_0 = arith.constant 0 : i32
    %2 = arith.cmpi ne, %1, %c0_i32_0 : i32
    scf.if %2 {
      %cst_10 = arith.constant 0.000000e+00 : f32
      %12 = vector.broadcast %cst_10 : f32 to vector<32x256xf32>
      %c0_11 = arith.constant 0 : index
      %c0_12 = arith.constant 0 : index
      %13 = vector.load %arg7[%c0_11, %c0_12] : memref<32x256xf32, #tpu.memory_space<vmem>>, vector<32x256xf32>
      tpu.vector_store %arg7[%c0_11, %c0_12], %12 {strides = array<i32>} : memref<32x256xf32, #tpu.memory_space<vmem>>, vector<32x256xf32>,
    } else {
    }
    %c0 = arith.constant 0 : index
    %c0_1 = arith.constant 0 : index
    %3 = vector.load %arg7[%c0, %c0_1] : memref<32x256xf32, #tpu.memory_space<vmem>>, vector<32x256xf32>
    %c0_2 = arith.constant 0 : index
    %c0_3 = arith.constant 0 : index
    %4 = vector.load %arg3[%c0_2, %c0_3] : memref<32x128xbf16, #tpu.memory_space<vmem>>, vector<32x128xbf16>
    %c0_4 = arith.constant 0 : index
    %c0_5 = arith.constant 0 : index
    %5 = vector.load %arg4[%c0_4, %c0_5] : memref<128x256xbf16, #tpu.memory_space<vmem>>, vector<128x256xbf16>
    %cst = arith.constant dense<0.000000e+00> : vector<32x256xf32>
    %6 = tpu.matmul %4, %5, %cst {dimension_numbers = #tpu.dot_dimension_numbers<[1], [0], [0], [1], [0, 0, 1, 1], [], []>} : vector<32x128xbf16>, vector<128x256xbf16>, vector<32x256xf32> -> vector<32x256xf32>
    %7 = arith.addf %3, %6 : vector<32x256xf32>
    %c0_6 = arith.constant 0 : index
    %c0_7 = arith.constant 0 : index
    %8 = vector.load %arg7[%c0_6, %c0_7] : memref<32x256xf32, #tpu.memory_space<vmem>>, vector<32x256xf32>
    tpu.vector_store %arg7[%c0_6, %c0_7], %7 {strides = array<i32>} : memref<32x256xf32, #tpu.memory_space<vmem>>, vector<32x256xf32>,
    %c0_i32_8 = arith.constant 0 : i32
    %9 = arith.cmpi eq, %arg2, %c0_i32_8 : i32
    %10 = arith.extui %9 : i1 to i32
    %c0_i32_9 = arith.constant 0 : i32
    %11 = arith.cmpi ne, %10, %c0_i32_9 : i32
    scf.if %11 {
      %c0_10 = arith.constant 0 : index
      %c0_11 = arith.constant 0 : index
      %12 = vector.load %arg7[%c0_10, %c0_11] : memref<32x256xf32, #tpu.memory_space<vmem>>, vector<32x256xf32>
      %c0_12 = arith.constant 0 : index
      %c0_13 = arith.constant 0 : index
      %13 = vector.load %arg5[%c0_12, %c0_13] : memref<1x256xf32, #tpu.memory_space<vmem>>, vector<1x256xf32>
      %14 = vector.broadcast %13 : vector<1x256xf32> to vector<32x256xf32>
      %15 = arith.addf %12, %14 : vector<32x256xf32>
      %16 = arith.truncf %15 : vector<32x256xf32> to vector<32x256xbf16>
      %c0_14 = arith.constant 0 : index
      %c0_15 = arith.constant 0 : index
      %17 = vector.load %arg6[%c0_14, %c0_15] : memref<32x256xbf16, #tpu.memory_space<vmem>>, vector<32x256xbf16>
      tpu.vector_store %arg6[%c0_14, %c0_15], %16 {strides = array<i32>} : memref<32x256xbf16, #tpu.memory_space<vmem>>, vector<32x256xbf16>,
    } else {
    }
    return
  }
  func.func @transform_0(%arg0: i32, %arg1: i32, %arg2: i32) -> (i32, i32) {
    %c0_i32 = arith.constant 0 : i32
    return %arg0, %arg2 : i32, i32
  }
  func.func @transform_1(%arg0: i32, %arg1: i32, %arg2: i32) -> (i32, i32) {
    %c0_i32 = arith.constant 0 : i32
    return %arg2, %arg1 : i32, i32
  }
  func.func @transform_2(%arg0: i32, %arg1: i32, %arg2: i32) -> (i32, i32) {
    %c0_i32 = arith.constant 0 : i32
    %c0_i32_0 = arith.constant 0 : i32
    return %c0_i32, %arg1 : i32, i32
  }
  func.func @transform_3(%arg0: i32, %arg1: i32, %arg2: i32) -> (i32, i32) {
    %c0_i32 = arith.constant 0 : i32
    return %arg0, %arg1 : i32, i32
  }
}

module attributes {stable_mosaic.version = 11 : i64} {
  func.func @kernel(%arg0: i32, %arg1: i32, %arg2: i32, %arg3: memref<32x128xbf16, #tpu.memory_space<vmem>>, %arg4: memref<128x256xbf16, #tpu.memory_space<vmem>>, %arg5: memref<1x256xf32, #tpu.memory_space<vmem>>, %arg6: memref<32x256xbf16, #tpu.memory_space<vmem>>, %arg7: memref<32x256xbf16, #tpu.memory_space<vmem>>, %arg8: memref<32x256xf32, #tpu.memory_space<vmem>>) attributes {dimension_semantics = [#tpu.dimension_semantics<parallel>, #tpu.dimension_semantics<parallel>, #tpu.dimension_semantics<arbitrary>], iteration_bounds = array<i64: 1, 1, 1>, scalar_prefetch = 0 : i64, scratch_operands = 1 : i64, tpu.core_type = #tpu.core_type<tc>, window_params = [{transform_indices = @transform_0, window_bounds = array<i64: 32, 128>}, {transform_indices = @transform_1, window_bounds = array<i64: 128, 256>}, {transform_indices = @transform_2, window_bounds = array<i64: 1, 256>}, {transform_indices = @transform_3, window_bounds = array<i64: 32, 256>}, {transform_indices = @transform_4, window_bounds = array<i64: 32, 256>}]} {
    %c0_i32 = arith.constant 0 : i32
    %0 = arith.cmpi eq, %arg2, %c0_i32 : i32
    %1 = arith.extui %0 : i1 to i32
    %c0_i32_0 = arith.constant 0 : i32
    %2 = arith.cmpi ne, %1, %c0_i32_0 : i32
    scf.if %2 {
      %cst_10 = arith.constant 0.000000e+00 : f32
      %12 = vector.broadcast %cst_10 : f32 to vector<32x256xf32>
      %c0_11 = arith.constant 0 : index
      %c0_12 = arith.constant 0 : index
      %13 = vector.load %arg8[%c0_11, %c0_12] : memref<32x256xf32, #tpu.memory_space<vmem>>, vector<32x256xf32>
      tpu.vector_store %arg8[%c0_11, %c0_12], %12 {strides = array<i32>} : memref<32x256xf32, #tpu.memory_space<vmem>>, vector<32x256xf32>,
    } else {
    }
    %c0 = arith.constant 0 : index
    %c0_1 = arith.constant 0 : index
    %3 = vector.load %arg8[%c0, %c0_1] : memref<32x256xf32, #tpu.memory_space<vmem>>, vector<32x256xf32>
    %c0_2 = arith.constant 0 : index
    %c0_3 = arith.constant 0 : index
    %4 = vector.load %arg3[%c0_2, %c0_3] : memref<32x128xbf16, #tpu.memory_space<vmem>>, vector<32x128xbf16>
    %c0_4 = arith.constant 0 : index
    %c0_5 = arith.constant 0 : index
    %5 = vector.load %arg4[%c0_4, %c0_5] : memref<128x256xbf16, #tpu.memory_space<vmem>>, vector<128x256xbf16>
    %cst = arith.constant dense<0.000000e+00> : vector<32x256xf32>
    %6 = tpu.matmul %4, %5, %cst {dimension_numbers = #tpu.dot_dimension_numbers<[1], [0], [0], [1], [0, 0, 1, 1], [], []>} : vector<32x128xbf16>, vector<128x256xbf16>, vector<32x256xf32> -> vector<32x256xf32>
    %7 = arith.addf %3, %6 : vector<32x256xf32>
    %c0_6 = arith.constant 0 : index
    %c0_7 = arith.constant 0 : index
    %8 = vector.load %arg8[%c0_6, %c0_7] : memref<32x256xf32, #tpu.memory_space<vmem>>, vector<32x256xf32>
    tpu.vector_store %arg8[%c0_6, %c0_7], %7 {strides = array<i32>} : memref<32x256xf32, #tpu.memory_space<vmem>>, vector<32x256xf32>,
    %c0_i32_8 = arith.constant 0 : i32
    %9 = arith.cmpi eq, %arg2, %c0_i32_8 : i32
    %10 = arith.extui %9 : i1 to i32
    %c0_i32_9 = arith.constant 0 : i32
    %11 = arith.cmpi ne, %10, %c0_i32_9 : i32
    scf.if %11 {
      %c0_10 = arith.constant 0 : index
      %c0_11 = arith.constant 0 : index
      %12 = vector.load %arg8[%c0_10, %c0_11] : memref<32x256xf32, #tpu.memory_space<vmem>>, vector<32x256xf32>
      %c0_12 = arith.constant 0 : index
      %c0_13 = arith.constant 0 : index
      %13 = vector.load %arg5[%c0_12, %c0_13] : memref<1x256xf32, #tpu.memory_space<vmem>>, vector<1x256xf32>
      %14 = vector.broadcast %13 : vector<1x256xf32> to vector<32x256xf32>
      %15 = arith.addf %12, %14 : vector<32x256xf32>
      %c0_14 = arith.constant 0 : index
      %c0_15 = arith.constant 0 : index
      %16 = vector.load %arg6[%c0_14, %c0_15] : memref<32x256xbf16, #tpu.memory_space<vmem>>, vector<32x256xbf16>
      %17 = arith.extf %16 : vector<32x256xbf16> to vector<32x256xf32>
      %18 = arith.addf %15, %17 : vector<32x256xf32>
      %cst_16 = arith.constant 0.000000e+00 : f32
      %19 = vector.broadcast %cst_16 : f32 to vector<32x256xf32>
      %20 = arith.maximumf %18, %19 : vector<32x256xf32>
      %21 = arith.truncf %20 : vector<32x256xf32> to vector<32x256xbf16>
      %c0_17 = arith.constant 0 : index
      %c0_18 = arith.constant 0 : index
      %22 = vector.load %arg7[%c0_17, %c0_18] : memref<32x256xbf16, #tpu.memory_space<vmem>>, vector<32x256xbf16>
      tpu.vector_store %arg7[%c0_17, %c0_18], %21 {strides = array<i32>} : memref<32x256xbf16, #tpu.memory_space<vmem>>, vector<32x256xbf16>,
    } else {
    }
    return
  }
  func.func @transform_0(%arg0: i32, %arg1: i32, %arg2: i32) -> (i32, i32) {
    %c0_i32 = arith.constant 0 : i32
    return %arg0, %arg2 : i32, i32
  }
  func.func @transform_1(%arg0: i32, %arg1: i32, %arg2: i32) -> (i32, i32) {
    %c0_i32 = arith.constant 0 : i32
    return %arg2, %arg1 : i32, i32
  }
  func.func @transform_2(%arg0: i32, %arg1: i32, %arg2: i32) -> (i32, i32) {
    %c0_i32 = arith.constant 0 : i32
    %c0_i32_0 = arith.constant 0 : i32
    return %c0_i32, %arg1 : i32, i32
  }
  func.func @transform_3(%arg0: i32, %arg1: i32, %arg2: i32) -> (i32, i32) {
    %c0_i32 = arith.constant 0 : i32
    return %arg0, %arg1 : i32, i32
  }
  func.func @transform_4(%arg0: i32, %arg1: i32, %arg2: i32) -> (i32, i32) {
    %c0_i32 = arith.constant 0 : i32
    return %arg0, %arg1 : i32, i32
  }
}

module attributes {stable_mosaic.version = 11 : i64} {
  func.func @kernel(%arg0: i32, %arg1: i32, %arg2: i32, %arg3: memref<32x256xbf16, #tpu.memory_space<vmem>>, %arg4: memref<256x128xbf16, #tpu.memory_space<vmem>>, %arg5: memref<1x128xf32, #tpu.memory_space<vmem>>, %arg6: memref<32x128xbf16, #tpu.memory_space<vmem>>, %arg7: memref<32x128xf32, #tpu.memory_space<vmem>>) attributes {dimension_semantics = [#tpu.dimension_semantics<parallel>, #tpu.dimension_semantics<parallel>, #tpu.dimension_semantics<arbitrary>], iteration_bounds = array<i64: 1, 1, 1>, scalar_prefetch = 0 : i64, scratch_operands = 1 : i64, tpu.core_type = #tpu.core_type<tc>, window_params = [{transform_indices = @transform_0, window_bounds = array<i64: 32, 256>}, {transform_indices = @transform_1, window_bounds = array<i64: 256, 128>}, {transform_indices = @transform_2, window_bounds = array<i64: 1, 128>}, {transform_indices = @transform_3, window_bounds = array<i64: 32, 128>}]} {
    %c0_i32 = arith.constant 0 : i32
    %0 = arith.cmpi eq, %arg2, %c0_i32 : i32
    %1 = arith.extui %0 : i1 to i32
    %c0_i32_0 = arith.constant 0 : i32
    %2 = arith.cmpi ne, %1, %c0_i32_0 : i32
    scf.if %2 {
      %cst_10 = arith.constant 0.000000e+00 : f32
      %12 = vector.broadcast %cst_10 : f32 to vector<32x128xf32>
      %c0_11 = arith.constant 0 : index
      %c0_12 = arith.constant 0 : index
      %13 = vector.load %arg7[%c0_11, %c0_12] : memref<32x128xf32, #tpu.memory_space<vmem>>, vector<32x128xf32>
      tpu.vector_store %arg7[%c0_11, %c0_12], %12 {strides = array<i32>} : memref<32x128xf32, #tpu.memory_space<vmem>>, vector<32x128xf32>,
    } else {
    }
    %c0 = arith.constant 0 : index
    %c0_1 = arith.constant 0 : index
    %3 = vector.load %arg7[%c0, %c0_1] : memref<32x128xf32, #tpu.memory_space<vmem>>, vector<32x128xf32>
    %c0_2 = arith.constant 0 : index
    %c0_3 = arith.constant 0 : index
    %4 = vector.load %arg3[%c0_2, %c0_3] : memref<32x256xbf16, #tpu.memory_space<vmem>>, vector<32x256xbf16>
    %c0_4 = arith.constant 0 : index
    %c0_5 = arith.constant 0 : index
    %5 = vector.load %arg4[%c0_4, %c0_5] : memref<256x128xbf16, #tpu.memory_space<vmem>>, vector<256x128xbf16>
    %cst = arith.constant dense<0.000000e+00> : vector<32x128xf32>
    %6 = tpu.matmul %4, %5, %cst {dimension_numbers = #tpu.dot_dimension_numbers<[1], [0], [0], [1], [0, 0, 1, 1], [], []>} : vector<32x256xbf16>, vector<256x128xbf16>, vector<32x128xf32> -> vector<32x128xf32>
    %7 = arith.addf %3, %6 : vector<32x128xf32>
    %c0_6 = arith.constant 0 : index
    %c0_7 = arith.constant 0 : index
    %8 = vector.load %arg7[%c0_6, %c0_7] : memref<32x128xf32, #tpu.memory_space<vmem>>, vector<32x128xf32>
    tpu.vector_store %arg7[%c0_6, %c0_7], %7 {strides = array<i32>} : memref<32x128xf32, #tpu.memory_space<vmem>>, vector<32x128xf32>,
    %c0_i32_8 = arith.constant 0 : i32
    %9 = arith.cmpi eq, %arg2, %c0_i32_8 : i32
    %10 = arith.extui %9 : i1 to i32
    %c0_i32_9 = arith.constant 0 : i32
    %11 = arith.cmpi ne, %10, %c0_i32_9 : i32
    scf.if %11 {
      %c0_10 = arith.constant 0 : index
      %c0_11 = arith.constant 0 : index
      %12 = vector.load %arg7[%c0_10, %c0_11] : memref<32x128xf32, #tpu.memory_space<vmem>>, vector<32x128xf32>
      %c0_12 = arith.constant 0 : index
      %c0_13 = arith.constant 0 : index
      %13 = vector.load %arg5[%c0_12, %c0_13] : memref<1x128xf32, #tpu.memory_space<vmem>>, vector<1x128xf32>
      %14 = vector.broadcast %13 : vector<1x128xf32> to vector<32x128xf32>
      %15 = arith.addf %12, %14 : vector<32x128xf32>
      %cst_14 = arith.constant 0.000000e+00 : f32
      %16 = vector.broadcast %cst_14 : f32 to vector<32x128xf32>
      %17 = arith.maximumf %15, %16 : vector<32x128xf32>
      %18 = arith.truncf %17 : vector<32x128xf32> to vector<32x128xbf16>
      %c0_15 = arith.constant 0 : index
      %c0_16 = arith.constant 0 : index
      %19 = vector.load %arg6[%c0_15, %c0_16] : memref<32x128xbf16, #tpu.memory_space<vmem>>, vector<32x128xbf16>
      tpu.vector_store %arg6[%c0_15, %c0_16], %18 {strides = array<i32>} : memref<32x128xbf16, #tpu.memory_space<vmem>>, vector<32x128xbf16>,
    } else {
    }
    return
  }
  func.func @transform_0(%arg0: i32, %arg1: i32, %arg2: i32) -> (i32, i32) {
    %c0_i32 = arith.constant 0 : i32
    return %arg0, %arg2 : i32, i32
  }
  func.func @transform_1(%arg0: i32, %arg1: i32, %arg2: i32) -> (i32, i32) {
    %c0_i32 = arith.constant 0 : i32
    return %arg2, %arg1 : i32, i32
  }
  func.func @transform_2(%arg0: i32, %arg1: i32, %arg2: i32) -> (i32, i32) {
    %c0_i32 = arith.constant 0 : i32
    %c0_i32_0 = arith.constant 0 : i32
    return %c0_i32, %arg1 : i32, i32
  }
  func.func @transform_3(%arg0: i32, %arg1: i32, %arg2: i32) -> (i32, i32) {
    %c0_i32 = arith.constant 0 : i32
    return %arg0, %arg1 : i32, i32
  }
}

module attributes {stable_mosaic.version = 11 : i64} {
  func.func @kernel(%arg0: i32, %arg1: i32, %arg2: i32, %arg3: memref<8x256xbf16, #tpu.memory_space<vmem>>, %arg4: memref<256x256xbf16, #tpu.memory_space<vmem>>, %arg5: memref<1x256xf32, #tpu.memory_space<vmem>>, %arg6: memref<8x256xbf16, #tpu.memory_space<vmem>>, %arg7: memref<8x256xf32, #tpu.memory_space<vmem>>) attributes {dimension_semantics = [#tpu.dimension_semantics<parallel>, #tpu.dimension_semantics<parallel>, #tpu.dimension_semantics<arbitrary>], iteration_bounds = array<i64: 1, 2, 1>, scalar_prefetch = 0 : i64, scratch_operands = 1 : i64, tpu.core_type = #tpu.core_type<tc>, window_params = [{transform_indices = @transform_0, window_bounds = array<i64: 8, 256>}, {transform_indices = @transform_1, window_bounds = array<i64: 256, 256>}, {transform_indices = @transform_2, window_bounds = array<i64: 1, 256>}, {transform_indices = @transform_3, window_bounds = array<i64: 8, 256>}]} {
    %c0_i32 = arith.constant 0 : i32
    %0 = arith.cmpi eq, %arg2, %c0_i32 : i32
    %1 = arith.extui %0 : i1 to i32
    %c0_i32_0 = arith.constant 0 : i32
    %2 = arith.cmpi ne, %1, %c0_i32_0 : i32
    scf.if %2 {
      %cst_10 = arith.constant 0.000000e+00 : f32
      %12 = vector.broadcast %cst_10 : f32 to vector<8x256xf32>
      %c0_11 = arith.constant 0 : index
      %c0_12 = arith.constant 0 : index
      %13 = vector.load %arg7[%c0_11, %c0_12] : memref<8x256xf32, #tpu.memory_space<vmem>>, vector<8x256xf32>
      tpu.vector_store %arg7[%c0_11, %c0_12], %12 {strides = array<i32>} : memref<8x256xf32, #tpu.memory_space<vmem>>, vector<8x256xf32>,
    } else {
    }
    %c0 = arith.constant 0 : index
    %c0_1 = arith.constant 0 : index
    %3 = vector.load %arg7[%c0, %c0_1] : memref<8x256xf32, #tpu.memory_space<vmem>>, vector<8x256xf32>
    %c0_2 = arith.constant 0 : index
    %c0_3 = arith.constant 0 : index
    %4 = vector.load %arg3[%c0_2, %c0_3] : memref<8x256xbf16, #tpu.memory_space<vmem>>, vector<8x256xbf16>
    %c0_4 = arith.constant 0 : index
    %c0_5 = arith.constant 0 : index
    %5 = vector.load %arg4[%c0_4, %c0_5] : memref<256x256xbf16, #tpu.memory_space<vmem>>, vector<256x256xbf16>
    %cst = arith.constant dense<0.000000e+00> : vector<8x256xf32>
    %6 = tpu.matmul %4, %5, %cst {dimension_numbers = #tpu.dot_dimension_numbers<[1], [0], [0], [1], [0, 0, 1, 1], [], []>} : vector<8x256xbf16>, vector<256x256xbf16>, vector<8x256xf32> -> vector<8x256xf32>
    %7 = arith.addf %3, %6 : vector<8x256xf32>
    %c0_6 = arith.constant 0 : index
    %c0_7 = arith.constant 0 : index
    %8 = vector.load %arg7[%c0_6, %c0_7] : memref<8x256xf32, #tpu.memory_space<vmem>>, vector<8x256xf32>
    tpu.vector_store %arg7[%c0_6, %c0_7], %7 {strides = array<i32>} : memref<8x256xf32, #tpu.memory_space<vmem>>, vector<8x256xf32>,
    %c0_i32_8 = arith.constant 0 : i32
    %9 = arith.cmpi eq, %arg2, %c0_i32_8 : i32
    %10 = arith.extui %9 : i1 to i32
    %c0_i32_9 = arith.constant 0 : i32
    %11 = arith.cmpi ne, %10, %c0_i32_9 : i32
    scf.if %11 {
      %c0_10 = arith.constant 0 : index
      %c0_11 = arith.constant 0 : index
      %12 = vector.load %arg7[%c0_10, %c0_11] : memref<8x256xf32, #tpu.memory_space<vmem>>, vector<8x256xf32>
      %c0_12 = arith.constant 0 : index
      %c0_13 = arith.constant 0 : index
      %13 = vector.load %arg5[%c0_12, %c0_13] : memref<1x256xf32, #tpu.memory_space<vmem>>, vector<1x256xf32>
      %14 = vector.broadcast %13 : vector<1x256xf32> to vector<8x256xf32>
      %15 = arith.addf %12, %14 : vector<8x256xf32>
      %16 = arith.truncf %15 : vector<8x256xf32> to vector<8x256xbf16>
      %c0_14 = arith.constant 0 : index
      %c0_15 = arith.constant 0 : index
      %17 = vector.load %arg6[%c0_14, %c0_15] : memref<8x256xbf16, #tpu.memory_space<vmem>>, vector<8x256xbf16>
      tpu.vector_store %arg6[%c0_14, %c0_15], %16 {strides = array<i32>} : memref<8x256xbf16, #tpu.memory_space<vmem>>, vector<8x256xbf16>,
    } else {
    }
    return
  }
  func.func @transform_0(%arg0: i32, %arg1: i32, %arg2: i32) -> (i32, i32) {
    %c0_i32 = arith.constant 0 : i32
    return %arg0, %arg2 : i32, i32
  }
  func.func @transform_1(%arg0: i32, %arg1: i32, %arg2: i32) -> (i32, i32) {
    %c0_i32 = arith.constant 0 : i32
    return %arg2, %arg1 : i32, i32
  }
  func.func @transform_2(%arg0: i32, %arg1: i32, %arg2: i32) -> (i32, i32) {
    %c0_i32 = arith.constant 0 : i32
    %c0_i32_0 = arith.constant 0 : i32
    return %c0_i32, %arg1 : i32, i32
  }
  func.func @transform_3(%arg0: i32, %arg1: i32, %arg2: i32) -> (i32, i32) {
    %c0_i32 = arith.constant 0 : i32
    return %arg0, %arg1 : i32, i32
  }
}

module attributes {stable_mosaic.version = 11 : i64} {
  func.func @kernel(%arg0: i32, %arg1: i32, %arg2: i32, %arg3: memref<8x128xbf16, #tpu.memory_space<vmem>>, %arg4: memref<128x256xbf16, #tpu.memory_space<vmem>>, %arg5: memref<1x256xf32, #tpu.memory_space<vmem>>, %arg6: memref<8x256xbf16, #tpu.memory_space<vmem>>, %arg7: memref<8x256xbf16, #tpu.memory_space<vmem>>, %arg8: memref<8x256xf32, #tpu.memory_space<vmem>>) attributes {dimension_semantics = [#tpu.dimension_semantics<parallel>, #tpu.dimension_semantics<parallel>, #tpu.dimension_semantics<arbitrary>], iteration_bounds = array<i64: 1, 2, 1>, scalar_prefetch = 0 : i64, scratch_operands = 1 : i64, tpu.core_type = #tpu.core_type<tc>, window_params = [{transform_indices = @transform_0, window_bounds = array<i64: 8, 128>}, {transform_indices = @transform_1, window_bounds = array<i64: 128, 256>}, {transform_indices = @transform_2, window_bounds = array<i64: 1, 256>}, {transform_indices = @transform_3, window_bounds = array<i64: 8, 256>}, {transform_indices = @transform_4, window_bounds = array<i64: 8, 256>}]} {
    %c0_i32 = arith.constant 0 : i32
    %0 = arith.cmpi eq, %arg2, %c0_i32 : i32
    %1 = arith.extui %0 : i1 to i32
    %c0_i32_0 = arith.constant 0 : i32
    %2 = arith.cmpi ne, %1, %c0_i32_0 : i32
    scf.if %2 {
      %cst_10 = arith.constant 0.000000e+00 : f32
      %12 = vector.broadcast %cst_10 : f32 to vector<8x256xf32>
      %c0_11 = arith.constant 0 : index
      %c0_12 = arith.constant 0 : index
      %13 = vector.load %arg8[%c0_11, %c0_12] : memref<8x256xf32, #tpu.memory_space<vmem>>, vector<8x256xf32>
      tpu.vector_store %arg8[%c0_11, %c0_12], %12 {strides = array<i32>} : memref<8x256xf32, #tpu.memory_space<vmem>>, vector<8x256xf32>,
    } else {
    }
    %c0 = arith.constant 0 : index
    %c0_1 = arith.constant 0 : index
    %3 = vector.load %arg8[%c0, %c0_1] : memref<8x256xf32, #tpu.memory_space<vmem>>, vector<8x256xf32>
    %c0_2 = arith.constant 0 : index
    %c0_3 = arith.constant 0 : index
    %4 = vector.load %arg3[%c0_2, %c0_3] : memref<8x128xbf16, #tpu.memory_space<vmem>>, vector<8x128xbf16>
    %c0_4 = arith.constant 0 : index
    %c0_5 = arith.constant 0 : index
    %5 = vector.load %arg4[%c0_4, %c0_5] : memref<128x256xbf16, #tpu.memory_space<vmem>>, vector<128x256xbf16>
    %cst = arith.constant dense<0.000000e+00> : vector<8x256xf32>
    %6 = tpu.matmul %4, %5, %cst {dimension_numbers = #tpu.dot_dimension_numbers<[1], [0], [0], [1], [0, 0, 1, 1], [], []>} : vector<8x128xbf16>, vector<128x256xbf16>, vector<8x256xf32> -> vector<8x256xf32>
    %7 = arith.addf %3, %6 : vector<8x256xf32>
    %c0_6 = arith.constant 0 : index
    %c0_7 = arith.constant 0 : index
    %8 = vector.load %arg8[%c0_6, %c0_7] : memref<8x256xf32, #tpu.memory_space<vmem>>, vector<8x256xf32>
    tpu.vector_store %arg8[%c0_6, %c0_7], %7 {strides = array<i32>} : memref<8x256xf32, #tpu.memory_space<vmem>>, vector<8x256xf32>,
    %c0_i32_8 = arith.constant 0 : i32
    %9 = arith.cmpi eq, %arg2, %c0_i32_8 : i32
    %10 = arith.extui %9 : i1 to i32
    %c0_i32_9 = arith.constant 0 : i32
    %11 = arith.cmpi ne, %10, %c0_i32_9 : i32
    scf.if %11 {
      %c0_10 = arith.constant 0 : index
      %c0_11 = arith.constant 0 : index
      %12 = vector.load %arg8[%c0_10, %c0_11] : memref<8x256xf32, #tpu.memory_space<vmem>>, vector<8x256xf32>
      %c0_12 = arith.constant 0 : index
      %c0_13 = arith.constant 0 : index
      %13 = vector.load %arg5[%c0_12, %c0_13] : memref<1x256xf32, #tpu.memory_space<vmem>>, vector<1x256xf32>
      %14 = vector.broadcast %13 : vector<1x256xf32> to vector<8x256xf32>
      %15 = arith.addf %12, %14 : vector<8x256xf32>
      %c0_14 = arith.constant 0 : index
      %c0_15 = arith.constant 0 : index
      %16 = vector.load %arg6[%c0_14, %c0_15] : memref<8x256xbf16, #tpu.memory_space<vmem>>, vector<8x256xbf16>
      %17 = arith.extf %16 : vector<8x256xbf16> to vector<8x256xf32>
      %18 = arith.addf %15, %17 : vector<8x256xf32>
      %cst_16 = arith.constant 0.000000e+00 : f32
      %19 = vector.broadcast %cst_16 : f32 to vector<8x256xf32>
      %20 = arith.maximumf %18, %19 : vector<8x256xf32>
      %21 = arith.truncf %20 : vector<8x256xf32> to vector<8x256xbf16>
      %c0_17 = arith.constant 0 : index
      %c0_18 = arith.constant 0 : index
      %22 = vector.load %arg7[%c0_17, %c0_18] : memref<8x256xbf16, #tpu.memory_space<vmem>>, vector<8x256xbf16>
      tpu.vector_store %arg7[%c0_17, %c0_18], %21 {strides = array<i32>} : memref<8x256xbf16, #tpu.memory_space<vmem>>, vector<8x256xbf16>,
    } else {
    }
    return
  }
  func.func @transform_0(%arg0: i32, %arg1: i32, %arg2: i32) -> (i32, i32) {
    %c0_i32 = arith.constant 0 : i32
    return %arg0, %arg2 : i32, i32
  }
  func.func @transform_1(%arg0: i32, %arg1: i32, %arg2: i32) -> (i32, i32) {
    %c0_i32 = arith.constant 0 : i32
    return %arg2, %arg1 : i32, i32
  }
  func.func @transform_2(%arg0: i32, %arg1: i32, %arg2: i32) -> (i32, i32) {
    %c0_i32 = arith.constant 0 : i32
    %c0_i32_0 = arith.constant 0 : i32
    return %c0_i32, %arg1 : i32, i32
  }
  func.func @transform_3(%arg0: i32, %arg1: i32, %arg2: i32) -> (i32, i32) {
    %c0_i32 = arith.constant 0 : i32
    return %arg0, %arg1 : i32, i32
  }
  func.func @transform_4(%arg0: i32, %arg1: i32, %arg2: i32) -> (i32, i32) {
    %c0_i32 = arith.constant 0 : i32
    return %arg0, %arg1 : i32, i32
  }
}

module attributes {stable_mosaic.version = 11 : i64} {
  func.func @kernel(%arg0: i32, %arg1: i32, %arg2: i32, %arg3: memref<8x512xbf16, #tpu.memory_space<vmem>>, %arg4: memref<512x256xbf16, #tpu.memory_space<vmem>>, %arg5: memref<1x256xf32, #tpu.memory_space<vmem>>, %arg6: memref<8x256xbf16, #tpu.memory_space<vmem>>, %arg7: memref<8x256xf32, #tpu.memory_space<vmem>>) attributes {dimension_semantics = [#tpu.dimension_semantics<parallel>, #tpu.dimension_semantics<parallel>, #tpu.dimension_semantics<arbitrary>], iteration_bounds = array<i64: 1, 1, 1>, scalar_prefetch = 0 : i64, scratch_operands = 1 : i64, tpu.core_type = #tpu.core_type<tc>, window_params = [{transform_indices = @transform_0, window_bounds = array<i64: 8, 512>}, {transform_indices = @transform_1, window_bounds = array<i64: 512, 256>}, {transform_indices = @transform_2, window_bounds = array<i64: 1, 256>}, {transform_indices = @transform_3, window_bounds = array<i64: 8, 256>}]} {
    %c0_i32 = arith.constant 0 : i32
    %0 = arith.cmpi eq, %arg2, %c0_i32 : i32
    %1 = arith.extui %0 : i1 to i32
    %c0_i32_0 = arith.constant 0 : i32
    %2 = arith.cmpi ne, %1, %c0_i32_0 : i32
    scf.if %2 {
      %cst_10 = arith.constant 0.000000e+00 : f32
      %12 = vector.broadcast %cst_10 : f32 to vector<8x256xf32>
      %c0_11 = arith.constant 0 : index
      %c0_12 = arith.constant 0 : index
      %13 = vector.load %arg7[%c0_11, %c0_12] : memref<8x256xf32, #tpu.memory_space<vmem>>, vector<8x256xf32>
      tpu.vector_store %arg7[%c0_11, %c0_12], %12 {strides = array<i32>} : memref<8x256xf32, #tpu.memory_space<vmem>>, vector<8x256xf32>,
    } else {
    }
    %c0 = arith.constant 0 : index
    %c0_1 = arith.constant 0 : index
    %3 = vector.load %arg7[%c0, %c0_1] : memref<8x256xf32, #tpu.memory_space<vmem>>, vector<8x256xf32>
    %c0_2 = arith.constant 0 : index
    %c0_3 = arith.constant 0 : index
    %4 = vector.load %arg3[%c0_2, %c0_3] : memref<8x512xbf16, #tpu.memory_space<vmem>>, vector<8x512xbf16>
    %c0_4 = arith.constant 0 : index
    %c0_5 = arith.constant 0 : index
    %5 = vector.load %arg4[%c0_4, %c0_5] : memref<512x256xbf16, #tpu.memory_space<vmem>>, vector<512x256xbf16>
    %cst = arith.constant dense<0.000000e+00> : vector<8x256xf32>
    %6 = tpu.matmul %4, %5, %cst {dimension_numbers = #tpu.dot_dimension_numbers<[1], [0], [0], [1], [0, 0, 1, 1], [], []>} : vector<8x512xbf16>, vector<512x256xbf16>, vector<8x256xf32> -> vector<8x256xf32>
    %7 = arith.addf %3, %6 : vector<8x256xf32>
    %c0_6 = arith.constant 0 : index
    %c0_7 = arith.constant 0 : index
    %8 = vector.load %arg7[%c0_6, %c0_7] : memref<8x256xf32, #tpu.memory_space<vmem>>, vector<8x256xf32>
    tpu.vector_store %arg7[%c0_6, %c0_7], %7 {strides = array<i32>} : memref<8x256xf32, #tpu.memory_space<vmem>>, vector<8x256xf32>,
    %c0_i32_8 = arith.constant 0 : i32
    %9 = arith.cmpi eq, %arg2, %c0_i32_8 : i32
    %10 = arith.extui %9 : i1 to i32
    %c0_i32_9 = arith.constant 0 : i32
    %11 = arith.cmpi ne, %10, %c0_i32_9 : i32
    scf.if %11 {
      %c0_10 = arith.constant 0 : index
      %c0_11 = arith.constant 0 : index
      %12 = vector.load %arg7[%c0_10, %c0_11] : memref<8x256xf32, #tpu.memory_space<vmem>>, vector<8x256xf32>
      %c0_12 = arith.constant 0 : index
      %c0_13 = arith.constant 0 : index
      %13 = vector.load %arg5[%c0_12, %c0_13] : memref<1x256xf32, #tpu.memory_space<vmem>>, vector<1x256xf32>
      %14 = vector.broadcast %13 : vector<1x256xf32> to vector<8x256xf32>
      %15 = arith.addf %12, %14 : vector<8x256xf32>
      %cst_14 = arith.constant 0.000000e+00 : f32
      %16 = vector.broadcast %cst_14 : f32 to vector<8x256xf32>
      %17 = arith.maximumf %15, %16 : vector<8x256xf32>
      %18 = arith.truncf %17 : vector<8x256xf32> to vector<8x256xbf16>
      %c0_15 = arith.constant 0 : index
      %c0_16 = arith.constant 0 : index
      %19 = vector.load %arg6[%c0_15, %c0_16] : memref<8x256xbf16, #tpu.memory_space<vmem>>, vector<8x256xbf16>
      tpu.vector_store %arg6[%c0_15, %c0_16], %18 {strides = array<i32>} : memref<8x256xbf16, #tpu.memory_space<vmem>>, vector<8x256xbf16>,
    } else {
    }
    return
  }
  func.func @transform_0(%arg0: i32, %arg1: i32, %arg2: i32) -> (i32, i32) {
    %c0_i32 = arith.constant 0 : i32
    return %arg0, %arg2 : i32, i32
  }
  func.func @transform_1(%arg0: i32, %arg1: i32, %arg2: i32) -> (i32, i32) {
    %c0_i32 = arith.constant 0 : i32
    return %arg2, %arg1 : i32, i32
  }
  func.func @transform_2(%arg0: i32, %arg1: i32, %arg2: i32) -> (i32, i32) {
    %c0_i32 = arith.constant 0 : i32
    %c0_i32_0 = arith.constant 0 : i32
    return %c0_i32, %arg1 : i32, i32
  }
  func.func @transform_3(%arg0: i32, %arg1: i32, %arg2: i32) -> (i32, i32) {
    %c0_i32 = arith.constant 0 : i32
    return %arg0, %arg1 : i32, i32
  }
}

module attributes {stable_mosaic.version = 11 : i64} {
  func.func @kernel(%arg0: i32, %arg1: i32, %arg2: i32, %arg3: memref<8x128xbf16, #tpu.memory_space<vmem>>, %arg4: memref<128x128xbf16, #tpu.memory_space<vmem>>, %arg5: memref<1x128xf32, #tpu.memory_space<vmem>>, %arg6: memref<8x128xbf16, #tpu.memory_space<vmem>>, %arg7: memref<8x128xf32, #tpu.memory_space<vmem>>) attributes {dimension_semantics = [#tpu.dimension_semantics<parallel>, #tpu.dimension_semantics<parallel>, #tpu.dimension_semantics<arbitrary>], iteration_bounds = array<i64: 1, 1, 9>, scalar_prefetch = 0 : i64, scratch_operands = 1 : i64, tpu.core_type = #tpu.core_type<tc>, window_params = [{transform_indices = @transform_0, window_bounds = array<i64: 8, 128>}, {transform_indices = @transform_1, window_bounds = array<i64: 128, 128>}, {transform_indices = @transform_2, window_bounds = array<i64: 1, 128>}, {transform_indices = @transform_3, window_bounds = array<i64: 8, 128>}]} {
    %c0_i32 = arith.constant 0 : i32
    %0 = arith.cmpi eq, %arg2, %c0_i32 : i32
    %1 = arith.extui %0 : i1 to i32
    %c0_i32_0 = arith.constant 0 : i32
    %2 = arith.cmpi ne, %1, %c0_i32_0 : i32
    scf.if %2 {
      %cst_9 = arith.constant 0.000000e+00 : f32
      %12 = vector.broadcast %cst_9 : f32 to vector<8x128xf32>
      %c0_10 = arith.constant 0 : index
      %c0_11 = arith.constant 0 : index
      %13 = vector.load %arg7[%c0_10, %c0_11] : memref<8x128xf32, #tpu.memory_space<vmem>>, vector<8x128xf32>
      tpu.vector_store %arg7[%c0_10, %c0_11], %12 {strides = array<i32>} : memref<8x128xf32, #tpu.memory_space<vmem>>, vector<8x128xf32>,
    } else {
    }
    %c0 = arith.constant 0 : index
    %c0_1 = arith.constant 0 : index
    %3 = vector.load %arg7[%c0, %c0_1] : memref<8x128xf32, #tpu.memory_space<vmem>>, vector<8x128xf32>
    %c0_2 = arith.constant 0 : index
    %c0_3 = arith.constant 0 : index
    %4 = vector.load %arg3[%c0_2, %c0_3] : memref<8x128xbf16, #tpu.memory_space<vmem>>, vector<8x128xbf16>
    %c0_4 = arith.constant 0 : index
    %c0_5 = arith.constant 0 : index
    %5 = vector.load %arg4[%c0_4, %c0_5] : memref<128x128xbf16, #tpu.memory_space<vmem>>, vector<128x128xbf16>
    %cst = arith.constant dense<0.000000e+00> : vector<8x128xf32>
    %6 = tpu.matmul %4, %5, %cst {dimension_numbers = #tpu.dot_dimension_numbers<[1], [0], [0], [1], [0, 0, 1, 1], [], []>} : vector<8x128xbf16>, vector<128x128xbf16>, vector<8x128xf32> -> vector<8x128xf32>
    %7 = arith.addf %3, %6 : vector<8x128xf32>
    %c0_6 = arith.constant 0 : index
    %c0_7 = arith.constant 0 : index
    %8 = vector.load %arg7[%c0_6, %c0_7] : memref<8x128xf32, #tpu.memory_space<vmem>>, vector<8x128xf32>
    tpu.vector_store %arg7[%c0_6, %c0_7], %7 {strides = array<i32>} : memref<8x128xf32, #tpu.memory_space<vmem>>, vector<8x128xf32>,
    %c8_i32 = arith.constant 8 : i32
    %9 = arith.cmpi eq, %arg2, %c8_i32 : i32
    %10 = arith.extui %9 : i1 to i32
    %c0_i32_8 = arith.constant 0 : i32
    %11 = arith.cmpi ne, %10, %c0_i32_8 : i32
    scf.if %11 {
      %c0_9 = arith.constant 0 : index
      %c0_10 = arith.constant 0 : index
      %12 = vector.load %arg7[%c0_9, %c0_10] : memref<8x128xf32, #tpu.memory_space<vmem>>, vector<8x128xf32>
      %c0_11 = arith.constant 0 : index
      %c0_12 = arith.constant 0 : index
      %13 = vector.load %arg5[%c0_11, %c0_12] : memref<1x128xf32, #tpu.memory_space<vmem>>, vector<1x128xf32>
      %14 = vector.broadcast %13 : vector<1x128xf32> to vector<8x128xf32>
      %15 = arith.addf %12, %14 : vector<8x128xf32>
      %cst_13 = arith.constant 0.000000e+00 : f32
      %16 = vector.broadcast %cst_13 : f32 to vector<8x128xf32>
      %17 = arith.maximumf %15, %16 : vector<8x128xf32>
      %18 = arith.truncf %17 : vector<8x128xf32> to vector<8x128xbf16>
      %c0_14 = arith.constant 0 : index
      %c0_15 = arith.constant 0 : index
      %19 = vector.load %arg6[%c0_14, %c0_15] : memref<8x128xbf16, #tpu.memory_space<vmem>>, vector<8x128xbf16>
      tpu.vector_store %arg6[%c0_14, %c0_15], %18 {strides = array<i32>} : memref<8x128xbf16, #tpu.memory_space<vmem>>, vector<8x128xbf16>,
    } else {
    }
    return
  }
  func.func @transform_0(%arg0: i32, %arg1: i32, %arg2: i32) -> (i32, i32) {
    %c0_i32 = arith.constant 0 : i32
    return %arg0, %arg2 : i32, i32
  }
  func.func @transform_1(%arg0: i32, %arg1: i32, %arg2: i32) -> (i32, i32) {
    %c0_i32 = arith.constant 0 : i32
    return %arg2, %arg1 : i32, i32
  }
  func.func @transform_2(%arg0: i32, %arg1: i32, %arg2: i32) -> (i32, i32) {
    %c0_i32 = arith.constant 0 : i32
    %c0_i32_0 = arith.constant 0 : i32
    return %c0_i32, %arg1 : i32, i32
  }
  func.func @transform_3(%arg0: i32, %arg1: i32, %arg2: i32) -> (i32, i32) {
    %c0_i32 = arith.constant 0 : i32
    return %arg0, %arg1 : i32, i32
  }
}

module attributes {stable_mosaic.version = 11 : i64} {
  func.func @kernel(%arg0: i32, %arg1: i32, %arg2: i32, %arg3: memref<8x256xbf16, #tpu.memory_space<vmem>>, %arg4: memref<256x256xbf16, #tpu.memory_space<vmem>>, %arg5: memref<1x256xf32, #tpu.memory_space<vmem>>, %arg6: memref<8x256xbf16, #tpu.memory_space<vmem>>, %arg7: memref<8x256xbf16, #tpu.memory_space<vmem>>, %arg8: memref<8x256xf32, #tpu.memory_space<vmem>>) attributes {dimension_semantics = [#tpu.dimension_semantics<parallel>, #tpu.dimension_semantics<parallel>, #tpu.dimension_semantics<arbitrary>], iteration_bounds = array<i64: 1, 4, 1>, scalar_prefetch = 0 : i64, scratch_operands = 1 : i64, tpu.core_type = #tpu.core_type<tc>, window_params = [{transform_indices = @transform_0, window_bounds = array<i64: 8, 256>}, {transform_indices = @transform_1, window_bounds = array<i64: 256, 256>}, {transform_indices = @transform_2, window_bounds = array<i64: 1, 256>}, {transform_indices = @transform_3, window_bounds = array<i64: 8, 256>}, {transform_indices = @transform_4, window_bounds = array<i64: 8, 256>}]} {
    %c0_i32 = arith.constant 0 : i32
    %0 = arith.cmpi eq, %arg2, %c0_i32 : i32
    %1 = arith.extui %0 : i1 to i32
    %c0_i32_0 = arith.constant 0 : i32
    %2 = arith.cmpi ne, %1, %c0_i32_0 : i32
    scf.if %2 {
      %cst_10 = arith.constant 0.000000e+00 : f32
      %12 = vector.broadcast %cst_10 : f32 to vector<8x256xf32>
      %c0_11 = arith.constant 0 : index
      %c0_12 = arith.constant 0 : index
      %13 = vector.load %arg8[%c0_11, %c0_12] : memref<8x256xf32, #tpu.memory_space<vmem>>, vector<8x256xf32>
      tpu.vector_store %arg8[%c0_11, %c0_12], %12 {strides = array<i32>} : memref<8x256xf32, #tpu.memory_space<vmem>>, vector<8x256xf32>,
    } else {
    }
    %c0 = arith.constant 0 : index
    %c0_1 = arith.constant 0 : index
    %3 = vector.load %arg8[%c0, %c0_1] : memref<8x256xf32, #tpu.memory_space<vmem>>, vector<8x256xf32>
    %c0_2 = arith.constant 0 : index
    %c0_3 = arith.constant 0 : index
    %4 = vector.load %arg3[%c0_2, %c0_3] : memref<8x256xbf16, #tpu.memory_space<vmem>>, vector<8x256xbf16>
    %c0_4 = arith.constant 0 : index
    %c0_5 = arith.constant 0 : index
    %5 = vector.load %arg4[%c0_4, %c0_5] : memref<256x256xbf16, #tpu.memory_space<vmem>>, vector<256x256xbf16>
    %cst = arith.constant dense<0.000000e+00> : vector<8x256xf32>
    %6 = tpu.matmul %4, %5, %cst {dimension_numbers = #tpu.dot_dimension_numbers<[1], [0], [0], [1], [0, 0, 1, 1], [], []>} : vector<8x256xbf16>, vector<256x256xbf16>, vector<8x256xf32> -> vector<8x256xf32>
    %7 = arith.addf %3, %6 : vector<8x256xf32>
    %c0_6 = arith.constant 0 : index
    %c0_7 = arith.constant 0 : index
    %8 = vector.load %arg8[%c0_6, %c0_7] : memref<8x256xf32, #tpu.memory_space<vmem>>, vector<8x256xf32>
    tpu.vector_store %arg8[%c0_6, %c0_7], %7 {strides = array<i32>} : memref<8x256xf32, #tpu.memory_space<vmem>>, vector<8x256xf32>,
    %c0_i32_8 = arith.constant 0 : i32
    %9 = arith.cmpi eq, %arg2, %c0_i32_8 : i32
    %10 = arith.extui %9 : i1 to i32
    %c0_i32_9 = arith.constant 0 : i32
    %11 = arith.cmpi ne, %10, %c0_i32_9 : i32
    scf.if %11 {
      %c0_10 = arith.constant 0 : index
      %c0_11 = arith.constant 0 : index
      %12 = vector.load %arg8[%c0_10, %c0_11] : memref<8x256xf32, #tpu.memory_space<vmem>>, vector<8x256xf32>
      %c0_12 = arith.constant 0 : index
      %c0_13 = arith.constant 0 : index
      %13 = vector.load %arg5[%c0_12, %c0_13] : memref<1x256xf32, #tpu.memory_space<vmem>>, vector<1x256xf32>
      %14 = vector.broadcast %13 : vector<1x256xf32> to vector<8x256xf32>
      %15 = arith.addf %12, %14 : vector<8x256xf32>
      %c0_14 = arith.constant 0 : index
      %c0_15 = arith.constant 0 : index
      %16 = vector.load %arg6[%c0_14, %c0_15] : memref<8x256xbf16, #tpu.memory_space<vmem>>, vector<8x256xbf16>
      %17 = arith.extf %16 : vector<8x256xbf16> to vector<8x256xf32>
      %18 = arith.addf %15, %17 : vector<8x256xf32>
      %cst_16 = arith.constant 0.000000e+00 : f32
      %19 = vector.broadcast %cst_16 : f32 to vector<8x256xf32>
      %20 = arith.maximumf %18, %19 : vector<8x256xf32>
      %21 = arith.truncf %20 : vector<8x256xf32> to vector<8x256xbf16>
      %c0_17 = arith.constant 0 : index
      %c0_18 = arith.constant 0 : index
      %22 = vector.load %arg7[%c0_17, %c0_18] : memref<8x256xbf16, #tpu.memory_space<vmem>>, vector<8x256xbf16>
      tpu.vector_store %arg7[%c0_17, %c0_18], %21 {strides = array<i32>} : memref<8x256xbf16, #tpu.memory_space<vmem>>, vector<8x256xbf16>,
    } else {
    }
    return
  }
  func.func @transform_0(%arg0: i32, %arg1: i32, %arg2: i32) -> (i32, i32) {
    %c0_i32 = arith.constant 0 : i32
    return %arg0, %arg2 : i32, i32
  }
  func.func @transform_1(%arg0: i32, %arg1: i32, %arg2: i32) -> (i32, i32) {
    %c0_i32 = arith.constant 0 : i32
    return %arg2, %arg1 : i32, i32
  }
  func.func @transform_2(%arg0: i32, %arg1: i32, %arg2: i32) -> (i32, i32) {
    %c0_i32 = arith.constant 0 : i32
    %c0_i32_0 = arith.constant 0 : i32
    return %c0_i32, %arg1 : i32, i32
  }
  func.func @transform_3(%arg0: i32, %arg1: i32, %arg2: i32) -> (i32, i32) {
    %c0_i32 = arith.constant 0 : i32
    return %arg0, %arg1 : i32, i32
  }
  func.func @transform_4(%arg0: i32, %arg1: i32, %arg2: i32) -> (i32, i32) {
    %c0_i32 = arith.constant 0 : i32
    return %arg0, %arg1 : i32, i32
  }
}

module attributes {stable_mosaic.version = 11 : i64} {
  func.func @kernel(%arg0: i32, %arg1: i32, %arg2: i32, %arg3: memref<8x256xbf16, #tpu.memory_space<vmem>>, %arg4: memref<256x256xbf16, #tpu.memory_space<vmem>>, %arg5: memref<1x256xf32, #tpu.memory_space<vmem>>, %arg6: memref<8x256xbf16, #tpu.memory_space<vmem>>, %arg7: memref<8x256xf32, #tpu.memory_space<vmem>>) attributes {dimension_semantics = [#tpu.dimension_semantics<parallel>, #tpu.dimension_semantics<parallel>, #tpu.dimension_semantics<arbitrary>], iteration_bounds = array<i64: 1, 1, 9>, scalar_prefetch = 0 : i64, scratch_operands = 1 : i64, tpu.core_type = #tpu.core_type<tc>, window_params = [{transform_indices = @transform_0, window_bounds = array<i64: 8, 256>}, {transform_indices = @transform_1, window_bounds = array<i64: 256, 256>}, {transform_indices = @transform_2, window_bounds = array<i64: 1, 256>}, {transform_indices = @transform_3, window_bounds = array<i64: 8, 256>}]} {
    %c0_i32 = arith.constant 0 : i32
    %0 = arith.cmpi eq, %arg2, %c0_i32 : i32
    %1 = arith.extui %0 : i1 to i32
    %c0_i32_0 = arith.constant 0 : i32
    %2 = arith.cmpi ne, %1, %c0_i32_0 : i32
    scf.if %2 {
      %cst_9 = arith.constant 0.000000e+00 : f32
      %12 = vector.broadcast %cst_9 : f32 to vector<8x256xf32>
      %c0_10 = arith.constant 0 : index
      %c0_11 = arith.constant 0 : index
      %13 = vector.load %arg7[%c0_10, %c0_11] : memref<8x256xf32, #tpu.memory_space<vmem>>, vector<8x256xf32>
      tpu.vector_store %arg7[%c0_10, %c0_11], %12 {strides = array<i32>} : memref<8x256xf32, #tpu.memory_space<vmem>>, vector<8x256xf32>,
    } else {
    }
    %c0 = arith.constant 0 : index
    %c0_1 = arith.constant 0 : index
    %3 = vector.load %arg7[%c0, %c0_1] : memref<8x256xf32, #tpu.memory_space<vmem>>, vector<8x256xf32>
    %c0_2 = arith.constant 0 : index
    %c0_3 = arith.constant 0 : index
    %4 = vector.load %arg3[%c0_2, %c0_3] : memref<8x256xbf16, #tpu.memory_space<vmem>>, vector<8x256xbf16>
    %c0_4 = arith.constant 0 : index
    %c0_5 = arith.constant 0 : index
    %5 = vector.load %arg4[%c0_4, %c0_5] : memref<256x256xbf16, #tpu.memory_space<vmem>>, vector<256x256xbf16>
    %cst = arith.constant dense<0.000000e+00> : vector<8x256xf32>
    %6 = tpu.matmul %4, %5, %cst {dimension_numbers = #tpu.dot_dimension_numbers<[1], [0], [0], [1], [0, 0, 1, 1], [], []>} : vector<8x256xbf16>, vector<256x256xbf16>, vector<8x256xf32> -> vector<8x256xf32>
    %7 = arith.addf %3, %6 : vector<8x256xf32>
    %c0_6 = arith.constant 0 : index
    %c0_7 = arith.constant 0 : index
    %8 = vector.load %arg7[%c0_6, %c0_7] : memref<8x256xf32, #tpu.memory_space<vmem>>, vector<8x256xf32>
    tpu.vector_store %arg7[%c0_6, %c0_7], %7 {strides = array<i32>} : memref<8x256xf32, #tpu.memory_space<vmem>>, vector<8x256xf32>,
    %c8_i32 = arith.constant 8 : i32
    %9 = arith.cmpi eq, %arg2, %c8_i32 : i32
    %10 = arith.extui %9 : i1 to i32
    %c0_i32_8 = arith.constant 0 : i32
    %11 = arith.cmpi ne, %10, %c0_i32_8 : i32
    scf.if %11 {
      %c0_9 = arith.constant 0 : index
      %c0_10 = arith.constant 0 : index
      %12 = vector.load %arg7[%c0_9, %c0_10] : memref<8x256xf32, #tpu.memory_space<vmem>>, vector<8x256xf32>
      %c0_11 = arith.constant 0 : index
      %c0_12 = arith.constant 0 : index
      %13 = vector.load %arg5[%c0_11, %c0_12] : memref<1x256xf32, #tpu.memory_space<vmem>>, vector<1x256xf32>
      %14 = vector.broadcast %13 : vector<1x256xf32> to vector<8x256xf32>
      %15 = arith.addf %12, %14 : vector<8x256xf32>
      %cst_13 = arith.constant 0.000000e+00 : f32
      %16 = vector.broadcast %cst_13 : f32 to vector<8x256xf32>
      %17 = arith.maximumf %15, %16 : vector<8x256xf32>
      %18 = arith.truncf %17 : vector<8x256xf32> to vector<8x256xbf16>
      %c0_14 = arith.constant 0 : index
      %c0_15 = arith.constant 0 : index
      %19 = vector.load %arg6[%c0_14, %c0_15] : memref<8x256xbf16, #tpu.memory_space<vmem>>, vector<8x256xbf16>
      tpu.vector_store %arg6[%c0_14, %c0_15], %18 {strides = array<i32>} : memref<8x256xbf16, #tpu.memory_space<vmem>>, vector<8x256xbf16>,
    } else {
    }
    return
  }
  func.func @transform_0(%arg0: i32, %arg1: i32, %arg2: i32) -> (i32, i32) {
    %c0_i32 = arith.constant 0 : i32
    return %arg0, %arg2 : i32, i32
  }
  func.func @transform_1(%arg0: i32, %arg1: i32, %arg2: i32) -> (i32, i32) {
    %c0_i32 = arith.constant 0 : i32
    return %arg2, %arg1 : i32, i32
  }
  func.func @transform_2(%arg0: i32, %arg1: i32, %arg2: i32) -> (i32, i32) {
    %c0_i32 = arith.constant 0 : i32
    %c0_i32_0 = arith.constant 0 : i32
    return %c0_i32, %arg1 : i32, i32
  }
  func.func @transform_3(%arg0: i32, %arg1: i32, %arg2: i32) -> (i32, i32) {
    %c0_i32 = arith.constant 0 : i32
    return %arg0, %arg1 : i32, i32
  }
}

module attributes {stable_mosaic.version = 11 : i64} {
  func.func @kernel(%arg0: i32, %arg1: i32, %arg2: i32, %arg3: memref<8x512xbf16, #tpu.memory_space<vmem>>, %arg4: memref<512x256xbf16, #tpu.memory_space<vmem>>, %arg5: memref<1x256xf32, #tpu.memory_space<vmem>>, %arg6: memref<8x256xbf16, #tpu.memory_space<vmem>>, %arg7: memref<8x256xf32, #tpu.memory_space<vmem>>) attributes {dimension_semantics = [#tpu.dimension_semantics<parallel>, #tpu.dimension_semantics<parallel>, #tpu.dimension_semantics<arbitrary>], iteration_bounds = array<i64: 1, 4, 1>, scalar_prefetch = 0 : i64, scratch_operands = 1 : i64, tpu.core_type = #tpu.core_type<tc>, window_params = [{transform_indices = @transform_0, window_bounds = array<i64: 8, 512>}, {transform_indices = @transform_1, window_bounds = array<i64: 512, 256>}, {transform_indices = @transform_2, window_bounds = array<i64: 1, 256>}, {transform_indices = @transform_3, window_bounds = array<i64: 8, 256>}]} {
    %c0_i32 = arith.constant 0 : i32
    %0 = arith.cmpi eq, %arg2, %c0_i32 : i32
    %1 = arith.extui %0 : i1 to i32
    %c0_i32_0 = arith.constant 0 : i32
    %2 = arith.cmpi ne, %1, %c0_i32_0 : i32
    scf.if %2 {
      %cst_10 = arith.constant 0.000000e+00 : f32
      %12 = vector.broadcast %cst_10 : f32 to vector<8x256xf32>
      %c0_11 = arith.constant 0 : index
      %c0_12 = arith.constant 0 : index
      %13 = vector.load %arg7[%c0_11, %c0_12] : memref<8x256xf32, #tpu.memory_space<vmem>>, vector<8x256xf32>
      tpu.vector_store %arg7[%c0_11, %c0_12], %12 {strides = array<i32>} : memref<8x256xf32, #tpu.memory_space<vmem>>, vector<8x256xf32>,
    } else {
    }
    %c0 = arith.constant 0 : index
    %c0_1 = arith.constant 0 : index
    %3 = vector.load %arg7[%c0, %c0_1] : memref<8x256xf32, #tpu.memory_space<vmem>>, vector<8x256xf32>
    %c0_2 = arith.constant 0 : index
    %c0_3 = arith.constant 0 : index
    %4 = vector.load %arg3[%c0_2, %c0_3] : memref<8x512xbf16, #tpu.memory_space<vmem>>, vector<8x512xbf16>
    %c0_4 = arith.constant 0 : index
    %c0_5 = arith.constant 0 : index
    %5 = vector.load %arg4[%c0_4, %c0_5] : memref<512x256xbf16, #tpu.memory_space<vmem>>, vector<512x256xbf16>
    %cst = arith.constant dense<0.000000e+00> : vector<8x256xf32>
    %6 = tpu.matmul %4, %5, %cst {dimension_numbers = #tpu.dot_dimension_numbers<[1], [0], [0], [1], [0, 0, 1, 1], [], []>} : vector<8x512xbf16>, vector<512x256xbf16>, vector<8x256xf32> -> vector<8x256xf32>
    %7 = arith.addf %3, %6 : vector<8x256xf32>
    %c0_6 = arith.constant 0 : index
    %c0_7 = arith.constant 0 : index
    %8 = vector.load %arg7[%c0_6, %c0_7] : memref<8x256xf32, #tpu.memory_space<vmem>>, vector<8x256xf32>
    tpu.vector_store %arg7[%c0_6, %c0_7], %7 {strides = array<i32>} : memref<8x256xf32, #tpu.memory_space<vmem>>, vector<8x256xf32>,
    %c0_i32_8 = arith.constant 0 : i32
    %9 = arith.cmpi eq, %arg2, %c0_i32_8 : i32
    %10 = arith.extui %9 : i1 to i32
    %c0_i32_9 = arith.constant 0 : i32
    %11 = arith.cmpi ne, %10, %c0_i32_9 : i32
    scf.if %11 {
      %c0_10 = arith.constant 0 : index
      %c0_11 = arith.constant 0 : index
      %12 = vector.load %arg7[%c0_10, %c0_11] : memref<8x256xf32, #tpu.memory_space<vmem>>, vector<8x256xf32>
      %c0_12 = arith.constant 0 : index
      %c0_13 = arith.constant 0 : index
      %13 = vector.load %arg5[%c0_12, %c0_13] : memref<1x256xf32, #tpu.memory_space<vmem>>, vector<1x256xf32>
      %14 = vector.broadcast %13 : vector<1x256xf32> to vector<8x256xf32>
      %15 = arith.addf %12, %14 : vector<8x256xf32>
      %16 = arith.truncf %15 : vector<8x256xf32> to vector<8x256xbf16>
      %c0_14 = arith.constant 0 : index
      %c0_15 = arith.constant 0 : index
      %17 = vector.load %arg6[%c0_14, %c0_15] : memref<8x256xbf16, #tpu.memory_space<vmem>>, vector<8x256xbf16>
      tpu.vector_store %arg6[%c0_14, %c0_15], %16 {strides = array<i32>} : memref<8x256xbf16, #tpu.memory_space<vmem>>, vector<8x256xbf16>,
    } else {
    }
    return
  }
  func.func @transform_0(%arg0: i32, %arg1: i32, %arg2: i32) -> (i32, i32) {
    %c0_i32 = arith.constant 0 : i32
    return %arg0, %arg2 : i32, i32
  }
  func.func @transform_1(%arg0: i32, %arg1: i32, %arg2: i32) -> (i32, i32) {
    %c0_i32 = arith.constant 0 : i32
    return %arg2, %arg1 : i32, i32
  }
  func.func @transform_2(%arg0: i32, %arg1: i32, %arg2: i32) -> (i32, i32) {
    %c0_i32 = arith.constant 0 : i32
    %c0_i32_0 = arith.constant 0 : i32
    return %c0_i32, %arg1 : i32, i32
  }
  func.func @transform_3(%arg0: i32, %arg1: i32, %arg2: i32) -> (i32, i32) {
    %c0_i32 = arith.constant 0 : i32
    return %arg0, %arg1 : i32, i32
  }
}

module attributes {stable_mosaic.version = 11 : i64} {
  func.func @kernel(%arg0: i32, %arg1: i32, %arg2: i32, %arg3: memref<8x512xbf16, #tpu.memory_space<vmem>>, %arg4: memref<512x256xbf16, #tpu.memory_space<vmem>>, %arg5: memref<1x256xf32, #tpu.memory_space<vmem>>, %arg6: memref<8x256xbf16, #tpu.memory_space<vmem>>, %arg7: memref<8x256xf32, #tpu.memory_space<vmem>>) attributes {dimension_semantics = [#tpu.dimension_semantics<parallel>, #tpu.dimension_semantics<parallel>, #tpu.dimension_semantics<arbitrary>], iteration_bounds = array<i64: 1, 2, 2>, scalar_prefetch = 0 : i64, scratch_operands = 1 : i64, tpu.core_type = #tpu.core_type<tc>, window_params = [{transform_indices = @transform_0, window_bounds = array<i64: 8, 512>}, {transform_indices = @transform_1, window_bounds = array<i64: 512, 256>}, {transform_indices = @transform_2, window_bounds = array<i64: 1, 256>}, {transform_indices = @transform_3, window_bounds = array<i64: 8, 256>}]} {
    %c0_i32 = arith.constant 0 : i32
    %0 = arith.cmpi eq, %arg2, %c0_i32 : i32
    %1 = arith.extui %0 : i1 to i32
    %c0_i32_0 = arith.constant 0 : i32
    %2 = arith.cmpi ne, %1, %c0_i32_0 : i32
    scf.if %2 {
      %cst_9 = arith.constant 0.000000e+00 : f32
      %12 = vector.broadcast %cst_9 : f32 to vector<8x256xf32>
      %c0_10 = arith.constant 0 : index
      %c0_11 = arith.constant 0 : index
      %13 = vector.load %arg7[%c0_10, %c0_11] : memref<8x256xf32, #tpu.memory_space<vmem>>, vector<8x256xf32>
      tpu.vector_store %arg7[%c0_10, %c0_11], %12 {strides = array<i32>} : memref<8x256xf32, #tpu.memory_space<vmem>>, vector<8x256xf32>,
    } else {
    }
    %c0 = arith.constant 0 : index
    %c0_1 = arith.constant 0 : index
    %3 = vector.load %arg7[%c0, %c0_1] : memref<8x256xf32, #tpu.memory_space<vmem>>, vector<8x256xf32>
    %c0_2 = arith.constant 0 : index
    %c0_3 = arith.constant 0 : index
    %4 = vector.load %arg3[%c0_2, %c0_3] : memref<8x512xbf16, #tpu.memory_space<vmem>>, vector<8x512xbf16>
    %c0_4 = arith.constant 0 : index
    %c0_5 = arith.constant 0 : index
    %5 = vector.load %arg4[%c0_4, %c0_5] : memref<512x256xbf16, #tpu.memory_space<vmem>>, vector<512x256xbf16>
    %cst = arith.constant dense<0.000000e+00> : vector<8x256xf32>
    %6 = tpu.matmul %4, %5, %cst {dimension_numbers = #tpu.dot_dimension_numbers<[1], [0], [0], [1], [0, 0, 1, 1], [], []>} : vector<8x512xbf16>, vector<512x256xbf16>, vector<8x256xf32> -> vector<8x256xf32>
    %7 = arith.addf %3, %6 : vector<8x256xf32>
    %c0_6 = arith.constant 0 : index
    %c0_7 = arith.constant 0 : index
    %8 = vector.load %arg7[%c0_6, %c0_7] : memref<8x256xf32, #tpu.memory_space<vmem>>, vector<8x256xf32>
    tpu.vector_store %arg7[%c0_6, %c0_7], %7 {strides = array<i32>} : memref<8x256xf32, #tpu.memory_space<vmem>>, vector<8x256xf32>,
    %c1_i32 = arith.constant 1 : i32
    %9 = arith.cmpi eq, %arg2, %c1_i32 : i32
    %10 = arith.extui %9 : i1 to i32
    %c0_i32_8 = arith.constant 0 : i32
    %11 = arith.cmpi ne, %10, %c0_i32_8 : i32
    scf.if %11 {
      %c0_9 = arith.constant 0 : index
      %c0_10 = arith.constant 0 : index
      %12 = vector.load %arg7[%c0_9, %c0_10] : memref<8x256xf32, #tpu.memory_space<vmem>>, vector<8x256xf32>
      %c0_11 = arith.constant 0 : index
      %c0_12 = arith.constant 0 : index
      %13 = vector.load %arg5[%c0_11, %c0_12] : memref<1x256xf32, #tpu.memory_space<vmem>>, vector<1x256xf32>
      %14 = vector.broadcast %13 : vector<1x256xf32> to vector<8x256xf32>
      %15 = arith.addf %12, %14 : vector<8x256xf32>
      %cst_13 = arith.constant 0.000000e+00 : f32
      %16 = vector.broadcast %cst_13 : f32 to vector<8x256xf32>
      %17 = arith.maximumf %15, %16 : vector<8x256xf32>
      %18 = arith.truncf %17 : vector<8x256xf32> to vector<8x256xbf16>
      %c0_14 = arith.constant 0 : index
      %c0_15 = arith.constant 0 : index
      %19 = vector.load %arg6[%c0_14, %c0_15] : memref<8x256xbf16, #tpu.memory_space<vmem>>, vector<8x256xbf16>
      tpu.vector_store %arg6[%c0_14, %c0_15], %18 {strides = array<i32>} : memref<8x256xbf16, #tpu.memory_space<vmem>>, vector<8x256xbf16>,
    } else {
    }
    return
  }
  func.func @transform_0(%arg0: i32, %arg1: i32, %arg2: i32) -> (i32, i32) {
    %c0_i32 = arith.constant 0 : i32
    return %arg0, %arg2 : i32, i32
  }
  func.func @transform_1(%arg0: i32, %arg1: i32, %arg2: i32) -> (i32, i32) {
    %c0_i32 = arith.constant 0 : i32
    return %arg2, %arg1 : i32, i32
  }
  func.func @transform_2(%arg0: i32, %arg1: i32, %arg2: i32) -> (i32, i32) {
    %c0_i32 = arith.constant 0 : i32
    %c0_i32_0 = arith.constant 0 : i32
    return %c0_i32, %arg1 : i32, i32
  }
  func.func @transform_3(%arg0: i32, %arg1: i32, %arg2: i32) -> (i32, i32) {
    %c0_i32 = arith.constant 0 : i32
    return %arg0, %arg1 : i32, i32
  }
}

module attributes {stable_mosaic.version = 11 : i64} {
  func.func @kernel(%arg0: i32, %arg1: i32, %arg2: i32, %arg3: memref<8x512xbf16, #tpu.memory_space<vmem>>, %arg4: memref<512x256xbf16, #tpu.memory_space<vmem>>, %arg5: memref<1x256xf32, #tpu.memory_space<vmem>>, %arg6: memref<8x256xbf16, #tpu.memory_space<vmem>>, %arg7: memref<8x256xf32, #tpu.memory_space<vmem>>) attributes {dimension_semantics = [#tpu.dimension_semantics<parallel>, #tpu.dimension_semantics<parallel>, #tpu.dimension_semantics<arbitrary>], iteration_bounds = array<i64: 1, 2, 9>, scalar_prefetch = 0 : i64, scratch_operands = 1 : i64, tpu.core_type = #tpu.core_type<tc>, window_params = [{transform_indices = @transform_0, window_bounds = array<i64: 8, 512>}, {transform_indices = @transform_1, window_bounds = array<i64: 512, 256>}, {transform_indices = @transform_2, window_bounds = array<i64: 1, 256>}, {transform_indices = @transform_3, window_bounds = array<i64: 8, 256>}]} {
    %c0_i32 = arith.constant 0 : i32
    %0 = arith.cmpi eq, %arg2, %c0_i32 : i32
    %1 = arith.extui %0 : i1 to i32
    %c0_i32_0 = arith.constant 0 : i32
    %2 = arith.cmpi ne, %1, %c0_i32_0 : i32
    scf.if %2 {
      %cst_9 = arith.constant 0.000000e+00 : f32
      %12 = vector.broadcast %cst_9 : f32 to vector<8x256xf32>
      %c0_10 = arith.constant 0 : index
      %c0_11 = arith.constant 0 : index
      %13 = vector.load %arg7[%c0_10, %c0_11] : memref<8x256xf32, #tpu.memory_space<vmem>>, vector<8x256xf32>
      tpu.vector_store %arg7[%c0_10, %c0_11], %12 {strides = array<i32>} : memref<8x256xf32, #tpu.memory_space<vmem>>, vector<8x256xf32>,
    } else {
    }
    %c0 = arith.constant 0 : index
    %c0_1 = arith.constant 0 : index
    %3 = vector.load %arg7[%c0, %c0_1] : memref<8x256xf32, #tpu.memory_space<vmem>>, vector<8x256xf32>
    %c0_2 = arith.constant 0 : index
    %c0_3 = arith.constant 0 : index
    %4 = vector.load %arg3[%c0_2, %c0_3] : memref<8x512xbf16, #tpu.memory_space<vmem>>, vector<8x512xbf16>
    %c0_4 = arith.constant 0 : index
    %c0_5 = arith.constant 0 : index
    %5 = vector.load %arg4[%c0_4, %c0_5] : memref<512x256xbf16, #tpu.memory_space<vmem>>, vector<512x256xbf16>
    %cst = arith.constant dense<0.000000e+00> : vector<8x256xf32>
    %6 = tpu.matmul %4, %5, %cst {dimension_numbers = #tpu.dot_dimension_numbers<[1], [0], [0], [1], [0, 0, 1, 1], [], []>} : vector<8x512xbf16>, vector<512x256xbf16>, vector<8x256xf32> -> vector<8x256xf32>
    %7 = arith.addf %3, %6 : vector<8x256xf32>
    %c0_6 = arith.constant 0 : index
    %c0_7 = arith.constant 0 : index
    %8 = vector.load %arg7[%c0_6, %c0_7] : memref<8x256xf32, #tpu.memory_space<vmem>>, vector<8x256xf32>
    tpu.vector_store %arg7[%c0_6, %c0_7], %7 {strides = array<i32>} : memref<8x256xf32, #tpu.memory_space<vmem>>, vector<8x256xf32>,
    %c8_i32 = arith.constant 8 : i32
    %9 = arith.cmpi eq, %arg2, %c8_i32 : i32
    %10 = arith.extui %9 : i1 to i32
    %c0_i32_8 = arith.constant 0 : i32
    %11 = arith.cmpi ne, %10, %c0_i32_8 : i32
    scf.if %11 {
      %c0_9 = arith.constant 0 : index
      %c0_10 = arith.constant 0 : index
      %12 = vector.load %arg7[%c0_9, %c0_10] : memref<8x256xf32, #tpu.memory_space<vmem>>, vector<8x256xf32>
      %c0_11 = arith.constant 0 : index
      %c0_12 = arith.constant 0 : index
      %13 = vector.load %arg5[%c0_11, %c0_12] : memref<1x256xf32, #tpu.memory_space<vmem>>, vector<1x256xf32>
      %14 = vector.broadcast %13 : vector<1x256xf32> to vector<8x256xf32>
      %15 = arith.addf %12, %14 : vector<8x256xf32>
      %cst_13 = arith.constant 0.000000e+00 : f32
      %16 = vector.broadcast %cst_13 : f32 to vector<8x256xf32>
      %17 = arith.maximumf %15, %16 : vector<8x256xf32>
      %18 = arith.truncf %17 : vector<8x256xf32> to vector<8x256xbf16>
      %c0_14 = arith.constant 0 : index
      %c0_15 = arith.constant 0 : index
      %19 = vector.load %arg6[%c0_14, %c0_15] : memref<8x256xbf16, #tpu.memory_space<vmem>>, vector<8x256xbf16>
      tpu.vector_store %arg6[%c0_14, %c0_15], %18 {strides = array<i32>} : memref<8x256xbf16, #tpu.memory_space<vmem>>, vector<8x256xbf16>,
    } else {
    }
    return
  }
  func.func @transform_0(%arg0: i32, %arg1: i32, %arg2: i32) -> (i32, i32) {
    %c0_i32 = arith.constant 0 : i32
    return %arg0, %arg2 : i32, i32
  }
  func.func @transform_1(%arg0: i32, %arg1: i32, %arg2: i32) -> (i32, i32) {
    %c0_i32 = arith.constant 0 : i32
    return %arg2, %arg1 : i32, i32
  }
  func.func @transform_2(%arg0: i32, %arg1: i32, %arg2: i32) -> (i32, i32) {
    %c0_i32 = arith.constant 0 : i32
    %c0_i32_0 = arith.constant 0 : i32
    return %c0_i32, %arg1 : i32, i32
  }
  func.func @transform_3(%arg0: i32, %arg1: i32, %arg2: i32) -> (i32, i32) {
    %c0_i32 = arith.constant 0 : i32
    return %arg0, %arg1 : i32, i32
  }
}

module attributes {stable_mosaic.version = 11 : i64} {
  func.func @kernel(%arg0: i32, %arg1: i32, %arg2: i32, %arg3: memref<8x512xbf16, #tpu.memory_space<vmem>>, %arg4: memref<512x256xbf16, #tpu.memory_space<vmem>>, %arg5: memref<1x256xf32, #tpu.memory_space<vmem>>, %arg6: memref<8x256xbf16, #tpu.memory_space<vmem>>, %arg7: memref<8x256xf32, #tpu.memory_space<vmem>>) attributes {dimension_semantics = [#tpu.dimension_semantics<parallel>, #tpu.dimension_semantics<parallel>, #tpu.dimension_semantics<arbitrary>], iteration_bounds = array<i64: 1, 8, 2>, scalar_prefetch = 0 : i64, scratch_operands = 1 : i64, tpu.core_type = #tpu.core_type<tc>, window_params = [{transform_indices = @transform_0, window_bounds = array<i64: 8, 512>}, {transform_indices = @transform_1, window_bounds = array<i64: 512, 256>}, {transform_indices = @transform_2, window_bounds = array<i64: 1, 256>}, {transform_indices = @transform_3, window_bounds = array<i64: 8, 256>}]} {
    %c0_i32 = arith.constant 0 : i32
    %0 = arith.cmpi eq, %arg2, %c0_i32 : i32
    %1 = arith.extui %0 : i1 to i32
    %c0_i32_0 = arith.constant 0 : i32
    %2 = arith.cmpi ne, %1, %c0_i32_0 : i32
    scf.if %2 {
      %cst_9 = arith.constant 0.000000e+00 : f32
      %12 = vector.broadcast %cst_9 : f32 to vector<8x256xf32>
      %c0_10 = arith.constant 0 : index
      %c0_11 = arith.constant 0 : index
      %13 = vector.load %arg7[%c0_10, %c0_11] : memref<8x256xf32, #tpu.memory_space<vmem>>, vector<8x256xf32>
      tpu.vector_store %arg7[%c0_10, %c0_11], %12 {strides = array<i32>} : memref<8x256xf32, #tpu.memory_space<vmem>>, vector<8x256xf32>,
    } else {
    }
    %c0 = arith.constant 0 : index
    %c0_1 = arith.constant 0 : index
    %3 = vector.load %arg7[%c0, %c0_1] : memref<8x256xf32, #tpu.memory_space<vmem>>, vector<8x256xf32>
    %c0_2 = arith.constant 0 : index
    %c0_3 = arith.constant 0 : index
    %4 = vector.load %arg3[%c0_2, %c0_3] : memref<8x512xbf16, #tpu.memory_space<vmem>>, vector<8x512xbf16>
    %c0_4 = arith.constant 0 : index
    %c0_5 = arith.constant 0 : index
    %5 = vector.load %arg4[%c0_4, %c0_5] : memref<512x256xbf16, #tpu.memory_space<vmem>>, vector<512x256xbf16>
    %cst = arith.constant dense<0.000000e+00> : vector<8x256xf32>
    %6 = tpu.matmul %4, %5, %cst {dimension_numbers = #tpu.dot_dimension_numbers<[1], [0], [0], [1], [0, 0, 1, 1], [], []>} : vector<8x512xbf16>, vector<512x256xbf16>, vector<8x256xf32> -> vector<8x256xf32>
    %7 = arith.addf %3, %6 : vector<8x256xf32>
    %c0_6 = arith.constant 0 : index
    %c0_7 = arith.constant 0 : index
    %8 = vector.load %arg7[%c0_6, %c0_7] : memref<8x256xf32, #tpu.memory_space<vmem>>, vector<8x256xf32>
    tpu.vector_store %arg7[%c0_6, %c0_7], %7 {strides = array<i32>} : memref<8x256xf32, #tpu.memory_space<vmem>>, vector<8x256xf32>,
    %c1_i32 = arith.constant 1 : i32
    %9 = arith.cmpi eq, %arg2, %c1_i32 : i32
    %10 = arith.extui %9 : i1 to i32
    %c0_i32_8 = arith.constant 0 : i32
    %11 = arith.cmpi ne, %10, %c0_i32_8 : i32
    scf.if %11 {
      %c0_9 = arith.constant 0 : index
      %c0_10 = arith.constant 0 : index
      %12 = vector.load %arg7[%c0_9, %c0_10] : memref<8x256xf32, #tpu.memory_space<vmem>>, vector<8x256xf32>
      %c0_11 = arith.constant 0 : index
      %c0_12 = arith.constant 0 : index
      %13 = vector.load %arg5[%c0_11, %c0_12] : memref<1x256xf32, #tpu.memory_space<vmem>>, vector<1x256xf32>
      %14 = vector.broadcast %13 : vector<1x256xf32> to vector<8x256xf32>
      %15 = arith.addf %12, %14 : vector<8x256xf32>
      %16 = arith.truncf %15 : vector<8x256xf32> to vector<8x256xbf16>
      %c0_13 = arith.constant 0 : index
      %c0_14 = arith.constant 0 : index
      %17 = vector.load %arg6[%c0_13, %c0_14] : memref<8x256xbf16, #tpu.memory_space<vmem>>, vector<8x256xbf16>
      tpu.vector_store %arg6[%c0_13, %c0_14], %16 {strides = array<i32>} : memref<8x256xbf16, #tpu.memory_space<vmem>>, vector<8x256xbf16>,
    } else {
    }
    return
  }
  func.func @transform_0(%arg0: i32, %arg1: i32, %arg2: i32) -> (i32, i32) {
    %c0_i32 = arith.constant 0 : i32
    return %arg0, %arg2 : i32, i32
  }
  func.func @transform_1(%arg0: i32, %arg1: i32, %arg2: i32) -> (i32, i32) {
    %c0_i32 = arith.constant 0 : i32
    return %arg2, %arg1 : i32, i32
  }
  func.func @transform_2(%arg0: i32, %arg1: i32, %arg2: i32) -> (i32, i32) {
    %c0_i32 = arith.constant 0 : i32
    %c0_i32_0 = arith.constant 0 : i32
    return %c0_i32, %arg1 : i32, i32
  }
  func.func @transform_3(%arg0: i32, %arg1: i32, %arg2: i32) -> (i32, i32) {
    %c0_i32 = arith.constant 0 : i32
    return %arg0, %arg1 : i32, i32
  }
}

module attributes {stable_mosaic.version = 11 : i64} {
  func.func @kernel(%arg0: i32, %arg1: i32, %arg2: i32, %arg3: memref<8x512xbf16, #tpu.memory_space<vmem>>, %arg4: memref<512x256xbf16, #tpu.memory_space<vmem>>, %arg5: memref<1x256xf32, #tpu.memory_space<vmem>>, %arg6: memref<8x256xbf16, #tpu.memory_space<vmem>>, %arg7: memref<8x256xbf16, #tpu.memory_space<vmem>>, %arg8: memref<8x256xf32, #tpu.memory_space<vmem>>) attributes {dimension_semantics = [#tpu.dimension_semantics<parallel>, #tpu.dimension_semantics<parallel>, #tpu.dimension_semantics<arbitrary>], iteration_bounds = array<i64: 1, 8, 1>, scalar_prefetch = 0 : i64, scratch_operands = 1 : i64, tpu.core_type = #tpu.core_type<tc>, window_params = [{transform_indices = @transform_0, window_bounds = array<i64: 8, 512>}, {transform_indices = @transform_1, window_bounds = array<i64: 512, 256>}, {transform_indices = @transform_2, window_bounds = array<i64: 1, 256>}, {transform_indices = @transform_3, window_bounds = array<i64: 8, 256>}, {transform_indices = @transform_4, window_bounds = array<i64: 8, 256>}]} {
    %c0_i32 = arith.constant 0 : i32
    %0 = arith.cmpi eq, %arg2, %c0_i32 : i32
    %1 = arith.extui %0 : i1 to i32
    %c0_i32_0 = arith.constant 0 : i32
    %2 = arith.cmpi ne, %1, %c0_i32_0 : i32
    scf.if %2 {
      %cst_10 = arith.constant 0.000000e+00 : f32
      %12 = vector.broadcast %cst_10 : f32 to vector<8x256xf32>
      %c0_11 = arith.constant 0 : index
      %c0_12 = arith.constant 0 : index
      %13 = vector.load %arg8[%c0_11, %c0_12] : memref<8x256xf32, #tpu.memory_space<vmem>>, vector<8x256xf32>
      tpu.vector_store %arg8[%c0_11, %c0_12], %12 {strides = array<i32>} : memref<8x256xf32, #tpu.memory_space<vmem>>, vector<8x256xf32>,
    } else {
    }
    %c0 = arith.constant 0 : index
    %c0_1 = arith.constant 0 : index
    %3 = vector.load %arg8[%c0, %c0_1] : memref<8x256xf32, #tpu.memory_space<vmem>>, vector<8x256xf32>
    %c0_2 = arith.constant 0 : index
    %c0_3 = arith.constant 0 : index
    %4 = vector.load %arg3[%c0_2, %c0_3] : memref<8x512xbf16, #tpu.memory_space<vmem>>, vector<8x512xbf16>
    %c0_4 = arith.constant 0 : index
    %c0_5 = arith.constant 0 : index
    %5 = vector.load %arg4[%c0_4, %c0_5] : memref<512x256xbf16, #tpu.memory_space<vmem>>, vector<512x256xbf16>
    %cst = arith.constant dense<0.000000e+00> : vector<8x256xf32>
    %6 = tpu.matmul %4, %5, %cst {dimension_numbers = #tpu.dot_dimension_numbers<[1], [0], [0], [1], [0, 0, 1, 1], [], []>} : vector<8x512xbf16>, vector<512x256xbf16>, vector<8x256xf32> -> vector<8x256xf32>
    %7 = arith.addf %3, %6 : vector<8x256xf32>
    %c0_6 = arith.constant 0 : index
    %c0_7 = arith.constant 0 : index
    %8 = vector.load %arg8[%c0_6, %c0_7] : memref<8x256xf32, #tpu.memory_space<vmem>>, vector<8x256xf32>
    tpu.vector_store %arg8[%c0_6, %c0_7], %7 {strides = array<i32>} : memref<8x256xf32, #tpu.memory_space<vmem>>, vector<8x256xf32>,
    %c0_i32_8 = arith.constant 0 : i32
    %9 = arith.cmpi eq, %arg2, %c0_i32_8 : i32
    %10 = arith.extui %9 : i1 to i32
    %c0_i32_9 = arith.constant 0 : i32
    %11 = arith.cmpi ne, %10, %c0_i32_9 : i32
    scf.if %11 {
      %c0_10 = arith.constant 0 : index
      %c0_11 = arith.constant 0 : index
      %12 = vector.load %arg8[%c0_10, %c0_11] : memref<8x256xf32, #tpu.memory_space<vmem>>, vector<8x256xf32>
      %c0_12 = arith.constant 0 : index
      %c0_13 = arith.constant 0 : index
      %13 = vector.load %arg5[%c0_12, %c0_13] : memref<1x256xf32, #tpu.memory_space<vmem>>, vector<1x256xf32>
      %14 = vector.broadcast %13 : vector<1x256xf32> to vector<8x256xf32>
      %15 = arith.addf %12, %14 : vector<8x256xf32>
      %c0_14 = arith.constant 0 : index
      %c0_15 = arith.constant 0 : index
      %16 = vector.load %arg6[%c0_14, %c0_15] : memref<8x256xbf16, #tpu.memory_space<vmem>>, vector<8x256xbf16>
      %17 = arith.extf %16 : vector<8x256xbf16> to vector<8x256xf32>
      %18 = arith.addf %15, %17 : vector<8x256xf32>
      %cst_16 = arith.constant 0.000000e+00 : f32
      %19 = vector.broadcast %cst_16 : f32 to vector<8x256xf32>
      %20 = arith.maximumf %18, %19 : vector<8x256xf32>
      %21 = arith.truncf %20 : vector<8x256xf32> to vector<8x256xbf16>
      %c0_17 = arith.constant 0 : index
      %c0_18 = arith.constant 0 : index
      %22 = vector.load %arg7[%c0_17, %c0_18] : memref<8x256xbf16, #tpu.memory_space<vmem>>, vector<8x256xbf16>
      tpu.vector_store %arg7[%c0_17, %c0_18], %21 {strides = array<i32>} : memref<8x256xbf16, #tpu.memory_space<vmem>>, vector<8x256xbf16>,
    } else {
    }
    return
  }
  func.func @transform_0(%arg0: i32, %arg1: i32, %arg2: i32) -> (i32, i32) {
    %c0_i32 = arith.constant 0 : i32
    return %arg0, %arg2 : i32, i32
  }
  func.func @transform_1(%arg0: i32, %arg1: i32, %arg2: i32) -> (i32, i32) {
    %c0_i32 = arith.constant 0 : i32
    return %arg2, %arg1 : i32, i32
  }
  func.func @transform_2(%arg0: i32, %arg1: i32, %arg2: i32) -> (i32, i32) {
    %c0_i32 = arith.constant 0 : i32
    %c0_i32_0 = arith.constant 0 : i32
    return %c0_i32, %arg1 : i32, i32
  }
  func.func @transform_3(%arg0: i32, %arg1: i32, %arg2: i32) -> (i32, i32) {
    %c0_i32 = arith.constant 0 : i32
    return %arg0, %arg1 : i32, i32
  }
  func.func @transform_4(%arg0: i32, %arg1: i32, %arg2: i32) -> (i32, i32) {
    %c0_i32 = arith.constant 0 : i32
    return %arg0, %arg1 : i32, i32
  }
}

module attributes {stable_mosaic.version = 11 : i64} {
  func.func @_avgpool_kernel(%arg0: memref<2x1x2048xbf16, #tpu.memory_space<vmem>>, %arg1: memref<2x2048xf32, #tpu.memory_space<vmem>>) attributes {dimension_semantics = [], scalar_prefetch = 0 : i64, scratch_operands = 0 : i64, tpu.core_type = #tpu.core_type<tc>} {
    %c0 = arith.constant 0 : index
    %c0_0 = arith.constant 0 : index
    %c0_1 = arith.constant 0 : index
    %0 = vector.load %arg0[%c0, %c0_0, %c0_1] : memref<2x1x2048xbf16, #tpu.memory_space<vmem>>, vector<2x1x2048xbf16>
    %1 = arith.extf %0 : vector<2x1x2048xbf16> to vector<2x1x2048xf32>
    %cst = arith.constant dense<0.000000e+00> : vector<2x2048xf32>
    %2 = vector.multi_reduction <add>, %1, %cst [1] : vector<2x1x2048xf32> to vector<2x2048xf32>
    %cst_2 = arith.constant 1.000000e+00 : f32
    %3 = vector.broadcast %cst_2 : f32 to vector<2x2048xf32>
    %4 = arith.divf %2, %3 : vector<2x2048xf32>
    %c0_3 = arith.constant 0 : index
    %c0_4 = arith.constant 0 : index
    %5 = vector.load %arg1[%c0_3, %c0_4] : memref<2x2048xf32, #tpu.memory_space<vmem>>, vector<2x2048xf32>
    tpu.vector_store %arg1[%c0_3, %c0_4], %4 {strides = array<i32>} : memref<2x2048xf32, #tpu.memory_space<vmem>>, vector<2x2048xf32>,
    return
  }
}

module attributes {stable_mosaic.version = 11 : i64} {
  func.func @kernel(%arg0: i32, %arg1: i32, %arg2: i32, %arg3: memref<8x128xbf16, #tpu.memory_space<vmem>>, %arg4: memref<128x128xbf16, #tpu.memory_space<vmem>>, %arg5: memref<1x128xf32, #tpu.memory_space<vmem>>, %arg6: memref<8x128xf32, #tpu.memory_space<vmem>>, %arg7: memref<8x128xf32, #tpu.memory_space<vmem>>) attributes {dimension_semantics = [#tpu.dimension_semantics<parallel>, #tpu.dimension_semantics<parallel>, #tpu.dimension_semantics<arbitrary>], iteration_bounds = array<i64: 1, 1, 17>, scalar_prefetch = 0 : i64, scratch_operands = 1 : i64, tpu.core_type = #tpu.core_type<tc>, window_params = [{transform_indices = @transform_0, window_bounds = array<i64: 8, 128>}, {transform_indices = @transform_1, window_bounds = array<i64: 128, 128>}, {transform_indices = @transform_2, window_bounds = array<i64: 1, 128>}, {transform_indices = @transform_3, window_bounds = array<i64: 8, 128>}]} {
    %c0_i32 = arith.constant 0 : i32
    %0 = arith.cmpi eq, %arg2, %c0_i32 : i32
    %1 = arith.extui %0 : i1 to i32
    %c0_i32_0 = arith.constant 0 : i32
    %2 = arith.cmpi ne, %1, %c0_i32_0 : i32
    scf.if %2 {
      %cst_9 = arith.constant 0.000000e+00 : f32
      %12 = vector.broadcast %cst_9 : f32 to vector<8x128xf32>
      %c0_10 = arith.constant 0 : index
      %c0_11 = arith.constant 0 : index
      %13 = vector.load %arg7[%c0_10, %c0_11] : memref<8x128xf32, #tpu.memory_space<vmem>>, vector<8x128xf32>
      tpu.vector_store %arg7[%c0_10, %c0_11], %12 {strides = array<i32>} : memref<8x128xf32, #tpu.memory_space<vmem>>, vector<8x128xf32>,
    } else {
    }
    %c0 = arith.constant 0 : index
    %c0_1 = arith.constant 0 : index
    %3 = vector.load %arg7[%c0, %c0_1] : memref<8x128xf32, #tpu.memory_space<vmem>>, vector<8x128xf32>
    %c0_2 = arith.constant 0 : index
    %c0_3 = arith.constant 0 : index
    %4 = vector.load %arg3[%c0_2, %c0_3] : memref<8x128xbf16, #tpu.memory_space<vmem>>, vector<8x128xbf16>
    %c0_4 = arith.constant 0 : index
    %c0_5 = arith.constant 0 : index
    %5 = vector.load %arg4[%c0_4, %c0_5] : memref<128x128xbf16, #tpu.memory_space<vmem>>, vector<128x128xbf16>
    %cst = arith.constant dense<0.000000e+00> : vector<8x128xf32>
    %6 = tpu.matmul %4, %5, %cst {dimension_numbers = #tpu.dot_dimension_numbers<[1], [0], [0], [1], [0, 0, 1, 1], [], []>} : vector<8x128xbf16>, vector<128x128xbf16>, vector<8x128xf32> -> vector<8x128xf32>
    %7 = arith.addf %3, %6 : vector<8x128xf32>
    %c0_6 = arith.constant 0 : index
    %c0_7 = arith.constant 0 : index
    %8 = vector.load %arg7[%c0_6, %c0_7] : memref<8x128xf32, #tpu.memory_space<vmem>>, vector<8x128xf32>
    tpu.vector_store %arg7[%c0_6, %c0_7], %7 {strides = array<i32>} : memref<8x128xf32, #tpu.memory_space<vmem>>, vector<8x128xf32>,
    %c16_i32 = arith.constant 16 : i32
    %9 = arith.cmpi eq, %arg2, %c16_i32 : i32
    %10 = arith.extui %9 : i1 to i32
    %c0_i32_8 = arith.constant 0 : i32
    %11 = arith.cmpi ne, %10, %c0_i32_8 : i32
    scf.if %11 {
      %c0_9 = arith.constant 0 : index
      %c0_10 = arith.constant 0 : index
      %12 = vector.load %arg7[%c0_9, %c0_10] : memref<8x128xf32, #tpu.memory_space<vmem>>, vector<8x128xf32>
      %c0_11 = arith.constant 0 : index
      %c0_12 = arith.constant 0 : index
      %13 = vector.load %arg5[%c0_11, %c0_12] : memref<1x128xf32, #tpu.memory_space<vmem>>, vector<1x128xf32>
      %14 = vector.broadcast %13 : vector<1x128xf32> to vector<8x128xf32>
      %15 = arith.addf %12, %14 : vector<8x128xf32>
      %16 = arith.negf %15 : vector<8x128xf32>
      %17 = math.exp %16 : vector<8x128xf32>
      %cst_13 = arith.constant 1.000000e+00 : f32
      %18 = vector.broadcast %cst_13 : f32 to vector<8x128xf32>
      %19 = arith.addf %18, %17 : vector<8x128xf32>
      %20 = arith.divf %18, %19 : vector<8x128xf32>
      %c0_14 = arith.constant 0 : index
      %c0_15 = arith.constant 0 : index
      %21 = vector.load %arg6[%c0_14, %c0_15] : memref<8x128xf32, #tpu.memory_space<vmem>>, vector<8x128xf32>
      tpu.vector_store %arg6[%c0_14, %c0_15], %20 {strides = array<i32>} : memref<8x128xf32, #tpu.memory_space<vmem>>, vector<8x128xf32>,
    } else {
    }
    return
  }
  func.func @transform_0(%arg0: i32, %arg1: i32, %arg2: i32) -> (i32, i32) {
    %c0_i32 = arith.constant 0 : i32
    return %arg0, %arg2 : i32, i32
  }
  func.func @transform_1(%arg0: i32, %arg1: i32, %arg2: i32) -> (i32, i32) {
    %c0_i32 = arith.constant 0 : i32
    return %arg2, %arg1 : i32, i32
  }
  func.func @transform_2(%arg0: i32, %arg1: i32, %arg2: i32) -> (i32, i32) {
    %c0_i32 = arith.constant 0 : i32
    %c0_i32_0 = arith.constant 0 : i32
    return %c0_i32, %arg1 : i32, i32
  }
  func.func @transform_3(%arg0: i32, %arg1: i32, %arg2: i32) -> (i32, i32) {
    %c0_i32 = arith.constant 0 : i32
    return %arg0, %arg1 : i32, i32
  }
}

module attributes {stable_mosaic.version = 11 : i64} {
  func.func @kernel(%arg0: i32, %arg1: i32, %arg2: i32, %arg3: memref<8x128xbf16, #tpu.memory_space<vmem>>, %arg4: memref<128x128xbf16, #tpu.memory_space<vmem>>, %arg5: memref<1x128xf32, #tpu.memory_space<vmem>>, %arg6: memref<8x128xf32, #tpu.memory_space<vmem>>, %arg7: memref<8x128xf32, #tpu.memory_space<vmem>>) attributes {dimension_semantics = [#tpu.dimension_semantics<parallel>, #tpu.dimension_semantics<parallel>, #tpu.dimension_semantics<arbitrary>], iteration_bounds = array<i64: 1, 1, 1>, scalar_prefetch = 0 : i64, scratch_operands = 1 : i64, tpu.core_type = #tpu.core_type<tc>, window_params = [{transform_indices = @transform_0, window_bounds = array<i64: 8, 128>}, {transform_indices = @transform_1, window_bounds = array<i64: 128, 128>}, {transform_indices = @transform_2, window_bounds = array<i64: 1, 128>}, {transform_indices = @transform_3, window_bounds = array<i64: 8, 128>}]} {
    %c0_i32 = arith.constant 0 : i32
    %0 = arith.cmpi eq, %arg2, %c0_i32 : i32
    %1 = arith.extui %0 : i1 to i32
    %c0_i32_0 = arith.constant 0 : i32
    %2 = arith.cmpi ne, %1, %c0_i32_0 : i32
    scf.if %2 {
      %cst_10 = arith.constant 0.000000e+00 : f32
      %12 = vector.broadcast %cst_10 : f32 to vector<8x128xf32>
      %c0_11 = arith.constant 0 : index
      %c0_12 = arith.constant 0 : index
      %13 = vector.load %arg7[%c0_11, %c0_12] : memref<8x128xf32, #tpu.memory_space<vmem>>, vector<8x128xf32>
      tpu.vector_store %arg7[%c0_11, %c0_12], %12 {strides = array<i32>} : memref<8x128xf32, #tpu.memory_space<vmem>>, vector<8x128xf32>,
    } else {
    }
    %c0 = arith.constant 0 : index
    %c0_1 = arith.constant 0 : index
    %3 = vector.load %arg7[%c0, %c0_1] : memref<8x128xf32, #tpu.memory_space<vmem>>, vector<8x128xf32>
    %c0_2 = arith.constant 0 : index
    %c0_3 = arith.constant 0 : index
    %4 = vector.load %arg3[%c0_2, %c0_3] : memref<8x128xbf16, #tpu.memory_space<vmem>>, vector<8x128xbf16>
    %c0_4 = arith.constant 0 : index
    %c0_5 = arith.constant 0 : index
    %5 = vector.load %arg4[%c0_4, %c0_5] : memref<128x128xbf16, #tpu.memory_space<vmem>>, vector<128x128xbf16>
    %cst = arith.constant dense<0.000000e+00> : vector<8x128xf32>
    %6 = tpu.matmul %4, %5, %cst {dimension_numbers = #tpu.dot_dimension_numbers<[1], [0], [0], [1], [0, 0, 1, 1], [], []>} : vector<8x128xbf16>, vector<128x128xbf16>, vector<8x128xf32> -> vector<8x128xf32>
    %7 = arith.addf %3, %6 : vector<8x128xf32>
    %c0_6 = arith.constant 0 : index
    %c0_7 = arith.constant 0 : index
    %8 = vector.load %arg7[%c0_6, %c0_7] : memref<8x128xf32, #tpu.memory_space<vmem>>, vector<8x128xf32>
    tpu.vector_store %arg7[%c0_6, %c0_7], %7 {strides = array<i32>} : memref<8x128xf32, #tpu.memory_space<vmem>>, vector<8x128xf32>,
    %c0_i32_8 = arith.constant 0 : i32
    %9 = arith.cmpi eq, %arg2, %c0_i32_8 : i32
    %10 = arith.extui %9 : i1 to i32
    %c0_i32_9 = arith.constant 0 : i32
    %11 = arith.cmpi ne, %10, %c0_i32_9 : i32
    scf.if %11 {
      %c0_10 = arith.constant 0 : index
      %c0_11 = arith.constant 0 : index
      %12 = vector.load %arg7[%c0_10, %c0_11] : memref<8x128xf32, #tpu.memory_space<vmem>>, vector<8x128xf32>
      %c0_12 = arith.constant 0 : index
      %c0_13 = arith.constant 0 : index
      %13 = vector.load %arg5[%c0_12, %c0_13] : memref<1x128xf32, #tpu.memory_space<vmem>>, vector<1x128xf32>
      %14 = vector.broadcast %13 : vector<1x128xf32> to vector<8x128xf32>
      %15 = arith.addf %12, %14 : vector<8x128xf32>
      %c0_14 = arith.constant 0 : index
      %c0_15 = arith.constant 0 : index
      %16 = vector.load %arg6[%c0_14, %c0_15] : memref<8x128xf32, #tpu.memory_space<vmem>>, vector<8x128xf32>
      tpu.vector_store %arg6[%c0_14, %c0_15], %15 {strides = array<i32>} : memref<8x128xf32, #tpu.memory_space<vmem>>, vector<8x128xf32>,
    } else {
    }
    return
  }
  func.func @transform_0(%arg0: i32, %arg1: i32, %arg2: i32) -> (i32, i32) {
    %c0_i32 = arith.constant 0 : i32
    return %arg0, %arg2 : i32, i32
  }
  func.func @transform_1(%arg0: i32, %arg1: i32, %arg2: i32) -> (i32, i32) {
    %c0_i32 = arith.constant 0 : i32
    return %arg2, %arg1 : i32, i32
  }
  func.func @transform_2(%arg0: i32, %arg1: i32, %arg2: i32) -> (i32, i32) {
    %c0_i32 = arith.constant 0 : i32
    %c0_i32_0 = arith.constant 0 : i32
    return %c0_i32, %arg1 : i32, i32
  }
  func.func @transform_3(%arg0: i32, %arg1: i32, %arg2: i32) -> (i32, i32) {
    %c0_i32 = arith.constant 0 : i32
    return %arg0, %arg1 : i32, i32
  }
}

</mosaic_0001>

<bundles_post_ra>
// kernel: _lambda_.21
= control target key start
LH: loop header
LB: loop body
LE: loop exit
PB: predicated region body
PF: predicated region fallthrough
CT: control target
= control target key end

     0   :  { %s928_s1 = inlined_call_operand.vmem [shape: bf16[256,128], index: 1, kind: input, shape index: {}]   ;;  %s929_s0 = inlined_call_operand.vmem [shape: bf16[128,256], index: 0, kind: input, shape index: {}]   ;;  %s930_s2 = inlined_call_operand.vmem [shape: f32[1,128], index: 2, kind: input, shape index: {}]   ;;  %s931_s3 = inlined_call_operand.vmem [shape: bf16[128,128], index: 3, kind: output, shape index: {}]  }
   0x1   :  { %v646_v0 = vld [vmem:[%s928_s1 + $0x38] sm:$0xff]  ;;  %v645_v2 = vld [vmem:[%s928_s1 + $0x30] sm:$0xff]  ;;  %v644_v4 = vld [vmem:[%s928_s1 + $0x28] sm:$0xff] }
   0x2   :  { %v654_v1 = vld [vmem:[%s928_s1 + $0x78] sm:$0xff]  ;;  %274 = vmatpush.bf16.msra.mxu0 %v646_v0  ;;  %702 = vmatpush.bf16.msra.mxu2 %v646_v0  ;;  %v653_v3 = vld [vmem:[%s928_s1 + $0x70] sm:$0xff]  ;;  %v652_v5 = vld [vmem:[%s928_s1 + $0x68] sm:$0xff] }
   0x3   :  { %323 = vmatpush.bf16.msra.mxu1 %v654_v1  ;;  %710 = vmatpush.bf16.msra.mxu3 %v654_v1  ;;  %v643_v6 = vld [vmem:[%s928_s1 + $0x20] sm:$0xff]  ;;  %v642_v8 = vld [vmem:[%s928_s1 + $0x18] sm:$0xff]  ;;  %v641_v10 = vld [vmem:[%s928_s1 + $0x10] sm:$0xff] }
   0x4   :  { %v651_v7 = vld [vmem:[%s928_s1 + $0x60] sm:$0xff]  ;;  %v650_v9 = vld [vmem:[%s928_s1 + $0x58] sm:$0xff]  ;;  %v649_v11 = vld [vmem:[%s928_s1 + $0x50] sm:$0xff] }
   0x5   :  { %v640_v12 = vld [vmem:[%s928_s1 + $0x8] sm:$0xff]  ;;  %v639_v14 = vld [vmem:[%s928_s1] sm:$0xff]  ;;  %v505_v28 = vld [vmem:[%s929_s0 + $0x10] sm:$0xf] }
   0x6   :  { %275 = vmatpush.bf16.msra.mxu0 %v645_v2  ;;  %703 = vmatpush.bf16.msra.mxu2 %v645_v2  ;;  %v648_v13 = vld [vmem:[%s928_s1 + $0x48] sm:$0xff]  ;;  %v647_v15 = vld [vmem:[%s928_s1 + $0x40] sm:$0xff]  ;;  %v626_v29 = vld [vmem:[%s929_s0 + $0x14] sm:$0xf0] }
   0x7   :  { %324 = vmatpush.bf16.msra.mxu1 %v653_v3  ;;  %711 = vmatpush.bf16.msra.mxu3 %v653_v3  ;;  %v497_v16 = vld [vmem:[%s929_s0] sm:$0xf]  ;;  %v624_v17 = vld [vmem:[%s929_s0 + $0x4] sm:$0xf0]  ;;  %v623_v20 = vld [vmem:[%s929_s0 + $0x4] sm:$0xf]  ;;  %v506_v36 = vor.u32 %v626_v29, %v505_v28 }
   0x8   :  { %v529_v18 = vld [vmem:[%s929_s0 + $0x40] sm:$0xf]  ;;  %v632_v19 = vld [vmem:[%s929_s0 + $0x44] sm:$0xf0]  ;;  %v499_v21 = vld [vmem:[%s929_s0 + $0x8] sm:$0xf0]  ;;  %v498_v24 = vor.u32 %v624_v17, %v497_v16 }
   0x9   :  { %v631_v22 = vld [vmem:[%s929_s0 + $0x44] sm:$0xf]  ;;  %v531_v23 = vld [vmem:[%s929_s0 + $0x48] sm:$0xf0]  ;;  %v530_v25 = vor.u32 %v632_v19, %v529_v18  ;;  %v502_v26 = vor.u32 %v623_v20, %v499_v21  ;;  %v537_v30 = vld [vmem:[%s929_s0 + $0x50] sm:$0xf] }
   0xa   :  { %276 = vmatpush.bf16.msra.mxu0 %v644_v4  ;;  %704 = vmatpush.bf16.msra.mxu2 %v644_v4  ;;  %v534_v27 = vor.u32 %v631_v22, %v531_v23  ;;  %v634_v31 = vld [vmem:[%s929_s0 + $0x54] sm:$0xf0]  ;;  %v625_v32 = vld [vmem:[%s929_s0 + $0x14] sm:$0xf]  ;;  %v507_v33 = vld [vmem:[%s929_s0 + $0x18] sm:$0xf0] }
   0xb   :  { %325 = vmatpush.bf16.msra.mxu1 %v652_v5  ;;  %712 = vmatpush.bf16.msra.mxu3 %v652_v5  ;;  %v633_v34 = vld [vmem:[%s929_s0 + $0x54] sm:$0xf]  ;;  %v539_v35 = vld [vmem:[%s929_s0 + $0x58] sm:$0xf0]  ;;  %v538_v37 = vor.u32 %v634_v31, %v537_v30  ;;  %v510_v38 = vor.u32 %v625_v32, %v507_v33  ;;  %v513_v40 = vld [vmem:[%s929_s0 + $0x20] sm:$0xf] }
   0xc   :  { %v542_v39 = vor.u32 %v633_v34, %v539_v35  ;;  %v628_v41 = vld [vmem:[%s929_s0 + $0x24] sm:$0xf0]  ;;  %v545_v42 = vld [vmem:[%s929_s0 + $0x60] sm:$0xf]  ;;  %v627_v44 = vld [vmem:[%s929_s0 + $0x24] sm:$0xf] }
   0xd   :  { %v636_v43 = vld [vmem:[%s929_s0 + $0x64] sm:$0xf0]  ;;  %v515_v45 = vld [vmem:[%s929_s0 + $0x28] sm:$0xf0]  ;;  %v635_v46 = vld [vmem:[%s929_s0 + $0x64] sm:$0xf]  ;;  %v514_v48 = vor.u32 %v628_v41, %v513_v40 }
   0xe   :  { %277 = vmatpush.bf16.msra.mxu0 %v643_v6  ;;  %705 = vmatpush.bf16.msra.mxu2 %v643_v6  ;;  %v547_v47 = vld [vmem:[%s929_s0 + $0x68] sm:$0xf0]  ;;  %v546_v49 = vor.u32 %v636_v43, %v545_v42  ;;  %v518_v50 = vor.u32 %v627_v44, %v515_v45  ;;  %v521_v52 = vld [vmem:[%s929_s0 + $0x30] sm:$0xf]  ;;  %v630_v53 = vld [vmem:[%s929_s0 + $0x34] sm:$0xf0] }
   0xf   :  { %326 = vmatpush.bf16.msra.mxu1 %v651_v7  ;;  %713 = vmatpush.bf16.msra.mxu3 %v651_v7  ;;  %v550_v51 = vor.u32 %v635_v46, %v547_v47  ;;  %v553_v54 = vld [vmem:[%s929_s0 + $0x70] sm:$0xf]  ;;  %v638_v55 = vld [vmem:[%s929_s0 + $0x74] sm:$0xf0]  ;;  %v629_v56 = vld [vmem:[%s929_s0 + $0x34] sm:$0xf]  ;;  %v522_v60 = vor.u32 %v630_v53, %v521_v52 }
  0x10   :  { %v523_v57 = vld [vmem:[%s929_s0 + $0x38] sm:$0xf0]  ;;  %v637_v58 = vld [vmem:[%s929_s0 + $0x74] sm:$0xf]  ;;  %v554_v61 = vor.u32 %v638_v55, %v553_v54  ;;  %v886_v3 = vld [vmem:[%s930_s2] ss:$0 sm:$0xff] }
  0x11   :  { %v555_v59 = vld [vmem:[%s929_s0 + $0x78] sm:$0xf0]  ;;  %v526_v62 = vor.u32 %v629_v56, %v523_v57 }
  0x12   :  { %278 = vmatpush.bf16.msra.mxu0 %v642_v8  ;;  %706 = vmatpush.bf16.msra.mxu2 %v642_v8  ;;  %v558_v63 = vor.u32 %v637_v58, %v555_v59 }
  0x13   :  { %327 = vmatpush.bf16.msra.mxu1 %v650_v9  ;;  %714 = vmatpush.bf16.msra.mxu3 %v650_v9 }
  0x16   :  { %279 = vmatpush.bf16.msra.mxu0 %v641_v10  ;;  %707 = vmatpush.bf16.msra.mxu2 %v641_v10 }
  0x17   :  { %328 = vmatpush.bf16.msra.mxu1 %v649_v11  ;;  %715 = vmatpush.bf16.msra.mxu3 %v649_v11 }
  0x1a   :  { %280 = vmatpush.bf16.msra.mxu0 %v640_v12  ;;  %708 = vmatpush.bf16.msra.mxu2 %v640_v12 }
  0x1b   :  { %329 = vmatpush.bf16.msra.mxu1 %v648_v13  ;;  %716 = vmatpush.bf16.msra.mxu3 %v648_v13 }
  0x1e   :  { %281 = vmatpush.bf16.msra.mxu0 %v639_v14  ;;  %709 = vmatpush.bf16.msra.mxu2 %v639_v14 }
  0x1f   :  { %330 = vmatpush.bf16.msra.mxu1 %v647_v15  ;;  %717 = vmatpush.bf16.msra.mxu3 %v647_v15 }
  0x21   :  { %282 = vmatmul.bf16.vlgmr.msra.gmra.mxu0 %v498_v24  ;;  %302 = vmatmul.bf16.vlgmr.msra.gmra.mxu2 %v530_v25 }
  0x22   :  { %331 = vmatmul.bf16.vlgmr.msra.gmra.mxu1 %v502_v26  ;;  %351 = vmatmul.bf16.vlgmr.msra.gmra.mxu3 %v534_v27 }
  0x31   :  { %287 = vmatmul.bf16.gmra.mxu0 %v506_v36  ;;  %307 = vmatmul.bf16.gmra.mxu2 %v538_v37 }
  0x32   :  { %336 = vmatmul.bf16.gmra.mxu1 %v510_v38  ;;  %356 = vmatmul.bf16.gmra.mxu3 %v542_v39 }
  0x41   :  { %292 = vmatmul.bf16.gmra.mxu0 %v514_v48  ;;  %312 = vmatmul.bf16.gmra.mxu2 %v546_v49 }
  0x42   :  { %341 = vmatmul.bf16.gmra.mxu1 %v518_v50  ;;  %361 = vmatmul.bf16.gmra.mxu3 %v550_v51 }
  0x51   :  { %297 = vmatmul.bf16.gmra.mxu0 %v522_v60  ;;  %317 = vmatmul.bf16.gmra.mxu2 %v554_v61 }
  0x52   :  { %346 = vmatmul.bf16.gmra.mxu1 %v526_v62  ;;  %366 = vmatmul.bf16.gmra.mxu3 %v558_v63 }
  0x9e   :  { %v283_v0 = vpop.f32.mrf.mxu0 }
  0x9f   :  { %v332_v1 = vpop.f32.mrf.mxu1 }
  0xa0   :  { %v333_v2 = vadd.f32 %v332_v1, %v283_v0 }
  0xa2   :  { %v427_v8 = vadd.f32 %v886_v3, %v333_v2 }
  0xa4   :  { %v303_v4 = vpop.f32.mrf.mxu2  ;;  %v443_v12 = vmax.f32 %v427_v8, 0.0 }
  0xa5   :  { %v352_v5 = vpop.f32.mrf.mxu3 }
  0xa6   :  { %v285_v6 = vpop.f32.mrf.mxu0  ;;  %v353_v10 = vadd.f32 %v352_v5, %v303_v4 }
  0xa7   :  { %v334_v7 = vpop.f32.mrf.mxu1 }
  0xa8   :  { %v335_v9 = vadd.f32 %v334_v7, %v285_v6  ;;  %v435_v16 = vadd.f32 %v886_v3, %v353_v10 }
  0xaa   :  { %v428_v11 = vadd.f32 %v886_v3, %v335_v9  ;;  %v451_v22 = vmax.f32 %v435_v16, 0.0 }
  0xac   :  { %v444_v13 = vmax.f32 %v428_v11, 0.0  ;;  %v305_v14 = vpop.f32.mrf.mxu2 }
  0xad   :  { %v354_v15 = vpop.f32.mrf.mxu3 }
  0xae   :  { %v658_v17 = vpack.c.bf16 %v444_v13, %v443_v12  ;;  %v355_v18 = vadd.f32 %v354_v15, %v305_v14  ;;  %v288_v19 = vpop.f32.mrf.mxu0 }
  0xaf   :  { %v337_v20 = vpop.f32.mrf.mxu1 }
  0xb0   :  { %659 = vst [vmem:[%s931_s3] sm:$0xff] %v658_v17   ;;  %v436_v21 = vadd.f32 %v886_v3, %v355_v18  ;;  %v338_v25 = vadd.f32 %v337_v20, %v288_v19 }
  0xb2   :  { %v452_v23 = vmax.f32 %v436_v21, 0.0  ;;  %v429_v30 = vadd.f32 %v886_v3, %v338_v25 }
  0xb4   :  { %v678_v24 = vpack.c.bf16 %v452_v23, %v451_v22  ;;  %v308_v26 = vpop.f32.mrf.mxu2  ;;  %v445_v34 = vmax.f32 %v429_v30, 0.0 }
  0xb5   :  { %v357_v27 = vpop.f32.mrf.mxu3 }
  0xb6   :  { %698 = vst [vmem:[%s931_s3 + $0x20] sm:$0xff] %v678_v24   ;;  %v290_v28 = vpop.f32.mrf.mxu0  ;;  %v358_v32 = vadd.f32 %v357_v27, %v308_v26 }
  0xb7   :  { %v339_v29 = vpop.f32.mrf.mxu1 }
  0xb8   :  { %v340_v31 = vadd.f32 %v339_v29, %v290_v28  ;;  %v437_v38 = vadd.f32 %v886_v3, %v358_v32 }
  0xba   :  { %v430_v33 = vadd.f32 %v886_v3, %v340_v31  ;;  %v453_v44 = vmax.f32 %v437_v38, 0.0 }
  0xbc   :  { %v446_v35 = vmax.f32 %v430_v33, 0.0  ;;  %v310_v36 = vpop.f32.mrf.mxu2 }
  0xbd   :  { %v359_v37 = vpop.f32.mrf.mxu3 }
  0xbe   :  { %v663_v39 = vpack.c.bf16 %v446_v35, %v445_v34  ;;  %v360_v40 = vadd.f32 %v359_v37, %v310_v36  ;;  %v293_v41 = vpop.f32.mrf.mxu0 }
  0xbf   :  { %v342_v42 = vpop.f32.mrf.mxu1 }
  0xc0   :  { %695 = vst [vmem:[%s931_s3 + $0x8] sm:$0xff] %v663_v39   ;;  %v438_v43 = vadd.f32 %v886_v3, %v360_v40  ;;  %v343_v47 = vadd.f32 %v342_v42, %v293_v41 }
  0xc2   :  { %v454_v45 = vmax.f32 %v438_v43, 0.0  ;;  %v431_v52 = vadd.f32 %v886_v3, %v343_v47 }
  0xc4   :  { %v683_v46 = vpack.c.bf16 %v454_v45, %v453_v44  ;;  %v313_v48 = vpop.f32.mrf.mxu2  ;;  %v447_v56 = vmax.f32 %v431_v52, 0.0 }
  0xc5   :  { %v362_v49 = vpop.f32.mrf.mxu3 }
  0xc6   :  { %699 = vst [vmem:[%s931_s3 + $0x28] sm:$0xff] %v683_v46   ;;  %v295_v50 = vpop.f32.mrf.mxu0  ;;  %v363_v54 = vadd.f32 %v362_v49, %v313_v48 }
  0xc7   :  { %v344_v51 = vpop.f32.mrf.mxu1 }
  0xc8   :  { %v345_v53 = vadd.f32 %v344_v51, %v295_v50  ;;  %v439_v60 = vadd.f32 %v886_v3, %v363_v54 }
  0xca   :  { %v432_v55 = vadd.f32 %v886_v3, %v345_v53  ;;  %v455_v2 = vmax.f32 %v439_v60, 0.0 }
  0xcc   :  { %v448_v57 = vmax.f32 %v432_v55, 0.0  ;;  %v315_v58 = vpop.f32.mrf.mxu2 }
  0xcd   :  { %v364_v59 = vpop.f32.mrf.mxu3 }
  0xce   :  { %v668_v61 = vpack.c.bf16 %v448_v57, %v447_v56  ;;  %v365_v62 = vadd.f32 %v364_v59, %v315_v58  ;;  %v298_v63 = vpop.f32.mrf.mxu0 }
  0xcf   :  { %v347_v0 = vpop.f32.mrf.mxu1 }
  0xd0   :  { %696 = vst [vmem:[%s931_s3 + $0x10] sm:$0xff] %v668_v61   ;;  %v440_v1 = vadd.f32 %v886_v3, %v365_v62  ;;  %v348_v6 = vadd.f32 %v347_v0, %v298_v63 }
  0xd2   :  { %v456_v4 = vmax.f32 %v440_v1, 0.0  ;;  %v433_v11 = vadd.f32 %v886_v3, %v348_v6 }
  0xd4   :  { %v688_v5 = vpack.c.bf16 %v456_v4, %v455_v2  ;;  %v318_v7 = vpop.f32.mrf.mxu2  ;;  %v449_v15 = vmax.f32 %v433_v11, 0.0 }
  0xd5   :  { %v367_v8 = vpop.f32.mrf.mxu3 }
  0xd6   :  { %700 = vst [vmem:[%s931_s3 + $0x30] sm:$0xff] %v688_v5   ;;  %v300_v9 = vpop.f32.mrf.mxu0  ;;  %v368_v13 = vadd.f32 %v367_v8, %v318_v7 }
  0xd7   :  { %v349_v10 = vpop.f32.mrf.mxu1 }
  0xd8   :  { %v350_v12 = vadd.f32 %v349_v10, %v300_v9  ;;  %v441_v19 = vadd.f32 %v886_v3, %v368_v13 }
  0xda   :  { %v434_v14 = vadd.f32 %v886_v3, %v350_v12  ;;  %v457_v23 = vmax.f32 %v441_v19, 0.0 }
  0xdc   :  { %v450_v16 = vmax.f32 %v434_v14, 0.0  ;;  %v320_v17 = vpop.f32.mrf.mxu2 }
  0xdd   :  { %v369_v18 = vpop.f32.mrf.mxu3 }
  0xde   :  { %v673_v20 = vpack.c.bf16 %v450_v16, %v449_v15  ;;  %v370_v21 = vadd.f32 %v369_v18, %v320_v17 }
  0xe0   :  { %697 = vst [vmem:[%s931_s3 + $0x18] sm:$0xff] %v673_v20   ;;  %v442_v22 = vadd.f32 %v886_v3, %v370_v21 }
  0xe2   :  { %v458_v24 = vmax.f32 %v442_v22, 0.0 }
  0xe4   :  { %v693_v25 = vpack.c.bf16 %v458_v24, %v457_v23 }
  0xe6   :  { %701 = vst [vmem:[%s931_s3 + $0x38] sm:$0xff] %v693_v25  }

// kernel: _lambda_.23
= control target key start
LH: loop header
LB: loop body
LE: loop exit
PB: predicated region body
PF: predicated region fallthrough
CT: control target
= control target key end

     0   :  { %s293_s1 = inlined_call_operand.vmem [shape: bf16[128,128], index: 1, kind: input, shape index: {}]   ;;  %s294_s2 = inlined_call_operand.vmem [shape: f32[1,128], index: 2, kind: input, shape index: {}]   ;;  %s295_s0 = inlined_call_operand.vmem [shape: bf16[32,128], index: 0, kind: input, shape index: {}]   ;;  %s296_s3 = inlined_call_operand.vmem [shape: bf16[32,128], index: 3, kind: output, shape index: {}]  }
   0x1   :  { %v213_v0 = vld [vmem:[%s293_s1 + $0x38] sm:$0xff]  ;;  %v212_v1 = vld [vmem:[%s293_s1 + $0x30] sm:$0xff]  ;;  %v211_v2 = vld [vmem:[%s293_s1 + $0x28] sm:$0xff] }
   0x2   :  { %106 = vmatpush.bf16.msra.mxu0 %v213_v0  ;;  %225 = vmatpush.bf16.msra.mxu1 %v213_v0  ;;  %v210_v3 = vld [vmem:[%s293_s1 + $0x20] sm:$0xff]  ;;  %v209_v4 = vld [vmem:[%s293_s1 + $0x18] sm:$0xff]  ;;  %v208_v5 = vld [vmem:[%s293_s1 + $0x10] sm:$0xff] }
   0x3   :  { %v207_v6 = vld [vmem:[%s293_s1 + $0x8] sm:$0xff]  ;;  %v206_v7 = vld [vmem:[%s293_s1] sm:$0xff] }
   0x4   :  { %v204_v8 = vld [vmem:[%s295_s0] sm:$0xff]  ;;  %v205_v9 = vld [vmem:[%s295_s0 + $0x8] sm:$0xff] }
   0x5   :  { %v233_v12 = vld [vmem:[%s294_s2] ss:$0 sm:$0xff] }
   0x6   :  { %107 = vmatpush.bf16.msra.mxu0 %v212_v1  ;;  %226 = vmatpush.bf16.msra.mxu1 %v212_v1 }
   0xa   :  { %108 = vmatpush.bf16.msra.mxu0 %v211_v2  ;;  %227 = vmatpush.bf16.msra.mxu1 %v211_v2 }
   0xe   :  { %109 = vmatpush.bf16.msra.mxu0 %v210_v3  ;;  %228 = vmatpush.bf16.msra.mxu1 %v210_v3 }
  0x12   :  { %110 = vmatpush.bf16.msra.mxu0 %v209_v4  ;;  %229 = vmatpush.bf16.msra.mxu1 %v209_v4 }
  0x16   :  { %111 = vmatpush.bf16.msra.mxu0 %v208_v5  ;;  %230 = vmatpush.bf16.msra.mxu1 %v208_v5 }
  0x1a   :  { %112 = vmatpush.bf16.msra.mxu0 %v207_v6  ;;  %231 = vmatpush.bf16.msra.mxu1 %v207_v6 }
  0x1e   :  { %113 = vmatpush.bf16.msra.mxu0 %v206_v7  ;;  %232 = vmatpush.bf16.msra.mxu1 %v206_v7 }
  0x21   :  { %114 = vmatmul.bf16.vlgmr.msra.gmra.mxu0 %v204_v8  ;;  %119 = vmatmul.bf16.vlgmr.msra.gmra.mxu1 %v205_v9 }
  0x9e   :  { %v115_v10 = vpop.f32.mrf.mxu0  ;;  %v120_v11 = vpop.f32.mrf.mxu1 }
  0x9f   :  { %v144_v13 = vadd.f32 %v233_v12, %v115_v10  ;;  %v146_v14 = vadd.f32 %v233_v12, %v120_v11 }
  0xa1   :  { %v148_v19 = vmax.f32 %v144_v13, 0.0  ;;  %v150_v20 = vmax.f32 %v146_v14, 0.0 }
  0xa6   :  { %v117_v15 = vpop.f32.mrf.mxu0  ;;  %v122_v16 = vpop.f32.mrf.mxu1 }
  0xa7   :  { %v145_v17 = vadd.f32 %v233_v12, %v117_v15  ;;  %v147_v18 = vadd.f32 %v233_v12, %v122_v16 }
  0xa9   :  { %v149_v21 = vmax.f32 %v145_v17, 0.0  ;;  %v151_v22 = vmax.f32 %v147_v18, 0.0 }
  0xab   :  { %v217_v23 = vpack.c.bf16 %v149_v21, %v148_v19  ;;  %v222_v24 = vpack.c.bf16 %v151_v22, %v150_v20 }
  0xad   :  { %218 = vst [vmem:[%s296_s3] sm:$0xff] %v217_v23  }
  0xae   :  { %224 = vst [vmem:[%s296_s3 + $0x8] sm:$0xff] %v222_v24  }

// kernel: _lambda_.22
= control target key start
LH: loop header
LB: loop body
LE: loop exit
PB: predicated region body
PF: predicated region fallthrough
CT: control target
= control target key end

     0   :  { %vm1680_vm0 = vcmask 516096   ;;  %s3052_s0 = inlined_call_operand.vmem [shape: bf16[10,10,2,64], index: 0, kind: input, shape index: {}]   ;;  %s3053_s1 = inlined_call_operand.vmem [shape: bf16[8,8,2,64], index: 1, kind: output, shape index: {}]  }
   0x1   :  { %v8_v0 = vld [vmem:[%s3052_s0] sm:$0x1]  ;;  %v9_v1 = vld [vmem:[%s3052_s0 + $0x1] sm:$0x1]  ;;  %v10_v2 = vld [vmem:[%s3052_s0 + $0x2] sm:$0x1] }
   0x2   :  { %v1771_v3 = vld [vmem:[%s3052_s0 + $0xa] sm:$0x1]  ;;  %v19_v4 = vld [vmem:[%s3052_s0 + $0xb] sm:$0x1]  ;;  %v20_v5 = vld [vmem:[%s3052_s0 + $0xc] sm:$0x1]  ;;  %v108_v6 = vunpack.c.l.bf16 %v8_v0  ;;  %v109_v7 = vunpack.c.l.bf16 %v9_v1  ;;  %v110_v8 = vunpack.c.l.bf16 %v10_v2 }
   0x3   :  { %v28_v9 = vld [vmem:[%s3052_s0 + $0x14] sm:$0x1]  ;;  %v29_v10 = vld [vmem:[%s3052_s0 + $0x15] sm:$0x1]  ;;  %v30_v11 = vld [vmem:[%s3052_s0 + $0x16] sm:$0x1]  ;;  %v116_v12 = vunpack.c.l.bf16 %v1771_v3  ;;  %v1789_v13 = vunpack.c.l.bf16 %v19_v4  ;;  %v1791_v14 = vunpack.c.l.bf16 %v20_v5 }
   0x4   :  { %v1793_v15 = vunpack.c.l.bf16 %v28_v9  ;;  %v1795_v16 = vunpack.c.l.bf16 %v29_v10  ;;  %v1797_v17 = vunpack.c.l.bf16 %v30_v11  ;;  %v180_v18 = vmax.f32 %v108_v6, %v109_v7  ;;  %v11_v19 = vld [vmem:[%s3052_s0 + $0x3] sm:$0x1]  ;;  %v21_v20 = vld [vmem:[%s3052_s0 + $0xd] sm:$0x1]  ;;  %v31_v21 = vld [vmem:[%s3052_s0 + $0x17] sm:$0x1] }
   0x5   :  { %v111_v22 = vunpack.c.l.bf16 %v11_v19  ;;  %v1808_v23 = vunpack.c.l.bf16 %v21_v20  ;;  %v1810_v24 = vunpack.c.l.bf16 %v31_v21  ;;  %v181_v25 = vmax.f32 %v109_v7, %v110_v8  ;;  %v12_v26 = vld [vmem:[%s3052_s0 + $0x4] sm:$0x1]  ;;  %v22_v27 = vld [vmem:[%s3052_s0 + $0xe] sm:$0x1]  ;;  %v32_v28 = vld [vmem:[%s3052_s0 + $0x18] sm:$0x1] }
   0x6   :  { %v196_v29 = vmax.f32 %v1793_v15, %v1795_v16  ;;  %v380_v30 = vmax.f32 %v180_v18, %v110_v8  ;;  %v112_v31 = vunpack.c.l.bf16 %v12_v26  ;;  %v1823_v32 = vunpack.c.l.bf16 %v22_v27  ;;  %v13_v33 = vld [vmem:[%s3052_s0 + $0x5] sm:$0x1]  ;;  %v23_v34 = vld [vmem:[%s3052_s0 + $0xf] sm:$0x1]  ;;  %v33_v35 = vld [vmem:[%s3052_s0 + $0x19] sm:$0x1] }
   0x7   :  { %v381_v36 = vmax.f32 %v181_v25, %v111_v22  ;;  %v1834_v37 = vunpack.c.l.bf16 %v32_v28  ;;  %v182_v38 = vmax.f32 %v110_v8, %v111_v22  ;;  %v113_v39 = vunpack.c.l.bf16 %v13_v33  ;;  %v14_v40 = vld [vmem:[%s3052_s0 + $0x6] sm:$0x1]  ;;  %v24_v41 = vld [vmem:[%s3052_s0 + $0x10] sm:$0x1]  ;;  %v34_v42 = vld [vmem:[%s3052_s0 + $0x1a] sm:$0x1] }
   0x8   :  { %v580_v43 = vmax.f32 %v380_v30, %v116_v12  ;;  %v1847_v44 = vunpack.c.l.bf16 %v23_v34  ;;  %v1849_v45 = vunpack.c.l.bf16 %v33_v35  ;;  %v183_v46 = vmax.f32 %v111_v22, %v112_v31  ;;  %v15_v47 = vld [vmem:[%s3052_s0 + $0x7] sm:$0x1]  ;;  %v25_v48 = vld [vmem:[%s3052_s0 + $0x11] sm:$0x1]  ;;  %v35_v53 = vld [vmem:[%s3052_s0 + $0x1b] sm:$0x1] }
   0x9   :  { %v581_v49 = vmax.f32 %v381_v36, %v1789_v13  ;;  %v382_v50 = vmax.f32 %v182_v38, %v112_v31  ;;  %v114_v51 = vunpack.c.l.bf16 %v14_v40  ;;  %v1858_v52 = vunpack.c.l.bf16 %v24_v41  ;;  %v16_v58 = vld [vmem:[%s3052_s0 + $0x8] sm:$0x1]  ;;  %v26_v63 = vld [vmem:[%s3052_s0 + $0x12] sm:$0x1]  ;;  %v36_v5 = vld [vmem:[%s3052_s0 + $0x1c] sm:$0x1] }
   0xa   :  { %v773_v54 = vmax.f32 %v580_v43, %v1789_v13  ;;  %v383_v55 = vmax.f32 %v183_v46, %v113_v39  ;;  %v1864_v56 = vunpack.c.l.bf16 %v34_v42  ;;  %v184_v57 = vmax.f32 %v112_v31, %v113_v39  ;;  %v17_v46 = vld [vmem:[%s3052_s0 + $0x9] sm:$0x1] }
   0xb   :  { %v774_v59 = vmax.f32 %v581_v49, %v1791_v14  ;;  %v582_v60 = vmax.f32 %v382_v50, %v1791_v14  ;;  %v115_v61 = vunpack.c.l.bf16 %v15_v47  ;;  %v1871_v62 = vunpack.c.l.bf16 %v25_v48 }
   0xc   :  { %v966_v0 = vmax.f32 %v773_v54, %v1791_v14  ;;  %v583_v1 = vmax.f32 %v383_v55, %v1808_v23  ;;  %v384_v2 = vmax.f32 %v184_v57, %v114_v51  ;;  %v1878_v4 = vunpack.c.l.bf16 %v35_v53  ;;  %v27_v53 = vld [vmem:[%s3052_s0 + $0x13] sm:$0x1]  ;;  %v37_v54 = vld [vmem:[%s3052_s0 + $0x1d] sm:$0x1] }
   0xd   :  { %v967_v6 = vmax.f32 %v774_v59, %v1808_v23  ;;  %v775_v7 = vmax.f32 %v582_v60, %v1808_v23  ;;  %v185_v8 = vmax.f32 %v113_v39, %v114_v51  ;;  %v172_v9 = vunpack.c.l.bf16 %v16_v58 }
   0xe   :  { %v1166_v10 = vmax.f32 %v966_v0, %v1793_v15  ;;  %v776_v11 = vmax.f32 %v583_v1, %v1823_v32  ;;  %v584_v18 = vmax.f32 %v384_v2, %v1823_v32  ;;  %v1888_v19 = vunpack.c.l.bf16 %v26_v63  ;;  %v38_v1 = vld [vmem:[%s3052_s0 + $0x1e] sm:$0x1] }
   0xf   :  { %v1167_v20 = vmax.f32 %v967_v6, %v1795_v16  ;;  %v968_v21 = vmax.f32 %v775_v7, %v1823_v32  ;;  %v385_v22 = vmax.f32 %v185_v8, %v115_v61  ;;  %v1892_v25 = vunpack.c.l.bf16 %v36_v5  ;;  %v39_v8 = vld [vmem:[%s3052_s0 + $0x1f] sm:$0x1] }
  0x10   :  { %v1359_v26 = vmax.f32 %v1166_v10, %v1795_v16  ;;  %v969_v27 = vmax.f32 %v776_v11, %v1847_v44  ;;  %v777_v28 = vmax.f32 %v584_v18, %v1847_v44  ;;  %v186_v30 = vmax.f32 %v114_v51, %v115_v61 }
  0x11   :  { %v1360_v31 = vmax.f32 %v1167_v20, %v1797_v17  ;;  %v1168_v33 = vmax.f32 %v968_v21, %v1797_v17  ;;  %v585_v34 = vmax.f32 %v385_v22, %v1847_v44  ;;  %v187_v35 = vmax.f32 %v115_v61, %v172_v9  ;;  %v40_v20 = vld [vmem:[%s3052_s0 + $0x20] sm:$0x1]  ;;  %v41_v21 = vld [vmem:[%s3052_s0 + $0x21] sm:$0x1] }
  0x12   :  { %v1552_v36 = vmax.f32 %v1359_v26, %v1797_v17  ;;  %v1169_v38 = vmax.f32 %v969_v27, %v1810_v24  ;;  %v970_v39 = vmax.f32 %v777_v28, %v1858_v52  ;;  %v386_v40 = vmax.f32 %v186_v30, %v172_v9 }
  0x13   :  { %v1553_v41 = vmax.f32 %v1360_v31, %v1810_v24  ;;  %v1361_v42 = vmax.f32 %v1168_v33, %v1810_v24  ;;  %v778_v43 = vmax.f32 %v585_v34, %v1858_v52  ;;  %v195_v47 = vmax.f32 %v1871_v62, %v1888_v19 }
  0x14   :  { %v1616_v48 = vpack.c.bf16 %v1552_v36, %v1552_v36  ;;  %v1362_v49 = vmax.f32 %v1169_v38, %v1834_v37  ;;  %v1170_v50 = vmax.f32 %v970_v39, %v1834_v37  ;;  %v586_v51 = vmax.f32 %v386_v40, %v1858_v52 }
  0x15   :  { %v1617_v55 = vpack.c.bf16 %v1553_v41, %v1553_v41  ;;  %v1554_v57 = vmax.f32 %v1361_v42, %v1834_v37  ;;  %v971_v58 = vmax.f32 %v778_v43, %v1871_v62  ;;  %v203_v59 = vmax.f32 %v1878_v4, %v1892_v25  ;;  %v43_v41 = vld [vmem:[%s3052_s0 + $0x23] sm:$0x1] }
  0x16   :  { %1681 = vst.msk [vmem:[%s3053_s1] sm:$0x1] %vm1680_vm0, %v1616_v48  ;;  %v1555_v60 = vmax.f32 %v1362_v49, %v1849_v45  ;;  %v1363_v61 = vmax.f32 %v1170_v50, %v1849_v45  ;;  %v779_v63 = vmax.f32 %v586_v51, %v1871_v62  ;;  %v372_v0 = vunpack.c.l.bf16 %v17_v46 }
  0x17   :  { %1682 = vst.msk [vmem:[%s3053_s1 + $0x1] sm:$0x1] %vm1680_vm0, %v1617_v55  ;;  %v1618_v2 = vpack.c.bf16 %v1554_v57, %v1554_v57  ;;  %v1171_v5 = vmax.f32 %v971_v58, %v1849_v45  ;;  %v373_v6 = vunpack.c.l.bf16 %v27_v53  ;;  %v1939_v7 = vunpack.c.l.bf16 %v37_v54 }
  0x18   :  { %v1619_v9 = vpack.c.bf16 %v1555_v60, %v1555_v60  ;;  %v1556_v10 = vmax.f32 %v1363_v61, %v1864_v56  ;;  %v972_v11 = vmax.f32 %v779_v63, %v1888_v19  ;;  %v387_v18 = vmax.f32 %v187_v35, %v372_v0  ;;  %v42_v35 = vld [vmem:[%s3052_s0 + $0x22] sm:$0x1] }
  0x19   :  { %1683 = vst.msk [vmem:[%s3053_s1 + $0x2] sm:$0x1] %vm1680_vm0, %v1618_v2  ;;  %v1364_v22 = vmax.f32 %v1171_v5, %v1864_v56  ;;  %v1957_v26 = vmax.f32 %v195_v47, %v373_v6  ;;  %v1960_v27 = vmax.f32 %v203_v59, %v1939_v7  ;;  %v1962_v28 = vunpack.c.l.bf16 %v38_v1  ;;  %v46_v1 = vld [vmem:[%s3052_s0 + $0x26] sm:$0x1] }
  0x1a   :  { %1684 = vst.msk [vmem:[%s3053_s1 + $0x3] sm:$0x1] %vm1680_vm0, %v1619_v9  ;;  %v1620_v30 = vpack.c.bf16 %v1556_v10, %v1556_v10  ;;  %v1172_v31 = vmax.f32 %v972_v11, %v1864_v56  ;;  %v587_v33 = vmax.f32 %v387_v18, %v1871_v62  ;;  %v1970_v34 = vunpack.c.l.bf16 %v39_v8 }
  0x1b   :  { %v1557_v36 = vmax.f32 %v1364_v22, %v1878_v4  ;;  %v1976_v38 = vunpack.c.l.bf16 %v40_v20  ;;  %v188_v39 = vmax.f32 %v116_v12, %v1789_v13  ;;  %v1981_v40 = vunpack.c.l.bf16 %v41_v21  ;;  %v44_v12 = vld [vmem:[%s3052_s0 + $0x24] sm:$0x1] }
  0x1c   :  { %1685 = vst.msk [vmem:[%s3053_s1 + $0x4] sm:$0x1] %vm1680_vm0, %v1620_v30  ;;  %v1365_v42 = vmax.f32 %v1172_v31, %v1878_v4  ;;  %v780_v43 = vmax.f32 %v587_v33, %v1888_v19  ;;  %v204_v46 = vmax.f32 %v1962_v28, %v1970_v34  ;;  %v189_v3 = vmax.f32 %v1789_v13, %v1791_v14  ;;  %v45_v13 = vld [vmem:[%s3052_s0 + $0x25] sm:$0x1] }
  0x1d   :  { %v1621_v47 = vpack.c.bf16 %v1557_v36, %v1557_v36  ;;  %v388_v48 = vmax.f32 %v188_v39, %v1791_v14  ;;  %v2000_v49 = vunpack.c.l.bf16 %v42_v35  ;;  %v190_v50 = vmax.f32 %v1791_v14, %v1808_v23 }
  0x1e   :  { %v1558_v51 = vmax.f32 %v1365_v42, %v1892_v25  ;;  %v973_v53 = vmax.f32 %v780_v43, %v373_v6  ;;  %v389_v54 = vmax.f32 %v189_v3, %v1808_v23  ;;  %v2006_v55 = vunpack.c.l.bf16 %v43_v41 }
  0x1f   :  { %1686 = vst.msk [vmem:[%s3053_s1 + $0x5] sm:$0x1] %vm1680_vm0, %v1621_v47  ;;  %v588_v57 = vmax.f32 %v388_v48, %v1793_v15  ;;  %v390_v14 = vmax.f32 %v190_v50, %v1823_v32  ;;  %v191_v58 = vmax.f32 %v1808_v23, %v1823_v32  ;;  %v2019_v59 = vunpack.c.l.bf16 %v44_v12  ;;  %v54_v15 = vld [vmem:[%s3052_s0 + $0x2e] sm:$0x1] }
  0x20   :  { %v1622_v60 = vpack.c.bf16 %v1558_v51, %v1558_v51  ;;  %v1173_v61 = vmax.f32 %v973_v53, %v1878_v4  ;;  %v589_v63 = vmax.f32 %v389_v54, %v1795_v16  ;;  %v192_v0 = vmax.f32 %v1823_v32, %v1847_v44  ;;  %v47_v51 = vld [vmem:[%s3052_s0 + $0x27] sm:$0x1] }
  0x21   :  { %v781_v2 = vmax.f32 %v588_v57, %v1795_v16  ;;  %v590_v5 = vmax.f32 %v390_v14, %v1797_v17  ;;  %v391_v23 = vmax.f32 %v191_v58, %v1847_v44  ;;  %v2031_v6 = vunpack.c.l.bf16 %v45_v13 }
  0x22   :  { %1687 = vst.msk [vmem:[%s3053_s1 + $0x6] sm:$0x1] %vm1680_vm0, %v1622_v60  ;;  %v1366_v8 = vmax.f32 %v1173_v61, %v1892_v25  ;;  %v782_v32 = vmax.f32 %v589_v63, %v1797_v17  ;;  %v392_v9 = vmax.f32 %v192_v0, %v1858_v52  ;;  %v193_v10 = vmax.f32 %v1847_v44, %v1858_v52 }
  0x23   :  { %v974_v11 = vmax.f32 %v781_v2, %v1797_v17  ;;  %v783_v18 = vmax.f32 %v590_v5, %v1810_v24  ;;  %v591_v20 = vmax.f32 %v391_v23, %v1810_v24  ;;  %v2045_v21 = vunpack.c.l.bf16 %v46_v1  ;;  %v48_v23 = vld [vmem:[%s3052_s0 + $0x28] sm:$0x1] }
  0x24   :  { %v1559_v22 = vmax.f32 %v1366_v8, %v1939_v7  ;;  %v975_v30 = vmax.f32 %v782_v32, %v1810_v24  ;;  %v592_v31 = vmax.f32 %v392_v9, %v1834_v37  ;;  %v393_v33 = vmax.f32 %v193_v10, %v1871_v62  ;;  %v49_v8 = vld [vmem:[%s3052_s0 + $0x29] sm:$0x1] }
  0x25   :  { %v1174_v35 = vmax.f32 %v974_v11, %v1962_v28  ;;  %v976_v44 = vmax.f32 %v783_v18, %v1834_v37  ;;  %v784_v36 = vmax.f32 %v591_v20, %v1834_v37  ;;  %v194_v39 = vmax.f32 %v1858_v52, %v1871_v62  ;;  %v50_v18 = vld [vmem:[%s3052_s0 + $0x2a] sm:$0x1] }
  0x26   :  { %v1623_v41 = vpack.c.bf16 %v1559_v22, %v1559_v22  ;;  %v1175_v42 = vmax.f32 %v975_v30, %v1970_v34  ;;  %v785_v43 = vmax.f32 %v592_v31, %v1849_v45  ;;  %v593_v3 = vmax.f32 %v393_v33, %v1849_v45 }
  0x27   :  { %v1367_v12 = vmax.f32 %v1174_v35, %v1970_v34  ;;  %v1176_v47 = vmax.f32 %v976_v44, %v1976_v38  ;;  %v977_v48 = vmax.f32 %v784_v36, %v1849_v45  ;;  %v394_v50 = vmax.f32 %v194_v39, %v1888_v19  ;;  %v51_v39 = vld [vmem:[%s3052_s0 + $0x2b] sm:$0x1] }
  0x28   :  { %1688 = vst.msk [vmem:[%s3053_s1 + $0x7] sm:$0x1] %vm1680_vm0, %v1623_v41  ;;  %v1368_v52 = vmax.f32 %v1175_v42, %v1976_v38  ;;  %v978_v62 = vmax.f32 %v785_v43, %v1864_v56  ;;  %v786_v53 = vmax.f32 %v593_v3, %v1864_v56  ;;  %v211_v54 = vmax.f32 %v2031_v6, %v2045_v21  ;;  %v52_v3 = vld [vmem:[%s3052_s0 + $0x2c] sm:$0x1] }
  0x29   :  { %v1560_v19 = vmax.f32 %v1367_v12, %v1976_v38  ;;  %v1369_v13 = vmax.f32 %v1176_v47, %v1981_v40  ;;  %v1177_v57 = vmax.f32 %v977_v48, %v1981_v40  ;;  %v594_v14 = vmax.f32 %v394_v50, %v1864_v56 }
  0x2a   :  { %v1561_v58 = vmax.f32 %v1368_v52, %v1981_v40  ;;  %v1178_v60 = vmax.f32 %v978_v62, %v2000_v49  ;;  %v979_v61 = vmax.f32 %v786_v53, %v1878_v4  ;;  %v2082_v63 = vunpack.c.l.bf16 %v47_v51  ;;  %v53_v51 = vld [vmem:[%s3052_s0 + $0x2d] sm:$0x1] }
  0x2b   :  { %v1624_v0 = vpack.c.bf16 %v1560_v19, %v1560_v19  ;;  %v1562_v1 = vmax.f32 %v1369_v13, %v2000_v49  ;;  %v1370_v2 = vmax.f32 %v1177_v57, %v2000_v49  ;;  %v787_v5 = vmax.f32 %v594_v14, %v1878_v4 }
  0x2c   :  { %v1625_v32 = vpack.c.bf16 %v1561_v58, %v1561_v58  ;;  %v1371_v9 = vmax.f32 %v1178_v60, %v2006_v55  ;;  %v1179_v10 = vmax.f32 %v979_v61, %v2006_v55  ;;  %v2096_v11 = vmax.f32 %v211_v54, %v2082_v63  ;;  %v55_v60 = vld [vmem:[%s3052_s0 + $0x2f] sm:$0x1] }
  0x2d   :  { %1689 = vst.msk [vmem:[%s3053_s1 + $0x8] sm:$0x1] %vm1680_vm0, %v1624_v0  ;;  %v1626_v20 = vpack.c.bf16 %v1562_v1, %v1562_v1  ;;  %v1563_v22 = vmax.f32 %v1370_v2, %v2006_v55  ;;  %v980_v30 = vmax.f32 %v787_v5, %v1892_v25  ;;  %v595_v31 = vmax.f32 %v1957_v26, %v1878_v4 }
  0x2e   :  { %1690 = vst.msk [vmem:[%s3053_s1 + $0x9] sm:$0x1] %vm1680_vm0, %v1625_v32  ;;  %v1564_v33 = vmax.f32 %v1371_v9, %v2019_v59  ;;  %v1372_v35 = vmax.f32 %v1179_v10, %v2019_v59  ;;  %v2115_v44 = vunpack.c.l.bf16 %v48_v23  ;;  %v2117_v36 = vunpack.c.l.bf16 %v49_v8  ;;  %v56_v32 = vld [vmem:[%s3052_s0 + $0x30] sm:$0x1] }
  0x2f   :  { %1691 = vst.msk [vmem:[%s3053_s1 + $0xa] sm:$0x1] %vm1680_vm0, %v1626_v20  ;;  %v1627_v26 = vpack.c.bf16 %v1563_v22, %v1563_v22  ;;  %v1180_v41 = vmax.f32 %v980_v30, %v2019_v59  ;;  %v788_v42 = vmax.f32 %v595_v31, %v1892_v25  ;;  %v2128_v43 = vunpack.c.l.bf16 %v50_v18 }
  0x30   :  { %v1628_v12 = vpack.c.bf16 %v1564_v33, %v1564_v33  ;;  %v1565_v47 = vmax.f32 %v1372_v35, %v2031_v6  ;;  %v212_v48 = vmax.f32 %v2115_v44, %v2117_v36  ;;  %v396_v50 = vmax.f32 %v196_v29, %v1797_v17 }
  0x31   :  { %1692 = vst.msk [vmem:[%s3053_s1 + $0xb] sm:$0x1] %vm1680_vm0, %v1627_v26  ;;  %v1373_v52 = vmax.f32 %v1180_v41, %v2031_v6  ;;  %v981_v62 = vmax.f32 %v788_v42, %v1939_v7  ;;  %v2149_v53 = vunpack.c.l.bf16 %v51_v39  ;;  %v197_v54 = vmax.f32 %v1795_v16, %v1797_v17 }
  0x32   :  { %1693 = vst.msk [vmem:[%s3053_s1 + $0xc] sm:$0x1] %vm1680_vm0, %v1628_v12  ;;  %v1629_v29 = vpack.c.bf16 %v1565_v47, %v1565_v47  ;;  %v596_v19 = vmax.f32 %v396_v50, %v1962_v28  ;;  %v2161_v13 = vunpack.c.l.bf16 %v52_v3  ;;  %v198_v7 = vmax.f32 %v1797_v17, %v1810_v24 }
  0x33   :  { %v1566_v57 = vmax.f32 %v1373_v52, %v2045_v21  ;;  %v1181_v16 = vmax.f32 %v981_v62, %v2031_v6  ;;  %v397_v14 = vmax.f32 %v197_v54, %v1810_v24  ;;  %v2168_v58 = vunpack.c.l.bf16 %v53_v51  ;;  %v57_v51 = vld [vmem:[%s3052_s0 + $0x31] sm:$0x1] }
  0x34   :  { %1694 = vst.msk [vmem:[%s3053_s1 + $0xd] sm:$0x1] %vm1680_vm0, %v1629_v29  ;;  %v789_v61 = vmax.f32 %v596_v19, %v1970_v34  ;;  %v398_v17 = vmax.f32 %v198_v7, %v1834_v37  ;;  %v199_v0 = vmax.f32 %v1810_v24, %v1834_v37  ;;  %v2181_v1 = vunpack.c.l.bf16 %v54_v15 }
  0x35   :  { %v1630_v2 = vpack.c.bf16 %v1566_v57, %v1566_v57  ;;  %v1374_v5 = vmax.f32 %v1181_v16, %v2045_v21  ;;  %v597_v23 = vmax.f32 %v397_v14, %v1970_v34  ;;  %v200_v8 = vmax.f32 %v1834_v37, %v1849_v45 }
  0x36   :  { %v982_v9 = vmax.f32 %v789_v61, %v1976_v38  ;;  %v598_v10 = vmax.f32 %v398_v17, %v1976_v38  ;;  %v399_v24 = vmax.f32 %v199_v0, %v1849_v45  ;;  %v2193_v18 = vunpack.c.l.bf16 %v55_v60 }
  0x37   :  { %1695 = vst.msk [vmem:[%s3053_s1 + $0xe] sm:$0x1] %vm1680_vm0, %v1630_v2  ;;  %v1567_v20 = vmax.f32 %v1374_v5, %v2082_v63  ;;  %v790_v37 = vmax.f32 %v597_v23, %v1976_v38  ;;  %v400_v22 = vmax.f32 %v200_v8, %v1864_v56  ;;  %v201_v30 = vmax.f32 %v1849_v45, %v1864_v56  ;;  %v58_v2 = vld [vmem:[%s3052_s0 + $0x32] sm:$0x1] }
  0x38   :  { %v1182_v31 = vmax.f32 %v982_v9, %v2115_v44  ;;  %v791_v33 = vmax.f32 %v598_v10, %v1981_v40  ;;  %v599_v35 = vmax.f32 %v399_v24, %v1981_v40  ;;  %v2207_v39 = vunpack.c.l.bf16 %v56_v32 }
  0x39   :  { %v1631_v26 = vpack.c.bf16 %v1567_v20, %v1567_v20  ;;  %v983_v41 = vmax.f32 %v790_v37, %v1981_v40  ;;  %v600_v42 = vmax.f32 %v400_v22, %v2000_v49  ;;  %v401_v3 = vmax.f32 %v201_v30, %v1878_v4  ;;  %v59_v20 = vld [vmem:[%s3052_s0 + $0x33] sm:$0x1]  ;;  %v60_v37 = vld [vmem:[%s3052_s0 + $0x34] sm:$0x1] }
  0x3a   :  { %v1375_v12 = vmax.f32 %v1182_v31, %v2117_v36  ;;  %v984_v47 = vmax.f32 %v791_v33, %v2000_v49  ;;  %v792_v45 = vmax.f32 %v599_v35, %v2000_v49  ;;  %v202_v50 = vmax.f32 %v1864_v56, %v1878_v4 }
  0x3b   :  { %1696 = vst.msk [vmem:[%s3053_s1 + $0xf] sm:$0x1] %vm1680_vm0, %v1631_v26  ;;  %v1183_v52 = vmax.f32 %v983_v41, %v2117_v36  ;;  %v793_v62 = vmax.f32 %v600_v42, %v2006_v55  ;;  %v601_v54 = vmax.f32 %v401_v3, %v2006_v55  ;;  %v219_v15 = vmax.f32 %v2193_v18, %v2207_v39  ;;  %v61_v42 = vld [vmem:[%s3052_s0 + $0x35] sm:$0x1] }
  0x3c   :  { %v1568_v56 = vmax.f32 %v1375_v12, %v2128_v43  ;;  %v1184_v4 = vmax.f32 %v984_v47, %v2128_v43  ;;  %v985_v29 = vmax.f32 %v792_v45, %v2006_v55  ;;  %v402_v19 = vmax.f32 %v202_v50, %v1892_v25 }
  0x3d   :  { %v1376_v7 = vmax.f32 %v1183_v52, %v2128_v43  ;;  %v986_v57 = vmax.f32 %v793_v62, %v2019_v59  ;;  %v794_v16 = vmax.f32 %v601_v54, %v2019_v59  ;;  %v2236_v14 = vunpack.c.l.bf16 %v57_v51  ;;  %v62_v54 = vld [vmem:[%s3052_s0 + $0x36] sm:$0x1] }
  0x3e   :  { %v1632_v60 = vpack.c.bf16 %v1568_v56, %v1568_v56  ;;  %v1377_v61 = vmax.f32 %v1184_v4, %v2149_v53  ;;  %v1185_v17 = vmax.f32 %v985_v29, %v2149_v53  ;;  %v602_v0 = vmax.f32 %v402_v19, %v2019_v59 }
  0x3f   :  { %v1569_v25 = vmax.f32 %v1376_v7, %v2149_v53  ;;  %v1186_v5 = vmax.f32 %v986_v57, %v2161_v13  ;;  %v987_v23 = vmax.f32 %v794_v16, %v2031_v6  ;;  %v2248_v8 = vmax.f32 %v219_v15, %v2236_v14  ;;  %v63_v15 = vld [vmem:[%s3052_s0 + $0x37] sm:$0x1]  ;;  %v64_v57 = vld [vmem:[%s3052_s0 + $0x38] sm:$0x1] }
  0x40   :  { %1697 = vst.msk [vmem:[%s3053_s1 + $0x10] sm:$0x1] %vm1680_vm0, %v1632_v60  ;;  %v1570_v32 = vmax.f32 %v1377_v61, %v2161_v13  ;;  %v1378_v9 = vmax.f32 %v1185_v17, %v2161_v13  ;;  %v795_v10 = vmax.f32 %v602_v0, %v2031_v6  ;;  %v603_v24 = vmax.f32 %v1960_v27, %v2031_v6 }
  0x41   :  { %v1633_v22 = vpack.c.bf16 %v1569_v25, %v1569_v25  ;;  %v1379_v30 = vmax.f32 %v1186_v5, %v2168_v58  ;;  %v1187_v31 = vmax.f32 %v987_v23, %v2168_v58  ;;  %v2267_v33 = vunpack.c.l.bf16 %v58_v2  ;;  %v65_v5 = vld [vmem:[%s3052_s0 + $0x39] sm:$0x1] }
  0x42   :  { %v1634_v35 = vpack.c.bf16 %v1570_v32, %v1570_v32  ;;  %v1571_v26 = vmax.f32 %v1378_v9, %v2168_v58  ;;  %v988_v27 = vmax.f32 %v795_v10, %v2045_v21  ;;  %v796_v41 = vmax.f32 %v603_v24, %v2045_v21 }
  0x43   :  { %1698 = vst.msk [vmem:[%s3053_s1 + $0x11] sm:$0x1] %vm1680_vm0, %v1633_v22  ;;  %v1572_v3 = vmax.f32 %v1379_v30, %v2181_v1  ;;  %v1380_v12 = vmax.f32 %v1187_v31, %v2181_v1  ;;  %v2281_v47 = vunpack.c.l.bf16 %v59_v20  ;;  %v2283_v45 = vunpack.c.l.bf16 %v60_v37  ;;  %v66_v22 = vld [vmem:[%s3052_s0 + $0x3a] sm:$0x1] }
  0x44   :  { %1699 = vst.msk [vmem:[%s3053_s1 + $0x12] sm:$0x1] %vm1680_vm0, %v1634_v35  ;;  %v1635_v50 = vpack.c.bf16 %v1571_v26, %v1571_v26  ;;  %v1188_v51 = vmax.f32 %v988_v27, %v2181_v1  ;;  %v989_v52 = vmax.f32 %v796_v41, %v2082_v63  ;;  %v404_v62 = vmax.f32 %v204_v46, %v1976_v38 }
  0x45   :  { %v1636_v56 = vpack.c.bf16 %v1572_v3, %v1572_v3  ;;  %v1573_v4 = vmax.f32 %v1380_v12, %v2193_v18  ;;  %v220_v29 = vmax.f32 %v2267_v33, %v2281_v47  ;;  %v2304_v63 = vunpack.c.l.bf16 %v61_v42 }
  0x46   :  { %1700 = vst.msk [vmem:[%s3053_s1 + $0x13] sm:$0x1] %vm1680_vm0, %v1635_v50  ;;  %v1381_v28 = vmax.f32 %v1188_v51, %v2193_v18  ;;  %v1189_v46 = vmax.f32 %v989_v52, %v2193_v18  ;;  %v604_v19 = vmax.f32 %v404_v62, %v2115_v44  ;;  %v205_v7 = vmax.f32 %v1970_v34, %v1976_v38 }
  0x47   :  { %1701 = vst.msk [vmem:[%s3053_s1 + $0x14] sm:$0x1] %vm1680_vm0, %v1636_v56  ;;  %v1637_v16 = vpack.c.bf16 %v1573_v4, %v1573_v4  ;;  %v2322_v60 = vunpack.c.l.bf16 %v62_v54  ;;  %v206_v61 = vmax.f32 %v1976_v38, %v1981_v40  ;;  %v2326_v17 = vunpack.c.l.bf16 %v63_v15  ;;  %v67_v54 = vld [vmem:[%s3052_s0 + $0x3b] sm:$0x1] }
  0x48   :  { %v1574_v0 = vmax.f32 %v1381_v28, %v2207_v39  ;;  %v1382_v34 = vmax.f32 %v1189_v46, %v2207_v39  ;;  %v797_v2 = vmax.f32 %v604_v19, %v2117_v36  ;;  %v405_v25 = vmax.f32 %v205_v7, %v1981_v40 }
  0x49   :  { %1702 = vst.msk [vmem:[%s3053_s1 + $0x15] sm:$0x1] %vm1680_vm0, %v1637_v16  ;;  %v406_v38 = vmax.f32 %v206_v61, %v2000_v49  ;;  %v207_v23 = vmax.f32 %v1981_v40, %v2000_v49  ;;  %v2342_v32 = vunpack.c.l.bf16 %v64_v57  ;;  %v208_v9 = vmax.f32 %v2000_v49, %v2006_v55 }
  0x4a   :  { %v1638_v10 = vpack.c.bf16 %v1574_v0, %v1574_v0  ;;  %v1575_v24 = vmax.f32 %v1382_v34, %v2236_v14  ;;  %v990_v20 = vmax.f32 %v797_v2, %v2128_v43  ;;  %v605_v37 = vmax.f32 %v405_v25, %v2117_v36 }
  0x4b   :  { %v606_v30 = vmax.f32 %v406_v38, %v2128_v43  ;;  %v407_v40 = vmax.f32 %v207_v23, %v2006_v55  ;;  %v408_v31 = vmax.f32 %v208_v9, %v2019_v59  ;;  %v2355_v35 = vunpack.c.l.bf16 %v65_v5  ;;  %v68_v5 = vld [vmem:[%s3052_s0 + $0x3c] sm:$0x1] }
  0x4c   :  { %1703 = vst.msk [vmem:[%s3053_s1 + $0x16] sm:$0x1] %vm1680_vm0, %v1638_v10  ;;  %v1639_v49 = vpack.c.bf16 %v1575_v24, %v1575_v24  ;;  %v1190_v26 = vmax.f32 %v990_v20, %v2267_v33  ;;  %v798_v27 = vmax.f32 %v605_v37, %v2128_v43  ;;  %v209_v41 = vmax.f32 %v2006_v55, %v2019_v59 }
  0x4d   :  { %v799_v42 = vmax.f32 %v606_v30, %v2149_v53  ;;  %v607_v3 = vmax.f32 %v407_v40, %v2149_v53  ;;  %v608_v12 = vmax.f32 %v408_v31, %v2161_v13  ;;  %v2368_v50 = vunpack.c.l.bf16 %v66_v22  ;;  %v69_v22 = vld [vmem:[%s3052_s0 + $0x3d] sm:$0x1] }
  0x4e   :  { %1704 = vst.msk [vmem:[%s3053_s1 + $0x17] sm:$0x1] %vm1680_vm0, %v1639_v49  ;;  %v1383_v51 = vmax.f32 %v1190_v26, %v2281_v47  ;;  %v991_v52 = vmax.f32 %v798_v27, %v2149_v53  ;;  %v409_v62 = vmax.f32 %v209_v41, %v2031_v6  ;;  %v210_v55 = vmax.f32 %v2019_v59, %v2031_v6  ;;  %v70_v49 = vld [vmem:[%s3052_s0 + $0x3e] sm:$0x1] }
  0x4f   :  { %v992_v15 = vmax.f32 %v799_v42, %v2161_v13  ;;  %v800_v56 = vmax.f32 %v607_v3, %v2161_v13  ;;  %v801_v4 = vmax.f32 %v608_v12, %v2168_v58  ;;  %v227_v28 = vmax.f32 %v2355_v35, %v2368_v50 }
  0x50   :  { %v1576_v46 = vmax.f32 %v1383_v51, %v2283_v45  ;;  %v1191_v19 = vmax.f32 %v991_v52, %v2281_v47  ;;  %v609_v7 = vmax.f32 %v409_v62, %v2168_v58  ;;  %v410_v59 = vmax.f32 %v210_v55, %v2045_v21  ;;  %v71_v62 = vld [vmem:[%s3052_s0 + $0x3f] sm:$0x1] }
  0x51   :  { %v1192_v6 = vmax.f32 %v992_v15, %v2283_v45  ;;  %v993_v57 = vmax.f32 %v800_v56, %v2168_v58  ;;  %v994_v16 = vmax.f32 %v801_v4, %v2181_v1  ;;  %v2394_v61 = vunpack.c.l.bf16 %v67_v54  ;;  %v72_v4 = vld [vmem:[%s3052_s0 + $0x40] sm:$0x1] }
  0x52   :  { %v1640_v0 = vpack.c.bf16 %v1576_v46, %v1576_v46  ;;  %v1384_v34 = vmax.f32 %v1191_v19, %v2283_v45  ;;  %v802_v2 = vmax.f32 %v609_v7, %v2181_v1  ;;  %v610_v25 = vmax.f32 %v410_v59, %v2181_v1  ;;  %v73_v7 = vld [vmem:[%s3052_s0 + $0x41] sm:$0x1] }
  0x53   :  { %v1385_v21 = vmax.f32 %v1192_v6, %v2304_v63  ;;  %v1193_v38 = vmax.f32 %v993_v57, %v2304_v63  ;;  %v1194_v23 = vmax.f32 %v994_v16, %v2322_v60  ;;  %v2406_v9 = vmax.f32 %v227_v28, %v2394_v61 }
  0x54   :  { %1705 = vst.msk [vmem:[%s3053_s1 + $0x18] sm:$0x1] %vm1680_vm0, %v1640_v0  ;;  %v1577_v10 = vmax.f32 %v1384_v34, %v2304_v63  ;;  %v995_v24 = vmax.f32 %v802_v2, %v2193_v18  ;;  %v803_v20 = vmax.f32 %v610_v25, %v2193_v18  ;;  %v611_v37 = vmax.f32 %v2096_v11, %v2193_v18  ;;  %v74_v2 = vld [vmem:[%s3052_s0 + $0x42] sm:$0x1] }
  0x55   :  { %v1578_v30 = vmax.f32 %v1385_v21, %v2322_v60  ;;  %v1386_v40 = vmax.f32 %v1193_v38, %v2322_v60  ;;  %v1387_v31 = vmax.f32 %v1194_v23, %v2326_v17  ;;  %v2426_v26 = vunpack.c.l.bf16 %v68_v5 }
  0x56   :  { %v1641_v27 = vpack.c.bf16 %v1577_v10, %v1577_v10  ;;  %v1195_v41 = vmax.f32 %v995_v24, %v2326_v17  ;;  %v996_v11 = vmax.f32 %v803_v20, %v2207_v39  ;;  %v804_v42 = vmax.f32 %v611_v37, %v2207_v39  ;;  %v75_v24 = vld [vmem:[%s3052_s0 + $0x43] sm:$0x1] }
  0x57   :  { %v1642_v3 = vpack.c.bf16 %v1578_v30, %v1578_v30  ;;  %v1579_v12 = vmax.f32 %v1386_v40, %v2326_v17  ;;  %v1580_v51 = vmax.f32 %v1387_v31, %v2342_v32  ;;  %v2433_v52 = vunpack.c.l.bf16 %v69_v22 }
  0x58   :  { %1706 = vst.msk [vmem:[%s3053_s1 + $0x19] sm:$0x1] %vm1680_vm0, %v1641_v27  ;;  %v1388_v55 = vmax.f32 %v1195_v41, %v2342_v32  ;;  %v1196_v54 = vmax.f32 %v996_v11, %v2342_v32  ;;  %v997_v15 = vmax.f32 %v804_v42, %v2236_v14  ;;  %v2445_v56 = vunpack.c.l.bf16 %v70_v49  ;;  %v76_v27 = vld [vmem:[%s3052_s0 + $0x44] sm:$0x1] }
  0x59   :  { %1707 = vst.msk [vmem:[%s3053_s1 + $0x1a] sm:$0x1] %vm1680_vm0, %v1642_v3  ;;  %v1643_v28 = vpack.c.bf16 %v1579_v12, %v1579_v12  ;;  %v1644_v46 = vpack.c.bf16 %v1580_v51, %v1580_v51  ;;  %v228_v19 = vmax.f32 %v2426_v26, %v2433_v52  ;;  %v412_v14 = vmax.f32 %v212_v48, %v2128_v43 }
  0x5a   :  { %v1581_v59 = vmax.f32 %v1388_v55, %v2355_v35  ;;  %v1389_v6 = vmax.f32 %v1196_v54, %v2355_v35  ;;  %v1197_v57 = vmax.f32 %v997_v15, %v2355_v35  ;;  %v2466_v16 = vunpack.c.l.bf16 %v71_v62 }
  0x5b   :  { %1708 = vst.msk [vmem:[%s3053_s1 + $0x1b] sm:$0x1] %vm1680_vm0, %v1643_v28  ;;  %v612_v44 = vmax.f32 %v412_v14, %v2267_v33  ;;  %v213_v48 = vmax.f32 %v2117_v36, %v2128_v43  ;;  %v2475_v0 = vunpack.c.l.bf16 %v72_v4  ;;  %v214_v34 = vmax.f32 %v2128_v43, %v2149_v53 }
  0x5c   :  { %1709 = vst.msk [vmem:[%s3053_s1 + $0x1c] sm:$0x1] %vm1680_vm0, %v1644_v46  ;;  %v1645_v25 = vpack.c.bf16 %v1581_v59, %v1581_v59  ;;  %v1582_v5 = vmax.f32 %v1389_v6, %v2368_v50  ;;  %v1390_v21 = vmax.f32 %v1197_v57, %v2368_v50  ;;  %v2488_v36 = vunpack.c.l.bf16 %v73_v7  ;;  %v77_v7 = vld [vmem:[%s3052_s0 + $0x45] sm:$0x1] }
  0x5d   :  { %v805_v38 = vmax.f32 %v612_v44, %v2281_v47  ;;  %v413_v43 = vmax.f32 %v213_v48, %v2149_v53  ;;  %v414_v23 = vmax.f32 %v214_v34, %v2161_v13  ;;  %v215_v10 = vmax.f32 %v2149_v53, %v2161_v13 }
  0x5e   :  { %1710 = vst.msk [vmem:[%s3053_s1 + $0x1d] sm:$0x1] %vm1680_vm0, %v1645_v25  ;;  %v1646_v20 = vpack.c.bf16 %v1582_v5, %v1582_v5  ;;  %v1583_v37 = vmax.f32 %v1390_v21, %v2394_v61  ;;  %v2503_v22 = vunpack.c.l.bf16 %v74_v2  ;;  %v216_v30 = vmax.f32 %v2161_v13, %v2168_v58 }
  0x5f   :  { %v998_v40 = vmax.f32 %v805_v38, %v2283_v45  ;;  %v613_v53 = vmax.f32 %v413_v43, %v2281_v47  ;;  %v614_v31 = vmax.f32 %v414_v23, %v2283_v45  ;;  %v415_v49 = vmax.f32 %v215_v10, %v2168_v58  ;;  %v78_v10 = vld [vmem:[%s3052_s0 + $0x46] sm:$0x1] }
  0x60   :  { %1711 = vst.msk [vmem:[%s3053_s1 + $0x1e] sm:$0x1] %vm1680_vm0, %v1646_v20  ;;  %v1647_v41 = vpack.c.bf16 %v1583_v37, %v1583_v37  ;;  %v416_v13 = vmax.f32 %v216_v30, %v2181_v1  ;;  %v2519_v11 = vunpack.c.l.bf16 %v75_v24  ;;  %v217_v42 = vmax.f32 %v2168_v58, %v2181_v1 }
  0x61   :  { %v1198_v3 = vmax.f32 %v998_v40, %v2426_v26  ;;  %v806_v12 = vmax.f32 %v613_v53, %v2283_v45  ;;  %v807_v51 = vmax.f32 %v614_v31, %v2304_v63  ;;  %v615_v62 = vmax.f32 %v415_v49, %v2304_v63 }
  0x62   :  { %1712 = vst.msk [vmem:[%s3053_s1 + $0x1f] sm:$0x1] %vm1680_vm0, %v1647_v41  ;;  %v616_v55 = vmax.f32 %v416_v13, %v2322_v60  ;;  %v417_v54 = vmax.f32 %v217_v42, %v2193_v18  ;;  %v2533_v15 = vunpack.c.l.bf16 %v76_v27  ;;  %v218_v58 = vmax.f32 %v2181_v1, %v2193_v18  ;;  %v79_v27 = vld [vmem:[%s3052_s0 + $0x47] sm:$0x1] }
  0x63   :  { %v1391_v4 = vmax.f32 %v1198_v3, %v2433_v52  ;;  %v999_v28 = vmax.f32 %v806_v12, %v2304_v63  ;;  %v1000_v46 = vmax.f32 %v807_v51, %v2322_v60  ;;  %v808_v14 = vmax.f32 %v615_v62, %v2322_v60  ;;  %v80_v3 = vld [vmem:[%s3052_s0 + $0x48] sm:$0x1] }
  0x64   :  { %v809_v59 = vmax.f32 %v616_v55, %v2326_v17  ;;  %v617_v6 = vmax.f32 %v417_v54, %v2326_v17  ;;  %v418_v57 = vmax.f32 %v218_v58, %v2207_v39  ;;  %v235_v1 = vmax.f32 %v2519_v11, %v2533_v15  ;;  %v81_v54 = vld [vmem:[%s3052_s0 + $0x49] sm:$0x1] }
  0x65   :  { %v1584_v18 = vmax.f32 %v1391_v4, %v2445_v56  ;;  %v1199_v44 = vmax.f32 %v999_v28, %v2433_v52  ;;  %v1200_v48 = vmax.f32 %v1000_v46, %v2445_v56  ;;  %v1001_v34 = vmax.f32 %v808_v14, %v2326_v17  ;;  %v82_v14 = vld [vmem:[%s3052_s0 + $0x4a] sm:$0x1] }
  0x66   :  { %v1002_v2 = vmax.f32 %v809_v59, %v2342_v32  ;;  %v810_v25 = vmax.f32 %v617_v6, %v2342_v32  ;;  %v618_v5 = vmax.f32 %v418_v57, %v2342_v32  ;;  %v2556_v21 = vunpack.c.l.bf16 %v77_v7 }
  0x67   :  { %v1648_v39 = vpack.c.bf16 %v1584_v18, %v1584_v18  ;;  %v1392_v38 = vmax.f32 %v1199_v44, %v2445_v56  ;;  %v1393_v43 = vmax.f32 %v1200_v48, %v2466_v16  ;;  %v1201_v23 = vmax.f32 %v1001_v34, %v2466_v16 }
  0x68   :  { %v1202_v24 = vmax.f32 %v1002_v2, %v2475_v0  ;;  %v1003_v20 = vmax.f32 %v810_v25, %v2355_v35  ;;  %v811_v37 = vmax.f32 %v618_v5, %v2355_v35  ;;  %v2568_v30 = vmax.f32 %v235_v1, %v2556_v21  ;;  %v83_v1 = vld [vmem:[%s3052_s0 + $0x4b] sm:$0x1]  ;;  %v84_v25 = vld [vmem:[%s3052_s0 + $0x4c] sm:$0x1] }
  0x69   :  { %1713 = vst.msk [vmem:[%s3053_s1 + $0x20] sm:$0x1] %vm1680_vm0, %v1648_v39  ;;  %v1585_v40 = vmax.f32 %v1392_v38, %v2466_v16  ;;  %v1586_v53 = vmax.f32 %v1393_v43, %v2475_v0  ;;  %v1394_v31 = vmax.f32 %v1201_v23, %v2475_v0  ;;  %v619_v49 = vmax.f32 %v2248_v8, %v2355_v35 }
  0x6a   :  { %v1395_v41 = vmax.f32 %v1202_v24, %v2488_v36  ;;  %v1203_v13 = vmax.f32 %v1003_v20, %v2488_v36  ;;  %v1004_v42 = vmax.f32 %v811_v37, %v2368_v50  ;;  %v2588_v12 = vunpack.c.l.bf16 %v78_v10  ;;  %v85_v20 = vld [vmem:[%s3052_s0 + $0x4d] sm:$0x1] }
  0x6b   :  { %v1649_v51 = vpack.c.bf16 %v1585_v40, %v1585_v40  ;;  %v1650_v62 = vpack.c.bf16 %v1586_v53, %v1586_v53  ;;  %v1587_v8 = vmax.f32 %v1394_v31, %v2488_v36  ;;  %v812_v55 = vmax.f32 %v619_v49, %v2368_v50 }
  0x6c   :  { %v1588_v58 = vmax.f32 %v1395_v41, %v2503_v22  ;;  %v1396_v4 = vmax.f32 %v1203_v13, %v2503_v22  ;;  %v1204_v28 = vmax.f32 %v1004_v42, %v2503_v22  ;;  %v2598_v46 = vunpack.c.l.bf16 %v79_v27  ;;  %v86_v41 = vld [vmem:[%s3052_s0 + $0x4e] sm:$0x1] }
  0x6d   :  { %1714 = vst.msk [vmem:[%s3053_s1 + $0x21] sm:$0x1] %vm1680_vm0, %v1649_v51  ;;  %v1651_v7 = vpack.c.bf16 %v1587_v8, %v1587_v8  ;;  %v1005_v59 = vmax.f32 %v812_v55, %v2394_v61  ;;  %v2608_v6 = vunpack.c.l.bf16 %v80_v3  ;;  %v420_v57 = vmax.f32 %v220_v29, %v2283_v45 }
  0x6e   :  { %1715 = vst.msk [vmem:[%s3053_s1 + $0x22] sm:$0x1] %vm1680_vm0, %v1650_v62  ;;  %v1652_v18 = vpack.c.bf16 %v1588_v58, %v1588_v58  ;;  %v1589_v44 = vmax.f32 %v1396_v4, %v2519_v11  ;;  %v1397_v61 = vmax.f32 %v1204_v28, %v2519_v11  ;;  %v2623_v48 = vunpack.c.l.bf16 %v81_v54 }
  0x6f   :  { %1716 = vst.msk [vmem:[%s3053_s1 + $0x23] sm:$0x1] %vm1680_vm0, %v1651_v7  ;;  %v1205_v33 = vmax.f32 %v1005_v59, %v2519_v11  ;;  %v620_v29 = vmax.f32 %v420_v57, %v2426_v26  ;;  %v221_v34 = vmax.f32 %v2281_v47, %v2283_v45  ;;  %v2633_v2 = vunpack.c.l.bf16 %v82_v14  ;;  %v87_v57 = vld [vmem:[%s3052_s0 + $0x4f] sm:$0x1] }
  0x70   :  { %1717 = vst.msk [vmem:[%s3053_s1 + $0x24] sm:$0x1] %vm1680_vm0, %v1652_v18  ;;  %v1653_v5 = vpack.c.bf16 %v1589_v44, %v1589_v44  ;;  %v1590_v39 = vmax.f32 %v1397_v61, %v2533_v15  ;;  %v222_v38 = vmax.f32 %v2283_v45, %v2304_v63  ;;  %v2645_v43 = vunpack.c.l.bf16 %v83_v1 }
  0x71   :  { %v1398_v47 = vmax.f32 %v1205_v33, %v2533_v15  ;;  %v813_v23 = vmax.f32 %v620_v29, %v2433_v52  ;;  %v421_v10 = vmax.f32 %v221_v34, %v2304_v63  ;;  %v223_v24 = vmax.f32 %v2304_v63, %v2322_v60 }
  0x72   :  { %1718 = vst.msk [vmem:[%s3053_s1 + $0x25] sm:$0x1] %vm1680_vm0, %v1653_v5  ;;  %v1654_v45 = vpack.c.bf16 %v1590_v39, %v1590_v39  ;;  %v422_v37 = vmax.f32 %v222_v38, %v2322_v60  ;;  %v2660_v40 = vunpack.c.l.bf16 %v84_v25  ;;  %v224_v53 = vmax.f32 %v2322_v60, %v2326_v17 }
  0x73   :  { %v1591_v31 = vmax.f32 %v1398_v47, %v2556_v21  ;;  %v1006_v63 = vmax.f32 %v813_v23, %v2445_v56  ;;  %v621_v49 = vmax.f32 %v421_v10, %v2433_v52  ;;  %v423_v27 = vmax.f32 %v223_v24, %v2326_v17 }
  0x74   :  { %1719 = vst.msk [vmem:[%s3053_s1 + $0x26] sm:$0x1] %vm1680_vm0, %v1654_v45  ;;  %v622_v13 = vmax.f32 %v422_v37, %v2445_v56  ;;  %v424_v60 = vmax.f32 %v224_v53, %v2342_v32  ;;  %v2677_v42 = vunpack.c.l.bf16 %v85_v20  ;;  %v225_v3 = vmax.f32 %v2326_v17, %v2342_v32 }
  0x75   :  { %v1655_v51 = vpack.c.bf16 %v1591_v31, %v1591_v31  ;;  %v1206_v62 = vmax.f32 %v1006_v63, %v2588_v12  ;;  %v814_v8 = vmax.f32 %v621_v49, %v2445_v56  ;;  %v623_v55 = vmax.f32 %v423_v27, %v2466_v16 }
  0x76   :  { %v815_v54 = vmax.f32 %v622_v13, %v2466_v16  ;;  %v624_v58 = vmax.f32 %v424_v60, %v2475_v0  ;;  %v425_v4 = vmax.f32 %v225_v3, %v2355_v35  ;;  %v2687_v28 = vunpack.c.l.bf16 %v86_v41 }
  0x77   :  { %1720 = vst.msk [vmem:[%s3053_s1 + $0x27] sm:$0x1] %vm1680_vm0, %v1655_v51  ;;  %v1399_v17 = vmax.f32 %v1206_v62, %v2598_v46  ;;  %v1007_v14 = vmax.f32 %v814_v8, %v2466_v16  ;;  %v816_v7 = vmax.f32 %v623_v55, %v2475_v0  ;;  %v226_v59 = vmax.f32 %v2342_v32, %v2355_v35  ;;  %v89_v8 = vld [vmem:[%s3052_s0 + $0x51] sm:$0x1] }
  0x78   :  { %v1008_v1 = vmax.f32 %v815_v54, %v2475_v0  ;;  %v817_v18 = vmax.f32 %v624_v58, %v2488_v36  ;;  %v625_v44 = vmax.f32 %v425_v4, %v2488_v36  ;;  %v243_v61 = vmax.f32 %v2677_v42, %v2687_v28  ;;  %v90_v4 = vld [vmem:[%s3052_s0 + $0x52] sm:$0x1] }
  0x79   :  { %v1592_v33 = vmax.f32 %v1399_v17, %v2608_v6  ;;  %v1207_v29 = vmax.f32 %v1007_v14, %v2598_v46  ;;  %v1009_v34 = vmax.f32 %v816_v7, %v2488_v36  ;;  %v426_v32 = vmax.f32 %v226_v59, %v2368_v50 }
  0x7a   :  { %v1208_v35 = vmax.f32 %v1008_v1, %v2608_v6  ;;  %v1010_v25 = vmax.f32 %v817_v18, %v2503_v22  ;;  %v818_v5 = vmax.f32 %v625_v44, %v2503_v22  ;;  %v2713_v39 = vunpack.c.l.bf16 %v87_v57  ;;  %v91_v1 = vld [vmem:[%s3052_s0 + $0x53] sm:$0x1] }
  0x7b   :  { %v1656_v38 = vpack.c.bf16 %v1592_v33, %v1592_v33  ;;  %v1400_v47 = vmax.f32 %v1207_v29, %v2608_v6  ;;  %v1209_v23 = vmax.f32 %v1009_v34, %v2623_v48  ;;  %v626_v10 = vmax.f32 %v426_v32, %v2503_v22  ;;  %v92_v34 = vld [vmem:[%s3052_s0 + $0x54] sm:$0x1]  ;;  %v93_v32 = vld [vmem:[%s3052_s0 + $0x55] sm:$0x1] }
  0x7c   :  { %v1401_v24 = vmax.f32 %v1208_v35, %v2623_v48  ;;  %v1210_v20 = vmax.f32 %v1010_v25, %v2633_v2  ;;  %v1011_v50 = vmax.f32 %v818_v5, %v2519_v11  ;;  %v2722_v45 = vmax.f32 %v243_v61, %v2713_v39 }
  0x7d   :  { %1721 = vst.msk [vmem:[%s3053_s1 + $0x28] sm:$0x1] %vm1680_vm0, %v1656_v38  ;;  %v1593_v37 = vmax.f32 %v1400_v47, %v2623_v48  ;;  %v1402_v53 = vmax.f32 %v1209_v23, %v2633_v2  ;;  %v819_v31 = vmax.f32 %v626_v10, %v2519_v11  ;;  %v627_v63 = vmax.f32 %v2406_v9, %v2519_v11  ;;  %v88_v9 = vld [vmem:[%s3052_s0 + $0x50] sm:$0x1] }
  0x7e   :  { %v1594_v49 = vmax.f32 %v1401_v24, %v2633_v2  ;;  %v1403_v27 = vmax.f32 %v1210_v20, %v2645_v43  ;;  %v1211_v41 = vmax.f32 %v1011_v50, %v2645_v43  ;;  %v236_v13 = vmax.f32 %v2588_v12, %v2598_v46  ;;  %v94_v24 = vld [vmem:[%s3052_s0 + $0x56] sm:$0x1] }
  0x7f   :  { %v1657_v60 = vpack.c.bf16 %v1593_v37, %v1593_v37  ;;  %v1595_v3 = vmax.f32 %v1402_v53, %v2645_v43  ;;  %v1012_v51 = vmax.f32 %v819_v31, %v2533_v15  ;;  %v820_v62 = vmax.f32 %v627_v63, %v2533_v15 }
  0x80   :  { %v1658_v55 = vpack.c.bf16 %v1594_v49, %v1594_v49  ;;  %v1596_v54 = vmax.f32 %v1403_v27, %v2660_v40  ;;  %v1404_v58 = vmax.f32 %v1211_v41, %v2660_v40  ;;  %v428_v17 = vmax.f32 %v228_v19, %v2445_v56  ;;  %v95_v49 = vld [vmem:[%s3052_s0 + $0x57] sm:$0x1] }
  0x81   :  { %1722 = vst.msk [vmem:[%s3053_s1 + $0x29] sm:$0x1] %vm1680_vm0, %v1657_v60  ;;  %v1659_v14 = vpack.c.bf16 %v1595_v3, %v1595_v3  ;;  %v1212_v7 = vmax.f32 %v1012_v51, %v2660_v40  ;;  %v1013_v59 = vmax.f32 %v820_v62, %v2556_v21  ;;  %v436_v57 = vmax.f32 %v236_v13, %v2608_v6 }
  0x82   :  { %1723 = vst.msk [vmem:[%s3053_s1 + $0x2a] sm:$0x1] %vm1680_vm0, %v1658_v55  ;;  %v1660_v26 = vpack.c.bf16 %v1596_v54, %v1596_v54  ;;  %v1597_v19 = vmax.f32 %v1404_v58, %v2677_v42  ;;  %v572_v18 = vunpack.c.l.bf16 %v88_v9  ;;  %v2771_v44 = vunpack.c.l.bf16 %v89_v8  ;;  %v96_v9 = vld [vmem:[%s3052_s0 + $0x58] sm:$0x1] }
  0x83   :  { %1724 = vst.msk [vmem:[%s3053_s1 + $0x2b] sm:$0x1] %vm1680_vm0, %v1659_v14  ;;  %v1405_v21 = vmax.f32 %v1212_v7, %v2677_v42  ;;  %v1213_v61 = vmax.f32 %v1013_v59, %v2677_v42  ;;  %v2779_v33 = vunpack.c.l.bf16 %v90_v4  ;;  %v628_v29 = vmax.f32 %v428_v17, %v2588_v12 }
  0x84   :  { %1725 = vst.msk [vmem:[%s3053_s1 + $0x2c] sm:$0x1] %vm1680_vm0, %v1660_v26  ;;  %v1661_v35 = vpack.c.bf16 %v1597_v19, %v1597_v19  ;;  %v2792_v25 = vmax.f32 %v436_v57, %v572_v18  ;;  %v229_v5 = vmax.f32 %v2433_v52, %v2445_v56  ;;  %v2796_v12 = vunpack.c.l.bf16 %v91_v1 }
  0x85   :  { %v1598_v38 = vmax.f32 %v1405_v21, %v2687_v28  ;;  %v1406_v47 = vmax.f32 %v1213_v61, %v2687_v28  ;;  %v821_v23 = vmax.f32 %v628_v29, %v2598_v46  ;;  %v230_v10 = vmax.f32 %v2445_v56, %v2466_v16 }
  0x86   :  { %1726 = vst.msk [vmem:[%s3053_s1 + $0x2d] sm:$0x1] %vm1680_vm0, %v1661_v35  ;;  %v429_v52 = vmax.f32 %v229_v5, %v2466_v16  ;;  %v2811_v20 = vunpack.c.l.bf16 %v92_v34  ;;  %v231_v50 = vmax.f32 %v2466_v16, %v2475_v0  ;;  %v2815_v37 = vunpack.c.l.bf16 %v93_v32 }
  0x87   :  { %v1662_v53 = vpack.c.bf16 %v1598_v38, %v1598_v38  ;;  %v1599_v56 = vmax.f32 %v1406_v47, %v2713_v39  ;;  %v1014_v31 = vmax.f32 %v821_v23, %v2608_v6  ;;  %v430_v63 = vmax.f32 %v230_v10, %v2475_v0  ;;  %v97_v47 = vld [vmem:[%s3052_s0 + $0x59] sm:$0x1] }
  0x88   :  { %v629_v27 = vmax.f32 %v429_v52, %v2598_v46  ;;  %v431_v41 = vmax.f32 %v231_v50, %v2488_v36  ;;  %v232_v16 = vmax.f32 %v2475_v0, %v2488_v36  ;;  %v2827_v13 = vunpack.c.l.bf16 %v94_v24 }
  0x89   :  { %1727 = vst.msk [vmem:[%s3053_s1 + $0x2e] sm:$0x1] %vm1680_vm0, %v1662_v53  ;;  %v1663_v60 = vpack.c.bf16 %v1599_v56, %v1599_v56  ;;  %v1214_v3 = vmax.f32 %v1014_v31, %v572_v18  ;;  %v630_v51 = vmax.f32 %v430_v63, %v2608_v6  ;;  %v233_v62 = vmax.f32 %v2488_v36, %v2503_v22 }
  0x8a   :  { %v822_v0 = vmax.f32 %v629_v27, %v2608_v6  ;;  %v631_v8 = vmax.f32 %v431_v41, %v2623_v48  ;;  %v432_v55 = vmax.f32 %v232_v16, %v2503_v22  ;;  %v2842_v54 = vunpack.c.l.bf16 %v95_v49 }
  0x8b   :  { %1728 = vst.msk [vmem:[%s3053_s1 + $0x2f] sm:$0x1] %vm1680_vm0, %v1663_v60  ;;  %v1407_v58 = vmax.f32 %v1214_v3, %v2771_v44  ;;  %v823_v36 = vmax.f32 %v630_v51, %v2623_v48  ;;  %v433_v4 = vmax.f32 %v233_v62, %v2519_v11  ;;  %v234_v17 = vmax.f32 %v2503_v22, %v2519_v11  ;;  %v98_v51 = vld [vmem:[%s3052_s0 + $0x5a] sm:$0x1] }
  0x8c   :  { %v1015_v14 = vmax.f32 %v822_v0, %v2623_v48  ;;  %v824_v7 = vmax.f32 %v631_v8, %v2633_v2  ;;  %v632_v59 = vmax.f32 %v432_v55, %v2633_v2  ;;  %v2856_v57 = vunpack.c.l.bf16 %v96_v9  ;;  %v2904_v8 = vld [vmem:[%s3052_s0 + $0x5b] sm:$0x1] }
  0x8d   :  { %v1600_v1 = vmax.f32 %v1407_v58, %v2779_v33  ;;  %v1016_v26 = vmax.f32 %v823_v36, %v2633_v2  ;;  %v633_v19 = vmax.f32 %v433_v4, %v2645_v43  ;;  %v434_v18 = vmax.f32 %v234_v17, %v2533_v15  ;;  %v100_v36 = vld [vmem:[%s3052_s0 + $0x5c] sm:$0x1] }
  0x8e   :  { %v1215_v21 = vmax.f32 %v1015_v14, %v2771_v44  ;;  %v1017_v22 = vmax.f32 %v824_v7, %v2645_v43  ;;  %v825_v11 = vmax.f32 %v632_v59, %v2645_v43  ;;  %v635_v61 = vmax.f32 %v2568_v30, %v2677_v42 }
  0x8f   :  { %v1664_v29 = vpack.c.bf16 %v1600_v1, %v1600_v1  ;;  %v1216_v34 = vmax.f32 %v1016_v26, %v2779_v33  ;;  %v826_v32 = vmax.f32 %v633_v19, %v2660_v40  ;;  %v634_v35 = vmax.f32 %v434_v18, %v2660_v40  ;;  %v101_v1 = vld [vmem:[%s3052_s0 + $0x5d] sm:$0x1] }
  0x90   :  { %v1408_v5 = vmax.f32 %v1215_v21, %v2779_v33  ;;  %v1217_v15 = vmax.f32 %v1017_v22, %v2796_v12  ;;  %v1018_v38 = vmax.f32 %v825_v11, %v2660_v40  ;;  %v643_v30 = vmax.f32 %v2722_v45, %v2842_v54  ;;  %v102_v21 = vld [vmem:[%s3052_s0 + $0x5e] sm:$0x1] }
  0x91   :  { %1729 = vst.msk [vmem:[%s3053_s1 + $0x30] sm:$0x1] %vm1680_vm0, %v1664_v29  ;;  %v1409_v23 = vmax.f32 %v1216_v34, %v2796_v12  ;;  %v1019_v10 = vmax.f32 %v826_v32, %v2677_v42  ;;  %v827_v24 = vmax.f32 %v634_v35, %v2677_v42  ;;  %v828_v52 = vmax.f32 %v635_v61, %v2687_v28 }
  0x92   :  { %v1601_v50 = vmax.f32 %v1408_v5, %v2796_v12  ;;  %v1410_v53 = vmax.f32 %v1217_v15, %v2811_v20  ;;  %v1218_v56 = vmax.f32 %v1018_v38, %v2811_v20  ;;  %v836_v45 = vmax.f32 %v643_v30, %v2856_v57  ;;  %v103_v15 = vld [vmem:[%s3052_s0 + $0x5f] sm:$0x1] }
  0x93   :  { %v1602_v31 = vmax.f32 %v1409_v23, %v2811_v20  ;;  %v1219_v63 = vmax.f32 %v1019_v10, %v2815_v37  ;;  %v1020_v49 = vmax.f32 %v827_v24, %v2687_v28  ;;  %v965_v27 = vunpack.c.l.bf16 %v97_v47 }
  0x94   :  { %v1665_v41 = vpack.c.bf16 %v1601_v50, %v1601_v50  ;;  %v1603_v16 = vmax.f32 %v1410_v53, %v2815_v37  ;;  %v1411_v60 = vmax.f32 %v1218_v56, %v2815_v37  ;;  %v1021_v3 = vmax.f32 %v828_v52, %v2713_v39 }
  0x95   :  { %v1666_v62 = vpack.c.bf16 %v1602_v31, %v1602_v31  ;;  %v1412_v9 = vmax.f32 %v1219_v63, %v2827_v13  ;;  %v1220_v0 = vmax.f32 %v1020_v49, %v2827_v13  ;;  %v829_v4 = vmax.f32 %v2792_v25, %v2771_v44 }
  0x96   :  { %1730 = vst.msk [vmem:[%s3053_s1 + $0x31] sm:$0x1] %vm1680_vm0, %v1665_v41  ;;  %v1667_v39 = vpack.c.bf16 %v1603_v16, %v1603_v16  ;;  %v1604_v55 = vmax.f32 %v1411_v60, %v2827_v13  ;;  %v1221_v58 = vmax.f32 %v1021_v3, %v2842_v54  ;;  %v2923_v7 = vmax.f32 %v836_v45, %v965_v27  ;;  %v2978_v45 = vld [vmem:[%s3052_s0 + $0x62] sm:$0x1]  ;;  %v107_v16 = vld [vmem:[%s3052_s0 + $0x63] sm:$0x1] }
  0x97   :  { %1731 = vst.msk [vmem:[%s3053_s1 + $0x32] sm:$0x1] %vm1680_vm0, %v1666_v62  ;;  %v1605_v17 = vmax.f32 %v1412_v9, %v2842_v54  ;;  %v1413_v14 = vmax.f32 %v1220_v0, %v2842_v54  ;;  %v1158_v59 = vunpack.c.l.bf16 %v98_v51  ;;  %v1022_v19 = vmax.f32 %v829_v4, %v2779_v33  ;;  %v104_v0 = vld [vmem:[%s3052_s0 + $0x60] sm:$0x1] }
  0x98   :  { %1732 = vst.msk [vmem:[%s3053_s1 + $0x33] sm:$0x1] %vm1680_vm0, %v1667_v39  ;;  %v1668_v25 = vpack.c.bf16 %v1604_v55, %v1604_v55  ;;  %v1414_v26 = vmax.f32 %v1221_v58, %v2856_v57  ;;  %v1159_v18 = vunpack.c.l.bf16 %v2904_v8  ;;  %v2939_v61 = vunpack.c.l.bf16 %v100_v36 }
  0x99   :  { %v1669_v22 = vpack.c.bf16 %v1605_v17, %v1605_v17  ;;  %v1606_v11 = vmax.f32 %v1413_v14, %v2856_v57  ;;  %v237_v29 = vmax.f32 %v2598_v46, %v2608_v6  ;;  %v1222_v32 = vmax.f32 %v1022_v19, %v1158_v59 }
  0x9a   :  { %1733 = vst.msk [vmem:[%s3053_s1 + $0x34] sm:$0x1] %vm1680_vm0, %v1668_v25  ;;  %v1607_v34 = vmax.f32 %v1414_v26, %v965_v27  ;;  %v2947_v35 = vunpack.c.l.bf16 %v101_v1  ;;  %v238_v5 = vmax.f32 %v2608_v6, %v2623_v48  ;;  %v1162_v47 = vunpack.c.l.bf16 %v102_v21  ;;  %v105_v6 = vld [vmem:[%s3052_s0 + $0x61] sm:$0x1] }
  0x9b   :  { %1734 = vst.msk [vmem:[%s3053_s1 + $0x35] sm:$0x1] %vm1680_vm0, %v1669_v22  ;;  %v1670_v46 = vpack.c.bf16 %v1606_v11, %v1606_v11  ;;  %v437_v38 = vmax.f32 %v237_v29, %v2623_v48  ;;  %v239_v30 = vmax.f32 %v2623_v48, %v2633_v2  ;;  %v1415_v10 = vmax.f32 %v1222_v32, %v1159_v18 }
  0x9c   :  { %v1671_v23 = vpack.c.bf16 %v1607_v34, %v1607_v34  ;;  %v438_v24 = vmax.f32 %v238_v5, %v2633_v2  ;;  %v240_v52 = vmax.f32 %v2633_v2, %v2645_v43  ;;  %v1163_v53 = vunpack.c.l.bf16 %v103_v15 }
  0x9d   :  { %1735 = vst.msk [vmem:[%s3053_s1 + $0x36] sm:$0x1] %vm1680_vm0, %v1670_v46  ;;  %v637_v50 = vmax.f32 %v437_v38, %v2771_v44  ;;  %v439_v48 = vmax.f32 %v239_v30, %v2645_v43  ;;  %v241_v56 = vmax.f32 %v2645_v43, %v2660_v40  ;;  %v1608_v2 = vmax.f32 %v1415_v10, %v2939_v61 }
  0x9e   :  { %1736 = vst.msk [vmem:[%s3053_s1 + $0x37] sm:$0x1] %vm1680_vm0, %v1671_v23  ;;  %v638_v44 = vmax.f32 %v438_v24, %v2779_v33  ;;  %v440_v31 = vmax.f32 %v240_v52, %v2660_v40  ;;  %v1165_v63 = vunpack.c.l.bf16 %v105_v6  ;;  %v242_v41 = vmax.f32 %v2660_v40, %v2677_v42 }
  0x9f   :  { %v830_v49 = vmax.f32 %v637_v50, %v2779_v33  ;;  %v639_v43 = vmax.f32 %v439_v48, %v2796_v12  ;;  %v441_v27 = vmax.f32 %v241_v56, %v2677_v42  ;;  %v1672_v60 = vpack.c.bf16 %v1608_v2, %v1608_v2 }
  0xa0   :  { %v831_v3 = vmax.f32 %v638_v44, %v2796_v12  ;;  %v640_v51 = vmax.f32 %v440_v31, %v2811_v20  ;;  %v1358_v62 = vunpack.c.l.bf16 %v2978_v45  ;;  %v442_v42 = vmax.f32 %v242_v41, %v2687_v28 }
  0xa1   :  { %v1023_v33 = vmax.f32 %v830_v49, %v2796_v12  ;;  %v832_v9 = vmax.f32 %v639_v43, %v2811_v20  ;;  %v641_v40 = vmax.f32 %v441_v27, %v2815_v37  ;;  %1737 = vst.msk [vmem:[%s3053_s1 + $0x38] sm:$0x1] %vm1680_vm0, %v1672_v60  ;;  %v1229_v12 = vmax.f32 %v2923_v7, %v1165_v63 }
  0xa2   :  { %v1024_v8 = vmax.f32 %v831_v3, %v2811_v20  ;;  %v833_v39 = vmax.f32 %v640_v51, %v2815_v37  ;;  %v1551_v55 = vunpack.c.l.bf16 %v107_v16  ;;  %v642_v17 = vmax.f32 %v442_v42, %v2827_v13 }
  0xa3   :  { %v1223_v58 = vmax.f32 %v1023_v33, %v1159_v18  ;;  %v1025_v36 = vmax.f32 %v832_v9, %v2815_v37  ;;  %v834_v4 = vmax.f32 %v641_v40, %v2827_v13  ;;  %v1164_v59 = vunpack.c.l.bf16 %v104_v0 }
  0xa4   :  { %v1224_v28 = vmax.f32 %v1024_v8, %v2939_v61  ;;  %v1026_v14 = vmax.f32 %v833_v39, %v2827_v13  ;;  %v1422_v1 = vmax.f32 %v1229_v12, %v1358_v62  ;;  %v835_v26 = vmax.f32 %v642_v17, %v2842_v54 }
  0xa5   :  { %v1416_v20 = vmax.f32 %v1223_v58, %v2939_v61  ;;  %v1225_v25 = vmax.f32 %v1025_v36, %v2947_v35  ;;  %v1027_v7 = vmax.f32 %v834_v4, %v2842_v54 }
  0xa6   :  { %v1417_v37 = vmax.f32 %v1224_v28, %v2947_v35  ;;  %v1226_v19 = vmax.f32 %v1026_v14, %v1162_v47  ;;  %v1615_v18 = vmax.f32 %v1422_v1, %v1551_v55  ;;  %v1028_v13 = vmax.f32 %v835_v26, %v2856_v57 }
  0xa7   :  { %v1609_v21 = vmax.f32 %v1416_v20, %v2947_v35  ;;  %v1418_v22 = vmax.f32 %v1225_v25, %v1162_v47  ;;  %v1227_v11 = vmax.f32 %v1027_v7, %v1163_v53 }
  0xa8   :  { %v1610_v29 = vmax.f32 %v1417_v37, %v1162_v47  ;;  %v1419_v34 = vmax.f32 %v1226_v19, %v1163_v53  ;;  %v1679_v32 = vpack.c.bf16 %v1615_v18, %v1615_v18  ;;  %v1228_v46 = vmax.f32 %v1028_v13, %v1164_v59 }
  0xa9   :  { %v1673_v61 = vpack.c.bf16 %v1609_v21, %v1609_v21  ;;  %v1611_v5 = vmax.f32 %v1418_v22, %v1163_v53  ;;  %v1420_v15 = vmax.f32 %v1227_v11, %v1164_v59 }
  0xaa   :  { %v1674_v38 = vpack.c.bf16 %v1610_v29, %v1610_v29  ;;  %v1612_v30 = vmax.f32 %v1419_v34, %v1164_v59  ;;  %1744 = vst.msk [vmem:[%s3053_s1 + $0x3f] sm:$0x1] %vm1680_vm0, %v1679_v32  ;;  %v1421_v35 = vmax.f32 %v1228_v46, %v1165_v63 }
  0xab   :  { %1738 = vst.msk [vmem:[%s3053_s1 + $0x39] sm:$0x1] %vm1680_vm0, %v1673_v61  ;;  %v1675_v54 = vpack.c.bf16 %v1611_v5, %v1611_v5  ;;  %v1613_v57 = vmax.f32 %v1420_v15, %v1165_v63 }
  0xac   :  { %1739 = vst.msk [vmem:[%s3053_s1 + $0x3a] sm:$0x1] %vm1680_vm0, %v1674_v38  ;;  %v1676_v47 = vpack.c.bf16 %v1612_v30, %v1612_v30  ;;  %v1614_v23 = vmax.f32 %v1421_v35, %v1358_v62 }
  0xad   :  { %1740 = vst.msk [vmem:[%s3053_s1 + $0x3b] sm:$0x1] %vm1680_vm0, %v1675_v54  ;;  %v1677_v6 = vpack.c.bf16 %v1613_v57, %v1613_v57 }
  0xae   :  { %1741 = vst.msk [vmem:[%s3053_s1 + $0x3c] sm:$0x1] %vm1680_vm0, %v1676_v47  ;;  %v1678_v10 = vpack.c.bf16 %v1614_v23, %v1614_v23 }
  0xaf   :  { %1742 = vst.msk [vmem:[%s3053_s1 + $0x3d] sm:$0x1] %vm1680_vm0, %v1677_v6 }
  0xb0   :  { %1743 = vst.msk [vmem:[%s3053_s1 + $0x3e] sm:$0x1] %vm1680_vm0, %v1678_v10 }

// kernel: _lambda_.24
= control target key start
LH: loop header
LB: loop body
LE: loop exit
PB: predicated region body
PF: predicated region fallthrough
CT: control target
= control target key end

     0   :  { %s752_s12 = smov 0   ;;  %s754_s13 = smov 0   ;;  %s845_s0 = inlined_call_operand.vmem [shape: bf16[32,640], index: 0, kind: input, shape index: {}]   ;;  %s846_s1 = inlined_call_operand.vmem [shape: bf16[640,128], index: 1, kind: input, shape index: {}]   ;;  %s847_s2 = inlined_call_operand.vmem [shape: f32[1,128], index: 2, kind: input, shape index: {}]   ;;  %s848_s3 = inlined_call_operand.vmem [shape: bf16[32,128], index: 3, kind: output, shape index: {}]  }
   0x1   :  { %s756_s14 = smov 0   ;;  %s758_s15 = smov 0  }
   0x2   :  { %s760_s16 = smov 0  }
   0x3 LB: > { %s25_s17 = sadd.s32 1, %s725_s15  ;;  %p48_p1 = scmp.ne.s32.totalorder %s717_s13, %s713_s12  ;;  %s729_s16 = sphi %s760_s16, %s13_s16   ;;  %s725_s15 = sphi %s758_s15, %s852_s15   ;;  %s721_s14 = sphi %s756_s14, %s851_s14   ;;  %s717_s13 = sphi %s754_s13, %s850_s13   ;;  %s713_s12 = sphi %s752_s12, %s849_s12  }
   0x4   : > { %p26_p0 = scmp.ge.s32.totalorder %s25_s17, 5  ;;  %p49_p2 = scmp.eq.s32.totalorder %s729_s16, 0 }
   0x5   : > { %s41_s19 = sadd.s32 1, %s717_s13  ;;  %p567_p5 = scmp.ge.s32.totalorder %s729_s16, 5 }
   0x6   : > { %s854_s17 = smov (%p26_p0, %s25_s17), 0  ;;  %p50_p3 = por %p49_p2, %p48_p1 }
   0x7   : > { %s37_s18 = ssub.s32 %s725_s15, %s854_s17  ;;  %162 = sbr.rel (%p567_p5) target bundleno = 20 (0x14), region = 20 }
   0x8   : > { %p39_p4 = scmp.eq.s32.totalorder %s37_s18, 0 }
   0xa   : > { %s787_s20 = scalar_select %p39_p4, %s717_s13, %s41_s19  }
   0xc   : > { %165 = sbr.rel (!%p50_p3) target bundleno = 20 (0x14), region = 24  ;;  %s167_s21 = sand.u32 (%p50_p3), 1, %s717_s13  }
   0xd   : > { %s569_s22 = sshll.u32 (%p50_p3), %s725_s15, 2  ;;  %s568_s23 = sshll.u32 (%p50_p3), %s167_s21, 4 }
   0xe   : > { %s174_s26 = scalar_lea.vmem (%p50_p3), %s845_s0, %s569_s22  ;;  %s169_s27 = scalar_lea.vmem (%p50_p3), [#allocation3], %s568_s23 }
   0xf   : > { %v191_v0 = vld [vmem:[%s174_s26] sm:$0xf] (%p50_p3)  ;;  %v193_v1 = vld [vmem:[%s174_s26 + $0x14] sm:$0xf] (%p50_p3)  ;;  %v195_v2 = vld [vmem:[%s174_s26 + $0x28] sm:$0xf] (%p50_p3) }
  0x10   : > { %192 = vst [vmem:[%s169_s27] sm:$0xf] (%p50_p3), %v191_v0  ;;  %v197_v3 = vld [vmem:[%s174_s26 + $0x3c] sm:$0xf] (%p50_p3) }
  0x11   : > { %194 = vst [vmem:[%s169_s27 + $0x4] sm:$0xf] %v193_v1 }
  0x12   : > { %196 = vst [vmem:[%s169_s27 + $0x8] sm:$0xf] %v195_v2 }
  0x13   : > { %198 = vst [vmem:[%s169_s27 + $0xc] sm:$0xf] %v197_v3 }
  0x14 PF: > { %p570_p6 = scmp.ge.s32.totalorder %s729_s16, 1  ;;  %p241_p7 = scmp.lt.s32.totalorder %s729_s16, 6 }
  0x16   : > { %p242_p8 = pnand %p570_p6, %p241_p7 }
  0x17   : > { %s248_s28 = sand.u32 (!%p242_p8), 1, %s713_s12   ;;  %s572_s29 = sshll.u32 (!%p242_p8), %s721_s14, 4 }
  0x18   : > { %245 = sbr.rel (%p242_p8) target bundleno = 223 (0xdf), region = 69  ;;  %s799_s30 = sshll.u32 (!%p242_p8), %s248_s28, 4 }
  0x19   : > { %p287_p9 = scmp.lt.s32.totalorder (!%p242_p8), %s572_s29, 79  ;;  %s250_s8 = scalar_lea.vmem (!%p242_p8), [#allocation3], %s799_s30 }
  0x1a   : > { %p574_p10 = scmp.ne.s32.totalorder (!%p242_p8), %s721_s14, 0 }
  0x1d   : > { %s856_s29 = smov (!%p287_p9, %s572_s29), 79  ;;  %310 = sbr.rel (%p574_p10) target bundleno = 39 (0x27), region = 77 }
  0x1e   : > { %s573_s4 = sshll.u32 %s856_s29, 2 }
  0x1f   : > { %s804_s7 = scalar_lea.vmem %s846_s1, %s573_s4 }
  0x22   : > { %v731_v4 = vmov 0.0  }
  0x23   : > { %311 = vst [vmem:[#allocation2 + $0x10] sm:$0xff] %v731_v4 }
  0x24   : > { %312 = vst [vmem:[#allocation2] sm:$0xff] %v731_v4 }
  0x25   : > { %313 = vst [vmem:[#allocation2 + $0x18] sm:$0xff] %v731_v4 }
  0x26   : > { %314 = vst [vmem:[#allocation2 + $0x8] sm:$0xff] %v731_v4 }
  0x27 PF: > { %v629_v5 = vld [vmem:[%s804_s7 + $0x38] sm:$0xff]  ;;  %v628_v6 = vld [vmem:[%s804_s7 + $0x30] sm:$0xff]  ;;  %v627_v7 = vld [vmem:[%s804_s7 + $0x28] sm:$0xff]  ;;  %p615_p11 = scmp.ne.s32.totalorder %s721_s14, 4 }
  0x28   : > { %399 = vmatpush.bf16.msra.mxu0 %v629_v5  ;;  %641 = vmatpush.bf16.msra.mxu1 %v629_v5  ;;  %v626_v8 = vld [vmem:[%s804_s7 + $0x20] sm:$0xff]  ;;  %v625_v9 = vld [vmem:[%s804_s7 + $0x18] sm:$0xff]  ;;  %v624_v10 = vld [vmem:[%s804_s7 + $0x10] sm:$0xff] }
  0x29   : > { %v623_v11 = vld [vmem:[%s804_s7 + $0x8] sm:$0xff]  ;;  %v622_v12 = vld [vmem:[%s804_s7] sm:$0xff] }
  0x2a   : > { %v620_v13 = vld [vmem:[%s250_s8] sm:$0xff]  ;;  %v621_v14 = vld [vmem:[%s250_s8 + $0x8] sm:$0xff] }
  0x2b   : > { %v315_v15 = vld [vmem:[#allocation2 + $0x10] sm:$0xff]  ;;  %v316_v21 = vld [vmem:[#allocation2] sm:$0xff] }
  0x2c   : > { %400 = vmatpush.bf16.msra.mxu0 %v628_v6  ;;  %642 = vmatpush.bf16.msra.mxu1 %v628_v6  ;;  %v317_v16 = vld [vmem:[#allocation2 + $0x18] sm:$0xff] }
  0x2d   : > { %v318_v22 = vld [vmem:[#allocation2 + $0x8] sm:$0xff] }
  0x30   : > { %401 = vmatpush.bf16.msra.mxu0 %v627_v7  ;;  %643 = vmatpush.bf16.msra.mxu1 %v627_v7 }
  0x34   : > { %402 = vmatpush.bf16.msra.mxu0 %v626_v8  ;;  %644 = vmatpush.bf16.msra.mxu1 %v626_v8 }
  0x38   : > { %403 = vmatpush.bf16.msra.mxu0 %v625_v9  ;;  %645 = vmatpush.bf16.msra.mxu1 %v625_v9 }
  0x3c   : > { %404 = vmatpush.bf16.msra.mxu0 %v624_v10  ;;  %646 = vmatpush.bf16.msra.mxu1 %v624_v10 }
  0x40   : > { %405 = vmatpush.bf16.msra.mxu0 %v623_v11  ;;  %647 = vmatpush.bf16.msra.mxu1 %v623_v11 }
  0x44   : > { %406 = vmatpush.bf16.msra.mxu0 %v622_v12  ;;  %648 = vmatpush.bf16.msra.mxu1 %v622_v12 }
  0x47   : > { %407 = vmatmul.bf16.vlgmr.msra.gmra.mxu0 %v620_v13  ;;  %412 = vmatmul.bf16.vlgmr.msra.gmra.mxu1 %v621_v14 }
  0xc4   : > { %v408_v17 = vpop.f32.mrf.mxu0  ;;  %v413_v18 = vpop.f32.mrf.mxu1 }
  0xc5   : > { %v418_v19 = vadd.f32 %v408_v17, %v315_v15  ;;  %v420_v20 = vadd.f32 %v413_v18, %v317_v16 }
  0xc7   : > { %422 = vst [vmem:[#allocation2 + $0x10] sm:$0xff] %v418_v19 }
  0xc8   : > { %424 = vst [vmem:[#allocation2 + $0x18] sm:$0xff] %v420_v20 }
  0xcc   : > { %v410_v23 = vpop.f32.mrf.mxu0  ;;  %v415_v24 = vpop.f32.mrf.mxu1  ;;  %429 = sbr.rel (%p615_p11) target bundleno = 223 (0xdf), region = 81 }
  0xcd   : > { %v419_v25 = vadd.f32 %v410_v23, %v316_v21  ;;  %v421_v26 = vadd.f32 %v415_v24, %v318_v22 }
  0xcf   : > { %423 = vst [vmem:[#allocation2] sm:$0xff] %v419_v25 }
  0xd0   : > { %425 = vst [vmem:[#allocation2 + $0x8] sm:$0xff] %v421_v26 }
  0xd1   : > { %v430_v27 = vld [vmem:[#allocation2 + $0x10] sm:$0xff]  ;;  %v690_v29 = vld [vmem:[%s847_s2] ss:$0 sm:$0xff]  ;;  %v432_v30 = vld [vmem:[#allocation2 + $0x18] sm:$0xff] }
  0xd2   : > { %v438_v32 = vadd.f32 %v690_v29, %v430_v27  ;;  %v440_v34 = vadd.f32 %v690_v29, %v432_v30 }
  0xd4   : > { %v442_v36 = vmax.f32 %v438_v32, 0.0  ;;  %v444_v38 = vmax.f32 %v440_v34, 0.0 }
  0xd6   : > { %v431_v28 = vld [vmem:[#allocation2] sm:$0xff] }
  0xd7   : > { %v433_v31 = vld [vmem:[#allocation2 + $0x8] sm:$0xff]  ;;  %v439_v33 = vadd.f32 %v690_v29, %v431_v28 }
  0xd8   : > { %v441_v35 = vadd.f32 %v690_v29, %v433_v31 }
  0xd9   : > { %v443_v37 = vmax.f32 %v439_v33, 0.0 }
  0xda   : > { %v445_v39 = vmax.f32 %v441_v35, 0.0 }
  0xdb   : > { %v633_v40 = vpack.c.bf16 %v443_v37, %v442_v36 }
  0xdc   : > { %v638_v41 = vpack.c.bf16 %v445_v39, %v444_v38 }
  0xdd   : > { %634 = vst [vmem:[%s848_s3] sm:$0xff] %v633_v40  }
  0xde   : > { %640 = vst [vmem:[%s848_s3 + $0x8] sm:$0xff] %v638_v41  }
  0xdf PF: > { %s13_s16 = sadd.s32 1, %s729_s16   ;;  %s849_s12 = smov %s717_s13 }
  0xe0   : > { %p10_p12 = scmp.ge.s32.totalorder %s13_s16, 7   ;;  %s850_s13 = smov %s787_s20 }
  0xe1   : > { %s851_s14 = smov %s725_s15  ;;  %s852_s15 = smov %s854_s17 }
  0xe2   :  { %12 = sbr.rel (!%p10_p12) target bundleno = 3 (0x3), region = 122 }

// kernel: _lambda_.25
= control target key start
LH: loop header
LB: loop body
LE: loop exit
PB: predicated region body
PF: predicated region fallthrough
CT: control target
= control target key end

     0   :  { %s480_s1 = inlined_call_operand.vmem [shape: bf16[128,256], index: 1, kind: input, shape index: {}]   ;;  %s481_s0 = inlined_call_operand.vmem [shape: bf16[32,128], index: 0, kind: input, shape index: {}]   ;;  %s482_s2 = inlined_call_operand.vmem [shape: f32[1,256], index: 2, kind: input, shape index: {}]   ;;  %s483_s3 = inlined_call_operand.vmem [shape: bf16[32,256], index: 3, kind: output, shape index: {}]  }
   0x1   :  { %v303_v0 = vld [vmem:[%s480_s1 + $0x70] sm:$0xf]  ;;  %v326_v1 = vld [vmem:[%s480_s1 + $0x74] sm:$0xf0]  ;;  %v325_v2 = vld [vmem:[%s480_s1 + $0x74] sm:$0xf] }
   0x2   :  { %v304_v3 = vor.u32 %v326_v1, %v303_v0  ;;  %v305_v4 = vld [vmem:[%s480_s1 + $0x78] sm:$0xf0]  ;;  %v295_v5 = vld [vmem:[%s480_s1 + $0x60] sm:$0xf]  ;;  %v324_v6 = vld [vmem:[%s480_s1 + $0x64] sm:$0xf0] }
   0x3   :  { %v308_v7 = vor.u32 %v325_v2, %v305_v4  ;;  %v323_v8 = vld [vmem:[%s480_s1 + $0x64] sm:$0xf]  ;;  %v297_v9 = vld [vmem:[%s480_s1 + $0x68] sm:$0xf0]  ;;  %v296_v10 = vor.u32 %v324_v6, %v295_v5  ;;  %v287_v12 = vld [vmem:[%s480_s1 + $0x50] sm:$0xf] }
   0x4   :  { %146 = vmatpush.bf16.msra.mxu0 %v304_v3  ;;  %327 = vmatpush.bf16.msra.mxu2 %v304_v3  ;;  %v300_v11 = vor.u32 %v323_v8, %v297_v9  ;;  %v322_v13 = vld [vmem:[%s480_s1 + $0x54] sm:$0xf0]  ;;  %v321_v14 = vld [vmem:[%s480_s1 + $0x54] sm:$0xf]  ;;  %v289_v15 = vld [vmem:[%s480_s1 + $0x58] sm:$0xf0] }
   0x5   :  { %165 = vmatpush.bf16.msra.mxu1 %v308_v7  ;;  %335 = vmatpush.bf16.msra.mxu3 %v308_v7  ;;  %v288_v16 = vor.u32 %v322_v13, %v287_v12  ;;  %v292_v17 = vor.u32 %v321_v14, %v289_v15  ;;  %v279_v18 = vld [vmem:[%s480_s1 + $0x40] sm:$0xf]  ;;  %v320_v19 = vld [vmem:[%s480_s1 + $0x44] sm:$0xf0]  ;;  %v319_v20 = vld [vmem:[%s480_s1 + $0x44] sm:$0xf] }
   0x6   :  { %v281_v21 = vld [vmem:[%s480_s1 + $0x48] sm:$0xf0]  ;;  %v280_v22 = vor.u32 %v320_v19, %v279_v18  ;;  %v271_v24 = vld [vmem:[%s480_s1 + $0x30] sm:$0xf]  ;;  %v318_v25 = vld [vmem:[%s480_s1 + $0x34] sm:$0xf0] }
   0x7   :  { %v284_v23 = vor.u32 %v319_v20, %v281_v21  ;;  %v317_v26 = vld [vmem:[%s480_s1 + $0x34] sm:$0xf]  ;;  %v273_v27 = vld [vmem:[%s480_s1 + $0x38] sm:$0xf0]  ;;  %v272_v28 = vor.u32 %v318_v25, %v271_v24  ;;  %v263_v30 = vld [vmem:[%s480_s1 + $0x20] sm:$0xf] }
   0x8   :  { %147 = vmatpush.bf16.msra.mxu0 %v296_v10  ;;  %328 = vmatpush.bf16.msra.mxu2 %v296_v10  ;;  %v276_v29 = vor.u32 %v317_v26, %v273_v27  ;;  %v316_v31 = vld [vmem:[%s480_s1 + $0x24] sm:$0xf0]  ;;  %v315_v32 = vld [vmem:[%s480_s1 + $0x24] sm:$0xf]  ;;  %v265_v33 = vld [vmem:[%s480_s1 + $0x28] sm:$0xf0] }
   0x9   :  { %166 = vmatpush.bf16.msra.mxu1 %v300_v11  ;;  %336 = vmatpush.bf16.msra.mxu3 %v300_v11  ;;  %v264_v34 = vor.u32 %v316_v31, %v263_v30  ;;  %v268_v35 = vor.u32 %v315_v32, %v265_v33  ;;  %v255_v36 = vld [vmem:[%s480_s1 + $0x10] sm:$0xf]  ;;  %v314_v37 = vld [vmem:[%s480_s1 + $0x14] sm:$0xf0]  ;;  %v313_v38 = vld [vmem:[%s480_s1 + $0x14] sm:$0xf] }
   0xa   :  { %v257_v39 = vld [vmem:[%s480_s1 + $0x18] sm:$0xf0]  ;;  %v256_v40 = vor.u32 %v314_v37, %v255_v36  ;;  %v247_v42 = vld [vmem:[%s480_s1] sm:$0xf]  ;;  %v312_v43 = vld [vmem:[%s480_s1 + $0x4] sm:$0xf0] }
   0xb   :  { %v260_v41 = vor.u32 %v313_v38, %v257_v39  ;;  %v311_v44 = vld [vmem:[%s480_s1 + $0x4] sm:$0xf]  ;;  %v249_v45 = vld [vmem:[%s480_s1 + $0x8] sm:$0xf0]  ;;  %v248_v46 = vor.u32 %v312_v43, %v247_v42  ;;  %v211_v50 = vld [vmem:[%s482_s2] sm:$0x3] }
   0xc   :  { %148 = vmatpush.bf16.msra.mxu0 %v288_v16  ;;  %329 = vmatpush.bf16.msra.mxu2 %v288_v16  ;;  %v252_v47 = vor.u32 %v311_v44, %v249_v45  ;;  %v309_v48 = vld [vmem:[%s481_s0] sm:$0xff]  ;;  %v310_v49 = vld [vmem:[%s481_s0 + $0x8] sm:$0xff]  ;;  %v213_v51 = vperm.slane %v211_v50, 0  ;;  %v214_v52 = vperm.slane %v211_v50, 1 }
   0xd   :  { %167 = vmatpush.bf16.msra.mxu1 %v292_v17  ;;  %337 = vmatpush.bf16.msra.mxu3 %v292_v17 }
  0x10   :  { %149 = vmatpush.bf16.msra.mxu0 %v280_v22  ;;  %330 = vmatpush.bf16.msra.mxu2 %v280_v22 }
  0x11   :  { %168 = vmatpush.bf16.msra.mxu1 %v284_v23  ;;  %338 = vmatpush.bf16.msra.mxu3 %v284_v23 }
  0x14   :  { %150 = vmatpush.bf16.msra.mxu0 %v272_v28  ;;  %331 = vmatpush.bf16.msra.mxu2 %v272_v28 }
  0x15   :  { %169 = vmatpush.bf16.msra.mxu1 %v276_v29  ;;  %339 = vmatpush.bf16.msra.mxu3 %v276_v29 }
  0x18   :  { %151 = vmatpush.bf16.msra.mxu0 %v264_v34  ;;  %332 = vmatpush.bf16.msra.mxu2 %v264_v34 }
  0x19   :  { %170 = vmatpush.bf16.msra.mxu1 %v268_v35  ;;  %340 = vmatpush.bf16.msra.mxu3 %v268_v35 }
  0x1c   :  { %152 = vmatpush.bf16.msra.mxu0 %v256_v40  ;;  %333 = vmatpush.bf16.msra.mxu2 %v256_v40 }
  0x1d   :  { %171 = vmatpush.bf16.msra.mxu1 %v260_v41  ;;  %341 = vmatpush.bf16.msra.mxu3 %v260_v41 }
  0x20   :  { %153 = vmatpush.bf16.msra.mxu0 %v248_v46  ;;  %334 = vmatpush.bf16.msra.mxu2 %v248_v46 }
  0x21   :  { %172 = vmatpush.bf16.msra.mxu1 %v252_v47  ;;  %342 = vmatpush.bf16.msra.mxu3 %v252_v47 }
  0x23   :  { %154 = vmatmul.bf16.vlgmr.msra.gmra.mxu0 %v309_v48  ;;  %159 = vmatmul.bf16.vlgmr.msra.gmra.mxu2 %v310_v49 }
  0x24   :  { %173 = vmatmul.bf16.vlgmr.msra.gmra.mxu1 %v309_v48  ;;  %178 = vmatmul.bf16.vlgmr.msra.gmra.mxu3 %v310_v49 }
  0xa0   :  { %v155_v53 = vpop.f32.mrf.mxu0 }
  0xa1   :  { %v217_v54 = vadd.f32 %v213_v51, %v155_v53  ;;  %v174_v55 = vpop.f32.mrf.mxu1 }
  0xa2   :  { %v218_v56 = vadd.f32 %v214_v52, %v174_v55 }
  0xa4   :  { %v225_v57 = vpack.c.bf16 %v218_v56, %v217_v54 }
  0xa6   :  { %229 = vst [vmem:[%s483_s3] sm:$0xff] %v225_v57  ;;  %v160_v58 = vpop.f32.mrf.mxu2 }
  0xa7   :  { %v221_v59 = vadd.f32 %v213_v51, %v160_v58  ;;  %v179_v60 = vpop.f32.mrf.mxu3 }
  0xa8   :  { %v222_v61 = vadd.f32 %v214_v52, %v179_v60  ;;  %v157_v62 = vpop.f32.mrf.mxu0 }
  0xa9   :  { %v219_v63 = vadd.f32 %v213_v51, %v157_v62  ;;  %v176_v0 = vpop.f32.mrf.mxu1 }
  0xaa   :  { %v227_v1 = vpack.c.bf16 %v222_v61, %v221_v59  ;;  %v220_v2 = vadd.f32 %v214_v52, %v176_v0 }
  0xac   :  { %231 = vst [vmem:[%s483_s3 + $0x10] sm:$0xff] %v227_v1  ;;  %v226_v3 = vpack.c.bf16 %v220_v2, %v219_v63 }
  0xae   :  { %230 = vst [vmem:[%s483_s3 + $0x8] sm:$0xff] %v226_v3  ;;  %v162_v4 = vpop.f32.mrf.mxu2 }
  0xaf   :  { %v223_v5 = vadd.f32 %v213_v51, %v162_v4  ;;  %v181_v6 = vpop.f32.mrf.mxu3 }
  0xb0   :  { %v224_v7 = vadd.f32 %v214_v52, %v181_v6 }
  0xb2   :  { %v228_v8 = vpack.c.bf16 %v224_v7, %v223_v5 }
  0xb4   :  { %232 = vst [vmem:[%s483_s3 + $0x18] sm:$0xff] %v228_v8 }

// kernel: _lambda_.26
= control target key start
LH: loop header
LB: loop body
LE: loop exit
PB: predicated region body
PF: predicated region fallthrough
CT: control target
= control target key end

     0   :  { %s528_s1 = inlined_call_operand.vmem [shape: bf16[128,256], index: 1, kind: input, shape index: {}]   ;;  %s529_s0 = inlined_call_operand.vmem [shape: bf16[32,128], index: 0, kind: input, shape index: {}]   ;;  %s530_s2 = inlined_call_operand.vmem [shape: f32[1,256], index: 2, kind: input, shape index: {}]   ;;  %s531_s3 = inlined_call_operand.vmem [shape: bf16[32,256], index: 3, kind: input, shape index: {}]   ;;  %s532_s4 = inlined_call_operand.vmem [shape: bf16[32,256], index: 4, kind: output, shape index: {}]  }
   0x1   :  { %v334_v0 = vld [vmem:[%s528_s1 + $0x70] sm:$0xf]  ;;  %v357_v1 = vld [vmem:[%s528_s1 + $0x74] sm:$0xf0]  ;;  %v356_v2 = vld [vmem:[%s528_s1 + $0x74] sm:$0xf] }
   0x2   :  { %v335_v3 = vor.u32 %v357_v1, %v334_v0  ;;  %v336_v4 = vld [vmem:[%s528_s1 + $0x78] sm:$0xf0]  ;;  %v326_v5 = vld [vmem:[%s528_s1 + $0x60] sm:$0xf]  ;;  %v355_v6 = vld [vmem:[%s528_s1 + $0x64] sm:$0xf0] }
   0x3   :  { %v339_v7 = vor.u32 %v356_v2, %v336_v4  ;;  %v354_v8 = vld [vmem:[%s528_s1 + $0x64] sm:$0xf]  ;;  %v328_v9 = vld [vmem:[%s528_s1 + $0x68] sm:$0xf0]  ;;  %v327_v10 = vor.u32 %v355_v6, %v326_v5  ;;  %v318_v12 = vld [vmem:[%s528_s1 + $0x50] sm:$0xf] }
   0x4   :  { %149 = vmatpush.bf16.msra.mxu0 %v335_v3  ;;  %358 = vmatpush.bf16.msra.mxu2 %v335_v3  ;;  %v331_v11 = vor.u32 %v354_v8, %v328_v9  ;;  %v353_v13 = vld [vmem:[%s528_s1 + $0x54] sm:$0xf0]  ;;  %v352_v14 = vld [vmem:[%s528_s1 + $0x54] sm:$0xf]  ;;  %v320_v15 = vld [vmem:[%s528_s1 + $0x58] sm:$0xf0] }
   0x5   :  { %168 = vmatpush.bf16.msra.mxu1 %v339_v7  ;;  %366 = vmatpush.bf16.msra.mxu3 %v339_v7  ;;  %v319_v16 = vor.u32 %v353_v13, %v318_v12  ;;  %v323_v17 = vor.u32 %v352_v14, %v320_v15  ;;  %v310_v18 = vld [vmem:[%s528_s1 + $0x40] sm:$0xf]  ;;  %v351_v19 = vld [vmem:[%s528_s1 + $0x44] sm:$0xf0]  ;;  %v350_v20 = vld [vmem:[%s528_s1 + $0x44] sm:$0xf] }
   0x6   :  { %v312_v21 = vld [vmem:[%s528_s1 + $0x48] sm:$0xf0]  ;;  %v311_v22 = vor.u32 %v351_v19, %v310_v18  ;;  %v302_v24 = vld [vmem:[%s528_s1 + $0x30] sm:$0xf]  ;;  %v349_v25 = vld [vmem:[%s528_s1 + $0x34] sm:$0xf0] }
   0x7   :  { %v315_v23 = vor.u32 %v350_v20, %v312_v21  ;;  %v348_v26 = vld [vmem:[%s528_s1 + $0x34] sm:$0xf]  ;;  %v304_v27 = vld [vmem:[%s528_s1 + $0x38] sm:$0xf0]  ;;  %v303_v28 = vor.u32 %v349_v25, %v302_v24  ;;  %v294_v30 = vld [vmem:[%s528_s1 + $0x20] sm:$0xf] }
   0x8   :  { %150 = vmatpush.bf16.msra.mxu0 %v327_v10  ;;  %359 = vmatpush.bf16.msra.mxu2 %v327_v10  ;;  %v307_v29 = vor.u32 %v348_v26, %v304_v27  ;;  %v347_v31 = vld [vmem:[%s528_s1 + $0x24] sm:$0xf0]  ;;  %v346_v32 = vld [vmem:[%s528_s1 + $0x24] sm:$0xf]  ;;  %v296_v33 = vld [vmem:[%s528_s1 + $0x28] sm:$0xf0] }
   0x9   :  { %169 = vmatpush.bf16.msra.mxu1 %v331_v11  ;;  %367 = vmatpush.bf16.msra.mxu3 %v331_v11  ;;  %v295_v34 = vor.u32 %v347_v31, %v294_v30  ;;  %v299_v35 = vor.u32 %v346_v32, %v296_v33  ;;  %v286_v36 = vld [vmem:[%s528_s1 + $0x10] sm:$0xf]  ;;  %v345_v37 = vld [vmem:[%s528_s1 + $0x14] sm:$0xf0]  ;;  %v344_v38 = vld [vmem:[%s528_s1 + $0x14] sm:$0xf] }
   0xa   :  { %v288_v39 = vld [vmem:[%s528_s1 + $0x18] sm:$0xf0]  ;;  %v287_v40 = vor.u32 %v345_v37, %v286_v36  ;;  %v278_v42 = vld [vmem:[%s528_s1] sm:$0xf]  ;;  %v343_v43 = vld [vmem:[%s528_s1 + $0x4] sm:$0xf0] }
   0xb   :  { %v291_v41 = vor.u32 %v344_v38, %v288_v39  ;;  %v342_v44 = vld [vmem:[%s528_s1 + $0x4] sm:$0xf]  ;;  %v280_v45 = vld [vmem:[%s528_s1 + $0x8] sm:$0xf0]  ;;  %v279_v46 = vor.u32 %v343_v43, %v278_v42  ;;  %v214_v50 = vld [vmem:[%s530_s2] sm:$0x3] }
   0xc   :  { %151 = vmatpush.bf16.msra.mxu0 %v319_v16  ;;  %360 = vmatpush.bf16.msra.mxu2 %v319_v16  ;;  %v283_v47 = vor.u32 %v342_v44, %v280_v45  ;;  %v340_v48 = vld [vmem:[%s529_s0] sm:$0xff]  ;;  %v341_v49 = vld [vmem:[%s529_s0 + $0x8] sm:$0xff]  ;;  %v216_v52 = vperm.slane %v214_v50, 0  ;;  %v217_v53 = vperm.slane %v214_v50, 1  ;;  %v230_v60 = vld [vmem:[%s531_s3 + $0x10] sm:$0xff] }
   0xd   :  { %170 = vmatpush.bf16.msra.mxu1 %v323_v17  ;;  %368 = vmatpush.bf16.msra.mxu3 %v323_v17  ;;  %v228_v51 = vld [vmem:[%s531_s3] sm:$0xff]  ;;  %v229_v63 = vld [vmem:[%s531_s3 + $0x8] sm:$0xff]  ;;  %v236_v1 = vunpack.c.l.bf16 %v230_v60  ;;  %v237_v4 = vunpack.c.h.bf16 %v230_v60  ;;  %v231_v17 = vld [vmem:[%s531_s3 + $0x18] sm:$0xff] }
   0xe   :  { %v232_v54 = vunpack.c.l.bf16 %v228_v51  ;;  %v233_v56 = vunpack.c.h.bf16 %v228_v51  ;;  %v234_v7 = vunpack.c.l.bf16 %v229_v63  ;;  %v235_v11 = vunpack.c.h.bf16 %v229_v63 }
   0xf   :  { %v239_v27 = vunpack.c.h.bf16 %v231_v17 }
  0x10   :  { %152 = vmatpush.bf16.msra.mxu0 %v311_v22  ;;  %361 = vmatpush.bf16.msra.mxu2 %v311_v22 }
  0x11   :  { %171 = vmatpush.bf16.msra.mxu1 %v315_v23  ;;  %369 = vmatpush.bf16.msra.mxu3 %v315_v23  ;;  %v238_v23 = vunpack.c.l.bf16 %v231_v17 }
  0x14   :  { %153 = vmatpush.bf16.msra.mxu0 %v303_v28  ;;  %362 = vmatpush.bf16.msra.mxu2 %v303_v28 }
  0x15   :  { %172 = vmatpush.bf16.msra.mxu1 %v307_v29  ;;  %370 = vmatpush.bf16.msra.mxu3 %v307_v29 }
  0x18   :  { %154 = vmatpush.bf16.msra.mxu0 %v295_v34  ;;  %363 = vmatpush.bf16.msra.mxu2 %v295_v34 }
  0x19   :  { %173 = vmatpush.bf16.msra.mxu1 %v299_v35  ;;  %371 = vmatpush.bf16.msra.mxu3 %v299_v35 }
  0x1c   :  { %155 = vmatpush.bf16.msra.mxu0 %v287_v40  ;;  %364 = vmatpush.bf16.msra.mxu2 %v287_v40 }
  0x1d   :  { %174 = vmatpush.bf16.msra.mxu1 %v291_v41  ;;  %372 = vmatpush.bf16.msra.mxu3 %v291_v41 }
  0x20   :  { %156 = vmatpush.bf16.msra.mxu0 %v279_v46  ;;  %365 = vmatpush.bf16.msra.mxu2 %v279_v46 }
  0x21   :  { %175 = vmatpush.bf16.msra.mxu1 %v283_v47  ;;  %373 = vmatpush.bf16.msra.mxu3 %v283_v47 }
  0x23   :  { %157 = vmatmul.bf16.vlgmr.msra.gmra.mxu0 %v340_v48  ;;  %162 = vmatmul.bf16.vlgmr.msra.gmra.mxu2 %v341_v49 }
  0x24   :  { %176 = vmatmul.bf16.vlgmr.msra.gmra.mxu1 %v340_v48  ;;  %181 = vmatmul.bf16.vlgmr.msra.gmra.mxu3 %v341_v49 }
  0xa0   :  { %v158_v55 = vpop.f32.mrf.mxu0 }
  0xa1   :  { %v220_v57 = vadd.f32 %v216_v52, %v158_v55  ;;  %v177_v58 = vpop.f32.mrf.mxu1 }
  0xa2   :  { %v221_v59 = vadd.f32 %v217_v53, %v177_v58 }
  0xa3   :  { %v240_v61 = vadd.f32 %v232_v54, %v220_v57 }
  0xa4   :  { %v241_v62 = vadd.f32 %v233_v56, %v221_v59 }
  0xa5   :  { %v248_v0 = vmax.f32 %v240_v61, 0.0 }
  0xa6   :  { %v249_v2 = vmax.f32 %v241_v62, 0.0  ;;  %v163_v3 = vpop.f32.mrf.mxu2 }
  0xa7   :  { %v224_v5 = vadd.f32 %v216_v52, %v163_v3  ;;  %v182_v6 = vpop.f32.mrf.mxu3 }
  0xa8   :  { %v256_v8 = vpack.c.bf16 %v249_v2, %v248_v0  ;;  %v225_v9 = vadd.f32 %v217_v53, %v182_v6  ;;  %v160_v10 = vpop.f32.mrf.mxu0 }
  0xa9   :  { %v244_v12 = vadd.f32 %v236_v1, %v224_v5  ;;  %v222_v13 = vadd.f32 %v216_v52, %v160_v10  ;;  %v179_v14 = vpop.f32.mrf.mxu1 }
  0xaa   :  { %260 = vst [vmem:[%s532_s4] sm:$0xff] %v256_v8  ;;  %v245_v15 = vadd.f32 %v237_v4, %v225_v9  ;;  %v223_v16 = vadd.f32 %v217_v53, %v179_v14 }
  0xab   :  { %v252_v18 = vmax.f32 %v244_v12, 0.0  ;;  %v242_v19 = vadd.f32 %v234_v7, %v222_v13 }
  0xac   :  { %v253_v20 = vmax.f32 %v245_v15, 0.0  ;;  %v243_v21 = vadd.f32 %v235_v11, %v223_v16 }
  0xad   :  { %v250_v22 = vmax.f32 %v242_v19, 0.0 }
  0xae   :  { %v258_v24 = vpack.c.bf16 %v253_v20, %v252_v18  ;;  %v251_v25 = vmax.f32 %v243_v21, 0.0  ;;  %v165_v26 = vpop.f32.mrf.mxu2 }
  0xaf   :  { %v226_v28 = vadd.f32 %v216_v52, %v165_v26  ;;  %v184_v29 = vpop.f32.mrf.mxu3 }
  0xb0   :  { %262 = vst [vmem:[%s532_s4 + $0x10] sm:$0xff] %v258_v24  ;;  %v257_v30 = vpack.c.bf16 %v251_v25, %v250_v22  ;;  %v227_v31 = vadd.f32 %v217_v53, %v184_v29 }
  0xb1   :  { %v246_v32 = vadd.f32 %v238_v23, %v226_v28 }
  0xb2   :  { %261 = vst [vmem:[%s532_s4 + $0x8] sm:$0xff] %v257_v30  ;;  %v247_v33 = vadd.f32 %v239_v27, %v227_v31 }
  0xb3   :  { %v254_v34 = vmax.f32 %v246_v32, 0.0 }
  0xb4   :  { %v255_v35 = vmax.f32 %v247_v33, 0.0 }
  0xb6   :  { %v259_v36 = vpack.c.bf16 %v255_v35, %v254_v34 }
  0xb8   :  { %263 = vst [vmem:[%s532_s4 + $0x18] sm:$0xff] %v259_v36 }

// kernel: _lambda_.27
= control target key start
LH: loop header
LB: loop body
LE: loop exit
PB: predicated region body
PF: predicated region fallthrough
CT: control target
= control target key end

     0   :  { %s484_s1 = inlined_call_operand.vmem [shape: bf16[256,128], index: 1, kind: input, shape index: {}]   ;;  %s485_s0 = inlined_call_operand.vmem [shape: bf16[32,256], index: 0, kind: input, shape index: {}]   ;;  %s486_s2 = inlined_call_operand.vmem [shape: f32[1,128], index: 2, kind: input, shape index: {}]   ;;  %s487_s3 = inlined_call_operand.vmem [shape: bf16[32,128], index: 3, kind: output, shape index: {}]  }
   0x1   :  { %v346_v0 = vld [vmem:[%s484_s1 + $0x38] sm:$0xff]  ;;  %v345_v2 = vld [vmem:[%s484_s1 + $0x30] sm:$0xff]  ;;  %v344_v4 = vld [vmem:[%s484_s1 + $0x28] sm:$0xff] }
   0x2   :  { %v354_v1 = vld [vmem:[%s484_s1 + $0x78] sm:$0xff]  ;;  %178 = vmatpush.bf16.msra.mxu0 %v346_v0  ;;  %366 = vmatpush.bf16.msra.mxu2 %v346_v0  ;;  %v353_v3 = vld [vmem:[%s484_s1 + $0x70] sm:$0xff]  ;;  %v352_v5 = vld [vmem:[%s484_s1 + $0x68] sm:$0xff] }
   0x3   :  { %197 = vmatpush.bf16.msra.mxu1 %v354_v1  ;;  %374 = vmatpush.bf16.msra.mxu3 %v354_v1  ;;  %v343_v6 = vld [vmem:[%s484_s1 + $0x20] sm:$0xff]  ;;  %v342_v8 = vld [vmem:[%s484_s1 + $0x18] sm:$0xff]  ;;  %v341_v10 = vld [vmem:[%s484_s1 + $0x10] sm:$0xff] }
   0x4   :  { %v351_v7 = vld [vmem:[%s484_s1 + $0x60] sm:$0xff]  ;;  %v350_v9 = vld [vmem:[%s484_s1 + $0x58] sm:$0xff]  ;;  %v349_v11 = vld [vmem:[%s484_s1 + $0x50] sm:$0xff] }
   0x5   :  { %v340_v12 = vld [vmem:[%s484_s1 + $0x8] sm:$0xff]  ;;  %v339_v14 = vld [vmem:[%s484_s1] sm:$0xff]  ;;  %v265_v18 = vld [vmem:[%s485_s0 + $0x10] sm:$0xf] }
   0x6   :  { %179 = vmatpush.bf16.msra.mxu0 %v345_v2  ;;  %367 = vmatpush.bf16.msra.mxu2 %v345_v2  ;;  %v348_v13 = vld [vmem:[%s484_s1 + $0x48] sm:$0xff]  ;;  %v347_v15 = vld [vmem:[%s484_s1 + $0x40] sm:$0xff]  ;;  %v338_v19 = vld [vmem:[%s485_s0 + $0x14] sm:$0xf0] }
   0x7   :  { %198 = vmatpush.bf16.msra.mxu1 %v353_v3  ;;  %375 = vmatpush.bf16.msra.mxu3 %v353_v3  ;;  %v257_v16 = vld [vmem:[%s485_s0] sm:$0xf]  ;;  %v336_v17 = vld [vmem:[%s485_s0 + $0x4] sm:$0xf0]  ;;  %v335_v20 = vld [vmem:[%s485_s0 + $0x4] sm:$0xf]  ;;  %v266_v25 = vor.u32 %v338_v19, %v265_v18 }
   0x8   :  { %v259_v21 = vld [vmem:[%s485_s0 + $0x8] sm:$0xf0]  ;;  %v337_v22 = vld [vmem:[%s485_s0 + $0x14] sm:$0xf]  ;;  %v267_v23 = vld [vmem:[%s485_s0 + $0x18] sm:$0xf0]  ;;  %v258_v24 = vor.u32 %v336_v17, %v257_v16 }
   0x9   :  { %v262_v26 = vor.u32 %v335_v20, %v259_v21  ;;  %v270_v27 = vor.u32 %v337_v22, %v267_v23  ;;  %v382_v31 = vld [vmem:[%s486_s2] ss:$0 sm:$0xff] }
   0xa   :  { %180 = vmatpush.bf16.msra.mxu0 %v344_v4  ;;  %368 = vmatpush.bf16.msra.mxu2 %v344_v4 }
   0xb   :  { %199 = vmatpush.bf16.msra.mxu1 %v352_v5  ;;  %376 = vmatpush.bf16.msra.mxu3 %v352_v5 }
   0xe   :  { %181 = vmatpush.bf16.msra.mxu0 %v343_v6  ;;  %369 = vmatpush.bf16.msra.mxu2 %v343_v6 }
   0xf   :  { %200 = vmatpush.bf16.msra.mxu1 %v351_v7  ;;  %377 = vmatpush.bf16.msra.mxu3 %v351_v7 }
  0x12   :  { %182 = vmatpush.bf16.msra.mxu0 %v342_v8  ;;  %370 = vmatpush.bf16.msra.mxu2 %v342_v8 }
  0x13   :  { %201 = vmatpush.bf16.msra.mxu1 %v350_v9  ;;  %378 = vmatpush.bf16.msra.mxu3 %v350_v9 }
  0x16   :  { %183 = vmatpush.bf16.msra.mxu0 %v341_v10  ;;  %371 = vmatpush.bf16.msra.mxu2 %v341_v10 }
  0x17   :  { %202 = vmatpush.bf16.msra.mxu1 %v349_v11  ;;  %379 = vmatpush.bf16.msra.mxu3 %v349_v11 }
  0x1a   :  { %184 = vmatpush.bf16.msra.mxu0 %v340_v12  ;;  %372 = vmatpush.bf16.msra.mxu2 %v340_v12 }
  0x1b   :  { %203 = vmatpush.bf16.msra.mxu1 %v348_v13  ;;  %380 = vmatpush.bf16.msra.mxu3 %v348_v13 }
  0x1e   :  { %185 = vmatpush.bf16.msra.mxu0 %v339_v14  ;;  %373 = vmatpush.bf16.msra.mxu2 %v339_v14 }
  0x1f   :  { %204 = vmatpush.bf16.msra.mxu1 %v347_v15  ;;  %381 = vmatpush.bf16.msra.mxu3 %v347_v15 }
  0x21   :  { %186 = vmatmul.bf16.vlgmr.msra.gmra.mxu0 %v258_v24  ;;  %191 = vmatmul.bf16.vlgmr.msra.gmra.mxu2 %v266_v25 }
  0x22   :  { %205 = vmatmul.bf16.vlgmr.msra.gmra.mxu1 %v262_v26  ;;  %210 = vmatmul.bf16.vlgmr.msra.gmra.mxu3 %v270_v27 }
  0x9e   :  { %v187_v28 = vpop.f32.mrf.mxu0 }
  0x9f   :  { %v206_v29 = vpop.f32.mrf.mxu1 }
  0xa0   :  { %v207_v30 = vadd.f32 %v206_v29, %v187_v28 }
  0xa2   :  { %v235_v36 = vadd.f32 %v382_v31, %v207_v30 }
  0xa4   :  { %v192_v32 = vpop.f32.mrf.mxu2  ;;  %v239_v40 = vmax.f32 %v235_v36, 0.0 }
  0xa5   :  { %v211_v33 = vpop.f32.mrf.mxu3 }
  0xa6   :  { %v189_v34 = vpop.f32.mrf.mxu0  ;;  %v212_v38 = vadd.f32 %v211_v33, %v192_v32 }
  0xa7   :  { %v208_v35 = vpop.f32.mrf.mxu1 }
  0xa8   :  { %v209_v37 = vadd.f32 %v208_v35, %v189_v34  ;;  %v237_v44 = vadd.f32 %v382_v31, %v212_v38 }
  0xaa   :  { %v236_v39 = vadd.f32 %v382_v31, %v209_v37  ;;  %v241_v48 = vmax.f32 %v237_v44, 0.0 }
  0xac   :  { %v240_v41 = vmax.f32 %v236_v39, 0.0  ;;  %v194_v42 = vpop.f32.mrf.mxu2 }
  0xad   :  { %v213_v43 = vpop.f32.mrf.mxu3 }
  0xae   :  { %v358_v45 = vpack.c.bf16 %v240_v41, %v239_v40  ;;  %v214_v46 = vadd.f32 %v213_v43, %v194_v42 }
  0xb0   :  { %359 = vst [vmem:[%s487_s3] sm:$0xff] %v358_v45   ;;  %v238_v47 = vadd.f32 %v382_v31, %v214_v46 }
  0xb2   :  { %v242_v49 = vmax.f32 %v238_v47, 0.0 }
  0xb4   :  { %v363_v50 = vpack.c.bf16 %v242_v49, %v241_v48 }
  0xb6   :  { %365 = vst [vmem:[%s487_s3 + $0x8] sm:$0xff] %v363_v50  }

// kernel: _lambda_.29
= control target key start
LH: loop header
LB: loop body
LE: loop exit
PB: predicated region body
PF: predicated region fallthrough
CT: control target
= control target key end

     0   :  { %s1101_s12 = smov 0   ;;  %s1103_s13 = smov 0   ;;  %s1306_s0 = inlined_call_operand.vmem [shape: bf16[8,256], index: 0, kind: input, shape index: {}]   ;;  %s1307_s1 = inlined_call_operand.vmem [shape: bf16[256,512], index: 1, kind: input, shape index: {}]   ;;  %s1308_s2 = inlined_call_operand.vmem [shape: f32[1,512], index: 2, kind: input, shape index: {}]   ;;  %s1309_s3 = inlined_call_operand.vmem [shape: bf16[8,512], index: 3, kind: output, shape index: {}]  }
   0x1   :  { %s1105_s14 = smov 0   ;;  %s1107_s15 = smov 0  }
   0x2   :  { %s1109_s16 = smov 0  }
   0x3 LB: > { %s28_s17 = sadd.s32 1, %s1075_s15  ;;  %p76_p1 = scmp.ne.s32.totalorder %s1067_s13, %s1063_s12  ;;  %s1079_s16 = sphi %s1109_s16, %s13_s16   ;;  %s1075_s15 = sphi %s1107_s15, %s1313_s15   ;;  %s1071_s14 = sphi %s1105_s14, %s1312_s14   ;;  %s1067_s13 = sphi %s1103_s13, %s1311_s13   ;;  %s1063_s12 = sphi %s1101_s12, %s1310_s12  }
   0x4   : > { %p30_p0 = scmp.ge.s32.totalorder %s28_s17, 2  ;;  %p77_p2 = scmp.eq.s32.totalorder %s1079_s16, 0 }
   0x5   : > { %s69_s19 = sadd.s32 1, %s1067_s13  ;;  %p829_p5 = scmp.ge.s32.totalorder %s1079_s16, 2 }
   0x6   : > { %s1315_s17 = smov (%p30_p0, %s28_s17), 0  ;;  %p78_p3 = por %p77_p2, %p76_p1 }
   0x7   : > { %s65_s18 = ssub.s32 %s1075_s15, %s1315_s17  ;;  %169 = sbr.rel (%p829_p5) target bundleno = 48 (0x30), region = 20 }
   0x8   : > { %p67_p4 = scmp.eq.s32.totalorder %s65_s18, 0 }
   0xa   : > { %s1136_s20 = scalar_select %p67_p4, %s1067_s13, %s69_s19  }
   0xc   : > { %172 = sbr.rel (!%p78_p3) target bundleno = 48 (0x30), region = 24  ;;  %s174_s21 = sand.u32 (%p78_p3), 1, %s1067_s13  }
   0xd   : > { %s968_s22 = sshll.u32 (%p78_p3), %s1075_s15, 3  ;;  %s830_s23 = sshll.u32 (%p78_p3), %s174_s21, 8 }
   0xe   : > { %s1144_s26 = scalar_lea.vmem (%p78_p3), %s1307_s1, %s968_s22  ;;  %s1149_s27 = scalar_lea.vmem (%p78_p3), [#allocation3], %s830_s23 }
   0xf   : > { %v273_v0 = vld [vmem:[%s1144_s26] sm:$0xff] (%p78_p3)  ;;  %v275_v1 = vld [vmem:[%s1144_s26 + $0x10] sm:$0xff] (%p78_p3) }
  0x10   : > { %v277_v2 = vld [vmem:[%s1144_s26 + $0x20] sm:$0xff] (%p78_p3)  ;;  %274 = vst [vmem:[%s1149_s27] sm:$0xff] (%p78_p3), %v273_v0  ;;  %v279_v3 = vld [vmem:[%s1144_s26 + $0x30] sm:$0xff] (%p78_p3) }
  0x11   : > { %276 = vst [vmem:[%s1149_s27 + $0x8] sm:$0xff] %v275_v1  ;;  %v281_v4 = vld [vmem:[%s1144_s26 + $0x40] sm:$0xff]  ;;  %v283_v5 = vld [vmem:[%s1144_s26 + $0x50] sm:$0xff] }
  0x12   : > { %278 = vst [vmem:[%s1149_s27 + $0x10] sm:$0xff] %v277_v2  ;;  %v285_v6 = vld [vmem:[%s1144_s26 + $0x60] sm:$0xff]  ;;  %v287_v7 = vld [vmem:[%s1144_s26 + $0x70] sm:$0xff] }
  0x13   : > { %280 = vst [vmem:[%s1149_s27 + $0x18] sm:$0xff] %v279_v3  ;;  %v289_v8 = vld [vmem:[%s1144_s26 + $0x80] sm:$0xff]  ;;  %v291_v9 = vld [vmem:[%s1144_s26 + $0x90] sm:$0xff] }
  0x14   : > { %282 = vst [vmem:[%s1149_s27 + $0x20] sm:$0xff] %v281_v4  ;;  %v293_v10 = vld [vmem:[%s1144_s26 + $0xa0] sm:$0xff]  ;;  %v295_v11 = vld [vmem:[%s1144_s26 + $0xb0] sm:$0xff] }
  0x15   : > { %284 = vst [vmem:[%s1149_s27 + $0x28] sm:$0xff] %v283_v5  ;;  %v297_v12 = vld [vmem:[%s1144_s26 + $0xc0] sm:$0xff]  ;;  %v299_v13 = vld [vmem:[%s1144_s26 + $0xd0] sm:$0xff] }
  0x16   : > { %286 = vst [vmem:[%s1149_s27 + $0x30] sm:$0xff] %v285_v6  ;;  %v301_v14 = vld [vmem:[%s1144_s26 + $0xe0] sm:$0xff]  ;;  %v303_v15 = vld [vmem:[%s1144_s26 + $0xf0] sm:$0xff] }
  0x17   : > { %288 = vst [vmem:[%s1149_s27 + $0x38] sm:$0xff] %v287_v7  ;;  %v305_v16 = vld [vmem:[%s1144_s26 + $0x100] sm:$0xff]  ;;  %v307_v17 = vld [vmem:[%s1144_s26 + $0x110] sm:$0xff] }
  0x18   : > { %290 = vst [vmem:[%s1149_s27 + $0x40] sm:$0xff] %v289_v8  ;;  %v309_v18 = vld [vmem:[%s1144_s26 + $0x120] sm:$0xff]  ;;  %v311_v19 = vld [vmem:[%s1144_s26 + $0x130] sm:$0xff] }
  0x19   : > { %292 = vst [vmem:[%s1149_s27 + $0x48] sm:$0xff] %v291_v9  ;;  %v313_v20 = vld [vmem:[%s1144_s26 + $0x140] sm:$0xff]  ;;  %v315_v21 = vld [vmem:[%s1144_s26 + $0x150] sm:$0xff] }
  0x1a   : > { %294 = vst [vmem:[%s1149_s27 + $0x50] sm:$0xff] %v293_v10  ;;  %v317_v22 = vld [vmem:[%s1144_s26 + $0x160] sm:$0xff]  ;;  %v319_v23 = vld [vmem:[%s1144_s26 + $0x170] sm:$0xff] }
  0x1b   : > { %296 = vst [vmem:[%s1149_s27 + $0x58] sm:$0xff] %v295_v11  ;;  %v321_v24 = vld [vmem:[%s1144_s26 + $0x180] sm:$0xff]  ;;  %v323_v25 = vld [vmem:[%s1144_s26 + $0x190] sm:$0xff] }
  0x1c   : > { %298 = vst [vmem:[%s1149_s27 + $0x60] sm:$0xff] %v297_v12  ;;  %v325_v26 = vld [vmem:[%s1144_s26 + $0x1a0] sm:$0xff]  ;;  %v327_v27 = vld [vmem:[%s1144_s26 + $0x1b0] sm:$0xff] }
  0x1d   : > { %300 = vst [vmem:[%s1149_s27 + $0x68] sm:$0xff] %v299_v13  ;;  %v329_v28 = vld [vmem:[%s1144_s26 + $0x1c0] sm:$0xff]  ;;  %v331_v29 = vld [vmem:[%s1144_s26 + $0x1d0] sm:$0xff] }
  0x1e   : > { %302 = vst [vmem:[%s1149_s27 + $0x70] sm:$0xff] %v301_v14  ;;  %v333_v30 = vld [vmem:[%s1144_s26 + $0x1e0] sm:$0xff]  ;;  %v335_v31 = vld [vmem:[%s1144_s26 + $0x1f0] sm:$0xff] }
  0x1f   : > { %304 = vst [vmem:[%s1149_s27 + $0x78] sm:$0xff] %v303_v15 }
  0x20   : > { %306 = vst [vmem:[%s1149_s27 + $0x80] sm:$0xff] %v305_v16 }
  0x21   : > { %308 = vst [vmem:[%s1149_s27 + $0x88] sm:$0xff] %v307_v17 }
  0x22   : > { %310 = vst [vmem:[%s1149_s27 + $0x90] sm:$0xff] %v309_v18 }
  0x23   : > { %312 = vst [vmem:[%s1149_s27 + $0x98] sm:$0xff] %v311_v19 }
  0x24   : > { %314 = vst [vmem:[%s1149_s27 + $0xa0] sm:$0xff] %v313_v20 }
  0x25   : > { %316 = vst [vmem:[%s1149_s27 + $0xa8] sm:$0xff] %v315_v21 }
  0x26   : > { %318 = vst [vmem:[%s1149_s27 + $0xb0] sm:$0xff] %v317_v22 }
  0x27   : > { %320 = vst [vmem:[%s1149_s27 + $0xb8] sm:$0xff] %v319_v23 }
  0x28   : > { %322 = vst [vmem:[%s1149_s27 + $0xc0] sm:$0xff] %v321_v24 }
  0x29   : > { %324 = vst [vmem:[%s1149_s27 + $0xc8] sm:$0xff] %v323_v25 }
  0x2a   : > { %326 = vst [vmem:[%s1149_s27 + $0xd0] sm:$0xff] %v325_v26 }
  0x2b   : > { %328 = vst [vmem:[%s1149_s27 + $0xd8] sm:$0xff] %v327_v27 }
  0x2c   : > { %330 = vst [vmem:[%s1149_s27 + $0xe0] sm:$0xff] %v329_v28 }
  0x2d   : > { %332 = vst [vmem:[%s1149_s27 + $0xe8] sm:$0xff] %v331_v29 }
  0x2e   : > { %334 = vst [vmem:[%s1149_s27 + $0xf0] sm:$0xff] %v333_v30 }
  0x2f   : > { %336 = vst [vmem:[%s1149_s27 + $0xf8] sm:$0xff] %v335_v31 }
  0x30 PF: > { %p833_p6 = scmp.ge.s32.totalorder %s1079_s16, 1  ;;  %p349_p7 = scmp.lt.s32.totalorder %s1079_s16, 3 }
  0x32   : > { %p350_p8 = pnand %p833_p6, %p349_p7 }
  0x33   : > { %s356_s28 = sand.u32 (!%p350_p8), 1, %s1063_s12   ;;  %s835_s6 = sshll.u32 (!%p350_p8), %s1071_s14, 1 }
  0x34   : > { %353 = sbr.rel (%p350_p8) target bundleno = 233 (0xe9), region = 66  ;;  %s834_s29 = sshll.u32 (!%p350_p8), %s356_s28, 8 }
  0x35   : > { %s1215_s30 = scalar_lea.vmem (!%p350_p8), [#allocation3], %s834_s29  ;;  %p409_p9 = scmp.lt.s32.totalorder (!%p350_p8), %s835_s6, 3 }
  0x39   : > { %v896_v32 = vld [vmem:[%s1215_s30 + $0x70] sm:$0xf]  ;;  %v984_v33 = vld [vmem:[%s1215_s30 + $0x74] sm:$0xf0]  ;;  %v983_v37 = vld [vmem:[%s1215_s30 + $0x74] sm:$0xf] }
  0x3a   : > { %v960_v34 = vld [vmem:[%s1215_s30 + $0xf0] sm:$0xf]  ;;  %v897_v35 = vor.u32 %v984_v33, %v896_v32  ;;  %v1000_v36 = vld [vmem:[%s1215_s30 + $0xf4] sm:$0xf0]  ;;  %v898_v38 = vld [vmem:[%s1215_s30 + $0x78] sm:$0xf0] }
  0x3b   : > { %v961_v39 = vor.u32 %v1000_v36, %v960_v34  ;;  %v901_v40 = vor.u32 %v983_v37, %v898_v38  ;;  %v999_v41 = vld [vmem:[%s1215_s30 + $0xf4] sm:$0xf]  ;;  %v962_v42 = vld [vmem:[%s1215_s30 + $0xf8] sm:$0xf0]  ;;  %v888_v43 = vld [vmem:[%s1215_s30 + $0x60] sm:$0xf] }
  0x3c   : > { %631 = vmatpush.bf16.msra.mxu0 %v897_v35  ;;  %v965_v44 = vor.u32 %v999_v41, %v962_v42  ;;  %v982_v45 = vld [vmem:[%s1215_s30 + $0x64] sm:$0xf0]  ;;  %v952_v46 = vld [vmem:[%s1215_s30 + $0xe0] sm:$0xf]  ;;  %v981_v50 = vld [vmem:[%s1215_s30 + $0x64] sm:$0xf] }
  0x3d   : > { %v998_v47 = vld [vmem:[%s1215_s30 + $0xe4] sm:$0xf0]  ;;  %644 = vmatpush.bf16.msra.mxu1 %v961_v39  ;;  %657 = vmatpush.bf16.msra.mxu2 %v901_v40  ;;  %v889_v48 = vor.u32 %v982_v45, %v888_v43  ;;  %v890_v51 = vld [vmem:[%s1215_s30 + $0x68] sm:$0xf0]  ;;  %v997_v52 = vld [vmem:[%s1215_s30 + $0xe4] sm:$0xf] }
  0x3e   : > { %v953_v49 = vor.u32 %v998_v47, %v952_v46  ;;  %670 = vmatpush.bf16.msra.mxu3 %v965_v44  ;;  %v893_v53 = vor.u32 %v981_v50, %v890_v51  ;;  %v954_v54 = vld [vmem:[%s1215_s30 + $0xe8] sm:$0xf0]  ;;  %v880_v55 = vld [vmem:[%s1215_s30 + $0x50] sm:$0xf]  ;;  %v980_v56 = vld [vmem:[%s1215_s30 + $0x54] sm:$0xf0] }
  0x3f   : > { %v957_v57 = vor.u32 %v997_v52, %v954_v54  ;;  %v944_v58 = vld [vmem:[%s1215_s30 + $0xd0] sm:$0xf]  ;;  %v996_v59 = vld [vmem:[%s1215_s30 + $0xd4] sm:$0xf0]  ;;  %v979_v60 = vld [vmem:[%s1215_s30 + $0x54] sm:$0xf]  ;;  %v881_v61 = vor.u32 %v980_v56, %v880_v55 }
  0x40   : > { %632 = vmatpush.bf16.msra.mxu0 %v889_v48  ;;  %v882_v62 = vld [vmem:[%s1215_s30 + $0x58] sm:$0xf0]  ;;  %v995_v63 = vld [vmem:[%s1215_s30 + $0xd4] sm:$0xf]  ;;  %v945_v1 = vor.u32 %v996_v59, %v944_v58  ;;  %v872_v3 = vld [vmem:[%s1215_s30 + $0x40] sm:$0xf] }
  0x41   : > { %v946_v0 = vld [vmem:[%s1215_s30 + $0xd8] sm:$0xf0]  ;;  %645 = vmatpush.bf16.msra.mxu1 %v953_v49  ;;  %658 = vmatpush.bf16.msra.mxu2 %v893_v53  ;;  %v885_v2 = vor.u32 %v979_v60, %v882_v62  ;;  %v978_v4 = vld [vmem:[%s1215_s30 + $0x44] sm:$0xf0]  ;;  %v936_v5 = vld [vmem:[%s1215_s30 + $0xc0] sm:$0xf] }
  0x42   : > { %671 = vmatpush.bf16.msra.mxu3 %v957_v57  ;;  %v949_v6 = vor.u32 %v995_v63, %v946_v0  ;;  %v994_v7 = vld [vmem:[%s1215_s30 + $0xc4] sm:$0xf0]  ;;  %v977_v8 = vld [vmem:[%s1215_s30 + $0x44] sm:$0xf]  ;;  %v874_v9 = vld [vmem:[%s1215_s30 + $0x48] sm:$0xf0]  ;;  %v873_v12 = vor.u32 %v978_v4, %v872_v3 }
  0x43   : > { %v993_v10 = vld [vmem:[%s1215_s30 + $0xc4] sm:$0xf]  ;;  %v938_v11 = vld [vmem:[%s1215_s30 + $0xc8] sm:$0xf0]  ;;  %v937_v13 = vor.u32 %v994_v7, %v936_v5  ;;  %v877_v14 = vor.u32 %v977_v8, %v874_v9  ;;  %v864_v15 = vld [vmem:[%s1215_s30 + $0x30] sm:$0xf] }
  0x44   : > { %633 = vmatpush.bf16.msra.mxu0 %v881_v61  ;;  %v976_v16 = vld [vmem:[%s1215_s30 + $0x34] sm:$0xf0]  ;;  %v928_v17 = vld [vmem:[%s1215_s30 + $0xb0] sm:$0xf]  ;;  %v941_v18 = vor.u32 %v993_v10, %v938_v11  ;;  %v975_v20 = vld [vmem:[%s1215_s30 + $0x34] sm:$0xf] }
  0x45   : > { %646 = vmatpush.bf16.msra.mxu1 %v945_v1  ;;  %659 = vmatpush.bf16.msra.mxu2 %v885_v2  ;;  %v992_v19 = vld [vmem:[%s1215_s30 + $0xb4] sm:$0xf0]  ;;  %v866_v21 = vld [vmem:[%s1215_s30 + $0x38] sm:$0xf0]  ;;  %v991_v22 = vld [vmem:[%s1215_s30 + $0xb4] sm:$0xf]  ;;  %v865_v24 = vor.u32 %v976_v16, %v864_v15 }
  0x46   : > { %672 = vmatpush.bf16.msra.mxu3 %v949_v6  ;;  %v930_v23 = vld [vmem:[%s1215_s30 + $0xb8] sm:$0xf0]  ;;  %v929_v25 = vor.u32 %v992_v19, %v928_v17  ;;  %v869_v26 = vor.u32 %v975_v20, %v866_v21  ;;  %v856_v27 = vld [vmem:[%s1215_s30 + $0x20] sm:$0xf]  ;;  %v974_v28 = vld [vmem:[%s1215_s30 + $0x24] sm:$0xf0] }
  0x47   : > { %v920_v29 = vld [vmem:[%s1215_s30 + $0xa0] sm:$0xf]  ;;  %v933_v30 = vor.u32 %v991_v22, %v930_v23  ;;  %v990_v31 = vld [vmem:[%s1215_s30 + $0xa4] sm:$0xf0]  ;;  %v973_v32 = vld [vmem:[%s1215_s30 + $0x24] sm:$0xf]  ;;  %v857_v36 = vor.u32 %v974_v28, %v856_v27 }
  0x48   : > { %634 = vmatpush.bf16.msra.mxu0 %v873_v12  ;;  %v858_v33 = vld [vmem:[%s1215_s30 + $0x28] sm:$0xf0]  ;;  %v989_v34 = vld [vmem:[%s1215_s30 + $0xa4] sm:$0xf]  ;;  %v921_v37 = vor.u32 %v990_v31, %v920_v29  ;;  %v848_v39 = vld [vmem:[%s1215_s30 + $0x10] sm:$0xf] }
  0x49   : > { %647 = vmatpush.bf16.msra.mxu1 %v937_v13  ;;  %660 = vmatpush.bf16.msra.mxu2 %v877_v14  ;;  %v922_v35 = vld [vmem:[%s1215_s30 + $0xa8] sm:$0xf0]  ;;  %v861_v38 = vor.u32 %v973_v32, %v858_v33  ;;  %v972_v40 = vld [vmem:[%s1215_s30 + $0x14] sm:$0xf0]  ;;  %v912_v41 = vld [vmem:[%s1215_s30 + $0x90] sm:$0xf] }
  0x4a   : > { %673 = vmatpush.bf16.msra.mxu3 %v941_v18  ;;  %v925_v42 = vor.u32 %v989_v34, %v922_v35  ;;  %v988_v43 = vld [vmem:[%s1215_s30 + $0x94] sm:$0xf0]  ;;  %v971_v44 = vld [vmem:[%s1215_s30 + $0x14] sm:$0xf]  ;;  %v850_v45 = vld [vmem:[%s1215_s30 + $0x18] sm:$0xf0]  ;;  %v849_v48 = vor.u32 %v972_v40, %v848_v39 }
  0x4b   : > { %v987_v46 = vld [vmem:[%s1215_s30 + $0x94] sm:$0xf]  ;;  %v914_v47 = vld [vmem:[%s1215_s30 + $0x98] sm:$0xf0]  ;;  %v431_v49 = vld [vmem:[%s1306_s0] sm:$0xff]  ;;  %v913_v50 = vor.u32 %v988_v43, %v912_v41  ;;  %v853_v51 = vor.u32 %v971_v44, %v850_v45  ;;  %s1317_s6 = smov (!%p409_p9, %s835_s6), 3 }
  0x4c   : > { %635 = vmatpush.bf16.msra.mxu0 %v865_v24  ;;  %v840_v52 = vld [vmem:[%s1215_s30] sm:$0xf]  ;;  %v970_v53 = vld [vmem:[%s1215_s30 + $0x4] sm:$0xf0]  ;;  %v917_v55 = vor.u32 %v987_v46, %v914_v47  ;;  %v969_v57 = vld [vmem:[%s1215_s30 + $0x4] sm:$0xf]  ;;  %v465_v61 = vunpack.c.l.b16 %v431_v49  ;;  %v466_v63 = vunpack.c.h.b16 %v431_v49  ;;  %s411_s9 = scalar_lea.vmem %s1308_s2, %s1317_s6 }
  0x4d   : > { %648 = vmatpush.bf16.msra.mxu1 %v929_v25  ;;  %661 = vmatpush.bf16.msra.mxu2 %v869_v26  ;;  %v904_v54 = vld [vmem:[%s1215_s30 + $0x80] sm:$0xf]  ;;  %v986_v56 = vld [vmem:[%s1215_s30 + $0x84] sm:$0xf0]  ;;  %v842_v58 = vld [vmem:[%s1215_s30 + $0x8] sm:$0xf0]  ;;  %v841_v62 = vor.u32 %v970_v53, %v840_v52 }
  0x4e   : > { %674 = vmatpush.bf16.msra.mxu3 %v933_v30  ;;  %v985_v59 = vld [vmem:[%s1215_s30 + $0x84] sm:$0xf]  ;;  %v906_v60 = vld [vmem:[%s1215_s30 + $0x88] sm:$0xf0]  ;;  %v905_v0 = vor.u32 %v986_v56, %v904_v54  ;;  %v845_v1 = vor.u32 %v969_v57, %v842_v58  ;;  %v467_v3 = vpack.c.b16 %v465_v61, %v465_v61  ;;  %v468_v4 = vpack.c.b16 %v466_v63, %v466_v63  ;;  %v692_v7 = vld [vmem:[%s411_s9] sm:$0x3] }
  0x4f   : > { %v909_v2 = vor.u32 %v985_v59, %v906_v60  ;;  %v694_v9 = vperm.slane %v692_v7, 0  ;;  %v695_v11 = vperm.slane %v692_v7, 1  ;;  %s837_s10 = sshll.u32 %s1317_s6, 2 }
  0x50   : > { %636 = vmatpush.bf16.msra.mxu0 %v857_v36  ;;  %s421_s14 = scalar_lea.vmem %s1309_s3, %s837_s10 }
  0x51   : > { %649 = vmatpush.bf16.msra.mxu1 %v921_v37  ;;  %662 = vmatpush.bf16.msra.mxu2 %v861_v38 }
  0x52   : > { %675 = vmatpush.bf16.msra.mxu3 %v925_v42 }
  0x54   : > { %637 = vmatpush.bf16.msra.mxu0 %v849_v48 }
  0x55   : > { %650 = vmatpush.bf16.msra.mxu1 %v913_v50  ;;  %663 = vmatpush.bf16.msra.mxu2 %v853_v51 }
  0x56   : > { %676 = vmatpush.bf16.msra.mxu3 %v917_v55 }
  0x58   : > { %638 = vmatpush.bf16.msra.mxu0 %v841_v62 }
  0x59   : > { %651 = vmatpush.bf16.msra.mxu1 %v905_v0  ;;  %664 = vmatpush.bf16.msra.mxu2 %v845_v1 }
  0x5a   : > { %677 = vmatpush.bf16.msra.mxu3 %v909_v2 }
  0x5b   : > { %639 = vmatmul.bf16.vlgmr.msra.gmra.mxu0 %v467_v3 }
  0x5c   : > { %652 = vmatmul.bf16.vlgmr.msra.gmra.mxu1 %v468_v4  ;;  %665 = vmatmul.bf16.vlgmr.msra.gmra.mxu2 %v467_v3 }
  0x5d   : > { %678 = vmatmul.bf16.vlgmr.msra.gmra.mxu3 %v468_v4 }
  0xd8   : > { %v640_v5 = vpop.f32.mrf.mxu0 }
  0xd9   : > { %v653_v6 = vpop.f32.mrf.mxu1 }
  0xda   : > { %v654_v8 = vadd.f32 %v653_v6, %v640_v5 }
  0xdc   : > { %v698_v14 = vadd.f32 %v694_v9, %v654_v8 }
  0xdf   : > { %v666_v10 = vpop.f32.mrf.mxu2 }
  0xe0   : > { %v679_v12 = vpop.f32.mrf.mxu3  ;;  %v642_v13 = vpop.f32.mrf.mxu0 }
  0xe1   : > { %v680_v15 = vadd.f32 %v679_v12, %v666_v10  ;;  %v655_v16 = vpop.f32.mrf.mxu1 }
  0xe3   : > { %v699_v17 = vadd.f32 %v695_v11, %v680_v15 }
  0xe5   : > { %v700_v18 = vpack.c.bf16 %v699_v17, %v698_v14 }
  0xe7   : > { %701 = vst [vmem:[%s421_s14] sm:$0xff] %v700_v18  ;;  %v668_v19 = vpop.f32.mrf.mxu2 }
  0xe8   : > { %v681_v20 = vpop.f32.mrf.mxu3 }
  0xe9 PF: > { %s13_s16 = sadd.s32 1, %s1079_s16   ;;  %s1310_s12 = smov %s1067_s13 }
  0xea   : > { %p10_p10 = scmp.ge.s32.totalorder %s13_s16, 4   ;;  %s1311_s13 = smov %s1136_s20 }
  0xeb   : > { %s1312_s14 = smov %s1075_s15  ;;  %s1313_s15 = smov %s1315_s17 }
  0xec   :  { %12 = sbr.rel (!%p10_p10) target bundleno = 3 (0x3), region = 119 }

// kernel: _lambda_.30
= control target key start
LH: loop header
LB: loop body
LE: loop exit
PB: predicated region body
PF: predicated region fallthrough
CT: control target
= control target key end

     0   :  { %s912_s15 = smov 0   ;;  %s914_s16 = smov 0   ;;  %s1038_s0 = inlined_call_operand.vmem [shape: bf16[8,128], index: 0, kind: input, shape index: {}]   ;;  %s1039_s1 = inlined_call_operand.vmem [shape: bf16[128,512], index: 1, kind: input, shape index: {}]   ;;  %s1040_s2 = inlined_call_operand.vmem [shape: f32[1,512], index: 2, kind: input, shape index: {}]   ;;  %s1041_s3 = inlined_call_operand.vmem [shape: bf16[8,512], index: 3, kind: input, shape index: {}]   ;;  %s1042_s4 = inlined_call_operand.vmem [shape: bf16[8,512], index: 4, kind: output, shape index: {}]  }
   0x1   :  { %s916_s17 = smov 0   ;;  %s918_s18 = smov 0  }
   0x2   :  { %s920_s19 = smov 0  }
   0x3 LB: > { %s29_s20 = sadd.s32 1, %s881_s18  ;;  %p77_p1 = scmp.ne.s32.totalorder %s873_s16, %s869_s15  ;;  %s885_s19 = sphi %s920_s19, %s14_s19   ;;  %s881_s18 = sphi %s918_s18, %s1046_s18   ;;  %s877_s17 = sphi %s916_s17, %s1045_s17   ;;  %s873_s16 = sphi %s914_s16, %s1044_s16   ;;  %s869_s15 = sphi %s912_s15, %s1043_s15  }
   0x4   : > { %p31_p0 = scmp.ge.s32.totalorder %s29_s20, 2  ;;  %p78_p2 = scmp.eq.s32.totalorder %s885_s19, 0 }
   0x5   : > { %s70_s22 = sadd.s32 1, %s873_s16  ;;  %p713_p5 = scmp.ge.s32.totalorder %s885_s19, 2 }
   0x6   : > { %s1048_s20 = smov (%p31_p0, %s29_s20), 0  ;;  %p79_p3 = por %p78_p2, %p77_p1 }
   0x7   : > { %s66_s21 = ssub.s32 %s881_s18, %s1048_s20  ;;  %195 = sbr.rel (%p713_p5) target bundleno = 32 (0x20), region = 20 }
   0x8   : > { %p68_p4 = scmp.eq.s32.totalorder %s66_s21, 0 }
   0xa   : > { %s947_s23 = scalar_select %p68_p4, %s873_s16, %s70_s22  }
   0xc   : > { %198 = sbr.rel (!%p79_p3) target bundleno = 32 (0x20), region = 24  ;;  %s200_s24 = sand.u32 (%p79_p3), 1, %s873_s16  }
   0xd   : > { %s790_s25 = sshll.u32 (%p79_p3), %s881_s18, 3  ;;  %s714_s26 = sshll.u32 (%p79_p3), %s200_s24, 7 }
   0xe   : > { %s955_s29 = scalar_lea.vmem (%p79_p3), %s1039_s1, %s790_s25  ;;  %s202_s30 = scalar_lea.vmem (%p79_p3), [#allocation3], %s714_s26 }
   0xf   : > { %v267_v0 = vld [vmem:[%s955_s29] sm:$0xff] (%p79_p3)  ;;  %v269_v1 = vld [vmem:[%s955_s29 + $0x10] sm:$0xff] (%p79_p3) }
  0x10   : > { %v271_v2 = vld [vmem:[%s955_s29 + $0x20] sm:$0xff] (%p79_p3)  ;;  %268 = vst [vmem:[%s202_s30] sm:$0xff] (%p79_p3), %v267_v0  ;;  %v273_v3 = vld [vmem:[%s955_s29 + $0x30] sm:$0xff] (%p79_p3) }
  0x11   : > { %270 = vst [vmem:[%s202_s30 + $0x8] sm:$0xff] %v269_v1  ;;  %v275_v4 = vld [vmem:[%s955_s29 + $0x40] sm:$0xff]  ;;  %v277_v5 = vld [vmem:[%s955_s29 + $0x50] sm:$0xff] }
  0x12   : > { %272 = vst [vmem:[%s202_s30 + $0x10] sm:$0xff] %v271_v2  ;;  %v279_v6 = vld [vmem:[%s955_s29 + $0x60] sm:$0xff]  ;;  %v281_v7 = vld [vmem:[%s955_s29 + $0x70] sm:$0xff] }
  0x13   : > { %274 = vst [vmem:[%s202_s30 + $0x18] sm:$0xff] %v273_v3  ;;  %v283_v8 = vld [vmem:[%s955_s29 + $0x80] sm:$0xff]  ;;  %v285_v9 = vld [vmem:[%s955_s29 + $0x90] sm:$0xff] }
  0x14   : > { %276 = vst [vmem:[%s202_s30 + $0x20] sm:$0xff] %v275_v4  ;;  %v287_v10 = vld [vmem:[%s955_s29 + $0xa0] sm:$0xff]  ;;  %v289_v11 = vld [vmem:[%s955_s29 + $0xb0] sm:$0xff] }
  0x15   : > { %278 = vst [vmem:[%s202_s30 + $0x28] sm:$0xff] %v277_v5  ;;  %v291_v12 = vld [vmem:[%s955_s29 + $0xc0] sm:$0xff]  ;;  %v293_v13 = vld [vmem:[%s955_s29 + $0xd0] sm:$0xff] }
  0x16   : > { %280 = vst [vmem:[%s202_s30 + $0x30] sm:$0xff] %v279_v6  ;;  %v295_v14 = vld [vmem:[%s955_s29 + $0xe0] sm:$0xff]  ;;  %v297_v15 = vld [vmem:[%s955_s29 + $0xf0] sm:$0xff] }
  0x17   : > { %282 = vst [vmem:[%s202_s30 + $0x38] sm:$0xff] %v281_v7 }
  0x18   : > { %284 = vst [vmem:[%s202_s30 + $0x40] sm:$0xff] %v283_v8 }
  0x19   : > { %286 = vst [vmem:[%s202_s30 + $0x48] sm:$0xff] %v285_v9 }
  0x1a   : > { %288 = vst [vmem:[%s202_s30 + $0x50] sm:$0xff] %v287_v10 }
  0x1b   : > { %290 = vst [vmem:[%s202_s30 + $0x58] sm:$0xff] %v289_v11 }
  0x1c   : > { %292 = vst [vmem:[%s202_s30 + $0x60] sm:$0xff] %v291_v12 }
  0x1d   : > { %294 = vst [vmem:[%s202_s30 + $0x68] sm:$0xff] %v293_v13 }
  0x1e   : > { %296 = vst [vmem:[%s202_s30 + $0x70] sm:$0xff] %v295_v14 }
  0x1f   : > { %298 = vst [vmem:[%s202_s30 + $0x78] sm:$0xff] %v297_v15 }
  0x20 PF: > { %p717_p6 = scmp.ge.s32.totalorder %s885_s19, 1  ;;  %p324_p7 = scmp.lt.s32.totalorder %s885_s19, 3 }
  0x22   : > { %p325_p8 = pnand %p717_p6, %p324_p7 }
  0x23   : > { %s331_s5 = sand.u32 (!%p325_p8), 1, %s869_s15   ;;  %s719_s10 = sshll.u32 (!%p325_p8), %s877_s17, 1 }
  0x24   : > { %328 = sbr.rel (%p325_p8) target bundleno = 211 (0xd3), region = 70  ;;  %s718_s6 = sshll.u32 (!%p325_p8), %s331_s5, 7 }
  0x25   : > { %s976_s7 = scalar_lea.vmem (!%p325_p8), [#allocation3], %s718_s6  ;;  %p390_p9 = scmp.lt.s32.totalorder (!%p325_p8), %s719_s10, 3 }
  0x29   : > { %v782_v16 = vld [vmem:[%s976_s7 + $0x70] sm:$0xf]  ;;  %v806_v17 = vld [vmem:[%s976_s7 + $0x74] sm:$0xf0]  ;;  %v805_v18 = vld [vmem:[%s976_s7 + $0x74] sm:$0xf] }
  0x2a   : > { %v783_v19 = vor.u32 %v806_v17, %v782_v16  ;;  %v784_v20 = vld [vmem:[%s976_s7 + $0x78] sm:$0xf0]  ;;  %v774_v21 = vld [vmem:[%s976_s7 + $0x60] sm:$0xf]  ;;  %v804_v22 = vld [vmem:[%s976_s7 + $0x64] sm:$0xf0] }
  0x2b   : > { %v787_v23 = vor.u32 %v805_v18, %v784_v20  ;;  %v803_v24 = vld [vmem:[%s976_s7 + $0x64] sm:$0xf]  ;;  %v776_v25 = vld [vmem:[%s976_s7 + $0x68] sm:$0xf0]  ;;  %v775_v26 = vor.u32 %v804_v22, %v774_v21  ;;  %v766_v28 = vld [vmem:[%s976_s7 + $0x50] sm:$0xf] }
  0x2c   : > { %519 = vmatpush.bf16.msra.mxu0 %v783_v19  ;;  %v779_v27 = vor.u32 %v803_v24, %v776_v25  ;;  %v802_v29 = vld [vmem:[%s976_s7 + $0x54] sm:$0xf0]  ;;  %v801_v30 = vld [vmem:[%s976_s7 + $0x54] sm:$0xf]  ;;  %v768_v31 = vld [vmem:[%s976_s7 + $0x58] sm:$0xf0] }
  0x2d   : > { %532 = vmatpush.bf16.msra.mxu1 %v787_v23  ;;  %v767_v32 = vor.u32 %v802_v29, %v766_v28  ;;  %v771_v33 = vor.u32 %v801_v30, %v768_v31  ;;  %v758_v34 = vld [vmem:[%s976_s7 + $0x40] sm:$0xf]  ;;  %v800_v35 = vld [vmem:[%s976_s7 + $0x44] sm:$0xf0]  ;;  %v799_v36 = vld [vmem:[%s976_s7 + $0x44] sm:$0xf] }
  0x2e   : > { %v760_v37 = vld [vmem:[%s976_s7 + $0x48] sm:$0xf0]  ;;  %v759_v38 = vor.u32 %v800_v35, %v758_v34  ;;  %v750_v40 = vld [vmem:[%s976_s7 + $0x30] sm:$0xf]  ;;  %v798_v41 = vld [vmem:[%s976_s7 + $0x34] sm:$0xf0] }
  0x2f   : > { %v763_v39 = vor.u32 %v799_v36, %v760_v37  ;;  %v797_v42 = vld [vmem:[%s976_s7 + $0x34] sm:$0xf]  ;;  %v752_v43 = vld [vmem:[%s976_s7 + $0x38] sm:$0xf0]  ;;  %v751_v44 = vor.u32 %v798_v41, %v750_v40  ;;  %v742_v46 = vld [vmem:[%s976_s7 + $0x20] sm:$0xf] }
  0x30   : > { %520 = vmatpush.bf16.msra.mxu0 %v775_v26  ;;  %v755_v45 = vor.u32 %v797_v42, %v752_v43  ;;  %v796_v47 = vld [vmem:[%s976_s7 + $0x24] sm:$0xf0]  ;;  %v795_v48 = vld [vmem:[%s976_s7 + $0x24] sm:$0xf]  ;;  %v744_v49 = vld [vmem:[%s976_s7 + $0x28] sm:$0xf0] }
  0x31   : > { %533 = vmatpush.bf16.msra.mxu1 %v779_v27  ;;  %v743_v50 = vor.u32 %v796_v47, %v742_v46  ;;  %v747_v51 = vor.u32 %v795_v48, %v744_v49  ;;  %v734_v52 = vld [vmem:[%s976_s7 + $0x10] sm:$0xf]  ;;  %v794_v53 = vld [vmem:[%s976_s7 + $0x14] sm:$0xf0]  ;;  %v793_v54 = vld [vmem:[%s976_s7 + $0x14] sm:$0xf] }
  0x32   : > { %v736_v55 = vld [vmem:[%s976_s7 + $0x18] sm:$0xf0]  ;;  %v735_v56 = vor.u32 %v794_v53, %v734_v52  ;;  %v726_v58 = vld [vmem:[%s976_s7] sm:$0xf]  ;;  %v792_v59 = vld [vmem:[%s976_s7 + $0x4] sm:$0xf0] }
  0x33   : > { %v739_v57 = vor.u32 %v793_v54, %v736_v55  ;;  %v791_v60 = vld [vmem:[%s976_s7 + $0x4] sm:$0xf]  ;;  %v728_v61 = vld [vmem:[%s976_s7 + $0x8] sm:$0xf0]  ;;  %v727_v62 = vor.u32 %v792_v59, %v726_v58  ;;  %v422_v0 = vld [vmem:[%s1038_s0] sm:$0xf] }
  0x34   : > { %521 = vmatpush.bf16.msra.mxu0 %v767_v32  ;;  %v731_v63 = vor.u32 %v791_v60, %v728_v61  ;;  %s1050_s10 = smov (!%p390_p9, %s719_s10), 3 }
  0x35   : > { %534 = vmatpush.bf16.msra.mxu1 %v771_v33  ;;  %s721_s11 = sshll.u32 %s1050_s10, 2  ;;  %s392_s14 = scalar_lea.vmem %s1040_s2, %s1050_s10 }
  0x36   : > { %s402_s22 = scalar_lea.vmem %s1041_s3, %s721_s11  ;;  %v554_v1 = vld [vmem:[%s392_s14] sm:$0x3]  ;;  %s412_s25 = scalar_lea.vmem %s1042_s4, %s721_s11 }
  0x37   : > { %v562_v2 = vld [vmem:[%s402_s22] sm:$0xff]  ;;  %v556_v3 = vperm.slane %v554_v1, 0  ;;  %v557_v4 = vperm.slane %v554_v1, 1 }
  0x38   : > { %522 = vmatpush.bf16.msra.mxu0 %v759_v38  ;;  %v563_v5 = vunpack.c.l.bf16 %v562_v2  ;;  %v564_v7 = vunpack.c.h.bf16 %v562_v2 }
  0x39   : > { %535 = vmatpush.bf16.msra.mxu1 %v763_v39 }
  0x3c   : > { %523 = vmatpush.bf16.msra.mxu0 %v751_v44 }
  0x3d   : > { %536 = vmatpush.bf16.msra.mxu1 %v755_v45 }
  0x40   : > { %524 = vmatpush.bf16.msra.mxu0 %v743_v50 }
  0x41   : > { %537 = vmatpush.bf16.msra.mxu1 %v747_v51 }
  0x44   : > { %525 = vmatpush.bf16.msra.mxu0 %v735_v56 }
  0x45   : > { %538 = vmatpush.bf16.msra.mxu1 %v739_v57 }
  0x48   : > { %526 = vmatpush.bf16.msra.mxu0 %v727_v62 }
  0x49   : > { %539 = vmatpush.bf16.msra.mxu1 %v731_v63 }
  0x4b   : > { %527 = vmatmul.bf16.vlgmr.msra.gmra.mxu0 %v422_v0 }
  0x4c   : > { %540 = vmatmul.bf16.vlgmr.msra.gmra.mxu1 %v422_v0 }
  0xc8   : > { %v528_v6 = vpop.f32.mrf.mxu0 }
  0xc9   : > { %v560_v8 = vadd.f32 %v556_v3, %v528_v6  ;;  %v541_v9 = vpop.f32.mrf.mxu1 }
  0xca   : > { %v561_v10 = vadd.f32 %v557_v4, %v541_v9 }
  0xcb   : > { %v565_v11 = vadd.f32 %v563_v5, %v560_v8 }
  0xcc   : > { %v566_v12 = vadd.f32 %v564_v7, %v561_v10 }
  0xcd   : > { %v567_v13 = vmax.f32 %v565_v11, 0.0 }
  0xce   : > { %v568_v14 = vmax.f32 %v566_v12, 0.0 }
  0xd0   : > { %v569_v15 = vpack.c.bf16 %v568_v14, %v567_v13  ;;  %v530_v16 = vpop.f32.mrf.mxu0 }
  0xd1   : > { %v543_v17 = vpop.f32.mrf.mxu1 }
  0xd2   : > { %570 = vst [vmem:[%s412_s25] sm:$0xff] %v569_v15 }
  0xd3 PF: > { %s14_s19 = sadd.s32 1, %s885_s19   ;;  %s1043_s15 = smov %s873_s16 }
  0xd4   : > { %p11_p10 = scmp.ge.s32.totalorder %s14_s19, 4   ;;  %s1044_s16 = smov %s947_s23 }
  0xd5   : > { %s1045_s17 = smov %s881_s18  ;;  %s1046_s18 = smov %s1048_s20 }
  0xd6   :  { %13 = sbr.rel (!%p11_p10) target bundleno = 3 (0x3), region = 126 }

// kernel: _lambda_.28
= control target key start
LH: loop header
LB: loop body
LE: loop exit
PB: predicated region body
PF: predicated region fallthrough
CT: control target
= control target key end

     0   :  { %s582_s12 = smov 0   ;;  %s584_s13 = smov 0   ;;  %s628_s0 = inlined_call_operand.vmem [shape: bf16[8,1152], index: 0, kind: input, shape index: {}]   ;;  %s629_s1 = inlined_call_operand.vmem [shape: bf16[1152,128], index: 1, kind: input, shape index: {}]   ;;  %s630_s2 = inlined_call_operand.vmem [shape: f32[1,128], index: 2, kind: input, shape index: {}]   ;;  %s631_s3 = inlined_call_operand.vmem [shape: bf16[8,128], index: 3, kind: output, shape index: {}]  }
   0x1   :  { %s586_s14 = smov 0  }
   0x2 LB: > { %s25_s15 = sadd.s32 1, %s555_s13  ;;  %p462_p0 = scmp.ge.s32.totalorder %s559_s14, 1  ;;  %s559_s14 = sphi %s586_s14, %s13_s14   ;;  %s555_s13 = sphi %s584_s13, %s633_s13   ;;  %s551_s12 = sphi %s582_s12, %s632_s12  }
   0x3   : > { %p26_p1 = scmp.ge.s32.totalorder %s25_s15, 9  ;;  %p187_p2 = scmp.lt.s32.totalorder %s559_s14, 10 }
   0x5   : > { %s635_s15 = smov (%p26_p1, %s25_s15), 0  ;;  %p188_p3 = pnand %p462_p0, %p187_p2 }
   0x6   : > { %p229_p4 = scmp.lt.s32.totalorder (!%p188_p3), %s551_s12, 8  ;;  %s464_s16 = sshll.u32 (!%p188_p3), %s551_s12, 4 }
   0x7   : > { %191 = sbr.rel (%p188_p3) target bundleno = 195 (0xc3), region = 32  ;;  %p236_p5 = scmp.lt.s32.totalorder (!%p188_p3), %s464_s16, 143 }
   0x8   : > { %p466_p6 = scmp.ne.s32.totalorder (!%p188_p3), %s551_s12, 0 }
   0xc   : > { %s230_s17 = scalar_select %p229_p4, %s551_s12, 8 }
   0xd   : > { %s637_s16 = smov (!%p236_p5, %s464_s16), 143  ;;  %257 = sbr.rel (%p466_p6) target bundleno = 20 (0x14), region = 36 }
   0xe   : > { %s463_s18 = sshll.u32 %s230_s17, 2  ;;  %s465_s22 = sshll.u32 %s637_s16, 2 }
   0xf   : > { %s234_s21 = scalar_lea.vmem %s628_s0, %s463_s18  ;;  %s242_s25 = scalar_lea.vmem %s629_s1, %s465_s22 }
  0x12   : > { %v561_v0 = vmov 0.0  }
  0x13   : > { %258 = vst [vmem:[#allocation2] sm:$0xff] %v561_v0 }
  0x14 PF: > { %v510_v1 = vld [vmem:[%s242_s25 + $0x38] sm:$0xff]  ;;  %v509_v2 = vld [vmem:[%s242_s25 + $0x30] sm:$0xff]  ;;  %v508_v3 = vld [vmem:[%s242_s25 + $0x28] sm:$0xff]  ;;  %p499_p7 = scmp.ne.s32.totalorder %s551_s12, 8 }
  0x15   : > { %325 = vmatpush.bf16.msra.mxu0 %v510_v1  ;;  %v507_v4 = vld [vmem:[%s242_s25 + $0x20] sm:$0xff]  ;;  %v506_v5 = vld [vmem:[%s242_s25 + $0x18] sm:$0xff]  ;;  %v505_v6 = vld [vmem:[%s242_s25 + $0x10] sm:$0xff] }
  0x16   : > { %v504_v7 = vld [vmem:[%s242_s25 + $0x8] sm:$0xff]  ;;  %v503_v8 = vld [vmem:[%s242_s25] sm:$0xff] }
  0x17   : > { %v260_v9 = vld [vmem:[%s234_s21] sm:$0xf] }
  0x19   : > { %326 = vmatpush.bf16.msra.mxu0 %v509_v2 }
  0x1a   : > { %v259_v10 = vld [vmem:[#allocation2] sm:$0xff] }
  0x1d   : > { %327 = vmatpush.bf16.msra.mxu0 %v508_v3 }
  0x21   : > { %328 = vmatpush.bf16.msra.mxu0 %v507_v4 }
  0x25   : > { %329 = vmatpush.bf16.msra.mxu0 %v506_v5 }
  0x29   : > { %330 = vmatpush.bf16.msra.mxu0 %v505_v6 }
  0x2d   : > { %331 = vmatpush.bf16.msra.mxu0 %v504_v7 }
  0x31   : > { %332 = vmatpush.bf16.msra.mxu0 %v503_v8 }
  0x34   : > { %333 = vmatmul.bf16.vlgmr.msra.gmra.mxu0 %v260_v9 }
  0xb1   : > { %v334_v11 = vpop.f32.mrf.mxu0 }
  0xb2   : > { %v338_v12 = vadd.f32 %v334_v11, %v259_v10 }
  0xb4   : > { %339 = vst [vmem:[#allocation2] sm:$0xff] %v338_v12 }
  0xb5   : > { %343 = sbr.rel (%p499_p7) target bundleno = 195 (0xc3), region = 40 }
  0xb9   : > { %v336_v13 = vpop.f32.mrf.mxu0 }
  0xba   : > { %v536_v15 = vld [vmem:[%s630_s2] ss:$0 sm:$0xff] }
  0xbb   : > { %v344_v14 = vld [vmem:[#allocation2] sm:$0xff] }
  0xbc   : > { %v349_v16 = vadd.f32 %v536_v15, %v344_v14 }
  0xbe   : > { %v350_v17 = vmax.f32 %v349_v16, 0.0 }
  0xc0   : > { %v351_v18 = vpack.c.bf16 %v350_v17, %v350_v17 }
  0xc2   : > { %352 = vst [vmem:[%s631_s3] sm:$0xf] %v351_v18 }
  0xc3 PF: > { %s13_s14 = sadd.s32 1, %s559_s14   ;;  %s632_s12 = smov %s555_s13 }
  0xc4   : > { %p10_p8 = scmp.ge.s32.totalorder %s13_s14, 11   ;;  %s633_s13 = smov %s635_s15 }
  0xc6   :  { %12 = sbr.rel (!%p10_p8) target bundleno = 2 (0x2), region = 76 }

// kernel: _lambda_.31
= control target key start
LH: loop header
LB: loop body
LE: loop exit
PB: predicated region body
PF: predicated region fallthrough
CT: control target
= control target key end

     0   :  { %s1303_s1 = inlined_call_operand.vmem [shape: bf16[512,256], index: 1, kind: input, shape index: {}]   ;;  %s1304_s0 = inlined_call_operand.vmem [shape: bf16[8,512], index: 0, kind: input, shape index: {}]   ;;  %s1305_s2 = inlined_call_operand.vmem [shape: f32[1,256], index: 2, kind: input, shape index: {}]   ;;  %s1306_s3 = inlined_call_operand.vmem [shape: bf16[8,256], index: 3, kind: output, shape index: {}]  }
   0x1   :  { %v609_v0 = vld [vmem:[%s1303_s1 + $0x70] sm:$0xf]  ;;  %v822_v1 = vld [vmem:[%s1303_s1 + $0x74] sm:$0xf0]  ;;  %v601_v11 = vld [vmem:[%s1303_s1 + $0x60] sm:$0xf] }
   0x2   :  { %v673_v2 = vld [vmem:[%s1303_s1 + $0xf0] sm:$0xf]  ;;  %v610_v3 = vor.u32 %v822_v1, %v609_v0  ;;  %v838_v4 = vld [vmem:[%s1303_s1 + $0xf4] sm:$0xf0]  ;;  %v820_v13 = vld [vmem:[%s1303_s1 + $0x64] sm:$0xf0] }
   0x3   :  { %v737_v5 = vld [vmem:[%s1303_s1 + $0x170] sm:$0xf]  ;;  %v854_v6 = vld [vmem:[%s1303_s1 + $0x174] sm:$0xf0]  ;;  %v674_v7 = vor.u32 %v838_v4, %v673_v2  ;;  %v665_v14 = vld [vmem:[%s1303_s1 + $0xe0] sm:$0xf]  ;;  %v602_v16 = vor.u32 %v820_v13, %v601_v11 }
   0x4   :  { %v738_v8 = vor.u32 %v854_v6, %v737_v5  ;;  %v801_v9 = vld [vmem:[%s1303_s1 + $0x1f0] sm:$0xf]  ;;  %v870_v10 = vld [vmem:[%s1303_s1 + $0x1f4] sm:$0xf0]  ;;  %422 = vmatpush.bf16.msra.mxu0 %v610_v3  ;;  %v836_v15 = vld [vmem:[%s1303_s1 + $0xe4] sm:$0xf0] }
   0x5   :  { %v802_v12 = vor.u32 %v870_v10, %v801_v9  ;;  %435 = vmatpush.bf16.msra.mxu1 %v674_v7  ;;  %v666_v17 = vor.u32 %v836_v15, %v665_v14  ;;  %v729_v18 = vld [vmem:[%s1303_s1 + $0x160] sm:$0xf]  ;;  %v852_v19 = vld [vmem:[%s1303_s1 + $0x164] sm:$0xf0]  ;;  %v593_v23 = vld [vmem:[%s1303_s1 + $0x50] sm:$0xf] }
   0x6   :  { %448 = vmatpush.bf16.msra.mxu2 %v738_v8  ;;  %v793_v20 = vld [vmem:[%s1303_s1 + $0x1e0] sm:$0xf]  ;;  %v730_v21 = vor.u32 %v852_v19, %v729_v18  ;;  %v868_v22 = vld [vmem:[%s1303_s1 + $0x1e4] sm:$0xf0]  ;;  %v818_v24 = vld [vmem:[%s1303_s1 + $0x54] sm:$0xf0] }
   0x7   :  { %461 = vmatpush.bf16.msra.mxu3 %v802_v12  ;;  %v794_v25 = vor.u32 %v868_v22, %v793_v20  ;;  %v657_v26 = vld [vmem:[%s1303_s1 + $0xd0] sm:$0xf]  ;;  %v834_v27 = vld [vmem:[%s1303_s1 + $0xd4] sm:$0xf0]  ;;  %v594_v29 = vor.u32 %v818_v24, %v593_v23  ;;  %v585_v35 = vld [vmem:[%s1303_s1 + $0x40] sm:$0xf] }
   0x8   :  { %v721_v28 = vld [vmem:[%s1303_s1 + $0x150] sm:$0xf]  ;;  %423 = vmatpush.bf16.msra.mxu0 %v602_v16  ;;  %v850_v30 = vld [vmem:[%s1303_s1 + $0x154] sm:$0xf0]  ;;  %v658_v33 = vor.u32 %v834_v27, %v657_v26  ;;  %v816_v36 = vld [vmem:[%s1303_s1 + $0x44] sm:$0xf0] }
   0x9   :  { %v785_v31 = vld [vmem:[%s1303_s1 + $0x1d0] sm:$0xf]  ;;  %v866_v32 = vld [vmem:[%s1303_s1 + $0x1d4] sm:$0xf0]  ;;  %436 = vmatpush.bf16.msra.mxu1 %v666_v17  ;;  %v722_v34 = vor.u32 %v850_v30, %v721_v28  ;;  %v649_v37 = vld [vmem:[%s1303_s1 + $0xc0] sm:$0xf]  ;;  %v586_v44 = vor.u32 %v816_v36, %v585_v35 }
   0xa   :  { %449 = vmatpush.bf16.msra.mxu2 %v730_v21  ;;  %v786_v38 = vor.u32 %v866_v32, %v785_v31  ;;  %v832_v39 = vld [vmem:[%s1303_s1 + $0xc4] sm:$0xf0]  ;;  %v713_v40 = vld [vmem:[%s1303_s1 + $0x140] sm:$0xf]  ;;  %v577_v47 = vld [vmem:[%s1303_s1 + $0x30] sm:$0xf] }
   0xb   :  { %462 = vmatpush.bf16.msra.mxu3 %v794_v25  ;;  %v848_v41 = vld [vmem:[%s1303_s1 + $0x144] sm:$0xf0]  ;;  %v777_v42 = vld [vmem:[%s1303_s1 + $0x1c0] sm:$0xf]  ;;  %v650_v45 = vor.u32 %v832_v39, %v649_v37  ;;  %v814_v48 = vld [vmem:[%s1303_s1 + $0x34] sm:$0xf0] }
   0xc   :  { %v864_v43 = vld [vmem:[%s1303_s1 + $0x1c4] sm:$0xf0]  ;;  %424 = vmatpush.bf16.msra.mxu0 %v594_v29  ;;  %v714_v46 = vor.u32 %v848_v41, %v713_v40  ;;  %v641_v49 = vld [vmem:[%s1303_s1 + $0xb0] sm:$0xf]  ;;  %v830_v51 = vld [vmem:[%s1303_s1 + $0xb4] sm:$0xf0]  ;;  %v578_v56 = vor.u32 %v814_v48, %v577_v47 }
   0xd   :  { %437 = vmatpush.bf16.msra.mxu1 %v658_v33  ;;  %v778_v50 = vor.u32 %v864_v43, %v777_v42  ;;  %v705_v52 = vld [vmem:[%s1303_s1 + $0x130] sm:$0xf]  ;;  %v846_v53 = vld [vmem:[%s1303_s1 + $0x134] sm:$0xf0]  ;;  %v642_v57 = vor.u32 %v830_v51, %v641_v49  ;;  %v569_v59 = vld [vmem:[%s1303_s1 + $0x20] sm:$0xf] }
   0xe   :  { %450 = vmatpush.bf16.msra.mxu2 %v722_v34  ;;  %v769_v54 = vld [vmem:[%s1303_s1 + $0x1b0] sm:$0xf]  ;;  %v862_v55 = vld [vmem:[%s1303_s1 + $0x1b4] sm:$0xf0]  ;;  %v706_v58 = vor.u32 %v846_v53, %v705_v52  ;;  %v812_v60 = vld [vmem:[%s1303_s1 + $0x24] sm:$0xf0] }
   0xf   :  { %463 = vmatpush.bf16.msra.mxu3 %v786_v38  ;;  %v633_v61 = vld [vmem:[%s1303_s1 + $0xa0] sm:$0xf]  ;;  %v770_v62 = vor.u32 %v862_v55, %v769_v54  ;;  %v828_v63 = vld [vmem:[%s1303_s1 + $0xa4] sm:$0xf0]  ;;  %v570_v4 = vor.u32 %v812_v60, %v569_v59  ;;  %v561_v7 = vld [vmem:[%s1303_s1 + $0x10] sm:$0xf] }
  0x10   :  { %425 = vmatpush.bf16.msra.mxu0 %v586_v44  ;;  %v697_v0 = vld [vmem:[%s1303_s1 + $0x120] sm:$0xf]  ;;  %v844_v1 = vld [vmem:[%s1303_s1 + $0x124] sm:$0xf0]  ;;  %v634_v5 = vor.u32 %v828_v63, %v633_v61  ;;  %v810_v8 = vld [vmem:[%s1303_s1 + $0x14] sm:$0xf0] }
  0x11   :  { %438 = vmatpush.bf16.msra.mxu1 %v650_v45  ;;  %v761_v2 = vld [vmem:[%s1303_s1 + $0x1a0] sm:$0xf]  ;;  %v860_v3 = vld [vmem:[%s1303_s1 + $0x1a4] sm:$0xf0]  ;;  %v698_v6 = vor.u32 %v844_v1, %v697_v0  ;;  %v625_v9 = vld [vmem:[%s1303_s1 + $0x90] sm:$0xf]  ;;  %v562_v16 = vor.u32 %v810_v8, %v561_v7 }
  0x12   :  { %451 = vmatpush.bf16.msra.mxu2 %v714_v46  ;;  %v762_v10 = vor.u32 %v860_v3, %v761_v2  ;;  %v826_v11 = vld [vmem:[%s1303_s1 + $0x94] sm:$0xf0]  ;;  %v689_v12 = vld [vmem:[%s1303_s1 + $0x110] sm:$0xf]  ;;  %v553_v17 = vld [vmem:[%s1303_s1] sm:$0xf] }
  0x13   :  { %464 = vmatpush.bf16.msra.mxu3 %v778_v50  ;;  %v842_v13 = vld [vmem:[%s1303_s1 + $0x114] sm:$0xf0]  ;;  %v753_v14 = vld [vmem:[%s1303_s1 + $0x190] sm:$0xf]  ;;  %v808_v18 = vld [vmem:[%s1303_s1 + $0x4] sm:$0xf0]  ;;  %v626_v20 = vor.u32 %v826_v11, %v625_v9 }
  0x14   :  { %426 = vmatpush.bf16.msra.mxu0 %v578_v56  ;;  %v858_v15 = vld [vmem:[%s1303_s1 + $0x194] sm:$0xf0]  ;;  %v617_v19 = vld [vmem:[%s1303_s1 + $0x80] sm:$0xf]  ;;  %v690_v21 = vor.u32 %v842_v13, %v689_v12  ;;  %v824_v22 = vld [vmem:[%s1303_s1 + $0x84] sm:$0xf0]  ;;  %v554_v32 = vor.u32 %v808_v18, %v553_v17 }
  0x15   :  { %439 = vmatpush.bf16.msra.mxu1 %v642_v57  ;;  %v681_v23 = vld [vmem:[%s1303_s1 + $0x100] sm:$0xf]  ;;  %v840_v24 = vld [vmem:[%s1303_s1 + $0x104] sm:$0xf0]  ;;  %v754_v25 = vor.u32 %v858_v15, %v753_v14  ;;  %v821_v28 = vld [vmem:[%s1303_s1 + $0x74] sm:$0xf]  ;;  %v618_v37 = vor.u32 %v824_v22, %v617_v19 }
  0x16   :  { %452 = vmatpush.bf16.msra.mxu2 %v706_v58  ;;  %v745_v26 = vld [vmem:[%s1303_s1 + $0x180] sm:$0xf]  ;;  %v856_v27 = vld [vmem:[%s1303_s1 + $0x184] sm:$0xf0]  ;;  %v611_v29 = vld [vmem:[%s1303_s1 + $0x78] sm:$0xf0]  ;;  %v682_v38 = vor.u32 %v840_v24, %v681_v23 }
  0x17   :  { %465 = vmatpush.bf16.msra.mxu3 %v770_v62  ;;  %v837_v30 = vld [vmem:[%s1303_s1 + $0xf4] sm:$0xf]  ;;  %v23_v31 = vld [vmem:[%s1304_s0 + $0x8] sm:$0xff]  ;;  %v675_v33 = vld [vmem:[%s1303_s1 + $0xf8] sm:$0xf0]  ;;  %v746_v42 = vor.u32 %v856_v27, %v745_v26  ;;  %v614_v43 = vor.u32 %v821_v28, %v611_v29 }
  0x18   :  { %427 = vmatpush.bf16.msra.mxu0 %v570_v4  ;;  %v853_v34 = vld [vmem:[%s1303_s1 + $0x174] sm:$0xf]  ;;  %v739_v35 = vld [vmem:[%s1303_s1 + $0x178] sm:$0xf0]  ;;  %v92_v36 = vunpack.c.l.b16 %v23_v31  ;;  %v93_v41 = vunpack.c.h.b16 %v23_v31  ;;  %v22_v44 = vld [vmem:[%s1304_s0] sm:$0xff]  ;;  %v678_v45 = vor.u32 %v837_v30, %v675_v33 }
  0x19   :  { %440 = vmatpush.bf16.msra.mxu1 %v634_v5  ;;  %v869_v39 = vld [vmem:[%s1303_s1 + $0x1f4] sm:$0xf]  ;;  %v803_v40 = vld [vmem:[%s1303_s1 + $0x1f8] sm:$0xf0]  ;;  %v742_v46 = vor.u32 %v853_v34, %v739_v35  ;;  %v819_v47 = vld [vmem:[%s1303_s1 + $0x64] sm:$0xf]  ;;  %v90_v50 = vunpack.c.l.b16 %v22_v44  ;;  %v91_v51 = vunpack.c.h.b16 %v22_v44 }
  0x1a   :  { %453 = vmatpush.bf16.msra.mxu2 %v698_v6  ;;  %v603_v48 = vld [vmem:[%s1303_s1 + $0x68] sm:$0xf0]  ;;  %v835_v49 = vld [vmem:[%s1303_s1 + $0xe4] sm:$0xf]  ;;  %v806_v52 = vor.u32 %v869_v39, %v803_v40  ;;  %v1131_v56 = vpack.c.b16 %v92_v36, %v92_v36  ;;  %v1139_v59 = vpack.c.b16 %v93_v41, %v93_v41  ;;  %v817_v1 = vld [vmem:[%s1303_s1 + $0x54] sm:$0xf] }
  0x1b   :  { %466 = vmatpush.bf16.msra.mxu3 %v762_v10  ;;  %v667_v53 = vld [vmem:[%s1303_s1 + $0xe8] sm:$0xf0]  ;;  %v851_v54 = vld [vmem:[%s1303_s1 + $0x164] sm:$0xf]  ;;  %v1141_v60 = vpack.c.b16 %v90_v50, %v90_v50  ;;  %v606_v61 = vor.u32 %v819_v47, %v603_v48  ;;  %v1143_v62 = vpack.c.b16 %v91_v51, %v91_v51  ;;  %v595_v2 = vld [vmem:[%s1303_s1 + $0x58] sm:$0xf0] }
  0x1c   :  { %428 = vmatpush.bf16.msra.mxu0 %v562_v16  ;;  %v731_v55 = vld [vmem:[%s1303_s1 + $0x168] sm:$0xf0]  ;;  %v867_v57 = vld [vmem:[%s1303_s1 + $0x1e4] sm:$0xf]  ;;  %v670_v63 = vor.u32 %v835_v49, %v667_v53  ;;  %v833_v3 = vld [vmem:[%s1303_s1 + $0xd4] sm:$0xf]  ;;  %v598_v10 = vor.u32 %v817_v1, %v595_v2 }
  0x1d   :  { %441 = vmatpush.bf16.msra.mxu1 %v626_v20  ;;  %v795_v58 = vld [vmem:[%s1303_s1 + $0x1e8] sm:$0xf0]  ;;  %v734_v0 = vor.u32 %v851_v54, %v731_v55  ;;  %v659_v5 = vld [vmem:[%s1303_s1 + $0xd8] sm:$0xf0]  ;;  %v849_v6 = vld [vmem:[%s1303_s1 + $0x154] sm:$0xf] }
  0x1e   :  { %454 = vmatpush.bf16.msra.mxu2 %v690_v21  ;;  %v798_v4 = vor.u32 %v867_v57, %v795_v58  ;;  %v723_v7 = vld [vmem:[%s1303_s1 + $0x158] sm:$0xf0]  ;;  %v865_v8 = vld [vmem:[%s1303_s1 + $0x1d4] sm:$0xf]  ;;  %v662_v11 = vor.u32 %v833_v3, %v659_v5  ;;  %v815_v13 = vld [vmem:[%s1303_s1 + $0x44] sm:$0xf] }
  0x1f   :  { %467 = vmatpush.bf16.msra.mxu3 %v754_v25  ;;  %v787_v9 = vld [vmem:[%s1303_s1 + $0x1d8] sm:$0xf0]  ;;  %v726_v12 = vor.u32 %v849_v6, %v723_v7  ;;  %v587_v14 = vld [vmem:[%s1303_s1 + $0x48] sm:$0xf0]  ;;  %v831_v15 = vld [vmem:[%s1303_s1 + $0xc4] sm:$0xf] }
  0x20   :  { %429 = vmatpush.bf16.msra.mxu0 %v554_v32  ;;  %v790_v16 = vor.u32 %v865_v8, %v787_v9  ;;  %v651_v17 = vld [vmem:[%s1303_s1 + $0xc8] sm:$0xf0]  ;;  %v847_v18 = vld [vmem:[%s1303_s1 + $0x144] sm:$0xf]  ;;  %v590_v22 = vor.u32 %v815_v13, %v587_v14  ;;  %v813_v25 = vld [vmem:[%s1303_s1 + $0x34] sm:$0xf] }
  0x21   :  { %442 = vmatpush.bf16.msra.mxu1 %v618_v37  ;;  %v715_v19 = vld [vmem:[%s1303_s1 + $0x148] sm:$0xf0]  ;;  %v863_v20 = vld [vmem:[%s1303_s1 + $0x1c4] sm:$0xf]  ;;  %v654_v23 = vor.u32 %v831_v15, %v651_v17  ;;  %v579_v26 = vld [vmem:[%s1303_s1 + $0x38] sm:$0xf0] }
  0x22   :  { %455 = vmatpush.bf16.msra.mxu2 %v682_v38  ;;  %v779_v21 = vld [vmem:[%s1303_s1 + $0x1c8] sm:$0xf0]  ;;  %v718_v24 = vor.u32 %v847_v18, %v715_v19  ;;  %v829_v27 = vld [vmem:[%s1303_s1 + $0xb4] sm:$0xf]  ;;  %v643_v29 = vld [vmem:[%s1303_s1 + $0xb8] sm:$0xf0]  ;;  %v582_v34 = vor.u32 %v813_v25, %v579_v26 }
  0x23   :  { %468 = vmatpush.bf16.msra.mxu3 %v746_v42  ;;  %430 = vmatmul.bf16.vlgmr.msra.gmra.mxu0 %v1141_v60  ;;  %v782_v28 = vor.u32 %v863_v20, %v779_v21  ;;  %v845_v30 = vld [vmem:[%s1303_s1 + $0x134] sm:$0xf]  ;;  %v707_v31 = vld [vmem:[%s1303_s1 + $0x138] sm:$0xf0]  ;;  %v646_v35 = vor.u32 %v829_v27, %v643_v29  ;;  %v811_v37 = vld [vmem:[%s1303_s1 + $0x24] sm:$0xf] }
  0x24   :  { %474 = vmatpush.bf16.msrb.mxu0 %v614_v43  ;;  %443 = vmatmul.bf16.vlgmr.msra.gmra.mxu1 %v1143_v62  ;;  %v861_v32 = vld [vmem:[%s1303_s1 + $0x1b4] sm:$0xf]  ;;  %v771_v33 = vld [vmem:[%s1303_s1 + $0x1b8] sm:$0xf0]  ;;  %v710_v36 = vor.u32 %v845_v30, %v707_v31  ;;  %v571_v38 = vld [vmem:[%s1303_s1 + $0x28] sm:$0xf0] }
  0x25   :  { %487 = vmatpush.bf16.msrb.mxu1 %v678_v45  ;;  %456 = vmatmul.bf16.vlgmr.msra.gmra.mxu2 %v1131_v56  ;;  %v827_v39 = vld [vmem:[%s1303_s1 + $0xa4] sm:$0xf]  ;;  %v774_v40 = vor.u32 %v861_v32, %v771_v33  ;;  %v635_v41 = vld [vmem:[%s1303_s1 + $0xa8] sm:$0xf0]  ;;  %v809_v49 = vld [vmem:[%s1303_s1 + $0x14] sm:$0xf] }
  0x26   :  { %500 = vmatpush.bf16.msrb.mxu2 %v742_v46  ;;  %469 = vmatmul.bf16.vlgmr.msra.gmra.mxu3 %v1139_v59  ;;  %v843_v42 = vld [vmem:[%s1303_s1 + $0x124] sm:$0xf]  ;;  %v699_v43 = vld [vmem:[%s1303_s1 + $0x128] sm:$0xf0]  ;;  %v574_v46 = vor.u32 %v811_v37, %v571_v38  ;;  %v638_v47 = vor.u32 %v827_v39, %v635_v41  ;;  %v563_v50 = vld [vmem:[%s1303_s1 + $0x18] sm:$0xf0] }
  0x27   :  { %513 = vmatpush.bf16.msrb.mxu3 %v806_v52  ;;  %v859_v44 = vld [vmem:[%s1303_s1 + $0x1a4] sm:$0xf]  ;;  %v763_v45 = vld [vmem:[%s1303_s1 + $0x1a8] sm:$0xf0]  ;;  %v702_v48 = vor.u32 %v843_v42, %v699_v43  ;;  %v825_v51 = vld [vmem:[%s1303_s1 + $0x94] sm:$0xf] }
  0x28   :  { %475 = vmatpush.bf16.msrb.mxu0 %v606_v61  ;;  %v766_v52 = vor.u32 %v859_v44, %v763_v45  ;;  %v627_v53 = vld [vmem:[%s1303_s1 + $0x98] sm:$0xf0]  ;;  %v841_v54 = vld [vmem:[%s1303_s1 + $0x114] sm:$0xf]  ;;  %v566_v61 = vor.u32 %v809_v49, %v563_v50  ;;  %v807_v1 = vld [vmem:[%s1303_s1 + $0x4] sm:$0xf] }
  0x29   :  { %488 = vmatpush.bf16.msrb.mxu1 %v670_v63  ;;  %v691_v55 = vld [vmem:[%s1303_s1 + $0x118] sm:$0xf0]  ;;  %v857_v57 = vld [vmem:[%s1303_s1 + $0x194] sm:$0xf]  ;;  %v630_v63 = vor.u32 %v825_v51, %v627_v53  ;;  %v555_v2 = vld [vmem:[%s1303_s1 + $0x8] sm:$0xf0] }
  0x2a   :  { %501 = vmatpush.bf16.msrb.mxu2 %v734_v0  ;;  %v755_v58 = vld [vmem:[%s1303_s1 + $0x198] sm:$0xf0]  ;;  %v694_v0 = vor.u32 %v841_v54, %v691_v55  ;;  %v823_v3 = vld [vmem:[%s1303_s1 + $0x84] sm:$0xf]  ;;  %v619_v5 = vld [vmem:[%s1303_s1 + $0x88] sm:$0xf0] }
  0x2b   :  { %514 = vmatpush.bf16.msrb.mxu3 %v798_v4  ;;  %v758_v4 = vor.u32 %v857_v57, %v755_v58  ;;  %v839_v6 = vld [vmem:[%s1303_s1 + $0x104] sm:$0xf]  ;;  %v683_v7 = vld [vmem:[%s1303_s1 + $0x108] sm:$0xf0] }
  0x2c   :  { %476 = vmatpush.bf16.msrb.mxu0 %v598_v10  ;;  %v855_v8 = vld [vmem:[%s1303_s1 + $0x184] sm:$0xf]  ;;  %v747_v9 = vld [vmem:[%s1303_s1 + $0x188] sm:$0xf0]  ;;  %v558_v10 = vor.u32 %v807_v1, %v555_v2 }
  0x2d   :  { %489 = vmatpush.bf16.msrb.mxu1 %v662_v11  ;;  %v622_v11 = vor.u32 %v823_v3, %v619_v5  ;;  %v750_v13 = vor.u32 %v855_v8, %v747_v9 }
  0x2e   :  { %502 = vmatpush.bf16.msrb.mxu2 %v726_v12  ;;  %v686_v12 = vor.u32 %v839_v6, %v683_v7 }
  0x2f   :  { %515 = vmatpush.bf16.msrb.mxu3 %v790_v16 }
  0x30   :  { %477 = vmatpush.bf16.msrb.mxu0 %v590_v22 }
  0x31   :  { %490 = vmatpush.bf16.msrb.mxu1 %v654_v23 }
  0x32   :  { %503 = vmatpush.bf16.msrb.mxu2 %v718_v24 }
  0x33   :  { %516 = vmatpush.bf16.msrb.mxu3 %v782_v28 }
  0x34   :  { %478 = vmatpush.bf16.msrb.mxu0 %v582_v34 }
  0x35   :  { %491 = vmatpush.bf16.msrb.mxu1 %v646_v35 }
  0x36   :  { %504 = vmatpush.bf16.msrb.mxu2 %v710_v36 }
  0x37   :  { %517 = vmatpush.bf16.msrb.mxu3 %v774_v40 }
  0x38   :  { %479 = vmatpush.bf16.msrb.mxu0 %v574_v46 }
  0x39   :  { %492 = vmatpush.bf16.msrb.mxu1 %v638_v47 }
  0x3a   :  { %505 = vmatpush.bf16.msrb.mxu2 %v702_v48 }
  0x3b   :  { %518 = vmatpush.bf16.msrb.mxu3 %v766_v52 }
  0x3c   :  { %480 = vmatpush.bf16.msrb.mxu0 %v566_v61 }
  0x3d   :  { %493 = vmatpush.bf16.msrb.mxu1 %v630_v63 }
  0x3e   :  { %506 = vmatpush.bf16.msrb.mxu2 %v694_v0 }
  0x3f   :  { %519 = vmatpush.bf16.msrb.mxu3 %v758_v4 }
  0x40   :  { %481 = vmatpush.bf16.msrb.mxu0 %v558_v10 }
  0x41   :  { %494 = vmatpush.bf16.msrb.mxu1 %v622_v11 }
  0x42   :  { %507 = vmatpush.bf16.msrb.mxu2 %v686_v12 }
  0x43   :  { %520 = vmatpush.bf16.msrb.mxu3 %v750_v13  ;;  %482 = vmatmul.bf16.vlgmr.msrb.gmra.mxu0 %v1141_v60  ;;  %v535_v60 = vld [vmem:[%s1305_s2] sm:$0x3] }
  0x44   :  { %495 = vmatmul.bf16.vlgmr.msrb.gmra.mxu1 %v1143_v62  ;;  %v537_v26 = vperm.slane %v535_v60, 0  ;;  %v538_v29 = vperm.slane %v535_v60, 1 }
  0x45   :  { %508 = vmatmul.bf16.vlgmr.msrb.gmra.mxu2 %v1131_v56 }
  0x46   :  { %521 = vmatmul.bf16.vlgmr.msrb.gmra.mxu3 %v1139_v59 }
  0xa0   :  { %v431_v14 = vpop.f32.mrf.mxu0 }
  0xa1   :  { %v444_v15 = vpop.f32.mrf.mxu1 }
  0xa2   :  { %v445_v22 = vadd.f32 %v444_v15, %v431_v14 }
  0xa8   :  { %v457_v16 = vpop.f32.mrf.mxu2  ;;  %v433_v18 = vpop.f32.mrf.mxu0 }
  0xa9   :  { %v470_v17 = vpop.f32.mrf.mxu3  ;;  %v446_v19 = vpop.f32.mrf.mxu1  ;;  %v458_v25 = vadd.f32 %v457_v16, %v445_v22 }
  0xab   :  { %v471_v56 = vadd.f32 %v470_v17, %v458_v25 }
  0xad   :  { %v541_v32 = vadd.f32 %v537_v26, %v471_v56 }
  0xaf   :  { %v543_v35 = vmax.f32 %v541_v32, 0.0 }
  0xb0   :  { %v459_v20 = vpop.f32.mrf.mxu2 }
  0xb1   :  { %v472_v21 = vpop.f32.mrf.mxu3 }
  0xc0   :  { %v483_v23 = vpop.f32.mrf.mxu0 }
  0xc1   :  { %v496_v24 = vpop.f32.mrf.mxu1 }
  0xc2   :  { %v497_v62 = vadd.f32 %v496_v24, %v483_v23 }
  0xc8   :  { %v509_v59 = vpop.f32.mrf.mxu2  ;;  %v485_v30 = vpop.f32.mrf.mxu0 }
  0xc9   :  { %v510_v27 = vadd.f32 %v509_v59, %v497_v62  ;;  %v522_v28 = vpop.f32.mrf.mxu3  ;;  %v498_v31 = vpop.f32.mrf.mxu1 }
  0xcb   :  { %v523_v33 = vadd.f32 %v522_v28, %v510_v27 }
  0xcd   :  { %v542_v34 = vadd.f32 %v538_v29, %v523_v33 }
  0xcf   :  { %v544_v36 = vmax.f32 %v542_v34, 0.0 }
  0xd0   :  { %v511_v37 = vpop.f32.mrf.mxu2 }
  0xd1   :  { %v545_v38 = vpack.c.bf16 %v544_v36, %v543_v35  ;;  %v524_v39 = vpop.f32.mrf.mxu3 }
  0xd3   :  { %546 = vst [vmem:[%s1306_s3] sm:$0xff] %v545_v38 }

// kernel: _lambda_.34
= control target key start
LH: loop header
LB: loop body
LE: loop exit
PB: predicated region body
PF: predicated region fallthrough
CT: control target
= control target key end

     0   :  { %s1196_s15 = smov 0   ;;  %s1198_s16 = smov 0   ;;  %s1404_s0 = inlined_call_operand.vmem [shape: bf16[8,256], index: 0, kind: input, shape index: {}]   ;;  %s1405_s1 = inlined_call_operand.vmem [shape: bf16[256,1024], index: 1, kind: input, shape index: {}]   ;;  %s1406_s2 = inlined_call_operand.vmem [shape: f32[1,1024], index: 2, kind: input, shape index: {}]   ;;  %s1407_s3 = inlined_call_operand.vmem [shape: bf16[8,1024], index: 3, kind: input, shape index: {}]   ;;  %s1408_s4 = inlined_call_operand.vmem [shape: bf16[8,1024], index: 4, kind: output, shape index: {}]  }
   0x1   :  { %s1200_s17 = smov 0   ;;  %s1202_s18 = smov 0  }
   0x2   :  { %s1204_s19 = smov 0  }
   0x3 LB: > { %s29_s20 = sadd.s32 1, %s1165_s18  ;;  %p77_p1 = scmp.ne.s32.totalorder %s1157_s16, %s1153_s15  ;;  %s1169_s19 = sphi %s1204_s19, %s14_s19   ;;  %s1165_s18 = sphi %s1202_s18, %s1412_s18   ;;  %s1161_s17 = sphi %s1200_s17, %s1411_s17   ;;  %s1157_s16 = sphi %s1198_s16, %s1410_s16   ;;  %s1153_s15 = sphi %s1196_s15, %s1409_s15  }
   0x4   : > { %p31_p0 = scmp.ge.s32.totalorder %s29_s20, 4  ;;  %p78_p2 = scmp.eq.s32.totalorder %s1169_s19, 0 }
   0x5   : > { %s70_s22 = sadd.s32 1, %s1157_s16  ;;  %p917_p5 = scmp.ge.s32.totalorder %s1169_s19, 4 }
   0x6   : > { %s1414_s20 = smov (%p31_p0, %s29_s20), 0  ;;  %p79_p3 = por %p78_p2, %p77_p1 }
   0x7   : > { %s66_s21 = ssub.s32 %s1165_s18, %s1414_s20  ;;  %198 = sbr.rel (%p917_p5) target bundleno = 48 (0x30), region = 20 }
   0x8   : > { %p68_p4 = scmp.eq.s32.totalorder %s66_s21, 0 }
   0xa   : > { %s1231_s23 = scalar_select %p68_p4, %s1157_s16, %s70_s22  }
   0xc   : > { %201 = sbr.rel (!%p79_p3) target bundleno = 48 (0x30), region = 24  ;;  %s203_s24 = sand.u32 (%p79_p3), 1, %s1157_s16  }
   0xd   : > { %s1058_s25 = sshll.u32 (%p79_p3), %s1165_s18, 3  ;;  %s918_s26 = sshll.u32 (%p79_p3), %s203_s24, 8 }
   0xe   : > { %s1239_s29 = scalar_lea.vmem (%p79_p3), %s1405_s1, %s1058_s25  ;;  %s1244_s30 = scalar_lea.vmem (%p79_p3), [#allocation3], %s918_s26 }
   0xf   : > { %v302_v0 = vld [vmem:[%s1239_s29] sm:$0xff] (%p79_p3) }
  0x10   : > { %v304_v1 = vld [vmem:[%s1239_s29 + $0x20] sm:$0xff] (%p79_p3)  ;;  %303 = vst [vmem:[%s1244_s30] sm:$0xff] (%p79_p3), %v302_v0 }
  0x11   : > { %v306_v2 = vld [vmem:[%s1239_s29 + $0x40] sm:$0xff]  ;;  %305 = vst [vmem:[%s1244_s30 + $0x8] sm:$0xff] %v304_v1 }
  0x12   : > { %v308_v3 = vld [vmem:[%s1239_s29 + $0x60] sm:$0xff]  ;;  %307 = vst [vmem:[%s1244_s30 + $0x10] sm:$0xff] %v306_v2 }
  0x13   : > { %v310_v4 = vld [vmem:[%s1239_s29 + $0x80] sm:$0xff]  ;;  %309 = vst [vmem:[%s1244_s30 + $0x18] sm:$0xff] %v308_v3 }
  0x14   : > { %v312_v5 = vld [vmem:[%s1239_s29 + $0xa0] sm:$0xff]  ;;  %311 = vst [vmem:[%s1244_s30 + $0x20] sm:$0xff] %v310_v4 }
  0x15   : > { %v314_v6 = vld [vmem:[%s1239_s29 + $0xc0] sm:$0xff]  ;;  %313 = vst [vmem:[%s1244_s30 + $0x28] sm:$0xff] %v312_v5 }
  0x16   : > { %v316_v7 = vld [vmem:[%s1239_s29 + $0xe0] sm:$0xff]  ;;  %315 = vst [vmem:[%s1244_s30 + $0x30] sm:$0xff] %v314_v6 }
  0x17   : > { %v318_v8 = vld [vmem:[%s1239_s29 + $0x100] sm:$0xff]  ;;  %317 = vst [vmem:[%s1244_s30 + $0x38] sm:$0xff] %v316_v7 }
  0x18   : > { %v320_v9 = vld [vmem:[%s1239_s29 + $0x120] sm:$0xff]  ;;  %319 = vst [vmem:[%s1244_s30 + $0x40] sm:$0xff] %v318_v8 }
  0x19   : > { %v322_v10 = vld [vmem:[%s1239_s29 + $0x140] sm:$0xff]  ;;  %321 = vst [vmem:[%s1244_s30 + $0x48] sm:$0xff] %v320_v9 }
  0x1a   : > { %v324_v11 = vld [vmem:[%s1239_s29 + $0x160] sm:$0xff]  ;;  %323 = vst [vmem:[%s1244_s30 + $0x50] sm:$0xff] %v322_v10 }
  0x1b   : > { %v326_v12 = vld [vmem:[%s1239_s29 + $0x180] sm:$0xff]  ;;  %325 = vst [vmem:[%s1244_s30 + $0x58] sm:$0xff] %v324_v11 }
  0x1c   : > { %v328_v13 = vld [vmem:[%s1239_s29 + $0x1a0] sm:$0xff]  ;;  %327 = vst [vmem:[%s1244_s30 + $0x60] sm:$0xff] %v326_v12 }
  0x1d   : > { %v330_v14 = vld [vmem:[%s1239_s29 + $0x1c0] sm:$0xff]  ;;  %329 = vst [vmem:[%s1244_s30 + $0x68] sm:$0xff] %v328_v13 }
  0x1e   : > { %v332_v15 = vld [vmem:[%s1239_s29 + $0x1e0] sm:$0xff]  ;;  %331 = vst [vmem:[%s1244_s30 + $0x70] sm:$0xff] %v330_v14 }
  0x1f   : > { %v334_v16 = vld [vmem:[%s1239_s29 + $0x200] sm:$0xff]  ;;  %333 = vst [vmem:[%s1244_s30 + $0x78] sm:$0xff] %v332_v15 }
  0x20   : > { %v336_v17 = vld [vmem:[%s1239_s29 + $0x220] sm:$0xff]  ;;  %335 = vst [vmem:[%s1244_s30 + $0x80] sm:$0xff] %v334_v16 }
  0x21   : > { %v338_v18 = vld [vmem:[%s1239_s29 + $0x240] sm:$0xff]  ;;  %337 = vst [vmem:[%s1244_s30 + $0x88] sm:$0xff] %v336_v17 }
  0x22   : > { %v340_v19 = vld [vmem:[%s1239_s29 + $0x260] sm:$0xff]  ;;  %339 = vst [vmem:[%s1244_s30 + $0x90] sm:$0xff] %v338_v18 }
  0x23   : > { %v342_v20 = vld [vmem:[%s1239_s29 + $0x280] sm:$0xff]  ;;  %341 = vst [vmem:[%s1244_s30 + $0x98] sm:$0xff] %v340_v19 }
  0x24   : > { %v344_v21 = vld [vmem:[%s1239_s29 + $0x2a0] sm:$0xff]  ;;  %343 = vst [vmem:[%s1244_s30 + $0xa0] sm:$0xff] %v342_v20 }
  0x25   : > { %v346_v22 = vld [vmem:[%s1239_s29 + $0x2c0] sm:$0xff]  ;;  %345 = vst [vmem:[%s1244_s30 + $0xa8] sm:$0xff] %v344_v21 }
  0x26   : > { %v348_v23 = vld [vmem:[%s1239_s29 + $0x2e0] sm:$0xff]  ;;  %347 = vst [vmem:[%s1244_s30 + $0xb0] sm:$0xff] %v346_v22 }
  0x27   : > { %v350_v24 = vld [vmem:[%s1239_s29 + $0x300] sm:$0xff]  ;;  %349 = vst [vmem:[%s1244_s30 + $0xb8] sm:$0xff] %v348_v23 }
  0x28   : > { %v352_v25 = vld [vmem:[%s1239_s29 + $0x320] sm:$0xff]  ;;  %351 = vst [vmem:[%s1244_s30 + $0xc0] sm:$0xff] %v350_v24 }
  0x29   : > { %v354_v26 = vld [vmem:[%s1239_s29 + $0x340] sm:$0xff]  ;;  %353 = vst [vmem:[%s1244_s30 + $0xc8] sm:$0xff] %v352_v25 }
  0x2a   : > { %v356_v27 = vld [vmem:[%s1239_s29 + $0x360] sm:$0xff]  ;;  %355 = vst [vmem:[%s1244_s30 + $0xd0] sm:$0xff] %v354_v26 }
  0x2b   : > { %v358_v28 = vld [vmem:[%s1239_s29 + $0x380] sm:$0xff]  ;;  %357 = vst [vmem:[%s1244_s30 + $0xd8] sm:$0xff] %v356_v27 }
  0x2c   : > { %v360_v29 = vld [vmem:[%s1239_s29 + $0x3a0] sm:$0xff]  ;;  %359 = vst [vmem:[%s1244_s30 + $0xe0] sm:$0xff] %v358_v28 }
  0x2d   : > { %v362_v30 = vld [vmem:[%s1239_s29 + $0x3c0] sm:$0xff]  ;;  %361 = vst [vmem:[%s1244_s30 + $0xe8] sm:$0xff] %v360_v29 }
  0x2e   : > { %v364_v31 = vld [vmem:[%s1239_s29 + $0x3e0] sm:$0xff]  ;;  %363 = vst [vmem:[%s1244_s30 + $0xf0] sm:$0xff] %v362_v30 }
  0x2f   : > { %365 = vst [vmem:[%s1244_s30 + $0xf8] sm:$0xff] %v364_v31 }
  0x30 PF: > { %p921_p6 = scmp.ge.s32.totalorder %s1169_s19, 1  ;;  %p391_p7 = scmp.lt.s32.totalorder %s1169_s19, 5 }
  0x32   : > { %p392_p8 = pnand %p921_p6, %p391_p7 }
  0x33   : > { %s398_s5 = sand.u32 (!%p392_p8), 1, %s1153_s15   ;;  %s923_s10 = sshll.u32 (!%p392_p8), %s1161_s17, 1 }
  0x34   : > { %395 = sbr.rel (%p392_p8) target bundleno = 236 (0xec), region = 70  ;;  %s922_s6 = sshll.u32 (!%p392_p8), %s398_s5, 8 }
  0x35   : > { %s1310_s7 = scalar_lea.vmem (!%p392_p8), [#allocation3], %s922_s6  ;;  %p462_p9 = scmp.lt.s32.totalorder (!%p392_p8), %s923_s10, 7 }
  0x39   : > { %v986_v32 = vld [vmem:[%s1310_s7 + $0x70] sm:$0xf]  ;;  %v1074_v33 = vld [vmem:[%s1310_s7 + $0x74] sm:$0xf0]  ;;  %v1073_v37 = vld [vmem:[%s1310_s7 + $0x74] sm:$0xf] }
  0x3a   : > { %v1050_v34 = vld [vmem:[%s1310_s7 + $0xf0] sm:$0xf]  ;;  %v987_v35 = vor.u32 %v1074_v33, %v986_v32  ;;  %v1090_v36 = vld [vmem:[%s1310_s7 + $0xf4] sm:$0xf0]  ;;  %v988_v38 = vld [vmem:[%s1310_s7 + $0x78] sm:$0xf0] }
  0x3b   : > { %v1051_v39 = vor.u32 %v1090_v36, %v1050_v34  ;;  %v991_v40 = vor.u32 %v1073_v37, %v988_v38  ;;  %v1089_v41 = vld [vmem:[%s1310_s7 + $0xf4] sm:$0xf]  ;;  %v1052_v42 = vld [vmem:[%s1310_s7 + $0xf8] sm:$0xf0]  ;;  %v978_v43 = vld [vmem:[%s1310_s7 + $0x60] sm:$0xf] }
  0x3c   : > { %694 = vmatpush.bf16.msra.mxu0 %v987_v35  ;;  %v1055_v44 = vor.u32 %v1089_v41, %v1052_v42  ;;  %v1072_v45 = vld [vmem:[%s1310_s7 + $0x64] sm:$0xf0]  ;;  %v1042_v46 = vld [vmem:[%s1310_s7 + $0xe0] sm:$0xf]  ;;  %v1071_v50 = vld [vmem:[%s1310_s7 + $0x64] sm:$0xf] }
  0x3d   : > { %v1088_v47 = vld [vmem:[%s1310_s7 + $0xe4] sm:$0xf0]  ;;  %707 = vmatpush.bf16.msra.mxu1 %v1051_v39  ;;  %720 = vmatpush.bf16.msra.mxu2 %v991_v40  ;;  %v979_v48 = vor.u32 %v1072_v45, %v978_v43  ;;  %v980_v51 = vld [vmem:[%s1310_s7 + $0x68] sm:$0xf0]  ;;  %v1087_v52 = vld [vmem:[%s1310_s7 + $0xe4] sm:$0xf] }
  0x3e   : > { %v1043_v49 = vor.u32 %v1088_v47, %v1042_v46  ;;  %733 = vmatpush.bf16.msra.mxu3 %v1055_v44  ;;  %v983_v53 = vor.u32 %v1071_v50, %v980_v51  ;;  %v1044_v54 = vld [vmem:[%s1310_s7 + $0xe8] sm:$0xf0]  ;;  %v970_v55 = vld [vmem:[%s1310_s7 + $0x50] sm:$0xf]  ;;  %v1070_v56 = vld [vmem:[%s1310_s7 + $0x54] sm:$0xf0] }
  0x3f   : > { %v1047_v57 = vor.u32 %v1087_v52, %v1044_v54  ;;  %v1034_v58 = vld [vmem:[%s1310_s7 + $0xd0] sm:$0xf]  ;;  %v1086_v59 = vld [vmem:[%s1310_s7 + $0xd4] sm:$0xf0]  ;;  %v1069_v60 = vld [vmem:[%s1310_s7 + $0x54] sm:$0xf]  ;;  %v971_v61 = vor.u32 %v1070_v56, %v970_v55 }
  0x40   : > { %695 = vmatpush.bf16.msra.mxu0 %v979_v48  ;;  %v972_v62 = vld [vmem:[%s1310_s7 + $0x58] sm:$0xf0]  ;;  %v1085_v63 = vld [vmem:[%s1310_s7 + $0xd4] sm:$0xf]  ;;  %v1035_v1 = vor.u32 %v1086_v59, %v1034_v58  ;;  %v962_v3 = vld [vmem:[%s1310_s7 + $0x40] sm:$0xf] }
  0x41   : > { %v1036_v0 = vld [vmem:[%s1310_s7 + $0xd8] sm:$0xf0]  ;;  %708 = vmatpush.bf16.msra.mxu1 %v1043_v49  ;;  %721 = vmatpush.bf16.msra.mxu2 %v983_v53  ;;  %v975_v2 = vor.u32 %v1069_v60, %v972_v62  ;;  %v1068_v4 = vld [vmem:[%s1310_s7 + $0x44] sm:$0xf0]  ;;  %v1026_v5 = vld [vmem:[%s1310_s7 + $0xc0] sm:$0xf] }
  0x42   : > { %734 = vmatpush.bf16.msra.mxu3 %v1047_v57  ;;  %v1039_v6 = vor.u32 %v1085_v63, %v1036_v0  ;;  %v1084_v7 = vld [vmem:[%s1310_s7 + $0xc4] sm:$0xf0]  ;;  %v1067_v8 = vld [vmem:[%s1310_s7 + $0x44] sm:$0xf]  ;;  %v964_v9 = vld [vmem:[%s1310_s7 + $0x48] sm:$0xf0]  ;;  %v963_v12 = vor.u32 %v1068_v4, %v962_v3 }
  0x43   : > { %v1083_v10 = vld [vmem:[%s1310_s7 + $0xc4] sm:$0xf]  ;;  %v1028_v11 = vld [vmem:[%s1310_s7 + $0xc8] sm:$0xf0]  ;;  %v1027_v13 = vor.u32 %v1084_v7, %v1026_v5  ;;  %v967_v14 = vor.u32 %v1067_v8, %v964_v9  ;;  %v954_v15 = vld [vmem:[%s1310_s7 + $0x30] sm:$0xf] }
  0x44   : > { %696 = vmatpush.bf16.msra.mxu0 %v971_v61  ;;  %v1066_v16 = vld [vmem:[%s1310_s7 + $0x34] sm:$0xf0]  ;;  %v1018_v17 = vld [vmem:[%s1310_s7 + $0xb0] sm:$0xf]  ;;  %v1031_v18 = vor.u32 %v1083_v10, %v1028_v11  ;;  %v1065_v20 = vld [vmem:[%s1310_s7 + $0x34] sm:$0xf] }
  0x45   : > { %709 = vmatpush.bf16.msra.mxu1 %v1035_v1  ;;  %722 = vmatpush.bf16.msra.mxu2 %v975_v2  ;;  %v1082_v19 = vld [vmem:[%s1310_s7 + $0xb4] sm:$0xf0]  ;;  %v956_v21 = vld [vmem:[%s1310_s7 + $0x38] sm:$0xf0]  ;;  %v1081_v22 = vld [vmem:[%s1310_s7 + $0xb4] sm:$0xf]  ;;  %v955_v24 = vor.u32 %v1066_v16, %v954_v15 }
  0x46   : > { %735 = vmatpush.bf16.msra.mxu3 %v1039_v6  ;;  %v1020_v23 = vld [vmem:[%s1310_s7 + $0xb8] sm:$0xf0]  ;;  %v1019_v25 = vor.u32 %v1082_v19, %v1018_v17  ;;  %v959_v26 = vor.u32 %v1065_v20, %v956_v21  ;;  %v946_v27 = vld [vmem:[%s1310_s7 + $0x20] sm:$0xf]  ;;  %v1064_v28 = vld [vmem:[%s1310_s7 + $0x24] sm:$0xf0] }
  0x47   : > { %v1010_v29 = vld [vmem:[%s1310_s7 + $0xa0] sm:$0xf]  ;;  %v1023_v30 = vor.u32 %v1081_v22, %v1020_v23  ;;  %v1080_v31 = vld [vmem:[%s1310_s7 + $0xa4] sm:$0xf0]  ;;  %v1063_v32 = vld [vmem:[%s1310_s7 + $0x24] sm:$0xf]  ;;  %v947_v36 = vor.u32 %v1064_v28, %v946_v27 }
  0x48   : > { %697 = vmatpush.bf16.msra.mxu0 %v963_v12  ;;  %v948_v33 = vld [vmem:[%s1310_s7 + $0x28] sm:$0xf0]  ;;  %v1079_v34 = vld [vmem:[%s1310_s7 + $0xa4] sm:$0xf]  ;;  %v1011_v37 = vor.u32 %v1080_v31, %v1010_v29  ;;  %v938_v39 = vld [vmem:[%s1310_s7 + $0x10] sm:$0xf] }
  0x49   : > { %710 = vmatpush.bf16.msra.mxu1 %v1027_v13  ;;  %723 = vmatpush.bf16.msra.mxu2 %v967_v14  ;;  %v1012_v35 = vld [vmem:[%s1310_s7 + $0xa8] sm:$0xf0]  ;;  %v951_v38 = vor.u32 %v1063_v32, %v948_v33  ;;  %v1062_v40 = vld [vmem:[%s1310_s7 + $0x14] sm:$0xf0]  ;;  %v1002_v41 = vld [vmem:[%s1310_s7 + $0x90] sm:$0xf] }
  0x4a   : > { %736 = vmatpush.bf16.msra.mxu3 %v1031_v18  ;;  %v1015_v42 = vor.u32 %v1079_v34, %v1012_v35  ;;  %v1078_v43 = vld [vmem:[%s1310_s7 + $0x94] sm:$0xf0]  ;;  %v1061_v44 = vld [vmem:[%s1310_s7 + $0x14] sm:$0xf]  ;;  %v940_v45 = vld [vmem:[%s1310_s7 + $0x18] sm:$0xf0]  ;;  %v939_v48 = vor.u32 %v1062_v40, %v938_v39 }
  0x4b   : > { %v1077_v46 = vld [vmem:[%s1310_s7 + $0x94] sm:$0xf]  ;;  %v1004_v47 = vld [vmem:[%s1310_s7 + $0x98] sm:$0xf0]  ;;  %v494_v49 = vld [vmem:[%s1404_s0] sm:$0xff]  ;;  %v1003_v50 = vor.u32 %v1078_v43, %v1002_v41  ;;  %v943_v51 = vor.u32 %v1061_v44, %v940_v45  ;;  %s1416_s10 = smov (!%p462_p9, %s923_s10), 7 }
  0x4c   : > { %698 = vmatpush.bf16.msra.mxu0 %v955_v24  ;;  %v930_v52 = vld [vmem:[%s1310_s7] sm:$0xf]  ;;  %v1060_v53 = vld [vmem:[%s1310_s7 + $0x4] sm:$0xf0]  ;;  %v1007_v55 = vor.u32 %v1077_v46, %v1004_v47  ;;  %v1059_v57 = vld [vmem:[%s1310_s7 + $0x4] sm:$0xf]  ;;  %v528_v61 = vunpack.c.l.b16 %v494_v49  ;;  %v529_v63 = vunpack.c.h.b16 %v494_v49  ;;  %s464_s13 = scalar_lea.vmem %s1406_s2, %s1416_s10 }
  0x4d   : > { %711 = vmatpush.bf16.msra.mxu1 %v1019_v25  ;;  %724 = vmatpush.bf16.msra.mxu2 %v959_v26  ;;  %v994_v54 = vld [vmem:[%s1310_s7 + $0x80] sm:$0xf]  ;;  %v1076_v56 = vld [vmem:[%s1310_s7 + $0x84] sm:$0xf0]  ;;  %v932_v58 = vld [vmem:[%s1310_s7 + $0x8] sm:$0xf0]  ;;  %v931_v62 = vor.u32 %v1060_v53, %v930_v52 }
  0x4e   : > { %737 = vmatpush.bf16.msra.mxu3 %v1023_v30  ;;  %v1075_v59 = vld [vmem:[%s1310_s7 + $0x84] sm:$0xf]  ;;  %v996_v60 = vld [vmem:[%s1310_s7 + $0x88] sm:$0xf0]  ;;  %v995_v0 = vor.u32 %v1076_v56, %v994_v54  ;;  %v935_v1 = vor.u32 %v1059_v57, %v932_v58  ;;  %v530_v3 = vpack.c.b16 %v528_v61, %v528_v61  ;;  %v531_v4 = vpack.c.b16 %v529_v63, %v529_v63  ;;  %s925_s14 = sshll.u32 %s1416_s10, 2 }
  0x4f   : > { %v999_v2 = vor.u32 %v1075_v59, %v996_v60  ;;  %v755_v5 = vld [vmem:[%s464_s13] sm:$0x3]  ;;  %s474_s22 = scalar_lea.vmem %s1407_s3, %s925_s14  ;;  %s484_s25 = scalar_lea.vmem %s1408_s4, %s925_s14 }
  0x50   : > { %699 = vmatpush.bf16.msra.mxu0 %v947_v36  ;;  %v757_v8 = vperm.slane %v755_v5, 0  ;;  %v763_v10 = vld [vmem:[%s474_s22] sm:$0xff]  ;;  %v758_v14 = vperm.slane %v755_v5, 1 }
  0x51   : > { %712 = vmatpush.bf16.msra.mxu1 %v1011_v37  ;;  %725 = vmatpush.bf16.msra.mxu2 %v951_v38  ;;  %v764_v12 = vunpack.c.l.bf16 %v763_v10  ;;  %v765_v19 = vunpack.c.h.bf16 %v763_v10 }
  0x52   : > { %738 = vmatpush.bf16.msra.mxu3 %v1015_v42 }
  0x54   : > { %700 = vmatpush.bf16.msra.mxu0 %v939_v48 }
  0x55   : > { %713 = vmatpush.bf16.msra.mxu1 %v1003_v50  ;;  %726 = vmatpush.bf16.msra.mxu2 %v943_v51 }
  0x56   : > { %739 = vmatpush.bf16.msra.mxu3 %v1007_v55 }
  0x58   : > { %701 = vmatpush.bf16.msra.mxu0 %v931_v62 }
  0x59   : > { %714 = vmatpush.bf16.msra.mxu1 %v995_v0  ;;  %727 = vmatpush.bf16.msra.mxu2 %v935_v1 }
  0x5a   : > { %740 = vmatpush.bf16.msra.mxu3 %v999_v2 }
  0x5b   : > { %702 = vmatmul.bf16.vlgmr.msra.gmra.mxu0 %v530_v3 }
  0x5c   : > { %715 = vmatmul.bf16.vlgmr.msra.gmra.mxu1 %v531_v4  ;;  %728 = vmatmul.bf16.vlgmr.msra.gmra.mxu2 %v530_v3 }
  0x5d   : > { %741 = vmatmul.bf16.vlgmr.msra.gmra.mxu3 %v531_v4 }
  0xd8   : > { %v703_v6 = vpop.f32.mrf.mxu0 }
  0xd9   : > { %v716_v7 = vpop.f32.mrf.mxu1 }
  0xda   : > { %v717_v9 = vadd.f32 %v716_v7, %v703_v6 }
  0xdc   : > { %v761_v11 = vadd.f32 %v757_v8, %v717_v9 }
  0xde   : > { %v766_v17 = vadd.f32 %v764_v12, %v761_v11 }
  0xdf   : > { %v729_v13 = vpop.f32.mrf.mxu2 }
  0xe0   : > { %v742_v15 = vpop.f32.mrf.mxu3  ;;  %v705_v16 = vpop.f32.mrf.mxu0  ;;  %v768_v22 = vmax.f32 %v766_v17, 0.0 }
  0xe1   : > { %v743_v18 = vadd.f32 %v742_v15, %v729_v13  ;;  %v718_v20 = vpop.f32.mrf.mxu1 }
  0xe3   : > { %v762_v21 = vadd.f32 %v758_v14, %v743_v18 }
  0xe5   : > { %v767_v23 = vadd.f32 %v765_v19, %v762_v21 }
  0xe7   : > { %v769_v24 = vmax.f32 %v767_v23, 0.0  ;;  %v731_v25 = vpop.f32.mrf.mxu2 }
  0xe8   : > { %v744_v26 = vpop.f32.mrf.mxu3 }
  0xe9   : > { %v770_v27 = vpack.c.bf16 %v769_v24, %v768_v22 }
  0xeb   : > { %771 = vst [vmem:[%s484_s25] sm:$0xff] %v770_v27 }
  0xec PF: > { %s14_s19 = sadd.s32 1, %s1169_s19   ;;  %s1409_s15 = smov %s1157_s16 }
  0xed   : > { %p11_p10 = scmp.ge.s32.totalorder %s14_s19, 6   ;;  %s1410_s16 = smov %s1231_s23 }
  0xee   : > { %s1411_s17 = smov %s1165_s18  ;;  %s1412_s18 = smov %s1414_s20 }
  0xef   :  { %13 = sbr.rel (!%p11_p10) target bundleno = 3 (0x3), region = 126 }

// kernel: _lambda_.32
= control target key start
LH: loop header
LB: loop body
LE: loop exit
PB: predicated region body
PF: predicated region fallthrough
CT: control target
= control target key end

     0   :  { %s923_s12 = smov 0   ;;  %s925_s13 = smov 0   ;;  %s1037_s0 = inlined_call_operand.vmem [shape: bf16[8,2304], index: 0, kind: input, shape index: {}]   ;;  %s1038_s1 = inlined_call_operand.vmem [shape: bf16[2304,256], index: 1, kind: input, shape index: {}]   ;;  %s1039_s2 = inlined_call_operand.vmem [shape: f32[1,256], index: 2, kind: input, shape index: {}]   ;;  %s1040_s3 = inlined_call_operand.vmem [shape: bf16[8,256], index: 3, kind: output, shape index: {}]  }
   0x1   :  { %s927_s14 = smov 0  }
   0x2 LB: > { %s25_s15 = sadd.s32 1, %s896_s13  ;;  %p680_p0 = scmp.ge.s32.totalorder %s900_s14, 1  ;;  %s900_s14 = sphi %s927_s14, %s13_s14   ;;  %s896_s13 = sphi %s925_s13, %s1042_s13   ;;  %s892_s12 = sphi %s923_s12, %s1041_s12  }
   0x3   : > { %p26_p1 = scmp.ge.s32.totalorder %s25_s15, 9  ;;  %p194_p2 = scmp.lt.s32.totalorder %s900_s14, 10 }
   0x5   : > { %s1044_s15 = smov (%p26_p1, %s25_s15), 0  ;;  %p195_p3 = pnand %p680_p0, %p194_p2 }
   0x6   : > { %s681_s16 = sshll.u32 (!%p195_p3), %s892_s12, 1  ;;  %s683_s17 = sshll.u32 (!%p195_p3), %s892_s12, 5 }
   0x7   : > { %198 = sbr.rel (%p195_p3) target bundleno = 210 (0xd2), region = 32  ;;  %p243_p4 = scmp.lt.s32.totalorder (!%p195_p3), %s681_s16, 17 }
   0x8   : > { %p252_p5 = scmp.lt.s32.totalorder (!%p195_p3), %s683_s17, 287  ;;  %p686_p6 = scmp.ne.s32.totalorder (!%p195_p3), %s892_s12, 0 }
   0xc   : > { %s1046_s16 = smov (!%p243_p4, %s681_s16), 17  ;;  %s1048_s17 = smov (!%p252_p5, %s683_s17), 287 }
   0xd   : > { %s682_s18 = sshll.u32 %s1046_s16, 2  ;;  %s820_s22 = sshll.u32 %s1048_s17, 3 }
   0xe   : > { %s948_s21 = scalar_lea.vmem %s1037_s0, %s682_s18  ;;  %s953_s25 = scalar_lea.vmem %s1038_s1, %s820_s22 }
   0xf   : > { %280 = sbr.rel (%p686_p6) target bundleno = 23 (0x17), region = 36 }
  0x14   : > { %v902_v0 = vmov 0.0  }
  0x15   : > { %281 = vst [vmem:[#allocation2] sm:$0xff] %v902_v0 }
  0x16   : > { %282 = vst [vmem:[#allocation2 + $0x8] sm:$0xff] %v902_v0 }
  0x17 PF: > { %v745_v1 = vld [vmem:[%s953_s25 + $0x70] sm:$0xf]  ;;  %v836_v2 = vld [vmem:[%s953_s25 + $0x74] sm:$0xf0]  ;;  %v835_v6 = vld [vmem:[%s953_s25 + $0x74] sm:$0xf] }
  0x18   : > { %v809_v3 = vld [vmem:[%s953_s25 + $0xf0] sm:$0xf]  ;;  %v746_v4 = vor.u32 %v836_v2, %v745_v1  ;;  %v852_v5 = vld [vmem:[%s953_s25 + $0xf4] sm:$0xf0]  ;;  %v747_v7 = vld [vmem:[%s953_s25 + $0x78] sm:$0xf0] }
  0x19   : > { %v810_v8 = vor.u32 %v852_v5, %v809_v3  ;;  %v750_v9 = vor.u32 %v835_v6, %v747_v7  ;;  %v851_v10 = vld [vmem:[%s953_s25 + $0xf4] sm:$0xf]  ;;  %v811_v11 = vld [vmem:[%s953_s25 + $0xf8] sm:$0xf0]  ;;  %v737_v12 = vld [vmem:[%s953_s25 + $0x60] sm:$0xf] }
  0x1a   : > { %485 = vmatpush.bf16.msra.mxu0 %v746_v4  ;;  %v814_v13 = vor.u32 %v851_v10, %v811_v11  ;;  %v834_v14 = vld [vmem:[%s953_s25 + $0x64] sm:$0xf0]  ;;  %v801_v15 = vld [vmem:[%s953_s25 + $0xe0] sm:$0xf]  ;;  %v833_v19 = vld [vmem:[%s953_s25 + $0x64] sm:$0xf] }
  0x1b   : > { %v850_v16 = vld [vmem:[%s953_s25 + $0xe4] sm:$0xf0]  ;;  %498 = vmatpush.bf16.msra.mxu1 %v810_v8  ;;  %511 = vmatpush.bf16.msra.mxu2 %v750_v9  ;;  %v738_v17 = vor.u32 %v834_v14, %v737_v12  ;;  %v739_v20 = vld [vmem:[%s953_s25 + $0x68] sm:$0xf0]  ;;  %v849_v21 = vld [vmem:[%s953_s25 + $0xe4] sm:$0xf] }
  0x1c   : > { %v802_v18 = vor.u32 %v850_v16, %v801_v15  ;;  %524 = vmatpush.bf16.msra.mxu3 %v814_v13  ;;  %v742_v22 = vor.u32 %v833_v19, %v739_v20  ;;  %v803_v23 = vld [vmem:[%s953_s25 + $0xe8] sm:$0xf0]  ;;  %v729_v24 = vld [vmem:[%s953_s25 + $0x50] sm:$0xf]  ;;  %v832_v25 = vld [vmem:[%s953_s25 + $0x54] sm:$0xf0] }
  0x1d   : > { %v806_v26 = vor.u32 %v849_v21, %v803_v23  ;;  %v793_v27 = vld [vmem:[%s953_s25 + $0xd0] sm:$0xf]  ;;  %v848_v28 = vld [vmem:[%s953_s25 + $0xd4] sm:$0xf0]  ;;  %v831_v29 = vld [vmem:[%s953_s25 + $0x54] sm:$0xf]  ;;  %v730_v30 = vor.u32 %v832_v25, %v729_v24 }
  0x1e   : > { %486 = vmatpush.bf16.msra.mxu0 %v738_v17  ;;  %v731_v31 = vld [vmem:[%s953_s25 + $0x58] sm:$0xf0]  ;;  %v847_v32 = vld [vmem:[%s953_s25 + $0xd4] sm:$0xf]  ;;  %v794_v34 = vor.u32 %v848_v28, %v793_v27  ;;  %v721_v36 = vld [vmem:[%s953_s25 + $0x40] sm:$0xf] }
  0x1f   : > { %v795_v33 = vld [vmem:[%s953_s25 + $0xd8] sm:$0xf0]  ;;  %499 = vmatpush.bf16.msra.mxu1 %v802_v18  ;;  %512 = vmatpush.bf16.msra.mxu2 %v742_v22  ;;  %v734_v35 = vor.u32 %v831_v29, %v731_v31  ;;  %v830_v37 = vld [vmem:[%s953_s25 + $0x44] sm:$0xf0]  ;;  %v785_v38 = vld [vmem:[%s953_s25 + $0xc0] sm:$0xf] }
  0x20   : > { %525 = vmatpush.bf16.msra.mxu3 %v806_v26  ;;  %v798_v39 = vor.u32 %v847_v32, %v795_v33  ;;  %v846_v40 = vld [vmem:[%s953_s25 + $0xc4] sm:$0xf0]  ;;  %v829_v41 = vld [vmem:[%s953_s25 + $0x44] sm:$0xf]  ;;  %v723_v42 = vld [vmem:[%s953_s25 + $0x48] sm:$0xf0]  ;;  %v722_v45 = vor.u32 %v830_v37, %v721_v36 }
  0x21   : > { %v845_v43 = vld [vmem:[%s953_s25 + $0xc4] sm:$0xf]  ;;  %v787_v44 = vld [vmem:[%s953_s25 + $0xc8] sm:$0xf0]  ;;  %v786_v46 = vor.u32 %v846_v40, %v785_v38  ;;  %v726_v47 = vor.u32 %v829_v41, %v723_v42  ;;  %v713_v48 = vld [vmem:[%s953_s25 + $0x30] sm:$0xf] }
  0x22   : > { %487 = vmatpush.bf16.msra.mxu0 %v730_v30  ;;  %v828_v49 = vld [vmem:[%s953_s25 + $0x34] sm:$0xf0]  ;;  %v777_v50 = vld [vmem:[%s953_s25 + $0xb0] sm:$0xf]  ;;  %v790_v51 = vor.u32 %v845_v43, %v787_v44  ;;  %v827_v53 = vld [vmem:[%s953_s25 + $0x34] sm:$0xf] }
  0x23   : > { %500 = vmatpush.bf16.msra.mxu1 %v794_v34  ;;  %513 = vmatpush.bf16.msra.mxu2 %v734_v35  ;;  %v844_v52 = vld [vmem:[%s953_s25 + $0xb4] sm:$0xf0]  ;;  %v715_v54 = vld [vmem:[%s953_s25 + $0x38] sm:$0xf0]  ;;  %v843_v55 = vld [vmem:[%s953_s25 + $0xb4] sm:$0xf]  ;;  %v714_v57 = vor.u32 %v828_v49, %v713_v48 }
  0x24   : > { %526 = vmatpush.bf16.msra.mxu3 %v798_v39  ;;  %v779_v56 = vld [vmem:[%s953_s25 + $0xb8] sm:$0xf0]  ;;  %v778_v58 = vor.u32 %v844_v52, %v777_v50  ;;  %v718_v59 = vor.u32 %v827_v53, %v715_v54  ;;  %v705_v60 = vld [vmem:[%s953_s25 + $0x20] sm:$0xf]  ;;  %v826_v61 = vld [vmem:[%s953_s25 + $0x24] sm:$0xf0] }
  0x25   : > { %v769_v62 = vld [vmem:[%s953_s25 + $0xa0] sm:$0xf]  ;;  %v782_v63 = vor.u32 %v843_v55, %v779_v56  ;;  %v842_v0 = vld [vmem:[%s953_s25 + $0xa4] sm:$0xf0]  ;;  %v825_v1 = vld [vmem:[%s953_s25 + $0x24] sm:$0xf]  ;;  %v706_v5 = vor.u32 %v826_v61, %v705_v60 }
  0x26   : > { %488 = vmatpush.bf16.msra.mxu0 %v722_v45  ;;  %v707_v2 = vld [vmem:[%s953_s25 + $0x28] sm:$0xf0]  ;;  %v841_v3 = vld [vmem:[%s953_s25 + $0xa4] sm:$0xf]  ;;  %v770_v6 = vor.u32 %v842_v0, %v769_v62  ;;  %v697_v8 = vld [vmem:[%s953_s25 + $0x10] sm:$0xf] }
  0x27   : > { %501 = vmatpush.bf16.msra.mxu1 %v786_v46  ;;  %514 = vmatpush.bf16.msra.mxu2 %v726_v47  ;;  %v771_v4 = vld [vmem:[%s953_s25 + $0xa8] sm:$0xf0]  ;;  %v710_v7 = vor.u32 %v825_v1, %v707_v2  ;;  %v824_v9 = vld [vmem:[%s953_s25 + $0x14] sm:$0xf0]  ;;  %v761_v10 = vld [vmem:[%s953_s25 + $0x90] sm:$0xf] }
  0x28   : > { %527 = vmatpush.bf16.msra.mxu3 %v790_v51  ;;  %v774_v11 = vor.u32 %v841_v3, %v771_v4  ;;  %v840_v12 = vld [vmem:[%s953_s25 + $0x94] sm:$0xf0]  ;;  %v823_v13 = vld [vmem:[%s953_s25 + $0x14] sm:$0xf]  ;;  %v699_v14 = vld [vmem:[%s953_s25 + $0x18] sm:$0xf0]  ;;  %v698_v17 = vor.u32 %v824_v9, %v697_v8 }
  0x29   : > { %v839_v15 = vld [vmem:[%s953_s25 + $0x94] sm:$0xf]  ;;  %v763_v16 = vld [vmem:[%s953_s25 + $0x98] sm:$0xf0]  ;;  %v285_v18 = vld [vmem:[%s948_s21] sm:$0xff]  ;;  %v762_v19 = vor.u32 %v840_v12, %v761_v10  ;;  %v702_v20 = vor.u32 %v823_v13, %v699_v14  ;;  %p815_p7 = scmp.ne.s32.totalorder %s892_s12, 8 }
  0x2a   : > { %489 = vmatpush.bf16.msra.mxu0 %v714_v57  ;;  %v689_v21 = vld [vmem:[%s953_s25] sm:$0xf]  ;;  %v822_v22 = vld [vmem:[%s953_s25 + $0x4] sm:$0xf0]  ;;  %v766_v24 = vor.u32 %v839_v15, %v763_v16  ;;  %v821_v26 = vld [vmem:[%s953_s25 + $0x4] sm:$0xf]  ;;  %v319_v30 = vunpack.c.l.b16 %v285_v18  ;;  %v320_v32 = vunpack.c.h.b16 %v285_v18 }
  0x2b   : > { %502 = vmatpush.bf16.msra.mxu1 %v778_v58  ;;  %515 = vmatpush.bf16.msra.mxu2 %v718_v59  ;;  %v753_v23 = vld [vmem:[%s953_s25 + $0x80] sm:$0xf]  ;;  %v838_v25 = vld [vmem:[%s953_s25 + $0x84] sm:$0xf0]  ;;  %v691_v27 = vld [vmem:[%s953_s25 + $0x8] sm:$0xf0]  ;;  %v690_v31 = vor.u32 %v822_v22, %v689_v21 }
  0x2c   : > { %528 = vmatpush.bf16.msra.mxu3 %v782_v63  ;;  %v837_v28 = vld [vmem:[%s953_s25 + $0x84] sm:$0xf]  ;;  %v755_v29 = vld [vmem:[%s953_s25 + $0x88] sm:$0xf0]  ;;  %v754_v33 = vor.u32 %v838_v25, %v753_v23  ;;  %v694_v34 = vor.u32 %v821_v26, %v691_v27  ;;  %v321_v36 = vpack.c.b16 %v319_v30, %v319_v30  ;;  %v322_v37 = vpack.c.b16 %v320_v32, %v320_v32 }
  0x2d   : > { %v758_v35 = vor.u32 %v837_v28, %v755_v29  ;;  %v283_v39 = vld [vmem:[#allocation2] sm:$0xff]  ;;  %v284_v44 = vld [vmem:[#allocation2 + $0x8] sm:$0xff] }
  0x2e   : > { %490 = vmatpush.bf16.msra.mxu0 %v706_v5 }
  0x2f   : > { %503 = vmatpush.bf16.msra.mxu1 %v770_v6  ;;  %516 = vmatpush.bf16.msra.mxu2 %v710_v7 }
  0x30   : > { %529 = vmatpush.bf16.msra.mxu3 %v774_v11 }
  0x32   : > { %491 = vmatpush.bf16.msra.mxu0 %v698_v17 }
  0x33   : > { %504 = vmatpush.bf16.msra.mxu1 %v762_v19  ;;  %517 = vmatpush.bf16.msra.mxu2 %v702_v20 }
  0x34   : > { %530 = vmatpush.bf16.msra.mxu3 %v766_v24 }
  0x36   : > { %492 = vmatpush.bf16.msra.mxu0 %v690_v31 }
  0x37   : > { %505 = vmatpush.bf16.msra.mxu1 %v754_v33  ;;  %518 = vmatpush.bf16.msra.mxu2 %v694_v34 }
  0x38   : > { %531 = vmatpush.bf16.msra.mxu3 %v758_v35 }
  0x39   : > { %493 = vmatmul.bf16.vlgmr.msra.gmra.mxu0 %v321_v36 }
  0x3a   : > { %506 = vmatmul.bf16.vlgmr.msra.gmra.mxu1 %v322_v37  ;;  %519 = vmatmul.bf16.vlgmr.msra.gmra.mxu2 %v321_v36 }
  0x3b   : > { %532 = vmatmul.bf16.vlgmr.msra.gmra.mxu3 %v322_v37 }
  0xb6   : > { %v494_v38 = vpop.f32.mrf.mxu0 }
  0xb7   : > { %v507_v40 = vpop.f32.mrf.mxu1 }
  0xb8   : > { %v508_v41 = vadd.f32 %v507_v40, %v494_v38 }
  0xba   : > { %v537_v42 = vadd.f32 %v508_v41, %v283_v39 }
  0xbc   : > { %539 = vst [vmem:[#allocation2] sm:$0xff] %v537_v42 }
  0xbd   : > { %v520_v43 = vpop.f32.mrf.mxu2 }
  0xbe   : > { %v533_v45 = vpop.f32.mrf.mxu3  ;;  %v496_v46 = vpop.f32.mrf.mxu0 }
  0xbf   : > { %v534_v47 = vadd.f32 %v533_v45, %v520_v43  ;;  %v509_v48 = vpop.f32.mrf.mxu1 }
  0xc1   : > { %v538_v49 = vadd.f32 %v534_v47, %v284_v44 }
  0xc2   : > { %544 = sbr.rel (%p815_p7) target bundleno = 210 (0xd2), region = 40 }
  0xc3   : > { %540 = vst [vmem:[#allocation2 + $0x8] sm:$0xff] %v538_v49 }
  0xc5   : > { %v522_v50 = vpop.f32.mrf.mxu2 }
  0xc6   : > { %v535_v51 = vpop.f32.mrf.mxu3 }
  0xc7   : > { %v545_v52 = vld [vmem:[#allocation2] sm:$0xff] }
  0xc8   : > { %v547_v54 = vld [vmem:[%s1039_s2] sm:$0x3] }
  0xc9   : > { %v549_v55 = vperm.slane %v547_v54, 0  ;;  %v550_v56 = vperm.slane %v547_v54, 1 }
  0xca   : > { %v546_v53 = vld [vmem:[#allocation2 + $0x8] sm:$0xff] }
  0xcb   : > { %v553_v57 = vadd.f32 %v549_v55, %v545_v52  ;;  %v554_v58 = vadd.f32 %v550_v56, %v546_v53 }
  0xcd   : > { %v555_v59 = vmax.f32 %v553_v57, 0.0  ;;  %v556_v60 = vmax.f32 %v554_v58, 0.0 }
  0xcf   : > { %v557_v61 = vpack.c.bf16 %v556_v60, %v555_v59 }
  0xd1   : > { %558 = vst [vmem:[%s1040_s3] sm:$0xff] %v557_v61 }
  0xd2 PF: > { %s13_s14 = sadd.s32 1, %s900_s14   ;;  %s1041_s12 = smov %s896_s13 }
  0xd3   : > { %p10_p8 = scmp.ge.s32.totalorder %s13_s14, 11   ;;  %s1042_s13 = smov %s1044_s15 }
  0xd5   :  { %12 = sbr.rel (!%p10_p8) target bundleno = 2 (0x2), region = 76 }

// kernel: _lambda_.36
= control target key start
LH: loop header
LB: loop body
LE: loop exit
PB: predicated region body
PF: predicated region fallthrough
CT: control target
= control target key end

     0   :  { %s1683_s12 = smov 0   ;;  %s1685_s13 = smov 0   ;;  %s2074_s0 = inlined_call_operand.vmem [shape: bf16[8,4608], index: 0, kind: input, shape index: {}]   ;;  %s2075_s1 = inlined_call_operand.vmem [shape: bf16[4608,512], index: 1, kind: input, shape index: {}]   ;;  %s2076_s2 = inlined_call_operand.vmem [shape: f32[1,512], index: 2, kind: input, shape index: {}]   ;;  %s2077_s3 = inlined_call_operand.vmem [shape: bf16[8,512], index: 3, kind: output, shape index: {}]  }
   0x1   :  { %s1687_s14 = smov 0   ;;  %s1689_s15 = smov 0  }
   0x2   :  { %s1691_s16 = smov 0   ;;  %s1693_s17 = smov 0  }
   0x3   :  { %s1695_s18 = smov 0  }
   0x4 LB: > { %s25_s19 = sadd.s32 1, %s1652_s16  ;;  %s28_s20 = sadd.s32 1, %s1656_s17  ;;  %s1660_s18 = sphi %s1695_s18, %s13_s18   ;;  %s1656_s17 = sphi %s1693_s17, %s2083_s17   ;;  %s1652_s16 = sphi %s1691_s16, %s2082_s16   ;;  %s1648_s15 = sphi %s1689_s15, %s2081_s15   ;;  %s1644_s14 = sphi %s1687_s14, %s2080_s14   ;;  %s1640_s13 = sphi %s1685_s13, %s2079_s13   ;;  %s1636_s12 = sphi %s1683_s12, %s2078_s12  }
   0x5   : > { %p26_p0 = scmp.ge.s32.totalorder %s25_s19, 9  ;;  %p76_p1 = scmp.ne.s32.totalorder %s1640_s13, %s1636_s12 }
   0x6   : > { %p77_p2 = scmp.eq.s32.totalorder %s1660_s18, 0  ;;  %s69_s24 = sadd.s32 1, %s1640_s13 }
   0x7   : > { %s2085_s19 = smov (%p26_p0, %s25_s19), 0  ;;  %s2087_s20 = smov (!%p26_p0, %s28_s20), %s1656_s17 }
   0x8   : > { %p78_p3 = por %p77_p2, %p76_p1  ;;  %p30_p4 = scmp.ge.s32.totalorder %s2087_s20, 2 }
   0x9   : > { %s64_s21 = ssub.s32 %s1652_s16, %s2085_s19  ;;  %p1211_p6 = scmp.ge.s32.totalorder %s1660_s18, 18 }
   0xa   : > { %s2089_s20 = smov (%p30_p4, %s2087_s20), 0 }
   0xb   : > { %s65_s22 = ssub.s32 %s1656_s17, %s2089_s20  ;;  %156 = sbr.rel (%p1211_p6) target bundleno = 87 (0x57), region = 16 }
   0xc   : > { %s66_s23 = sor.u32 %s65_s22, %s64_s21 }
   0xd   : > { %p67_p5 = scmp.eq.s32.totalorder %s66_s23, 0 }
   0xf   : > { %s1734_s25 = scalar_select %p67_p5, %s1640_s13, %s69_s24  }
  0x10   : > { %172 = sbr.rel (!%p78_p3) target bundleno = 87 (0x57), region = 24  ;;  %s174_s26 = sand.u32 (%p78_p3), 1, %s1640_s13  }
  0x11   : > { %s1214_s27 = sshll.u32 (%p78_p3), %s1656_s17, 1  ;;  %s1212_s28 = sshll.u32 (%p78_p3), %s174_s26, 9 }
  0x12   : > { %s1484_s29 = sshll.u32 (%p78_p3), %s1652_s16, 8  ;;  %s1748_s8 = scalar_lea.vmem (%p78_p3), [#allocation3], %s1212_s28 }
  0x13   : > { %s180_s30 = sadd.s32 (%p78_p3), %s1484_s29, %s1214_s27 }
  0x14   : > { %s1216_s4 = sshll.u32 (%p78_p3), %s180_s30, 2 }
  0x15   : > { %s1743_s7 = scalar_lea.vmem %s2075_s1, %s1216_s4 }
  0x16   : > { %v337_v0 = vld [vmem:[%s1743_s7] sm:$0xff]  ;;  %v339_v1 = vld [vmem:[%s1743_s7 + $0x10] sm:$0xff] }
  0x17   : > { %v341_v2 = vld [vmem:[%s1743_s7 + $0x20] sm:$0xff]  ;;  %338 = vst [vmem:[%s1748_s8] sm:$0xff] %v337_v0  ;;  %v343_v3 = vld [vmem:[%s1743_s7 + $0x30] sm:$0xff] }
  0x18   : > { %340 = vst [vmem:[%s1748_s8 + $0x8] sm:$0xff] %v339_v1  ;;  %v345_v4 = vld [vmem:[%s1743_s7 + $0x40] sm:$0xff]  ;;  %v347_v5 = vld [vmem:[%s1743_s7 + $0x50] sm:$0xff] }
  0x19   : > { %342 = vst [vmem:[%s1748_s8 + $0x10] sm:$0xff] %v341_v2  ;;  %v349_v6 = vld [vmem:[%s1743_s7 + $0x60] sm:$0xff]  ;;  %v351_v7 = vld [vmem:[%s1743_s7 + $0x70] sm:$0xff] }
  0x1a   : > { %344 = vst [vmem:[%s1748_s8 + $0x18] sm:$0xff] %v343_v3  ;;  %v353_v8 = vld [vmem:[%s1743_s7 + $0x80] sm:$0xff]  ;;  %v355_v9 = vld [vmem:[%s1743_s7 + $0x90] sm:$0xff] }
  0x1b   : > { %346 = vst [vmem:[%s1748_s8 + $0x20] sm:$0xff] %v345_v4  ;;  %v357_v10 = vld [vmem:[%s1743_s7 + $0xa0] sm:$0xff]  ;;  %v359_v11 = vld [vmem:[%s1743_s7 + $0xb0] sm:$0xff] }
  0x1c   : > { %348 = vst [vmem:[%s1748_s8 + $0x28] sm:$0xff] %v347_v5  ;;  %v361_v12 = vld [vmem:[%s1743_s7 + $0xc0] sm:$0xff]  ;;  %v363_v13 = vld [vmem:[%s1743_s7 + $0xd0] sm:$0xff] }
  0x1d   : > { %350 = vst [vmem:[%s1748_s8 + $0x30] sm:$0xff] %v349_v6  ;;  %v365_v14 = vld [vmem:[%s1743_s7 + $0xe0] sm:$0xff]  ;;  %v367_v15 = vld [vmem:[%s1743_s7 + $0xf0] sm:$0xff] }
  0x1e   : > { %352 = vst [vmem:[%s1748_s8 + $0x38] sm:$0xff] %v351_v7  ;;  %v369_v16 = vld [vmem:[%s1743_s7 + $0x100] sm:$0xff]  ;;  %v371_v17 = vld [vmem:[%s1743_s7 + $0x110] sm:$0xff] }
  0x1f   : > { %354 = vst [vmem:[%s1748_s8 + $0x40] sm:$0xff] %v353_v8  ;;  %v373_v18 = vld [vmem:[%s1743_s7 + $0x120] sm:$0xff]  ;;  %v375_v19 = vld [vmem:[%s1743_s7 + $0x130] sm:$0xff] }
  0x20   : > { %356 = vst [vmem:[%s1748_s8 + $0x48] sm:$0xff] %v355_v9  ;;  %v377_v20 = vld [vmem:[%s1743_s7 + $0x140] sm:$0xff]  ;;  %v379_v21 = vld [vmem:[%s1743_s7 + $0x150] sm:$0xff] }
  0x21   : > { %358 = vst [vmem:[%s1748_s8 + $0x50] sm:$0xff] %v357_v10  ;;  %v381_v22 = vld [vmem:[%s1743_s7 + $0x160] sm:$0xff]  ;;  %v383_v23 = vld [vmem:[%s1743_s7 + $0x170] sm:$0xff] }
  0x22   : > { %360 = vst [vmem:[%s1748_s8 + $0x58] sm:$0xff] %v359_v11  ;;  %v385_v24 = vld [vmem:[%s1743_s7 + $0x180] sm:$0xff]  ;;  %v387_v25 = vld [vmem:[%s1743_s7 + $0x190] sm:$0xff] }
  0x23   : > { %362 = vst [vmem:[%s1748_s8 + $0x60] sm:$0xff] %v361_v12  ;;  %v389_v26 = vld [vmem:[%s1743_s7 + $0x1a0] sm:$0xff]  ;;  %v391_v27 = vld [vmem:[%s1743_s7 + $0x1b0] sm:$0xff] }
  0x24   : > { %364 = vst [vmem:[%s1748_s8 + $0x68] sm:$0xff] %v363_v13  ;;  %v393_v28 = vld [vmem:[%s1743_s7 + $0x1c0] sm:$0xff]  ;;  %v395_v29 = vld [vmem:[%s1743_s7 + $0x1d0] sm:$0xff] }
  0x25   : > { %366 = vst [vmem:[%s1748_s8 + $0x70] sm:$0xff] %v365_v14  ;;  %v397_v30 = vld [vmem:[%s1743_s7 + $0x1e0] sm:$0xff]  ;;  %v399_v31 = vld [vmem:[%s1743_s7 + $0x1f0] sm:$0xff] }
  0x26   : > { %368 = vst [vmem:[%s1748_s8 + $0x78] sm:$0xff] %v367_v15  ;;  %v401_v32 = vld [vmem:[%s1743_s7 + $0x200] sm:$0xff]  ;;  %v403_v33 = vld [vmem:[%s1743_s7 + $0x210] sm:$0xff] }
  0x27   : > { %370 = vst [vmem:[%s1748_s8 + $0x80] sm:$0xff] %v369_v16  ;;  %v405_v34 = vld [vmem:[%s1743_s7 + $0x220] sm:$0xff]  ;;  %v407_v35 = vld [vmem:[%s1743_s7 + $0x230] sm:$0xff] }
  0x28   : > { %372 = vst [vmem:[%s1748_s8 + $0x88] sm:$0xff] %v371_v17  ;;  %v409_v36 = vld [vmem:[%s1743_s7 + $0x240] sm:$0xff]  ;;  %v411_v37 = vld [vmem:[%s1743_s7 + $0x250] sm:$0xff] }
  0x29   : > { %374 = vst [vmem:[%s1748_s8 + $0x90] sm:$0xff] %v373_v18  ;;  %v413_v38 = vld [vmem:[%s1743_s7 + $0x260] sm:$0xff]  ;;  %v415_v39 = vld [vmem:[%s1743_s7 + $0x270] sm:$0xff] }
  0x2a   : > { %376 = vst [vmem:[%s1748_s8 + $0x98] sm:$0xff] %v375_v19  ;;  %v417_v40 = vld [vmem:[%s1743_s7 + $0x280] sm:$0xff]  ;;  %v419_v41 = vld [vmem:[%s1743_s7 + $0x290] sm:$0xff] }
  0x2b   : > { %378 = vst [vmem:[%s1748_s8 + $0xa0] sm:$0xff] %v377_v20  ;;  %v421_v42 = vld [vmem:[%s1743_s7 + $0x2a0] sm:$0xff]  ;;  %v423_v43 = vld [vmem:[%s1743_s7 + $0x2b0] sm:$0xff] }
  0x2c   : > { %380 = vst [vmem:[%s1748_s8 + $0xa8] sm:$0xff] %v379_v21  ;;  %v425_v44 = vld [vmem:[%s1743_s7 + $0x2c0] sm:$0xff]  ;;  %v427_v45 = vld [vmem:[%s1743_s7 + $0x2d0] sm:$0xff] }
  0x2d   : > { %382 = vst [vmem:[%s1748_s8 + $0xb0] sm:$0xff] %v381_v22  ;;  %v429_v46 = vld [vmem:[%s1743_s7 + $0x2e0] sm:$0xff]  ;;  %v431_v47 = vld [vmem:[%s1743_s7 + $0x2f0] sm:$0xff] }
  0x2e   : > { %384 = vst [vmem:[%s1748_s8 + $0xb8] sm:$0xff] %v383_v23  ;;  %v433_v48 = vld [vmem:[%s1743_s7 + $0x300] sm:$0xff]  ;;  %v435_v49 = vld [vmem:[%s1743_s7 + $0x310] sm:$0xff] }
  0x2f   : > { %386 = vst [vmem:[%s1748_s8 + $0xc0] sm:$0xff] %v385_v24  ;;  %v437_v50 = vld [vmem:[%s1743_s7 + $0x320] sm:$0xff]  ;;  %v439_v51 = vld [vmem:[%s1743_s7 + $0x330] sm:$0xff] }
  0x30   : > { %388 = vst [vmem:[%s1748_s8 + $0xc8] sm:$0xff] %v387_v25  ;;  %v441_v52 = vld [vmem:[%s1743_s7 + $0x340] sm:$0xff]  ;;  %v443_v53 = vld [vmem:[%s1743_s7 + $0x350] sm:$0xff] }
  0x31   : > { %390 = vst [vmem:[%s1748_s8 + $0xd0] sm:$0xff] %v389_v26  ;;  %v445_v54 = vld [vmem:[%s1743_s7 + $0x360] sm:$0xff]  ;;  %v447_v55 = vld [vmem:[%s1743_s7 + $0x370] sm:$0xff] }
  0x32   : > { %392 = vst [vmem:[%s1748_s8 + $0xd8] sm:$0xff] %v391_v27  ;;  %v449_v56 = vld [vmem:[%s1743_s7 + $0x380] sm:$0xff]  ;;  %v451_v57 = vld [vmem:[%s1743_s7 + $0x390] sm:$0xff] }
  0x33   : > { %394 = vst [vmem:[%s1748_s8 + $0xe0] sm:$0xff] %v393_v28  ;;  %v453_v58 = vld [vmem:[%s1743_s7 + $0x3a0] sm:$0xff]  ;;  %v455_v59 = vld [vmem:[%s1743_s7 + $0x3b0] sm:$0xff] }
  0x34   : > { %396 = vst [vmem:[%s1748_s8 + $0xe8] sm:$0xff] %v395_v29  ;;  %v457_v60 = vld [vmem:[%s1743_s7 + $0x3c0] sm:$0xff]  ;;  %v459_v61 = vld [vmem:[%s1743_s7 + $0x3d0] sm:$0xff] }
  0x35   : > { %398 = vst [vmem:[%s1748_s8 + $0xf0] sm:$0xff] %v397_v30  ;;  %v461_v62 = vld [vmem:[%s1743_s7 + $0x3e0] sm:$0xff]  ;;  %v463_v63 = vld [vmem:[%s1743_s7 + $0x3f0] sm:$0xff] }
  0x36   : > { %400 = vst [vmem:[%s1748_s8 + $0xf8] sm:$0xff] %v399_v31 }
  0x37   : > { %402 = vst [vmem:[%s1748_s8 + $0x100] sm:$0xff] %v401_v32 }
  0x38   : > { %404 = vst [vmem:[%s1748_s8 + $0x108] sm:$0xff] %v403_v33 }
  0x39   : > { %406 = vst [vmem:[%s1748_s8 + $0x110] sm:$0xff] %v405_v34 }
  0x3a   : > { %408 = vst [vmem:[%s1748_s8 + $0x118] sm:$0xff] %v407_v35 }
  0x3b   : > { %410 = vst [vmem:[%s1748_s8 + $0x120] sm:$0xff] %v409_v36 }
  0x3c   : > { %412 = vst [vmem:[%s1748_s8 + $0x128] sm:$0xff] %v411_v37 }
  0x3d   : > { %414 = vst [vmem:[%s1748_s8 + $0x130] sm:$0xff] %v413_v38 }
  0x3e   : > { %416 = vst [vmem:[%s1748_s8 + $0x138] sm:$0xff] %v415_v39 }
  0x3f   : > { %418 = vst [vmem:[%s1748_s8 + $0x140] sm:$0xff] %v417_v40 }
  0x40   : > { %420 = vst [vmem:[%s1748_s8 + $0x148] sm:$0xff] %v419_v41 }
  0x41   : > { %422 = vst [vmem:[%s1748_s8 + $0x150] sm:$0xff] %v421_v42 }
  0x42   : > { %424 = vst [vmem:[%s1748_s8 + $0x158] sm:$0xff] %v423_v43 }
  0x43   : > { %426 = vst [vmem:[%s1748_s8 + $0x160] sm:$0xff] %v425_v44 }
  0x44   : > { %428 = vst [vmem:[%s1748_s8 + $0x168] sm:$0xff] %v427_v45 }
  0x45   : > { %430 = vst [vmem:[%s1748_s8 + $0x170] sm:$0xff] %v429_v46 }
  0x46   : > { %432 = vst [vmem:[%s1748_s8 + $0x178] sm:$0xff] %v431_v47 }
  0x47   : > { %434 = vst [vmem:[%s1748_s8 + $0x180] sm:$0xff] %v433_v48 }
  0x48   : > { %436 = vst [vmem:[%s1748_s8 + $0x188] sm:$0xff] %v435_v49 }
  0x49   : > { %438 = vst [vmem:[%s1748_s8 + $0x190] sm:$0xff] %v437_v50 }
  0x4a   : > { %440 = vst [vmem:[%s1748_s8 + $0x198] sm:$0xff] %v439_v51 }
  0x4b   : > { %442 = vst [vmem:[%s1748_s8 + $0x1a0] sm:$0xff] %v441_v52 }
  0x4c   : > { %444 = vst [vmem:[%s1748_s8 + $0x1a8] sm:$0xff] %v443_v53 }
  0x4d   : > { %446 = vst [vmem:[%s1748_s8 + $0x1b0] sm:$0xff] %v445_v54 }
  0x4e   : > { %448 = vst [vmem:[%s1748_s8 + $0x1b8] sm:$0xff] %v447_v55 }
  0x4f   : > { %450 = vst [vmem:[%s1748_s8 + $0x1c0] sm:$0xff] %v449_v56 }
  0x50   : > { %452 = vst [vmem:[%s1748_s8 + $0x1c8] sm:$0xff] %v451_v57 }
  0x51   : > { %454 = vst [vmem:[%s1748_s8 + $0x1d0] sm:$0xff] %v453_v58 }
  0x52   : > { %456 = vst [vmem:[%s1748_s8 + $0x1d8] sm:$0xff] %v455_v59 }
  0x53   : > { %458 = vst [vmem:[%s1748_s8 + $0x1e0] sm:$0xff] %v457_v60 }
  0x54   : > { %460 = vst [vmem:[%s1748_s8 + $0x1e8] sm:$0xff] %v459_v61 }
  0x55   : > { %462 = vst [vmem:[%s1748_s8 + $0x1f0] sm:$0xff] %v461_v62 }
  0x56   : > { %464 = vst [vmem:[%s1748_s8 + $0x1f8] sm:$0xff] %v463_v63 }
  0x57 PF: > { %p1217_p7 = scmp.ge.s32.totalorder %s1660_s18, 1  ;;  %p477_p8 = scmp.lt.s32.totalorder %s1660_s18, 19 }
  0x59   : > { %p478_p9 = pnand %p1217_p7, %p477_p8 }
  0x5a   : > { %s484_s9 = sand.u32 (!%p478_p9), 1, %s1636_s12   ;;  %s1219_s10 = sshll.u32 (!%p478_p9), %s1644_s14, 2 }
  0x5b   : > { %481 = sbr.rel (%p478_p9) target bundleno = 328 (0x148), region = 66  ;;  %s1218_s11 = sshll.u32 (!%p478_p9), %s484_s9, 9 }
  0x5c   : > { %p527_p10 = scmp.lt.s32.totalorder (!%p478_p9), %s1219_s10, 35  ;;  %s1221_s21 = sshll.u32 (!%p478_p9), %s1648_s15, 1 }
  0x5d   : > { %p537_p11 = scmp.lt.s32.totalorder (!%p478_p9), %s1221_s21, 3  ;;  %s1897_s5 = scalar_lea.vmem (!%p478_p9), [#allocation3], %s1218_s11 }
  0x5e   : > { %p1224_p12 = scmp.ne.s32.totalorder (!%p478_p9), %s1644_s14, 0 }
  0x60   : > { %s2091_s10 = smov (!%p527_p10, %s1219_s10), 35  ;;  %s2093_s21 = smov (!%p537_p11, %s1221_s21), 3 }
  0x61   : > { %s1220_s22 = sshll.u32 %s2091_s10, 2  ;;  %s539_s12 = scalar_lea.vmem %s2076_s2, %s2093_s21 }
  0x62   : > { %s1883_s26 = scalar_lea.vmem %s2074_s0, %s1220_s22  ;;  %s1223_s29 = sshll.u32 %s2093_s21, 2 }
  0x63   : > { %s1895_s15 = scalar_lea.vmem %s2077_s3, %s1223_s29  ;;  %554 = sbr.rel (%p1224_p12) target bundleno = 107 (0x6b), region = 74 }
  0x68   : > { %v1662_v0 = vmov 0.0  }
  0x69   : > { %555 = vst [vmem:[#allocation2] sm:$0xff] %v1662_v0 }
  0x6a   : > { %556 = vst [vmem:[#allocation2 + $0x8] sm:$0xff] %v1662_v0 }
  0x6b PF: > { %v1283_v1 = vld [vmem:[%s1897_s5 + $0x70] sm:$0xf]  ;;  %v1500_v2 = vld [vmem:[%s1897_s5 + $0x74] sm:$0xf0]  ;;  %v1275_v12 = vld [vmem:[%s1897_s5 + $0x60] sm:$0xf] }
  0x6c   : > { %v1347_v3 = vld [vmem:[%s1897_s5 + $0xf0] sm:$0xf]  ;;  %v1284_v4 = vor.u32 %v1500_v2, %v1283_v1  ;;  %v1516_v5 = vld [vmem:[%s1897_s5 + $0xf4] sm:$0xf0]  ;;  %v1498_v14 = vld [vmem:[%s1897_s5 + $0x64] sm:$0xf0] }
  0x6d   : > { %v1411_v6 = vld [vmem:[%s1897_s5 + $0x170] sm:$0xf]  ;;  %v1532_v7 = vld [vmem:[%s1897_s5 + $0x174] sm:$0xf0]  ;;  %v1348_v8 = vor.u32 %v1516_v5, %v1347_v3  ;;  %v1339_v15 = vld [vmem:[%s1897_s5 + $0xe0] sm:$0xf]  ;;  %v1276_v17 = vor.u32 %v1498_v14, %v1275_v12 }
  0x6e   : > { %v1412_v9 = vor.u32 %v1532_v7, %v1411_v6  ;;  %v1475_v10 = vld [vmem:[%s1897_s5 + $0x1f0] sm:$0xf]  ;;  %v1548_v11 = vld [vmem:[%s1897_s5 + $0x1f4] sm:$0xf0]  ;;  %959 = vmatpush.bf16.msra.mxu0 %v1284_v4  ;;  %v1514_v16 = vld [vmem:[%s1897_s5 + $0xe4] sm:$0xf0] }
  0x6f   : > { %v1476_v13 = vor.u32 %v1548_v11, %v1475_v10  ;;  %972 = vmatpush.bf16.msra.mxu1 %v1348_v8  ;;  %v1340_v18 = vor.u32 %v1514_v16, %v1339_v15  ;;  %v1403_v19 = vld [vmem:[%s1897_s5 + $0x160] sm:$0xf]  ;;  %v1530_v20 = vld [vmem:[%s1897_s5 + $0x164] sm:$0xf0]  ;;  %v1267_v24 = vld [vmem:[%s1897_s5 + $0x50] sm:$0xf] }
  0x70   : > { %985 = vmatpush.bf16.msra.mxu2 %v1412_v9  ;;  %v1467_v21 = vld [vmem:[%s1897_s5 + $0x1e0] sm:$0xf]  ;;  %v1404_v22 = vor.u32 %v1530_v20, %v1403_v19  ;;  %v1546_v23 = vld [vmem:[%s1897_s5 + $0x1e4] sm:$0xf0]  ;;  %v1496_v25 = vld [vmem:[%s1897_s5 + $0x54] sm:$0xf0] }
  0x71   : > { %998 = vmatpush.bf16.msra.mxu3 %v1476_v13  ;;  %v1468_v26 = vor.u32 %v1546_v23, %v1467_v21  ;;  %v1331_v27 = vld [vmem:[%s1897_s5 + $0xd0] sm:$0xf]  ;;  %v1512_v28 = vld [vmem:[%s1897_s5 + $0xd4] sm:$0xf0]  ;;  %v1268_v30 = vor.u32 %v1496_v25, %v1267_v24  ;;  %v1259_v36 = vld [vmem:[%s1897_s5 + $0x40] sm:$0xf] }
  0x72   : > { %v1395_v29 = vld [vmem:[%s1897_s5 + $0x150] sm:$0xf]  ;;  %960 = vmatpush.bf16.msra.mxu0 %v1276_v17  ;;  %v1528_v31 = vld [vmem:[%s1897_s5 + $0x154] sm:$0xf0]  ;;  %v1332_v34 = vor.u32 %v1512_v28, %v1331_v27  ;;  %v1494_v37 = vld [vmem:[%s1897_s5 + $0x44] sm:$0xf0] }
  0x73   : > { %v1459_v32 = vld [vmem:[%s1897_s5 + $0x1d0] sm:$0xf]  ;;  %v1544_v33 = vld [vmem:[%s1897_s5 + $0x1d4] sm:$0xf0]  ;;  %973 = vmatpush.bf16.msra.mxu1 %v1340_v18  ;;  %v1396_v35 = vor.u32 %v1528_v31, %v1395_v29  ;;  %v1323_v38 = vld [vmem:[%s1897_s5 + $0xc0] sm:$0xf]  ;;  %v1260_v45 = vor.u32 %v1494_v37, %v1259_v36 }
  0x74   : > { %986 = vmatpush.bf16.msra.mxu2 %v1404_v22  ;;  %v1460_v39 = vor.u32 %v1544_v33, %v1459_v32  ;;  %v1510_v40 = vld [vmem:[%s1897_s5 + $0xc4] sm:$0xf0]  ;;  %v1387_v41 = vld [vmem:[%s1897_s5 + $0x140] sm:$0xf]  ;;  %v1251_v48 = vld [vmem:[%s1897_s5 + $0x30] sm:$0xf] }
  0x75   : > { %999 = vmatpush.bf16.msra.mxu3 %v1468_v26  ;;  %v1526_v42 = vld [vmem:[%s1897_s5 + $0x144] sm:$0xf0]  ;;  %v1451_v43 = vld [vmem:[%s1897_s5 + $0x1c0] sm:$0xf]  ;;  %v1324_v46 = vor.u32 %v1510_v40, %v1323_v38  ;;  %v1492_v49 = vld [vmem:[%s1897_s5 + $0x34] sm:$0xf0] }
  0x76   : > { %v1542_v44 = vld [vmem:[%s1897_s5 + $0x1c4] sm:$0xf0]  ;;  %961 = vmatpush.bf16.msra.mxu0 %v1268_v30  ;;  %v1388_v47 = vor.u32 %v1526_v42, %v1387_v41  ;;  %v1315_v50 = vld [vmem:[%s1897_s5 + $0xb0] sm:$0xf]  ;;  %v1508_v52 = vld [vmem:[%s1897_s5 + $0xb4] sm:$0xf0]  ;;  %v1252_v57 = vor.u32 %v1492_v49, %v1251_v48 }
  0x77   : > { %974 = vmatpush.bf16.msra.mxu1 %v1332_v34  ;;  %v1452_v51 = vor.u32 %v1542_v44, %v1451_v43  ;;  %v1379_v53 = vld [vmem:[%s1897_s5 + $0x130] sm:$0xf]  ;;  %v1524_v54 = vld [vmem:[%s1897_s5 + $0x134] sm:$0xf0]  ;;  %v1316_v58 = vor.u32 %v1508_v52, %v1315_v50  ;;  %v1243_v60 = vld [vmem:[%s1897_s5 + $0x20] sm:$0xf] }
  0x78   : > { %987 = vmatpush.bf16.msra.mxu2 %v1396_v35  ;;  %v1443_v55 = vld [vmem:[%s1897_s5 + $0x1b0] sm:$0xf]  ;;  %v1540_v56 = vld [vmem:[%s1897_s5 + $0x1b4] sm:$0xf0]  ;;  %v1380_v59 = vor.u32 %v1524_v54, %v1379_v53  ;;  %v1490_v61 = vld [vmem:[%s1897_s5 + $0x24] sm:$0xf0] }
  0x79   : > { %1000 = vmatpush.bf16.msra.mxu3 %v1460_v39  ;;  %v1307_v62 = vld [vmem:[%s1897_s5 + $0xa0] sm:$0xf]  ;;  %v1444_v63 = vor.u32 %v1540_v56, %v1443_v55  ;;  %v1506_v0 = vld [vmem:[%s1897_s5 + $0xa4] sm:$0xf0]  ;;  %v1244_v5 = vor.u32 %v1490_v61, %v1243_v60  ;;  %v1235_v8 = vld [vmem:[%s1897_s5 + $0x10] sm:$0xf] }
  0x7a   : > { %962 = vmatpush.bf16.msra.mxu0 %v1260_v45  ;;  %v1371_v1 = vld [vmem:[%s1897_s5 + $0x120] sm:$0xf]  ;;  %v1522_v2 = vld [vmem:[%s1897_s5 + $0x124] sm:$0xf0]  ;;  %v1308_v6 = vor.u32 %v1506_v0, %v1307_v62  ;;  %v1488_v9 = vld [vmem:[%s1897_s5 + $0x14] sm:$0xf0] }
  0x7b   : > { %975 = vmatpush.bf16.msra.mxu1 %v1324_v46  ;;  %v1435_v3 = vld [vmem:[%s1897_s5 + $0x1a0] sm:$0xf]  ;;  %v1538_v4 = vld [vmem:[%s1897_s5 + $0x1a4] sm:$0xf0]  ;;  %v1372_v7 = vor.u32 %v1522_v2, %v1371_v1  ;;  %v1299_v10 = vld [vmem:[%s1897_s5 + $0x90] sm:$0xf]  ;;  %v1236_v17 = vor.u32 %v1488_v9, %v1235_v8 }
  0x7c   : > { %988 = vmatpush.bf16.msra.mxu2 %v1388_v47  ;;  %v1436_v11 = vor.u32 %v1538_v4, %v1435_v3  ;;  %v1504_v12 = vld [vmem:[%s1897_s5 + $0x94] sm:$0xf0]  ;;  %v1363_v13 = vld [vmem:[%s1897_s5 + $0x110] sm:$0xf]  ;;  %v1227_v18 = vld [vmem:[%s1897_s5] sm:$0xf] }
  0x7d   : > { %1001 = vmatpush.bf16.msra.mxu3 %v1452_v51  ;;  %v1520_v14 = vld [vmem:[%s1897_s5 + $0x114] sm:$0xf0]  ;;  %v1427_v15 = vld [vmem:[%s1897_s5 + $0x190] sm:$0xf]  ;;  %v1486_v19 = vld [vmem:[%s1897_s5 + $0x4] sm:$0xf0]  ;;  %v1300_v21 = vor.u32 %v1504_v12, %v1299_v10 }
  0x7e   : > { %963 = vmatpush.bf16.msra.mxu0 %v1252_v57  ;;  %v1536_v16 = vld [vmem:[%s1897_s5 + $0x194] sm:$0xf0]  ;;  %v1291_v20 = vld [vmem:[%s1897_s5 + $0x80] sm:$0xf]  ;;  %v1364_v22 = vor.u32 %v1520_v14, %v1363_v13  ;;  %v1502_v23 = vld [vmem:[%s1897_s5 + $0x84] sm:$0xf0]  ;;  %v1228_v33 = vor.u32 %v1486_v19, %v1227_v18 }
  0x7f   : > { %976 = vmatpush.bf16.msra.mxu1 %v1316_v58  ;;  %v1355_v24 = vld [vmem:[%s1897_s5 + $0x100] sm:$0xf]  ;;  %v1518_v25 = vld [vmem:[%s1897_s5 + $0x104] sm:$0xf0]  ;;  %v1428_v26 = vor.u32 %v1536_v16, %v1427_v15  ;;  %v1499_v29 = vld [vmem:[%s1897_s5 + $0x74] sm:$0xf]  ;;  %v1292_v38 = vor.u32 %v1502_v23, %v1291_v20 }
  0x80   : > { %989 = vmatpush.bf16.msra.mxu2 %v1380_v59  ;;  %v1419_v27 = vld [vmem:[%s1897_s5 + $0x180] sm:$0xf]  ;;  %v1534_v28 = vld [vmem:[%s1897_s5 + $0x184] sm:$0xf0]  ;;  %v1285_v30 = vld [vmem:[%s1897_s5 + $0x78] sm:$0xf0]  ;;  %v1356_v39 = vor.u32 %v1518_v25, %v1355_v24 }
  0x81   : > { %1002 = vmatpush.bf16.msra.mxu3 %v1444_v63  ;;  %v1515_v31 = vld [vmem:[%s1897_s5 + $0xf4] sm:$0xf]  ;;  %v560_v32 = vld [vmem:[%s1883_s26 + $0x8] sm:$0xff]  ;;  %v1420_v43 = vor.u32 %v1534_v28, %v1419_v27  ;;  %v1288_v44 = vor.u32 %v1499_v29, %v1285_v30  ;;  %v1497_v48 = vld [vmem:[%s1897_s5 + $0x64] sm:$0xf]  ;;  %p1481_p13 = scmp.ne.s32.totalorder %s1644_s14, 8 }
  0x82   : > { %964 = vmatpush.bf16.msra.mxu0 %v1244_v5  ;;  %v1349_v34 = vld [vmem:[%s1897_s5 + $0xf8] sm:$0xf0]  ;;  %v1531_v35 = vld [vmem:[%s1897_s5 + $0x174] sm:$0xf]  ;;  %v629_v37 = vunpack.c.l.b16 %v560_v32  ;;  %v630_v42 = vunpack.c.h.b16 %v560_v32  ;;  %v1277_v49 = vld [vmem:[%s1897_s5 + $0x68] sm:$0xf0] }
  0x83   : > { %977 = vmatpush.bf16.msra.mxu1 %v1308_v6  ;;  %v1413_v36 = vld [vmem:[%s1897_s5 + $0x178] sm:$0xf0]  ;;  %v1547_v40 = vld [vmem:[%s1897_s5 + $0x1f4] sm:$0xf]  ;;  %v1352_v46 = vor.u32 %v1515_v31, %v1349_v34  ;;  %v1513_v50 = vld [vmem:[%s1897_s5 + $0xe4] sm:$0xf]  ;;  %v1280_v62 = vor.u32 %v1497_v48, %v1277_v49 }
  0x84   : > { %990 = vmatpush.bf16.msra.mxu2 %v1372_v7  ;;  %v1477_v41 = vld [vmem:[%s1897_s5 + $0x1f8] sm:$0xf0]  ;;  %v559_v45 = vld [vmem:[%s1883_s26] sm:$0xff]  ;;  %v1416_v47 = vor.u32 %v1531_v35, %v1413_v36  ;;  %v1341_v54 = vld [vmem:[%s1897_s5 + $0xe8] sm:$0xf0]  ;;  %v1980_v57 = vpack.c.b16 %v629_v37, %v629_v37  ;;  %v1984_v60 = vpack.c.b16 %v630_v42, %v630_v42 }
  0x85   : > { %1003 = vmatpush.bf16.msra.mxu3 %v1436_v11  ;;  %v627_v51 = vunpack.c.l.b16 %v559_v45  ;;  %v628_v52 = vunpack.c.h.b16 %v559_v45  ;;  %v1480_v53 = vor.u32 %v1547_v40, %v1477_v41  ;;  %v1529_v55 = vld [vmem:[%s1897_s5 + $0x164] sm:$0xf]  ;;  %v1405_v56 = vld [vmem:[%s1897_s5 + $0x168] sm:$0xf0]  ;;  %v1344_v0 = vor.u32 %v1513_v50, %v1341_v54  ;;  %v1495_v2 = vld [vmem:[%s1897_s5 + $0x54] sm:$0xf] }
  0x86   : > { %965 = vmatpush.bf16.msra.mxu0 %v1236_v17  ;;  %v1545_v58 = vld [vmem:[%s1897_s5 + $0x1e4] sm:$0xf]  ;;  %v1469_v59 = vld [vmem:[%s1897_s5 + $0x1e8] sm:$0xf0]  ;;  %v1408_v1 = vor.u32 %v1529_v55, %v1405_v56  ;;  %v1269_v3 = vld [vmem:[%s1897_s5 + $0x58] sm:$0xf0] }
  0x87   : > { %978 = vmatpush.bf16.msra.mxu1 %v1300_v21  ;;  %v1986_v61 = vpack.c.b16 %v627_v51, %v627_v51  ;;  %v1988_v63 = vpack.c.b16 %v628_v52, %v628_v52  ;;  %v1511_v4 = vld [vmem:[%s1897_s5 + $0xd4] sm:$0xf]  ;;  %v1472_v5 = vor.u32 %v1545_v58, %v1469_v59  ;;  %v1333_v6 = vld [vmem:[%s1897_s5 + $0xd8] sm:$0xf0]  ;;  %v1272_v11 = vor.u32 %v1495_v2, %v1269_v3  ;;  %v1493_v14 = vld [vmem:[%s1897_s5 + $0x44] sm:$0xf] }
  0x88   : > { %991 = vmatpush.bf16.msra.mxu2 %v1364_v22  ;;  %v1527_v7 = vld [vmem:[%s1897_s5 + $0x154] sm:$0xf]  ;;  %v1397_v8 = vld [vmem:[%s1897_s5 + $0x158] sm:$0xf0]  ;;  %v1336_v12 = vor.u32 %v1511_v4, %v1333_v6  ;;  %v1261_v15 = vld [vmem:[%s1897_s5 + $0x48] sm:$0xf0] }
  0x89   : > { %1004 = vmatpush.bf16.msra.mxu3 %v1428_v26  ;;  %v1543_v9 = vld [vmem:[%s1897_s5 + $0x1d4] sm:$0xf]  ;;  %v1461_v10 = vld [vmem:[%s1897_s5 + $0x1d8] sm:$0xf0]  ;;  %v1400_v13 = vor.u32 %v1527_v7, %v1397_v8  ;;  %v1509_v16 = vld [vmem:[%s1897_s5 + $0xc4] sm:$0xf]  ;;  %v1264_v23 = vor.u32 %v1493_v14, %v1261_v15 }
  0x8a   : > { %966 = vmatpush.bf16.msra.mxu0 %v1228_v33  ;;  %v1464_v17 = vor.u32 %v1543_v9, %v1461_v10  ;;  %v1325_v18 = vld [vmem:[%s1897_s5 + $0xc8] sm:$0xf0]  ;;  %v1525_v19 = vld [vmem:[%s1897_s5 + $0x144] sm:$0xf]  ;;  %v1491_v26 = vld [vmem:[%s1897_s5 + $0x34] sm:$0xf] }
  0x8b   : > { %979 = vmatpush.bf16.msra.mxu1 %v1292_v38  ;;  %v1389_v20 = vld [vmem:[%s1897_s5 + $0x148] sm:$0xf0]  ;;  %v1541_v21 = vld [vmem:[%s1897_s5 + $0x1c4] sm:$0xf]  ;;  %v1328_v24 = vor.u32 %v1509_v16, %v1325_v18  ;;  %v1253_v27 = vld [vmem:[%s1897_s5 + $0x38] sm:$0xf0] }
  0x8c   : > { %992 = vmatpush.bf16.msra.mxu2 %v1356_v39  ;;  %v1453_v22 = vld [vmem:[%s1897_s5 + $0x1c8] sm:$0xf0]  ;;  %v1392_v25 = vor.u32 %v1525_v19, %v1389_v20  ;;  %v1507_v28 = vld [vmem:[%s1897_s5 + $0xb4] sm:$0xf]  ;;  %v1317_v30 = vld [vmem:[%s1897_s5 + $0xb8] sm:$0xf0]  ;;  %v1256_v35 = vor.u32 %v1491_v26, %v1253_v27 }
  0x8d   : > { %1005 = vmatpush.bf16.msra.mxu3 %v1420_v43  ;;  %967 = vmatmul.bf16.vlgmr.msra.gmra.mxu0 %v1986_v61  ;;  %v1456_v29 = vor.u32 %v1541_v21, %v1453_v22  ;;  %v1523_v31 = vld [vmem:[%s1897_s5 + $0x134] sm:$0xf]  ;;  %v1381_v32 = vld [vmem:[%s1897_s5 + $0x138] sm:$0xf0]  ;;  %v1320_v36 = vor.u32 %v1507_v28, %v1317_v30  ;;  %v1489_v38 = vld [vmem:[%s1897_s5 + $0x24] sm:$0xf] }
  0x8e   : > { %1011 = vmatpush.bf16.msrb.mxu0 %v1288_v44  ;;  %980 = vmatmul.bf16.vlgmr.msra.gmra.mxu1 %v1988_v63  ;;  %v1539_v33 = vld [vmem:[%s1897_s5 + $0x1b4] sm:$0xf]  ;;  %v1445_v34 = vld [vmem:[%s1897_s5 + $0x1b8] sm:$0xf0]  ;;  %v1384_v37 = vor.u32 %v1523_v31, %v1381_v32  ;;  %v1245_v39 = vld [vmem:[%s1897_s5 + $0x28] sm:$0xf0] }
  0x8f   : > { %1024 = vmatpush.bf16.msrb.mxu1 %v1352_v46  ;;  %993 = vmatmul.bf16.vlgmr.msra.gmra.mxu2 %v1980_v57  ;;  %v1505_v40 = vld [vmem:[%s1897_s5 + $0xa4] sm:$0xf]  ;;  %v1448_v41 = vor.u32 %v1539_v33, %v1445_v34  ;;  %v1309_v42 = vld [vmem:[%s1897_s5 + $0xa8] sm:$0xf0]  ;;  %v1487_v50 = vld [vmem:[%s1897_s5 + $0x14] sm:$0xf] }
  0x90   : > { %1037 = vmatpush.bf16.msrb.mxu2 %v1416_v47  ;;  %1006 = vmatmul.bf16.vlgmr.msra.gmra.mxu3 %v1984_v60  ;;  %v1521_v43 = vld [vmem:[%s1897_s5 + $0x124] sm:$0xf]  ;;  %v1373_v44 = vld [vmem:[%s1897_s5 + $0x128] sm:$0xf0]  ;;  %v1248_v47 = vor.u32 %v1489_v38, %v1245_v39  ;;  %v1312_v48 = vor.u32 %v1505_v40, %v1309_v42  ;;  %v1237_v51 = vld [vmem:[%s1897_s5 + $0x18] sm:$0xf0] }
  0x91   : > { %1050 = vmatpush.bf16.msrb.mxu3 %v1480_v53  ;;  %v1537_v45 = vld [vmem:[%s1897_s5 + $0x1a4] sm:$0xf]  ;;  %v1437_v46 = vld [vmem:[%s1897_s5 + $0x1a8] sm:$0xf0]  ;;  %v1376_v49 = vor.u32 %v1521_v43, %v1373_v44  ;;  %v1503_v52 = vld [vmem:[%s1897_s5 + $0x94] sm:$0xf] }
  0x92   : > { %1012 = vmatpush.bf16.msrb.mxu0 %v1280_v62  ;;  %v1440_v53 = vor.u32 %v1537_v45, %v1437_v46  ;;  %v1301_v54 = vld [vmem:[%s1897_s5 + $0x98] sm:$0xf0]  ;;  %v1519_v55 = vld [vmem:[%s1897_s5 + $0x114] sm:$0xf]  ;;  %v1240_v62 = vor.u32 %v1487_v50, %v1237_v51  ;;  %v1485_v2 = vld [vmem:[%s1897_s5 + $0x4] sm:$0xf] }
  0x93   : > { %1025 = vmatpush.bf16.msrb.mxu1 %v1344_v0  ;;  %v1365_v56 = vld [vmem:[%s1897_s5 + $0x118] sm:$0xf0]  ;;  %v1535_v58 = vld [vmem:[%s1897_s5 + $0x194] sm:$0xf]  ;;  %v1304_v0 = vor.u32 %v1503_v52, %v1301_v54  ;;  %v1229_v3 = vld [vmem:[%s1897_s5 + $0x8] sm:$0xf0] }
  0x94   : > { %1038 = vmatpush.bf16.msrb.mxu2 %v1408_v1  ;;  %v1429_v59 = vld [vmem:[%s1897_s5 + $0x198] sm:$0xf0]  ;;  %v1368_v1 = vor.u32 %v1519_v55, %v1365_v56  ;;  %v1501_v4 = vld [vmem:[%s1897_s5 + $0x84] sm:$0xf]  ;;  %v1293_v6 = vld [vmem:[%s1897_s5 + $0x88] sm:$0xf0] }
  0x95   : > { %1051 = vmatpush.bf16.msrb.mxu3 %v1472_v5  ;;  %v1432_v5 = vor.u32 %v1535_v58, %v1429_v59  ;;  %v1517_v7 = vld [vmem:[%s1897_s5 + $0x104] sm:$0xf]  ;;  %v1357_v8 = vld [vmem:[%s1897_s5 + $0x108] sm:$0xf0]  ;;  %v557_v21 = vld [vmem:[#allocation2] sm:$0xff] }
  0x96   : > { %1013 = vmatpush.bf16.msrb.mxu0 %v1272_v11  ;;  %v1533_v9 = vld [vmem:[%s1897_s5 + $0x184] sm:$0xf]  ;;  %v1421_v10 = vld [vmem:[%s1897_s5 + $0x188] sm:$0xf0]  ;;  %v1232_v11 = vor.u32 %v1485_v2, %v1229_v3  ;;  %v558_v31 = vld [vmem:[#allocation2 + $0x8] sm:$0xff] }
  0x97   : > { %1026 = vmatpush.bf16.msrb.mxu1 %v1336_v12  ;;  %v1296_v12 = vor.u32 %v1501_v4, %v1293_v6  ;;  %v1424_v14 = vor.u32 %v1533_v9, %v1421_v10 }
  0x98   : > { %1039 = vmatpush.bf16.msrb.mxu2 %v1400_v13  ;;  %v1360_v13 = vor.u32 %v1517_v7, %v1357_v8 }
  0x99   : > { %1052 = vmatpush.bf16.msrb.mxu3 %v1464_v17 }
  0x9a   : > { %1014 = vmatpush.bf16.msrb.mxu0 %v1264_v23 }
  0x9b   : > { %1027 = vmatpush.bf16.msrb.mxu1 %v1328_v24 }
  0x9c   : > { %1040 = vmatpush.bf16.msrb.mxu2 %v1392_v25 }
  0x9d   : > { %1053 = vmatpush.bf16.msrb.mxu3 %v1456_v29 }
  0x9e   : > { %1015 = vmatpush.bf16.msrb.mxu0 %v1256_v35 }
  0x9f   : > { %1028 = vmatpush.bf16.msrb.mxu1 %v1320_v36 }
  0xa0   : > { %1041 = vmatpush.bf16.msrb.mxu2 %v1384_v37 }
  0xa1   : > { %1054 = vmatpush.bf16.msrb.mxu3 %v1448_v41 }
  0xa2   : > { %1016 = vmatpush.bf16.msrb.mxu0 %v1248_v47 }
  0xa3   : > { %1029 = vmatpush.bf16.msrb.mxu1 %v1312_v48 }
  0xa4   : > { %1042 = vmatpush.bf16.msrb.mxu2 %v1376_v49 }
  0xa5   : > { %1055 = vmatpush.bf16.msrb.mxu3 %v1440_v53 }
  0xa6   : > { %1017 = vmatpush.bf16.msrb.mxu0 %v1240_v62 }
  0xa7   : > { %1030 = vmatpush.bf16.msrb.mxu1 %v1304_v0 }
  0xa8   : > { %1043 = vmatpush.bf16.msrb.mxu2 %v1368_v1 }
  0xa9   : > { %1056 = vmatpush.bf16.msrb.mxu3 %v1432_v5 }
  0xaa   : > { %1018 = vmatpush.bf16.msrb.mxu0 %v1232_v11 }
  0xab   : > { %1031 = vmatpush.bf16.msrb.mxu1 %v1296_v12 }
  0xac   : > { %1044 = vmatpush.bf16.msrb.mxu2 %v1360_v13 }
  0xad   : > { %1057 = vmatpush.bf16.msrb.mxu3 %v1424_v14  ;;  %1019 = vmatmul.bf16.vlgmr.msrb.gmra.mxu0 %v1986_v61 }
  0xae   : > { %1032 = vmatmul.bf16.vlgmr.msrb.gmra.mxu1 %v1988_v63 }
  0xaf   : > { %1045 = vmatmul.bf16.vlgmr.msrb.gmra.mxu2 %v1980_v57 }
  0xb0   : > { %1058 = vmatmul.bf16.vlgmr.msrb.gmra.mxu3 %v1984_v60 }
 0x10a   : > { %v968_v15 = vpop.f32.mrf.mxu0 }
 0x10b   : > { %v981_v16 = vpop.f32.mrf.mxu1 }
 0x10c   : > { %v982_v17 = vadd.f32 %v981_v16, %v968_v15 }
 0x112   : > { %v994_v18 = vpop.f32.mrf.mxu2  ;;  %v970_v23 = vpop.f32.mrf.mxu0 }
 0x113   : > { %v995_v19 = vadd.f32 %v994_v18, %v982_v17  ;;  %v1007_v20 = vpop.f32.mrf.mxu3  ;;  %v983_v24 = vpop.f32.mrf.mxu1 }
 0x115   : > { %v1008_v22 = vadd.f32 %v1007_v20, %v995_v19 }
 0x117   : > { %v1063_v25 = vadd.f32 %v1008_v22, %v557_v21 }
 0x119   : > { %1065 = vst [vmem:[#allocation2] sm:$0xff] %v1063_v25 }
 0x11a   : > { %v996_v26 = vpop.f32.mrf.mxu2 }
 0x11b   : > { %v1009_v61 = vpop.f32.mrf.mxu3 }
 0x12a   : > { %v1020_v27 = vpop.f32.mrf.mxu0 }
 0x12b   : > { %v1033_v63 = vpop.f32.mrf.mxu1 }
 0x12c   : > { %v1034_v28 = vadd.f32 %v1033_v63, %v1020_v27 }
 0x132   : > { %v1046_v57 = vpop.f32.mrf.mxu2  ;;  %v1022_v30 = vpop.f32.mrf.mxu0 }
 0x133   : > { %v1047_v29 = vadd.f32 %v1046_v57, %v1034_v28  ;;  %v1059_v60 = vpop.f32.mrf.mxu3  ;;  %v1035_v32 = vpop.f32.mrf.mxu1 }
 0x135   : > { %v1060_v33 = vadd.f32 %v1059_v60, %v1047_v29 }
 0x137   : > { %v1064_v34 = vadd.f32 %v1060_v33, %v558_v31  ;;  %1070 = sbr.rel (%p1481_p13) target bundleno = 328 (0x148), region = 78 }
 0x139   : > { %1066 = vst [vmem:[#allocation2 + $0x8] sm:$0xff] %v1064_v34 }
 0x13a   : > { %v1048_v35 = vpop.f32.mrf.mxu2 }
 0x13b   : > { %v1061_v36 = vpop.f32.mrf.mxu3 }
 0x13c   : > { %v1071_v37 = vld [vmem:[#allocation2] sm:$0xff] }
 0x13d   : > { %v1073_v39 = vld [vmem:[%s539_s12] sm:$0x3] }
 0x13e   : > { %v1075_v40 = vperm.slane %v1073_v39, 0  ;;  %v1076_v41 = vperm.slane %v1073_v39, 1 }
 0x140   : > { %v1072_v38 = vld [vmem:[#allocation2 + $0x8] sm:$0xff]  ;;  %v1079_v42 = vadd.f32 %v1075_v40, %v1071_v37 }
 0x141   : > { %v1080_v43 = vadd.f32 %v1076_v41, %v1072_v38 }
 0x142   : > { %v1081_v44 = vmax.f32 %v1079_v42, 0.0 }
 0x143   : > { %v1082_v45 = vmax.f32 %v1080_v43, 0.0 }
 0x145   : > { %v1083_v46 = vpack.c.bf16 %v1082_v45, %v1081_v44 }
 0x147   : > { %1084 = vst [vmem:[%s1895_s15] sm:$0xff] %v1083_v46 }
 0x148 PF: > { %s13_s18 = sadd.s32 1, %s1660_s18   ;;  %s2078_s12 = smov %s1640_s13 }
 0x149   : > { %p10_p0 = scmp.ge.s32.totalorder %s13_s18, 20   ;;  %s2079_s13 = smov %s1734_s25 }
 0x14a   : > { %s2080_s14 = smov %s1652_s16  ;;  %s2081_s15 = smov %s1656_s17 }
 0x14b   : > { %s2082_s16 = smov %s2085_s19  ;;  %s2083_s17 = smov %s2089_s20 }
 0x14c   :  { %12 = sbr.rel (!%p10_p0) target bundleno = 4 (0x4), region = 119 }

// kernel: _lambda_.33
= control target key start
LH: loop header
LB: loop body
LE: loop exit
PB: predicated region body
PF: predicated region fallthrough
CT: control target
= control target key end

     0   :  { %s1641_s12 = smov 0   ;;  %s1643_s13 = smov 0   ;;  %s1993_s0 = inlined_call_operand.vmem [shape: bf16[8,512], index: 0, kind: input, shape index: {}]   ;;  %s1994_s1 = inlined_call_operand.vmem [shape: bf16[512,1024], index: 1, kind: input, shape index: {}]   ;;  %s1995_s2 = inlined_call_operand.vmem [shape: f32[1,1024], index: 2, kind: input, shape index: {}]   ;;  %s1996_s3 = inlined_call_operand.vmem [shape: bf16[8,1024], index: 3, kind: output, shape index: {}]  }
   0x1   :  { %s1645_s14 = smov 0   ;;  %s1647_s15 = smov 0  }
   0x2   :  { %s1649_s16 = smov 0  }
   0x3 LB: > { %s28_s17 = sadd.s32 1, %s1615_s15  ;;  %p76_p1 = scmp.ne.s32.totalorder %s1607_s13, %s1603_s12  ;;  %s1619_s16 = sphi %s1649_s16, %s13_s16   ;;  %s1615_s15 = sphi %s1647_s15, %s2000_s15   ;;  %s1611_s14 = sphi %s1645_s14, %s1999_s14   ;;  %s1607_s13 = sphi %s1643_s13, %s1998_s13   ;;  %s1603_s12 = sphi %s1641_s12, %s1997_s12  }
   0x4   : > { %p30_p0 = scmp.ge.s32.totalorder %s28_s17, 4  ;;  %p77_p2 = scmp.eq.s32.totalorder %s1619_s16, 0 }
   0x5   : > { %s69_s19 = sadd.s32 1, %s1607_s13  ;;  %p1209_p5 = scmp.ge.s32.totalorder %s1619_s16, 4 }
   0x6   : > { %s2002_s17 = smov (%p30_p0, %s28_s17), 0  ;;  %p78_p3 = por %p77_p2, %p76_p1 }
   0x7   : > { %s65_s18 = ssub.s32 %s1615_s15, %s2002_s17  ;;  %169 = sbr.rel (%p1209_p5) target bundleno = 80 (0x50), region = 20 }
   0x8   : > { %p67_p4 = scmp.eq.s32.totalorder %s65_s18, 0 }
   0xa   : > { %s1676_s20 = scalar_select %p67_p4, %s1607_s13, %s69_s19  }
   0xc   : > { %172 = sbr.rel (!%p78_p3) target bundleno = 80 (0x50), region = 24  ;;  %s174_s21 = sand.u32 (%p78_p3), 1, %s1607_s13  }
   0xd   : > { %s1476_s22 = sshll.u32 (%p78_p3), %s1615_s15, 3  ;;  %s1210_s23 = sshll.u32 (%p78_p3), %s174_s21, 9 }
   0xe   : > { %s1684_s26 = scalar_lea.vmem (%p78_p3), %s1994_s1, %s1476_s22  ;;  %s1689_s27 = scalar_lea.vmem (%p78_p3), [#allocation3], %s1210_s23 }
   0xf   : > { %v337_v0 = vld [vmem:[%s1684_s26] sm:$0xff] (%p78_p3) }
  0x10   : > { %v339_v1 = vld [vmem:[%s1684_s26 + $0x20] sm:$0xff] (%p78_p3)  ;;  %338 = vst [vmem:[%s1689_s27] sm:$0xff] (%p78_p3), %v337_v0 }
  0x11   : > { %v341_v2 = vld [vmem:[%s1684_s26 + $0x40] sm:$0xff]  ;;  %340 = vst [vmem:[%s1689_s27 + $0x8] sm:$0xff] %v339_v1 }
  0x12   : > { %v343_v3 = vld [vmem:[%s1684_s26 + $0x60] sm:$0xff]  ;;  %342 = vst [vmem:[%s1689_s27 + $0x10] sm:$0xff] %v341_v2 }
  0x13   : > { %v345_v4 = vld [vmem:[%s1684_s26 + $0x80] sm:$0xff]  ;;  %344 = vst [vmem:[%s1689_s27 + $0x18] sm:$0xff] %v343_v3 }
  0x14   : > { %v347_v5 = vld [vmem:[%s1684_s26 + $0xa0] sm:$0xff]  ;;  %346 = vst [vmem:[%s1689_s27 + $0x20] sm:$0xff] %v345_v4 }
  0x15   : > { %v349_v6 = vld [vmem:[%s1684_s26 + $0xc0] sm:$0xff]  ;;  %348 = vst [vmem:[%s1689_s27 + $0x28] sm:$0xff] %v347_v5 }
  0x16   : > { %v351_v7 = vld [vmem:[%s1684_s26 + $0xe0] sm:$0xff]  ;;  %350 = vst [vmem:[%s1689_s27 + $0x30] sm:$0xff] %v349_v6 }
  0x17   : > { %v353_v8 = vld [vmem:[%s1684_s26 + $0x100] sm:$0xff]  ;;  %352 = vst [vmem:[%s1689_s27 + $0x38] sm:$0xff] %v351_v7 }
  0x18   : > { %v355_v9 = vld [vmem:[%s1684_s26 + $0x120] sm:$0xff]  ;;  %354 = vst [vmem:[%s1689_s27 + $0x40] sm:$0xff] %v353_v8 }
  0x19   : > { %v357_v10 = vld [vmem:[%s1684_s26 + $0x140] sm:$0xff]  ;;  %356 = vst [vmem:[%s1689_s27 + $0x48] sm:$0xff] %v355_v9 }
  0x1a   : > { %v359_v11 = vld [vmem:[%s1684_s26 + $0x160] sm:$0xff]  ;;  %358 = vst [vmem:[%s1689_s27 + $0x50] sm:$0xff] %v357_v10 }
  0x1b   : > { %v361_v12 = vld [vmem:[%s1684_s26 + $0x180] sm:$0xff]  ;;  %360 = vst [vmem:[%s1689_s27 + $0x58] sm:$0xff] %v359_v11 }
  0x1c   : > { %v363_v13 = vld [vmem:[%s1684_s26 + $0x1a0] sm:$0xff]  ;;  %362 = vst [vmem:[%s1689_s27 + $0x60] sm:$0xff] %v361_v12 }
  0x1d   : > { %v365_v14 = vld [vmem:[%s1684_s26 + $0x1c0] sm:$0xff]  ;;  %364 = vst [vmem:[%s1689_s27 + $0x68] sm:$0xff] %v363_v13 }
  0x1e   : > { %v367_v15 = vld [vmem:[%s1684_s26 + $0x1e0] sm:$0xff]  ;;  %366 = vst [vmem:[%s1689_s27 + $0x70] sm:$0xff] %v365_v14 }
  0x1f   : > { %v369_v16 = vld [vmem:[%s1684_s26 + $0x200] sm:$0xff]  ;;  %368 = vst [vmem:[%s1689_s27 + $0x78] sm:$0xff] %v367_v15 }
  0x20   : > { %v371_v17 = vld [vmem:[%s1684_s26 + $0x220] sm:$0xff]  ;;  %370 = vst [vmem:[%s1689_s27 + $0x80] sm:$0xff] %v369_v16 }
  0x21   : > { %v373_v18 = vld [vmem:[%s1684_s26 + $0x240] sm:$0xff]  ;;  %372 = vst [vmem:[%s1689_s27 + $0x88] sm:$0xff] %v371_v17 }
  0x22   : > { %v375_v19 = vld [vmem:[%s1684_s26 + $0x260] sm:$0xff]  ;;  %374 = vst [vmem:[%s1689_s27 + $0x90] sm:$0xff] %v373_v18 }
  0x23   : > { %v377_v20 = vld [vmem:[%s1684_s26 + $0x280] sm:$0xff]  ;;  %376 = vst [vmem:[%s1689_s27 + $0x98] sm:$0xff] %v375_v19 }
  0x24   : > { %v379_v21 = vld [vmem:[%s1684_s26 + $0x2a0] sm:$0xff]  ;;  %378 = vst [vmem:[%s1689_s27 + $0xa0] sm:$0xff] %v377_v20 }
  0x25   : > { %v381_v22 = vld [vmem:[%s1684_s26 + $0x2c0] sm:$0xff]  ;;  %380 = vst [vmem:[%s1689_s27 + $0xa8] sm:$0xff] %v379_v21 }
  0x26   : > { %v383_v23 = vld [vmem:[%s1684_s26 + $0x2e0] sm:$0xff]  ;;  %382 = vst [vmem:[%s1689_s27 + $0xb0] sm:$0xff] %v381_v22 }
  0x27   : > { %v385_v24 = vld [vmem:[%s1684_s26 + $0x300] sm:$0xff]  ;;  %384 = vst [vmem:[%s1689_s27 + $0xb8] sm:$0xff] %v383_v23 }
  0x28   : > { %v387_v25 = vld [vmem:[%s1684_s26 + $0x320] sm:$0xff]  ;;  %386 = vst [vmem:[%s1689_s27 + $0xc0] sm:$0xff] %v385_v24 }
  0x29   : > { %v389_v26 = vld [vmem:[%s1684_s26 + $0x340] sm:$0xff]  ;;  %388 = vst [vmem:[%s1689_s27 + $0xc8] sm:$0xff] %v387_v25 }
  0x2a   : > { %v391_v27 = vld [vmem:[%s1684_s26 + $0x360] sm:$0xff]  ;;  %390 = vst [vmem:[%s1689_s27 + $0xd0] sm:$0xff] %v389_v26 }
  0x2b   : > { %v393_v28 = vld [vmem:[%s1684_s26 + $0x380] sm:$0xff]  ;;  %392 = vst [vmem:[%s1689_s27 + $0xd8] sm:$0xff] %v391_v27 }
  0x2c   : > { %v395_v29 = vld [vmem:[%s1684_s26 + $0x3a0] sm:$0xff]  ;;  %394 = vst [vmem:[%s1689_s27 + $0xe0] sm:$0xff] %v393_v28 }
  0x2d   : > { %v397_v30 = vld [vmem:[%s1684_s26 + $0x3c0] sm:$0xff]  ;;  %396 = vst [vmem:[%s1689_s27 + $0xe8] sm:$0xff] %v395_v29 }
  0x2e   : > { %v399_v31 = vld [vmem:[%s1684_s26 + $0x3e0] sm:$0xff]  ;;  %398 = vst [vmem:[%s1689_s27 + $0xf0] sm:$0xff] %v397_v30 }
  0x2f   : > { %v401_v32 = vld [vmem:[%s1684_s26 + $0x400] sm:$0xff]  ;;  %400 = vst [vmem:[%s1689_s27 + $0xf8] sm:$0xff] %v399_v31 }
  0x30   : > { %v403_v33 = vld [vmem:[%s1684_s26 + $0x420] sm:$0xff]  ;;  %402 = vst [vmem:[%s1689_s27 + $0x100] sm:$0xff] %v401_v32 }
  0x31   : > { %v405_v34 = vld [vmem:[%s1684_s26 + $0x440] sm:$0xff]  ;;  %404 = vst [vmem:[%s1689_s27 + $0x108] sm:$0xff] %v403_v33 }
  0x32   : > { %v407_v35 = vld [vmem:[%s1684_s26 + $0x460] sm:$0xff]  ;;  %406 = vst [vmem:[%s1689_s27 + $0x110] sm:$0xff] %v405_v34 }
  0x33   : > { %v409_v36 = vld [vmem:[%s1684_s26 + $0x480] sm:$0xff]  ;;  %408 = vst [vmem:[%s1689_s27 + $0x118] sm:$0xff] %v407_v35 }
  0x34   : > { %v411_v37 = vld [vmem:[%s1684_s26 + $0x4a0] sm:$0xff]  ;;  %410 = vst [vmem:[%s1689_s27 + $0x120] sm:$0xff] %v409_v36 }
  0x35   : > { %v413_v38 = vld [vmem:[%s1684_s26 + $0x4c0] sm:$0xff]  ;;  %412 = vst [vmem:[%s1689_s27 + $0x128] sm:$0xff] %v411_v37 }
  0x36   : > { %v415_v39 = vld [vmem:[%s1684_s26 + $0x4e0] sm:$0xff]  ;;  %414 = vst [vmem:[%s1689_s27 + $0x130] sm:$0xff] %v413_v38 }
  0x37   : > { %v417_v40 = vld [vmem:[%s1684_s26 + $0x500] sm:$0xff]  ;;  %416 = vst [vmem:[%s1689_s27 + $0x138] sm:$0xff] %v415_v39 }
  0x38   : > { %v419_v41 = vld [vmem:[%s1684_s26 + $0x520] sm:$0xff]  ;;  %418 = vst [vmem:[%s1689_s27 + $0x140] sm:$0xff] %v417_v40 }
  0x39   : > { %v421_v42 = vld [vmem:[%s1684_s26 + $0x540] sm:$0xff]  ;;  %420 = vst [vmem:[%s1689_s27 + $0x148] sm:$0xff] %v419_v41 }
  0x3a   : > { %v423_v43 = vld [vmem:[%s1684_s26 + $0x560] sm:$0xff]  ;;  %422 = vst [vmem:[%s1689_s27 + $0x150] sm:$0xff] %v421_v42 }
  0x3b   : > { %v425_v44 = vld [vmem:[%s1684_s26 + $0x580] sm:$0xff]  ;;  %424 = vst [vmem:[%s1689_s27 + $0x158] sm:$0xff] %v423_v43 }
  0x3c   : > { %v427_v45 = vld [vmem:[%s1684_s26 + $0x5a0] sm:$0xff]  ;;  %426 = vst [vmem:[%s1689_s27 + $0x160] sm:$0xff] %v425_v44 }
  0x3d   : > { %v429_v46 = vld [vmem:[%s1684_s26 + $0x5c0] sm:$0xff]  ;;  %428 = vst [vmem:[%s1689_s27 + $0x168] sm:$0xff] %v427_v45 }
  0x3e   : > { %v431_v47 = vld [vmem:[%s1684_s26 + $0x5e0] sm:$0xff]  ;;  %430 = vst [vmem:[%s1689_s27 + $0x170] sm:$0xff] %v429_v46 }
  0x3f   : > { %v433_v48 = vld [vmem:[%s1684_s26 + $0x600] sm:$0xff]  ;;  %432 = vst [vmem:[%s1689_s27 + $0x178] sm:$0xff] %v431_v47 }
  0x40   : > { %v435_v49 = vld [vmem:[%s1684_s26 + $0x620] sm:$0xff]  ;;  %434 = vst [vmem:[%s1689_s27 + $0x180] sm:$0xff] %v433_v48 }
  0x41   : > { %v437_v50 = vld [vmem:[%s1684_s26 + $0x640] sm:$0xff]  ;;  %436 = vst [vmem:[%s1689_s27 + $0x188] sm:$0xff] %v435_v49 }
  0x42   : > { %v439_v51 = vld [vmem:[%s1684_s26 + $0x660] sm:$0xff]  ;;  %438 = vst [vmem:[%s1689_s27 + $0x190] sm:$0xff] %v437_v50 }
  0x43   : > { %v441_v52 = vld [vmem:[%s1684_s26 + $0x680] sm:$0xff]  ;;  %440 = vst [vmem:[%s1689_s27 + $0x198] sm:$0xff] %v439_v51 }
  0x44   : > { %v443_v53 = vld [vmem:[%s1684_s26 + $0x6a0] sm:$0xff]  ;;  %442 = vst [vmem:[%s1689_s27 + $0x1a0] sm:$0xff] %v441_v52 }
  0x45   : > { %v445_v54 = vld [vmem:[%s1684_s26 + $0x6c0] sm:$0xff]  ;;  %444 = vst [vmem:[%s1689_s27 + $0x1a8] sm:$0xff] %v443_v53 }
  0x46   : > { %v447_v55 = vld [vmem:[%s1684_s26 + $0x6e0] sm:$0xff]  ;;  %446 = vst [vmem:[%s1689_s27 + $0x1b0] sm:$0xff] %v445_v54 }
  0x47   : > { %v449_v56 = vld [vmem:[%s1684_s26 + $0x700] sm:$0xff]  ;;  %448 = vst [vmem:[%s1689_s27 + $0x1b8] sm:$0xff] %v447_v55 }
  0x48   : > { %v451_v57 = vld [vmem:[%s1684_s26 + $0x720] sm:$0xff]  ;;  %450 = vst [vmem:[%s1689_s27 + $0x1c0] sm:$0xff] %v449_v56 }
  0x49   : > { %v453_v58 = vld [vmem:[%s1684_s26 + $0x740] sm:$0xff]  ;;  %452 = vst [vmem:[%s1689_s27 + $0x1c8] sm:$0xff] %v451_v57 }
  0x4a   : > { %v455_v59 = vld [vmem:[%s1684_s26 + $0x760] sm:$0xff]  ;;  %454 = vst [vmem:[%s1689_s27 + $0x1d0] sm:$0xff] %v453_v58 }
  0x4b   : > { %v457_v60 = vld [vmem:[%s1684_s26 + $0x780] sm:$0xff]  ;;  %456 = vst [vmem:[%s1689_s27 + $0x1d8] sm:$0xff] %v455_v59 }
  0x4c   : > { %v459_v61 = vld [vmem:[%s1684_s26 + $0x7a0] sm:$0xff]  ;;  %458 = vst [vmem:[%s1689_s27 + $0x1e0] sm:$0xff] %v457_v60 }
  0x4d   : > { %v461_v62 = vld [vmem:[%s1684_s26 + $0x7c0] sm:$0xff]  ;;  %460 = vst [vmem:[%s1689_s27 + $0x1e8] sm:$0xff] %v459_v61 }
  0x4e   : > { %v463_v63 = vld [vmem:[%s1684_s26 + $0x7e0] sm:$0xff]  ;;  %462 = vst [vmem:[%s1689_s27 + $0x1f0] sm:$0xff] %v461_v62 }
  0x4f   : > { %464 = vst [vmem:[%s1689_s27 + $0x1f8] sm:$0xff] %v463_v63 }
  0x50 PF: > { %p1213_p6 = scmp.ge.s32.totalorder %s1619_s16, 1  ;;  %p477_p7 = scmp.lt.s32.totalorder %s1619_s16, 5 }
  0x52   : > { %p478_p8 = pnand %p1213_p6, %p477_p7 }
  0x53   : > { %s484_s28 = sand.u32 (!%p478_p8), 1, %s1603_s12   ;;  %s1215_s8 = sshll.u32 (!%p478_p8), %s1611_s14, 1 }
  0x54   : > { %481 = sbr.rel (%p478_p8) target bundleno = 298 (0x12a), region = 66  ;;  %s1214_s29 = sshll.u32 (!%p478_p8), %s484_s28, 9 }
  0x55   : > { %s1819_s30 = scalar_lea.vmem (!%p478_p8), [#allocation3], %s1214_s29  ;;  %p537_p9 = scmp.lt.s32.totalorder (!%p478_p8), %s1215_s8, 7 }
  0x59   : > { %v1276_v0 = vld [vmem:[%s1819_s30 + $0x70] sm:$0xf]  ;;  %v1492_v1 = vld [vmem:[%s1819_s30 + $0x74] sm:$0xf0]  ;;  %v1268_v11 = vld [vmem:[%s1819_s30 + $0x60] sm:$0xf] }
  0x5a   : > { %v1340_v2 = vld [vmem:[%s1819_s30 + $0xf0] sm:$0xf]  ;;  %v1277_v3 = vor.u32 %v1492_v1, %v1276_v0  ;;  %v1508_v4 = vld [vmem:[%s1819_s30 + $0xf4] sm:$0xf0]  ;;  %v1490_v13 = vld [vmem:[%s1819_s30 + $0x64] sm:$0xf0] }
  0x5b   : > { %v1404_v5 = vld [vmem:[%s1819_s30 + $0x170] sm:$0xf]  ;;  %v1524_v6 = vld [vmem:[%s1819_s30 + $0x174] sm:$0xf0]  ;;  %v1341_v7 = vor.u32 %v1508_v4, %v1340_v2  ;;  %v1332_v14 = vld [vmem:[%s1819_s30 + $0xe0] sm:$0xf]  ;;  %v1269_v16 = vor.u32 %v1490_v13, %v1268_v11 }
  0x5c   : > { %v1405_v8 = vor.u32 %v1524_v6, %v1404_v5  ;;  %v1468_v9 = vld [vmem:[%s1819_s30 + $0x1f0] sm:$0xf]  ;;  %v1540_v10 = vld [vmem:[%s1819_s30 + $0x1f4] sm:$0xf0]  ;;  %959 = vmatpush.bf16.msra.mxu0 %v1277_v3  ;;  %v1506_v15 = vld [vmem:[%s1819_s30 + $0xe4] sm:$0xf0] }
  0x5d   : > { %v1469_v12 = vor.u32 %v1540_v10, %v1468_v9  ;;  %972 = vmatpush.bf16.msra.mxu1 %v1341_v7  ;;  %v1333_v17 = vor.u32 %v1506_v15, %v1332_v14  ;;  %v1396_v18 = vld [vmem:[%s1819_s30 + $0x160] sm:$0xf]  ;;  %v1522_v19 = vld [vmem:[%s1819_s30 + $0x164] sm:$0xf0]  ;;  %v1260_v23 = vld [vmem:[%s1819_s30 + $0x50] sm:$0xf] }
  0x5e   : > { %985 = vmatpush.bf16.msra.mxu2 %v1405_v8  ;;  %v1460_v20 = vld [vmem:[%s1819_s30 + $0x1e0] sm:$0xf]  ;;  %v1397_v21 = vor.u32 %v1522_v19, %v1396_v18  ;;  %v1538_v22 = vld [vmem:[%s1819_s30 + $0x1e4] sm:$0xf0]  ;;  %v1488_v24 = vld [vmem:[%s1819_s30 + $0x54] sm:$0xf0] }
  0x5f   : > { %998 = vmatpush.bf16.msra.mxu3 %v1469_v12  ;;  %v1461_v25 = vor.u32 %v1538_v22, %v1460_v20  ;;  %v1324_v26 = vld [vmem:[%s1819_s30 + $0xd0] sm:$0xf]  ;;  %v1504_v27 = vld [vmem:[%s1819_s30 + $0xd4] sm:$0xf0]  ;;  %v1261_v29 = vor.u32 %v1488_v24, %v1260_v23  ;;  %v1252_v35 = vld [vmem:[%s1819_s30 + $0x40] sm:$0xf] }
  0x60   : > { %v1388_v28 = vld [vmem:[%s1819_s30 + $0x150] sm:$0xf]  ;;  %960 = vmatpush.bf16.msra.mxu0 %v1269_v16  ;;  %v1520_v30 = vld [vmem:[%s1819_s30 + $0x154] sm:$0xf0]  ;;  %v1325_v33 = vor.u32 %v1504_v27, %v1324_v26  ;;  %v1486_v36 = vld [vmem:[%s1819_s30 + $0x44] sm:$0xf0] }
  0x61   : > { %v1452_v31 = vld [vmem:[%s1819_s30 + $0x1d0] sm:$0xf]  ;;  %v1536_v32 = vld [vmem:[%s1819_s30 + $0x1d4] sm:$0xf0]  ;;  %973 = vmatpush.bf16.msra.mxu1 %v1333_v17  ;;  %v1389_v34 = vor.u32 %v1520_v30, %v1388_v28  ;;  %v1316_v37 = vld [vmem:[%s1819_s30 + $0xc0] sm:$0xf]  ;;  %v1253_v44 = vor.u32 %v1486_v36, %v1252_v35 }
  0x62   : > { %986 = vmatpush.bf16.msra.mxu2 %v1397_v21  ;;  %v1453_v38 = vor.u32 %v1536_v32, %v1452_v31  ;;  %v1502_v39 = vld [vmem:[%s1819_s30 + $0xc4] sm:$0xf0]  ;;  %v1380_v40 = vld [vmem:[%s1819_s30 + $0x140] sm:$0xf]  ;;  %v1244_v47 = vld [vmem:[%s1819_s30 + $0x30] sm:$0xf] }
  0x63   : > { %999 = vmatpush.bf16.msra.mxu3 %v1461_v25  ;;  %v1518_v41 = vld [vmem:[%s1819_s30 + $0x144] sm:$0xf0]  ;;  %v1444_v42 = vld [vmem:[%s1819_s30 + $0x1c0] sm:$0xf]  ;;  %v1317_v45 = vor.u32 %v1502_v39, %v1316_v37  ;;  %v1484_v48 = vld [vmem:[%s1819_s30 + $0x34] sm:$0xf0] }
  0x64   : > { %v1534_v43 = vld [vmem:[%s1819_s30 + $0x1c4] sm:$0xf0]  ;;  %961 = vmatpush.bf16.msra.mxu0 %v1261_v29  ;;  %v1381_v46 = vor.u32 %v1518_v41, %v1380_v40  ;;  %v1308_v49 = vld [vmem:[%s1819_s30 + $0xb0] sm:$0xf]  ;;  %v1500_v51 = vld [vmem:[%s1819_s30 + $0xb4] sm:$0xf0]  ;;  %v1245_v56 = vor.u32 %v1484_v48, %v1244_v47 }
  0x65   : > { %974 = vmatpush.bf16.msra.mxu1 %v1325_v33  ;;  %v1445_v50 = vor.u32 %v1534_v43, %v1444_v42  ;;  %v1372_v52 = vld [vmem:[%s1819_s30 + $0x130] sm:$0xf]  ;;  %v1516_v53 = vld [vmem:[%s1819_s30 + $0x134] sm:$0xf0]  ;;  %v1309_v57 = vor.u32 %v1500_v51, %v1308_v49  ;;  %v1236_v59 = vld [vmem:[%s1819_s30 + $0x20] sm:$0xf] }
  0x66   : > { %987 = vmatpush.bf16.msra.mxu2 %v1389_v34  ;;  %v1436_v54 = vld [vmem:[%s1819_s30 + $0x1b0] sm:$0xf]  ;;  %v1532_v55 = vld [vmem:[%s1819_s30 + $0x1b4] sm:$0xf0]  ;;  %v1373_v58 = vor.u32 %v1516_v53, %v1372_v52  ;;  %v1482_v60 = vld [vmem:[%s1819_s30 + $0x24] sm:$0xf0] }
  0x67   : > { %1000 = vmatpush.bf16.msra.mxu3 %v1453_v38  ;;  %v1300_v61 = vld [vmem:[%s1819_s30 + $0xa0] sm:$0xf]  ;;  %v1437_v62 = vor.u32 %v1532_v55, %v1436_v54  ;;  %v1498_v63 = vld [vmem:[%s1819_s30 + $0xa4] sm:$0xf0]  ;;  %v1237_v4 = vor.u32 %v1482_v60, %v1236_v59  ;;  %v1228_v7 = vld [vmem:[%s1819_s30 + $0x10] sm:$0xf] }
  0x68   : > { %962 = vmatpush.bf16.msra.mxu0 %v1253_v44  ;;  %v1364_v0 = vld [vmem:[%s1819_s30 + $0x120] sm:$0xf]  ;;  %v1514_v1 = vld [vmem:[%s1819_s30 + $0x124] sm:$0xf0]  ;;  %v1301_v5 = vor.u32 %v1498_v63, %v1300_v61  ;;  %v1480_v8 = vld [vmem:[%s1819_s30 + $0x14] sm:$0xf0] }
  0x69   : > { %975 = vmatpush.bf16.msra.mxu1 %v1317_v45  ;;  %v1428_v2 = vld [vmem:[%s1819_s30 + $0x1a0] sm:$0xf]  ;;  %v1530_v3 = vld [vmem:[%s1819_s30 + $0x1a4] sm:$0xf0]  ;;  %v1365_v6 = vor.u32 %v1514_v1, %v1364_v0  ;;  %v1292_v9 = vld [vmem:[%s1819_s30 + $0x90] sm:$0xf]  ;;  %v1229_v16 = vor.u32 %v1480_v8, %v1228_v7 }
  0x6a   : > { %988 = vmatpush.bf16.msra.mxu2 %v1381_v46  ;;  %v1429_v10 = vor.u32 %v1530_v3, %v1428_v2  ;;  %v1496_v11 = vld [vmem:[%s1819_s30 + $0x94] sm:$0xf0]  ;;  %v1356_v12 = vld [vmem:[%s1819_s30 + $0x110] sm:$0xf]  ;;  %v1220_v17 = vld [vmem:[%s1819_s30] sm:$0xf] }
  0x6b   : > { %1001 = vmatpush.bf16.msra.mxu3 %v1445_v50  ;;  %v1512_v13 = vld [vmem:[%s1819_s30 + $0x114] sm:$0xf0]  ;;  %v1420_v14 = vld [vmem:[%s1819_s30 + $0x190] sm:$0xf]  ;;  %v1478_v18 = vld [vmem:[%s1819_s30 + $0x4] sm:$0xf0]  ;;  %v1293_v20 = vor.u32 %v1496_v11, %v1292_v9 }
  0x6c   : > { %963 = vmatpush.bf16.msra.mxu0 %v1245_v56  ;;  %v1528_v15 = vld [vmem:[%s1819_s30 + $0x194] sm:$0xf0]  ;;  %v1284_v19 = vld [vmem:[%s1819_s30 + $0x80] sm:$0xf]  ;;  %v1357_v21 = vor.u32 %v1512_v13, %v1356_v12  ;;  %v1494_v22 = vld [vmem:[%s1819_s30 + $0x84] sm:$0xf0]  ;;  %v1221_v32 = vor.u32 %v1478_v18, %v1220_v17 }
  0x6d   : > { %976 = vmatpush.bf16.msra.mxu1 %v1309_v57  ;;  %v1348_v23 = vld [vmem:[%s1819_s30 + $0x100] sm:$0xf]  ;;  %v1510_v24 = vld [vmem:[%s1819_s30 + $0x104] sm:$0xf0]  ;;  %v1421_v25 = vor.u32 %v1528_v15, %v1420_v14  ;;  %v1491_v28 = vld [vmem:[%s1819_s30 + $0x74] sm:$0xf]  ;;  %v1285_v37 = vor.u32 %v1494_v22, %v1284_v19 }
  0x6e   : > { %989 = vmatpush.bf16.msra.mxu2 %v1373_v58  ;;  %v1412_v26 = vld [vmem:[%s1819_s30 + $0x180] sm:$0xf]  ;;  %v1526_v27 = vld [vmem:[%s1819_s30 + $0x184] sm:$0xf0]  ;;  %v1278_v29 = vld [vmem:[%s1819_s30 + $0x78] sm:$0xf0]  ;;  %v1349_v38 = vor.u32 %v1510_v24, %v1348_v23 }
  0x6f   : > { %1002 = vmatpush.bf16.msra.mxu3 %v1437_v62  ;;  %v1507_v30 = vld [vmem:[%s1819_s30 + $0xf4] sm:$0xf]  ;;  %v560_v31 = vld [vmem:[%s1993_s0 + $0x8] sm:$0xff]  ;;  %v1342_v33 = vld [vmem:[%s1819_s30 + $0xf8] sm:$0xf0]  ;;  %v1413_v42 = vor.u32 %v1526_v27, %v1412_v26  ;;  %v1281_v43 = vor.u32 %v1491_v28, %v1278_v29  ;;  %s2004_s8 = smov (!%p537_p9, %s1215_s8), 7 }
  0x70   : > { %964 = vmatpush.bf16.msra.mxu0 %v1237_v4  ;;  %v1523_v34 = vld [vmem:[%s1819_s30 + $0x174] sm:$0xf]  ;;  %v1406_v35 = vld [vmem:[%s1819_s30 + $0x178] sm:$0xf0]  ;;  %v629_v36 = vunpack.c.l.b16 %v560_v31  ;;  %v630_v41 = vunpack.c.h.b16 %v560_v31  ;;  %v559_v44 = vld [vmem:[%s1993_s0] sm:$0xff]  ;;  %v1345_v45 = vor.u32 %v1507_v30, %v1342_v33  ;;  %s539_s11 = scalar_lea.vmem %s1995_s2, %s2004_s8  ;;  %s1217_s12 = sshll.u32 %s2004_s8, 2 }
  0x71   : > { %977 = vmatpush.bf16.msra.mxu1 %v1301_v5  ;;  %v1539_v39 = vld [vmem:[%s1819_s30 + $0x1f4] sm:$0xf]  ;;  %v1470_v40 = vld [vmem:[%s1819_s30 + $0x1f8] sm:$0xf0]  ;;  %v1409_v46 = vor.u32 %v1523_v34, %v1406_v35  ;;  %v1489_v47 = vld [vmem:[%s1819_s30 + $0x64] sm:$0xf]  ;;  %v627_v50 = vunpack.c.l.b16 %v559_v44  ;;  %v628_v51 = vunpack.c.h.b16 %v559_v44  ;;  %s549_s19 = scalar_lea.vmem %s1996_s3, %s1217_s12 }
  0x72   : > { %990 = vmatpush.bf16.msra.mxu2 %v1365_v6  ;;  %v1270_v48 = vld [vmem:[%s1819_s30 + $0x68] sm:$0xf0]  ;;  %v1505_v49 = vld [vmem:[%s1819_s30 + $0xe4] sm:$0xf]  ;;  %v1473_v52 = vor.u32 %v1539_v39, %v1470_v40  ;;  %v1905_v56 = vpack.c.b16 %v629_v36, %v629_v36  ;;  %v1909_v59 = vpack.c.b16 %v630_v41, %v630_v41  ;;  %v1487_v1 = vld [vmem:[%s1819_s30 + $0x54] sm:$0xf] }
  0x73   : > { %1003 = vmatpush.bf16.msra.mxu3 %v1429_v10  ;;  %v1334_v53 = vld [vmem:[%s1819_s30 + $0xe8] sm:$0xf0]  ;;  %v1521_v54 = vld [vmem:[%s1819_s30 + $0x164] sm:$0xf]  ;;  %v1911_v60 = vpack.c.b16 %v627_v50, %v627_v50  ;;  %v1273_v61 = vor.u32 %v1489_v47, %v1270_v48  ;;  %v1913_v62 = vpack.c.b16 %v628_v51, %v628_v51  ;;  %v1262_v2 = vld [vmem:[%s1819_s30 + $0x58] sm:$0xf0] }
  0x74   : > { %965 = vmatpush.bf16.msra.mxu0 %v1229_v16  ;;  %v1398_v55 = vld [vmem:[%s1819_s30 + $0x168] sm:$0xf0]  ;;  %v1537_v57 = vld [vmem:[%s1819_s30 + $0x1e4] sm:$0xf]  ;;  %v1337_v63 = vor.u32 %v1505_v49, %v1334_v53  ;;  %v1503_v3 = vld [vmem:[%s1819_s30 + $0xd4] sm:$0xf]  ;;  %v1265_v10 = vor.u32 %v1487_v1, %v1262_v2 }
  0x75   : > { %978 = vmatpush.bf16.msra.mxu1 %v1293_v20  ;;  %v1462_v58 = vld [vmem:[%s1819_s30 + $0x1e8] sm:$0xf0]  ;;  %v1401_v0 = vor.u32 %v1521_v54, %v1398_v55  ;;  %v1326_v5 = vld [vmem:[%s1819_s30 + $0xd8] sm:$0xf0]  ;;  %v1519_v6 = vld [vmem:[%s1819_s30 + $0x154] sm:$0xf] }
  0x76   : > { %991 = vmatpush.bf16.msra.mxu2 %v1357_v21  ;;  %v1465_v4 = vor.u32 %v1537_v57, %v1462_v58  ;;  %v1390_v7 = vld [vmem:[%s1819_s30 + $0x158] sm:$0xf0]  ;;  %v1535_v8 = vld [vmem:[%s1819_s30 + $0x1d4] sm:$0xf]  ;;  %v1329_v11 = vor.u32 %v1503_v3, %v1326_v5  ;;  %v1485_v13 = vld [vmem:[%s1819_s30 + $0x44] sm:$0xf] }
  0x77   : > { %1004 = vmatpush.bf16.msra.mxu3 %v1421_v25  ;;  %v1454_v9 = vld [vmem:[%s1819_s30 + $0x1d8] sm:$0xf0]  ;;  %v1393_v12 = vor.u32 %v1519_v6, %v1390_v7  ;;  %v1254_v14 = vld [vmem:[%s1819_s30 + $0x48] sm:$0xf0]  ;;  %v1501_v15 = vld [vmem:[%s1819_s30 + $0xc4] sm:$0xf] }
  0x78   : > { %966 = vmatpush.bf16.msra.mxu0 %v1221_v32  ;;  %v1457_v16 = vor.u32 %v1535_v8, %v1454_v9  ;;  %v1318_v17 = vld [vmem:[%s1819_s30 + $0xc8] sm:$0xf0]  ;;  %v1517_v18 = vld [vmem:[%s1819_s30 + $0x144] sm:$0xf]  ;;  %v1257_v22 = vor.u32 %v1485_v13, %v1254_v14  ;;  %v1483_v25 = vld [vmem:[%s1819_s30 + $0x34] sm:$0xf] }
  0x79   : > { %979 = vmatpush.bf16.msra.mxu1 %v1285_v37  ;;  %v1382_v19 = vld [vmem:[%s1819_s30 + $0x148] sm:$0xf0]  ;;  %v1533_v20 = vld [vmem:[%s1819_s30 + $0x1c4] sm:$0xf]  ;;  %v1321_v23 = vor.u32 %v1501_v15, %v1318_v17  ;;  %v1246_v26 = vld [vmem:[%s1819_s30 + $0x38] sm:$0xf0] }
  0x7a   : > { %992 = vmatpush.bf16.msra.mxu2 %v1349_v38  ;;  %v1446_v21 = vld [vmem:[%s1819_s30 + $0x1c8] sm:$0xf0]  ;;  %v1385_v24 = vor.u32 %v1517_v18, %v1382_v19  ;;  %v1499_v27 = vld [vmem:[%s1819_s30 + $0xb4] sm:$0xf]  ;;  %v1310_v29 = vld [vmem:[%s1819_s30 + $0xb8] sm:$0xf0]  ;;  %v1249_v34 = vor.u32 %v1483_v25, %v1246_v26 }
  0x7b   : > { %1005 = vmatpush.bf16.msra.mxu3 %v1413_v42  ;;  %967 = vmatmul.bf16.vlgmr.msra.gmra.mxu0 %v1911_v60  ;;  %v1449_v28 = vor.u32 %v1533_v20, %v1446_v21  ;;  %v1515_v30 = vld [vmem:[%s1819_s30 + $0x134] sm:$0xf]  ;;  %v1374_v31 = vld [vmem:[%s1819_s30 + $0x138] sm:$0xf0]  ;;  %v1313_v35 = vor.u32 %v1499_v27, %v1310_v29  ;;  %v1481_v37 = vld [vmem:[%s1819_s30 + $0x24] sm:$0xf] }
  0x7c   : > { %1011 = vmatpush.bf16.msrb.mxu0 %v1281_v43  ;;  %980 = vmatmul.bf16.vlgmr.msra.gmra.mxu1 %v1913_v62  ;;  %v1531_v32 = vld [vmem:[%s1819_s30 + $0x1b4] sm:$0xf]  ;;  %v1438_v33 = vld [vmem:[%s1819_s30 + $0x1b8] sm:$0xf0]  ;;  %v1377_v36 = vor.u32 %v1515_v30, %v1374_v31  ;;  %v1238_v38 = vld [vmem:[%s1819_s30 + $0x28] sm:$0xf0] }
  0x7d   : > { %1024 = vmatpush.bf16.msrb.mxu1 %v1345_v45  ;;  %993 = vmatmul.bf16.vlgmr.msra.gmra.mxu2 %v1905_v56  ;;  %v1497_v39 = vld [vmem:[%s1819_s30 + $0xa4] sm:$0xf]  ;;  %v1441_v40 = vor.u32 %v1531_v32, %v1438_v33  ;;  %v1302_v41 = vld [vmem:[%s1819_s30 + $0xa8] sm:$0xf0]  ;;  %v1479_v49 = vld [vmem:[%s1819_s30 + $0x14] sm:$0xf] }
  0x7e   : > { %1037 = vmatpush.bf16.msrb.mxu2 %v1409_v46  ;;  %1006 = vmatmul.bf16.vlgmr.msra.gmra.mxu3 %v1909_v59  ;;  %v1513_v42 = vld [vmem:[%s1819_s30 + $0x124] sm:$0xf]  ;;  %v1366_v43 = vld [vmem:[%s1819_s30 + $0x128] sm:$0xf0]  ;;  %v1241_v46 = vor.u32 %v1481_v37, %v1238_v38  ;;  %v1305_v47 = vor.u32 %v1497_v39, %v1302_v41  ;;  %v1230_v50 = vld [vmem:[%s1819_s30 + $0x18] sm:$0xf0] }
  0x7f   : > { %1050 = vmatpush.bf16.msrb.mxu3 %v1473_v52  ;;  %v1529_v44 = vld [vmem:[%s1819_s30 + $0x1a4] sm:$0xf]  ;;  %v1430_v45 = vld [vmem:[%s1819_s30 + $0x1a8] sm:$0xf0]  ;;  %v1369_v48 = vor.u32 %v1513_v42, %v1366_v43  ;;  %v1495_v51 = vld [vmem:[%s1819_s30 + $0x94] sm:$0xf] }
  0x80   : > { %1012 = vmatpush.bf16.msrb.mxu0 %v1273_v61  ;;  %v1433_v52 = vor.u32 %v1529_v44, %v1430_v45  ;;  %v1294_v53 = vld [vmem:[%s1819_s30 + $0x98] sm:$0xf0]  ;;  %v1511_v54 = vld [vmem:[%s1819_s30 + $0x114] sm:$0xf]  ;;  %v1233_v61 = vor.u32 %v1479_v49, %v1230_v50  ;;  %v1477_v1 = vld [vmem:[%s1819_s30 + $0x4] sm:$0xf] }
  0x81   : > { %1025 = vmatpush.bf16.msrb.mxu1 %v1337_v63  ;;  %v1358_v55 = vld [vmem:[%s1819_s30 + $0x118] sm:$0xf0]  ;;  %v1527_v57 = vld [vmem:[%s1819_s30 + $0x194] sm:$0xf]  ;;  %v1297_v63 = vor.u32 %v1495_v51, %v1294_v53  ;;  %v1222_v2 = vld [vmem:[%s1819_s30 + $0x8] sm:$0xf0] }
  0x82   : > { %1038 = vmatpush.bf16.msrb.mxu2 %v1401_v0  ;;  %v1422_v58 = vld [vmem:[%s1819_s30 + $0x198] sm:$0xf0]  ;;  %v1361_v0 = vor.u32 %v1511_v54, %v1358_v55  ;;  %v1493_v3 = vld [vmem:[%s1819_s30 + $0x84] sm:$0xf]  ;;  %v1286_v5 = vld [vmem:[%s1819_s30 + $0x88] sm:$0xf0] }
  0x83   : > { %1051 = vmatpush.bf16.msrb.mxu3 %v1465_v4  ;;  %v1425_v4 = vor.u32 %v1527_v57, %v1422_v58  ;;  %v1509_v6 = vld [vmem:[%s1819_s30 + $0x104] sm:$0xf]  ;;  %v1350_v7 = vld [vmem:[%s1819_s30 + $0x108] sm:$0xf0] }
  0x84   : > { %1013 = vmatpush.bf16.msrb.mxu0 %v1265_v10  ;;  %v1525_v8 = vld [vmem:[%s1819_s30 + $0x184] sm:$0xf]  ;;  %v1414_v9 = vld [vmem:[%s1819_s30 + $0x188] sm:$0xf0]  ;;  %v1225_v10 = vor.u32 %v1477_v1, %v1222_v2 }
  0x85   : > { %1026 = vmatpush.bf16.msrb.mxu1 %v1329_v11  ;;  %v1289_v11 = vor.u32 %v1493_v3, %v1286_v5  ;;  %v1417_v13 = vor.u32 %v1525_v8, %v1414_v9 }
  0x86   : > { %1039 = vmatpush.bf16.msrb.mxu2 %v1393_v12  ;;  %v1353_v12 = vor.u32 %v1509_v6, %v1350_v7 }
  0x87   : > { %1052 = vmatpush.bf16.msrb.mxu3 %v1457_v16 }
  0x88   : > { %1014 = vmatpush.bf16.msrb.mxu0 %v1257_v22 }
  0x89   : > { %1027 = vmatpush.bf16.msrb.mxu1 %v1321_v23 }
  0x8a   : > { %1040 = vmatpush.bf16.msrb.mxu2 %v1385_v24 }
  0x8b   : > { %1053 = vmatpush.bf16.msrb.mxu3 %v1449_v28 }
  0x8c   : > { %1015 = vmatpush.bf16.msrb.mxu0 %v1249_v34 }
  0x8d   : > { %1028 = vmatpush.bf16.msrb.mxu1 %v1313_v35 }
  0x8e   : > { %1041 = vmatpush.bf16.msrb.mxu2 %v1377_v36 }
  0x8f   : > { %1054 = vmatpush.bf16.msrb.mxu3 %v1441_v40 }
  0x90   : > { %1016 = vmatpush.bf16.msrb.mxu0 %v1241_v46 }
  0x91   : > { %1029 = vmatpush.bf16.msrb.mxu1 %v1305_v47 }
  0x92   : > { %1042 = vmatpush.bf16.msrb.mxu2 %v1369_v48 }
  0x93   : > { %1055 = vmatpush.bf16.msrb.mxu3 %v1433_v52 }
  0x94   : > { %1017 = vmatpush.bf16.msrb.mxu0 %v1233_v61 }
  0x95   : > { %1030 = vmatpush.bf16.msrb.mxu1 %v1297_v63 }
  0x96   : > { %1043 = vmatpush.bf16.msrb.mxu2 %v1361_v0 }
  0x97   : > { %1056 = vmatpush.bf16.msrb.mxu3 %v1425_v4 }
  0x98   : > { %1018 = vmatpush.bf16.msrb.mxu0 %v1225_v10 }
  0x99   : > { %1031 = vmatpush.bf16.msrb.mxu1 %v1289_v11 }
  0x9a   : > { %1044 = vmatpush.bf16.msrb.mxu2 %v1353_v12 }
  0x9b   : > { %1057 = vmatpush.bf16.msrb.mxu3 %v1417_v13  ;;  %1019 = vmatmul.bf16.vlgmr.msrb.gmra.mxu0 %v1911_v60 }
  0x9c   : > { %1032 = vmatmul.bf16.vlgmr.msrb.gmra.mxu1 %v1913_v62  ;;  %v1072_v62 = vld [vmem:[%s539_s11] sm:$0x3] }
  0x9d   : > { %1045 = vmatmul.bf16.vlgmr.msrb.gmra.mxu2 %v1905_v56  ;;  %v1074_v26 = vperm.slane %v1072_v62, 0  ;;  %v1075_v29 = vperm.slane %v1072_v62, 1 }
  0x9e   : > { %1058 = vmatmul.bf16.vlgmr.msrb.gmra.mxu3 %v1909_v59 }
  0xf8   : > { %v968_v14 = vpop.f32.mrf.mxu0 }
  0xf9   : > { %v981_v15 = vpop.f32.mrf.mxu1 }
  0xfa   : > { %v982_v22 = vadd.f32 %v981_v15, %v968_v14 }
 0x100   : > { %v994_v16 = vpop.f32.mrf.mxu2  ;;  %v970_v18 = vpop.f32.mrf.mxu0 }
 0x101   : > { %v1007_v17 = vpop.f32.mrf.mxu3  ;;  %v983_v19 = vpop.f32.mrf.mxu1  ;;  %v995_v56 = vadd.f32 %v994_v16, %v982_v22 }
 0x103   : > { %v1008_v25 = vadd.f32 %v1007_v17, %v995_v56 }
 0x105   : > { %v1078_v33 = vadd.f32 %v1074_v26, %v1008_v25 }
 0x108   : > { %v996_v20 = vpop.f32.mrf.mxu2 }
 0x109   : > { %v1009_v21 = vpop.f32.mrf.mxu3 }
 0x118   : > { %v1020_v23 = vpop.f32.mrf.mxu0 }
 0x119   : > { %v1033_v60 = vpop.f32.mrf.mxu1 }
 0x11a   : > { %v1034_v59 = vadd.f32 %v1033_v60, %v1020_v23 }
 0x120   : > { %v1046_v24 = vpop.f32.mrf.mxu2  ;;  %v1022_v30 = vpop.f32.mrf.mxu0 }
 0x121   : > { %v1047_v27 = vadd.f32 %v1046_v24, %v1034_v59  ;;  %v1059_v28 = vpop.f32.mrf.mxu3  ;;  %v1035_v31 = vpop.f32.mrf.mxu1 }
 0x123   : > { %v1060_v32 = vadd.f32 %v1059_v28, %v1047_v27 }
 0x125   : > { %v1079_v34 = vadd.f32 %v1075_v29, %v1060_v32 }
 0x127   : > { %v1080_v35 = vpack.c.bf16 %v1079_v34, %v1078_v33 }
 0x128   : > { %v1048_v36 = vpop.f32.mrf.mxu2 }
 0x129   : > { %1081 = vst [vmem:[%s549_s19] sm:$0xff] %v1080_v35  ;;  %v1061_v37 = vpop.f32.mrf.mxu3 }
 0x12a PF: > { %s13_s16 = sadd.s32 1, %s1619_s16   ;;  %s1997_s12 = smov %s1607_s13 }
 0x12b   : > { %p10_p10 = scmp.ge.s32.totalorder %s13_s16, 6   ;;  %s1998_s13 = smov %s1676_s20 }
 0x12c   : > { %s1999_s14 = smov %s1615_s15  ;;  %s2000_s15 = smov %s2002_s17 }
 0x12d   :  { %12 = sbr.rel (!%p10_p10) target bundleno = 3 (0x3), region = 119 }

// kernel: _lambda_.35
= control target key start
LH: loop header
LB: loop body
LE: loop exit
PB: predicated region body
PF: predicated region fallthrough
CT: control target
= control target key end

     0   :  { %s1683_s12 = smov 0   ;;  %s1685_s13 = smov 0   ;;  %s2074_s0 = inlined_call_operand.vmem [shape: bf16[8,1024], index: 0, kind: input, shape index: {}]   ;;  %s2075_s1 = inlined_call_operand.vmem [shape: bf16[1024,512], index: 1, kind: input, shape index: {}]   ;;  %s2076_s2 = inlined_call_operand.vmem [shape: f32[1,512], index: 2, kind: input, shape index: {}]   ;;  %s2077_s3 = inlined_call_operand.vmem [shape: bf16[8,512], index: 3, kind: output, shape index: {}]  }
   0x1   :  { %s1687_s14 = smov 0   ;;  %s1689_s15 = smov 0  }
   0x2   :  { %s1691_s16 = smov 0   ;;  %s1693_s17 = smov 0  }
   0x3   :  { %s1695_s18 = smov 0  }
   0x4 LB: > { %s25_s19 = sadd.s32 1, %s1652_s16  ;;  %s28_s20 = sadd.s32 1, %s1656_s17  ;;  %s1660_s18 = sphi %s1695_s18, %s13_s18   ;;  %s1656_s17 = sphi %s1693_s17, %s2083_s17   ;;  %s1652_s16 = sphi %s1691_s16, %s2082_s16   ;;  %s1648_s15 = sphi %s1689_s15, %s2081_s15   ;;  %s1644_s14 = sphi %s1687_s14, %s2080_s14   ;;  %s1640_s13 = sphi %s1685_s13, %s2079_s13   ;;  %s1636_s12 = sphi %s1683_s12, %s2078_s12  }
   0x5   : > { %p26_p0 = scmp.ge.s32.totalorder %s25_s19, 2  ;;  %p76_p1 = scmp.ne.s32.totalorder %s1640_s13, %s1636_s12 }
   0x6   : > { %p77_p2 = scmp.eq.s32.totalorder %s1660_s18, 0  ;;  %s69_s24 = sadd.s32 1, %s1640_s13 }
   0x7   : > { %s2085_s19 = smov (%p26_p0, %s25_s19), 0  ;;  %s2087_s20 = smov (!%p26_p0, %s28_s20), %s1656_s17 }
   0x8   : > { %p78_p3 = por %p77_p2, %p76_p1  ;;  %p30_p4 = scmp.ge.s32.totalorder %s2087_s20, 2 }
   0x9   : > { %s64_s21 = ssub.s32 %s1652_s16, %s2085_s19  ;;  %p1211_p6 = scmp.ge.s32.totalorder %s1660_s18, 4 }
   0xa   : > { %s2089_s20 = smov (%p30_p4, %s2087_s20), 0 }
   0xb   : > { %s65_s22 = ssub.s32 %s1656_s17, %s2089_s20  ;;  %156 = sbr.rel (%p1211_p6) target bundleno = 87 (0x57), region = 16 }
   0xc   : > { %s66_s23 = sor.u32 %s65_s22, %s64_s21 }
   0xd   : > { %p67_p5 = scmp.eq.s32.totalorder %s66_s23, 0 }
   0xf   : > { %s1734_s25 = scalar_select %p67_p5, %s1640_s13, %s69_s24  }
  0x10   : > { %172 = sbr.rel (!%p78_p3) target bundleno = 87 (0x57), region = 24  ;;  %s174_s26 = sand.u32 (%p78_p3), 1, %s1640_s13  }
  0x11   : > { %s1214_s27 = sshll.u32 (%p78_p3), %s1656_s17, 1  ;;  %s1212_s28 = sshll.u32 (%p78_p3), %s174_s26, 9 }
  0x12   : > { %s1484_s29 = sshll.u32 (%p78_p3), %s1652_s16, 8  ;;  %s1748_s8 = scalar_lea.vmem (%p78_p3), [#allocation3], %s1212_s28 }
  0x13   : > { %s180_s30 = sadd.s32 (%p78_p3), %s1484_s29, %s1214_s27 }
  0x14   : > { %s1216_s4 = sshll.u32 (%p78_p3), %s180_s30, 2 }
  0x15   : > { %s1743_s7 = scalar_lea.vmem %s2075_s1, %s1216_s4 }
  0x16   : > { %v337_v0 = vld [vmem:[%s1743_s7] sm:$0xff]  ;;  %v339_v1 = vld [vmem:[%s1743_s7 + $0x10] sm:$0xff] }
  0x17   : > { %v341_v2 = vld [vmem:[%s1743_s7 + $0x20] sm:$0xff]  ;;  %338 = vst [vmem:[%s1748_s8] sm:$0xff] %v337_v0  ;;  %v343_v3 = vld [vmem:[%s1743_s7 + $0x30] sm:$0xff] }
  0x18   : > { %340 = vst [vmem:[%s1748_s8 + $0x8] sm:$0xff] %v339_v1  ;;  %v345_v4 = vld [vmem:[%s1743_s7 + $0x40] sm:$0xff]  ;;  %v347_v5 = vld [vmem:[%s1743_s7 + $0x50] sm:$0xff] }
  0x19   : > { %342 = vst [vmem:[%s1748_s8 + $0x10] sm:$0xff] %v341_v2  ;;  %v349_v6 = vld [vmem:[%s1743_s7 + $0x60] sm:$0xff]  ;;  %v351_v7 = vld [vmem:[%s1743_s7 + $0x70] sm:$0xff] }
  0x1a   : > { %344 = vst [vmem:[%s1748_s8 + $0x18] sm:$0xff] %v343_v3  ;;  %v353_v8 = vld [vmem:[%s1743_s7 + $0x80] sm:$0xff]  ;;  %v355_v9 = vld [vmem:[%s1743_s7 + $0x90] sm:$0xff] }
  0x1b   : > { %346 = vst [vmem:[%s1748_s8 + $0x20] sm:$0xff] %v345_v4  ;;  %v357_v10 = vld [vmem:[%s1743_s7 + $0xa0] sm:$0xff]  ;;  %v359_v11 = vld [vmem:[%s1743_s7 + $0xb0] sm:$0xff] }
  0x1c   : > { %348 = vst [vmem:[%s1748_s8 + $0x28] sm:$0xff] %v347_v5  ;;  %v361_v12 = vld [vmem:[%s1743_s7 + $0xc0] sm:$0xff]  ;;  %v363_v13 = vld [vmem:[%s1743_s7 + $0xd0] sm:$0xff] }
  0x1d   : > { %350 = vst [vmem:[%s1748_s8 + $0x30] sm:$0xff] %v349_v6  ;;  %v365_v14 = vld [vmem:[%s1743_s7 + $0xe0] sm:$0xff]  ;;  %v367_v15 = vld [vmem:[%s1743_s7 + $0xf0] sm:$0xff] }
  0x1e   : > { %352 = vst [vmem:[%s1748_s8 + $0x38] sm:$0xff] %v351_v7  ;;  %v369_v16 = vld [vmem:[%s1743_s7 + $0x100] sm:$0xff]  ;;  %v371_v17 = vld [vmem:[%s1743_s7 + $0x110] sm:$0xff] }
  0x1f   : > { %354 = vst [vmem:[%s1748_s8 + $0x40] sm:$0xff] %v353_v8  ;;  %v373_v18 = vld [vmem:[%s1743_s7 + $0x120] sm:$0xff]  ;;  %v375_v19 = vld [vmem:[%s1743_s7 + $0x130] sm:$0xff] }
  0x20   : > { %356 = vst [vmem:[%s1748_s8 + $0x48] sm:$0xff] %v355_v9  ;;  %v377_v20 = vld [vmem:[%s1743_s7 + $0x140] sm:$0xff]  ;;  %v379_v21 = vld [vmem:[%s1743_s7 + $0x150] sm:$0xff] }
  0x21   : > { %358 = vst [vmem:[%s1748_s8 + $0x50] sm:$0xff] %v357_v10  ;;  %v381_v22 = vld [vmem:[%s1743_s7 + $0x160] sm:$0xff]  ;;  %v383_v23 = vld [vmem:[%s1743_s7 + $0x170] sm:$0xff] }
  0x22   : > { %360 = vst [vmem:[%s1748_s8 + $0x58] sm:$0xff] %v359_v11  ;;  %v385_v24 = vld [vmem:[%s1743_s7 + $0x180] sm:$0xff]  ;;  %v387_v25 = vld [vmem:[%s1743_s7 + $0x190] sm:$0xff] }
  0x23   : > { %362 = vst [vmem:[%s1748_s8 + $0x60] sm:$0xff] %v361_v12  ;;  %v389_v26 = vld [vmem:[%s1743_s7 + $0x1a0] sm:$0xff]  ;;  %v391_v27 = vld [vmem:[%s1743_s7 + $0x1b0] sm:$0xff] }
  0x24   : > { %364 = vst [vmem:[%s1748_s8 + $0x68] sm:$0xff] %v363_v13  ;;  %v393_v28 = vld [vmem:[%s1743_s7 + $0x1c0] sm:$0xff]  ;;  %v395_v29 = vld [vmem:[%s1743_s7 + $0x1d0] sm:$0xff] }
  0x25   : > { %366 = vst [vmem:[%s1748_s8 + $0x70] sm:$0xff] %v365_v14  ;;  %v397_v30 = vld [vmem:[%s1743_s7 + $0x1e0] sm:$0xff]  ;;  %v399_v31 = vld [vmem:[%s1743_s7 + $0x1f0] sm:$0xff] }
  0x26   : > { %368 = vst [vmem:[%s1748_s8 + $0x78] sm:$0xff] %v367_v15  ;;  %v401_v32 = vld [vmem:[%s1743_s7 + $0x200] sm:$0xff]  ;;  %v403_v33 = vld [vmem:[%s1743_s7 + $0x210] sm:$0xff] }
  0x27   : > { %370 = vst [vmem:[%s1748_s8 + $0x80] sm:$0xff] %v369_v16  ;;  %v405_v34 = vld [vmem:[%s1743_s7 + $0x220] sm:$0xff]  ;;  %v407_v35 = vld [vmem:[%s1743_s7 + $0x230] sm:$0xff] }
  0x28   : > { %372 = vst [vmem:[%s1748_s8 + $0x88] sm:$0xff] %v371_v17  ;;  %v409_v36 = vld [vmem:[%s1743_s7 + $0x240] sm:$0xff]  ;;  %v411_v37 = vld [vmem:[%s1743_s7 + $0x250] sm:$0xff] }
  0x29   : > { %374 = vst [vmem:[%s1748_s8 + $0x90] sm:$0xff] %v373_v18  ;;  %v413_v38 = vld [vmem:[%s1743_s7 + $0x260] sm:$0xff]  ;;  %v415_v39 = vld [vmem:[%s1743_s7 + $0x270] sm:$0xff] }
  0x2a   : > { %376 = vst [vmem:[%s1748_s8 + $0x98] sm:$0xff] %v375_v19  ;;  %v417_v40 = vld [vmem:[%s1743_s7 + $0x280] sm:$0xff]  ;;  %v419_v41 = vld [vmem:[%s1743_s7 + $0x290] sm:$0xff] }
  0x2b   : > { %378 = vst [vmem:[%s1748_s8 + $0xa0] sm:$0xff] %v377_v20  ;;  %v421_v42 = vld [vmem:[%s1743_s7 + $0x2a0] sm:$0xff]  ;;  %v423_v43 = vld [vmem:[%s1743_s7 + $0x2b0] sm:$0xff] }
  0x2c   : > { %380 = vst [vmem:[%s1748_s8 + $0xa8] sm:$0xff] %v379_v21  ;;  %v425_v44 = vld [vmem:[%s1743_s7 + $0x2c0] sm:$0xff]  ;;  %v427_v45 = vld [vmem:[%s1743_s7 + $0x2d0] sm:$0xff] }
  0x2d   : > { %382 = vst [vmem:[%s1748_s8 + $0xb0] sm:$0xff] %v381_v22  ;;  %v429_v46 = vld [vmem:[%s1743_s7 + $0x2e0] sm:$0xff]  ;;  %v431_v47 = vld [vmem:[%s1743_s7 + $0x2f0] sm:$0xff] }
  0x2e   : > { %384 = vst [vmem:[%s1748_s8 + $0xb8] sm:$0xff] %v383_v23  ;;  %v433_v48 = vld [vmem:[%s1743_s7 + $0x300] sm:$0xff]  ;;  %v435_v49 = vld [vmem:[%s1743_s7 + $0x310] sm:$0xff] }
  0x2f   : > { %386 = vst [vmem:[%s1748_s8 + $0xc0] sm:$0xff] %v385_v24  ;;  %v437_v50 = vld [vmem:[%s1743_s7 + $0x320] sm:$0xff]  ;;  %v439_v51 = vld [vmem:[%s1743_s7 + $0x330] sm:$0xff] }
  0x30   : > { %388 = vst [vmem:[%s1748_s8 + $0xc8] sm:$0xff] %v387_v25  ;;  %v441_v52 = vld [vmem:[%s1743_s7 + $0x340] sm:$0xff]  ;;  %v443_v53 = vld [vmem:[%s1743_s7 + $0x350] sm:$0xff] }
  0x31   : > { %390 = vst [vmem:[%s1748_s8 + $0xd0] sm:$0xff] %v389_v26  ;;  %v445_v54 = vld [vmem:[%s1743_s7 + $0x360] sm:$0xff]  ;;  %v447_v55 = vld [vmem:[%s1743_s7 + $0x370] sm:$0xff] }
  0x32   : > { %392 = vst [vmem:[%s1748_s8 + $0xd8] sm:$0xff] %v391_v27  ;;  %v449_v56 = vld [vmem:[%s1743_s7 + $0x380] sm:$0xff]  ;;  %v451_v57 = vld [vmem:[%s1743_s7 + $0x390] sm:$0xff] }
  0x33   : > { %394 = vst [vmem:[%s1748_s8 + $0xe0] sm:$0xff] %v393_v28  ;;  %v453_v58 = vld [vmem:[%s1743_s7 + $0x3a0] sm:$0xff]  ;;  %v455_v59 = vld [vmem:[%s1743_s7 + $0x3b0] sm:$0xff] }
  0x34   : > { %396 = vst [vmem:[%s1748_s8 + $0xe8] sm:$0xff] %v395_v29  ;;  %v457_v60 = vld [vmem:[%s1743_s7 + $0x3c0] sm:$0xff]  ;;  %v459_v61 = vld [vmem:[%s1743_s7 + $0x3d0] sm:$0xff] }
  0x35   : > { %398 = vst [vmem:[%s1748_s8 + $0xf0] sm:$0xff] %v397_v30  ;;  %v461_v62 = vld [vmem:[%s1743_s7 + $0x3e0] sm:$0xff]  ;;  %v463_v63 = vld [vmem:[%s1743_s7 + $0x3f0] sm:$0xff] }
  0x36   : > { %400 = vst [vmem:[%s1748_s8 + $0xf8] sm:$0xff] %v399_v31 }
  0x37   : > { %402 = vst [vmem:[%s1748_s8 + $0x100] sm:$0xff] %v401_v32 }
  0x38   : > { %404 = vst [vmem:[%s1748_s8 + $0x108] sm:$0xff] %v403_v33 }
  0x39   : > { %406 = vst [vmem:[%s1748_s8 + $0x110] sm:$0xff] %v405_v34 }
  0x3a   : > { %408 = vst [vmem:[%s1748_s8 + $0x118] sm:$0xff] %v407_v35 }
  0x3b   : > { %410 = vst [vmem:[%s1748_s8 + $0x120] sm:$0xff] %v409_v36 }
  0x3c   : > { %412 = vst [vmem:[%s1748_s8 + $0x128] sm:$0xff] %v411_v37 }
  0x3d   : > { %414 = vst [vmem:[%s1748_s8 + $0x130] sm:$0xff] %v413_v38 }
  0x3e   : > { %416 = vst [vmem:[%s1748_s8 + $0x138] sm:$0xff] %v415_v39 }
  0x3f   : > { %418 = vst [vmem:[%s1748_s8 + $0x140] sm:$0xff] %v417_v40 }
  0x40   : > { %420 = vst [vmem:[%s1748_s8 + $0x148] sm:$0xff] %v419_v41 }
  0x41   : > { %422 = vst [vmem:[%s1748_s8 + $0x150] sm:$0xff] %v421_v42 }
  0x42   : > { %424 = vst [vmem:[%s1748_s8 + $0x158] sm:$0xff] %v423_v43 }
  0x43   : > { %426 = vst [vmem:[%s1748_s8 + $0x160] sm:$0xff] %v425_v44 }
  0x44   : > { %428 = vst [vmem:[%s1748_s8 + $0x168] sm:$0xff] %v427_v45 }
  0x45   : > { %430 = vst [vmem:[%s1748_s8 + $0x170] sm:$0xff] %v429_v46 }
  0x46   : > { %432 = vst [vmem:[%s1748_s8 + $0x178] sm:$0xff] %v431_v47 }
  0x47   : > { %434 = vst [vmem:[%s1748_s8 + $0x180] sm:$0xff] %v433_v48 }
  0x48   : > { %436 = vst [vmem:[%s1748_s8 + $0x188] sm:$0xff] %v435_v49 }
  0x49   : > { %438 = vst [vmem:[%s1748_s8 + $0x190] sm:$0xff] %v437_v50 }
  0x4a   : > { %440 = vst [vmem:[%s1748_s8 + $0x198] sm:$0xff] %v439_v51 }
  0x4b   : > { %442 = vst [vmem:[%s1748_s8 + $0x1a0] sm:$0xff] %v441_v52 }
  0x4c   : > { %444 = vst [vmem:[%s1748_s8 + $0x1a8] sm:$0xff] %v443_v53 }
  0x4d   : > { %446 = vst [vmem:[%s1748_s8 + $0x1b0] sm:$0xff] %v445_v54 }
  0x4e   : > { %448 = vst [vmem:[%s1748_s8 + $0x1b8] sm:$0xff] %v447_v55 }
  0x4f   : > { %450 = vst [vmem:[%s1748_s8 + $0x1c0] sm:$0xff] %v449_v56 }
  0x50   : > { %452 = vst [vmem:[%s1748_s8 + $0x1c8] sm:$0xff] %v451_v57 }
  0x51   : > { %454 = vst [vmem:[%s1748_s8 + $0x1d0] sm:$0xff] %v453_v58 }
  0x52   : > { %456 = vst [vmem:[%s1748_s8 + $0x1d8] sm:$0xff] %v455_v59 }
  0x53   : > { %458 = vst [vmem:[%s1748_s8 + $0x1e0] sm:$0xff] %v457_v60 }
  0x54   : > { %460 = vst [vmem:[%s1748_s8 + $0x1e8] sm:$0xff] %v459_v61 }
  0x55   : > { %462 = vst [vmem:[%s1748_s8 + $0x1f0] sm:$0xff] %v461_v62 }
  0x56   : > { %464 = vst [vmem:[%s1748_s8 + $0x1f8] sm:$0xff] %v463_v63 }
  0x57 PF: > { %p1217_p7 = scmp.ge.s32.totalorder %s1660_s18, 1  ;;  %p477_p8 = scmp.lt.s32.totalorder %s1660_s18, 5 }
  0x59   : > { %p478_p9 = pnand %p1217_p7, %p477_p8 }
  0x5a   : > { %s484_s9 = sand.u32 (!%p478_p9), 1, %s1636_s12   ;;  %s1219_s10 = sshll.u32 (!%p478_p9), %s1644_s14, 2 }
  0x5b   : > { %481 = sbr.rel (%p478_p9) target bundleno = 328 (0x148), region = 66  ;;  %s1218_s11 = sshll.u32 (!%p478_p9), %s484_s9, 9 }
  0x5c   : > { %p527_p10 = scmp.lt.s32.totalorder (!%p478_p9), %s1219_s10, 7  ;;  %s1221_s21 = sshll.u32 (!%p478_p9), %s1648_s15, 1 }
  0x5d   : > { %p537_p11 = scmp.lt.s32.totalorder (!%p478_p9), %s1221_s21, 3  ;;  %s1897_s5 = scalar_lea.vmem (!%p478_p9), [#allocation3], %s1218_s11 }
  0x5e   : > { %p1224_p12 = scmp.ne.s32.totalorder (!%p478_p9), %s1644_s14, 0 }
  0x60   : > { %s2091_s10 = smov (!%p527_p10, %s1219_s10), 7  ;;  %s2093_s21 = smov (!%p537_p11, %s1221_s21), 3 }
  0x61   : > { %s1220_s22 = sshll.u32 %s2091_s10, 2  ;;  %s539_s12 = scalar_lea.vmem %s2076_s2, %s2093_s21 }
  0x62   : > { %s1883_s26 = scalar_lea.vmem %s2074_s0, %s1220_s22  ;;  %s1223_s29 = sshll.u32 %s2093_s21, 2 }
  0x63   : > { %s1895_s15 = scalar_lea.vmem %s2077_s3, %s1223_s29  ;;  %554 = sbr.rel (%p1224_p12) target bundleno = 107 (0x6b), region = 74 }
  0x68   : > { %v1662_v0 = vmov 0.0  }
  0x69   : > { %555 = vst [vmem:[#allocation2] sm:$0xff] %v1662_v0 }
  0x6a   : > { %556 = vst [vmem:[#allocation2 + $0x8] sm:$0xff] %v1662_v0 }
  0x6b PF: > { %v1283_v1 = vld [vmem:[%s1897_s5 + $0x70] sm:$0xf]  ;;  %v1500_v2 = vld [vmem:[%s1897_s5 + $0x74] sm:$0xf0]  ;;  %v1275_v12 = vld [vmem:[%s1897_s5 + $0x60] sm:$0xf] }
  0x6c   : > { %v1347_v3 = vld [vmem:[%s1897_s5 + $0xf0] sm:$0xf]  ;;  %v1284_v4 = vor.u32 %v1500_v2, %v1283_v1  ;;  %v1516_v5 = vld [vmem:[%s1897_s5 + $0xf4] sm:$0xf0]  ;;  %v1498_v14 = vld [vmem:[%s1897_s5 + $0x64] sm:$0xf0] }
  0x6d   : > { %v1411_v6 = vld [vmem:[%s1897_s5 + $0x170] sm:$0xf]  ;;  %v1532_v7 = vld [vmem:[%s1897_s5 + $0x174] sm:$0xf0]  ;;  %v1348_v8 = vor.u32 %v1516_v5, %v1347_v3  ;;  %v1339_v15 = vld [vmem:[%s1897_s5 + $0xe0] sm:$0xf]  ;;  %v1276_v17 = vor.u32 %v1498_v14, %v1275_v12 }
  0x6e   : > { %v1412_v9 = vor.u32 %v1532_v7, %v1411_v6  ;;  %v1475_v10 = vld [vmem:[%s1897_s5 + $0x1f0] sm:$0xf]  ;;  %v1548_v11 = vld [vmem:[%s1897_s5 + $0x1f4] sm:$0xf0]  ;;  %959 = vmatpush.bf16.msra.mxu0 %v1284_v4  ;;  %v1514_v16 = vld [vmem:[%s1897_s5 + $0xe4] sm:$0xf0] }
  0x6f   : > { %v1476_v13 = vor.u32 %v1548_v11, %v1475_v10  ;;  %972 = vmatpush.bf16.msra.mxu1 %v1348_v8  ;;  %v1340_v18 = vor.u32 %v1514_v16, %v1339_v15  ;;  %v1403_v19 = vld [vmem:[%s1897_s5 + $0x160] sm:$0xf]  ;;  %v1530_v20 = vld [vmem:[%s1897_s5 + $0x164] sm:$0xf0]  ;;  %v1267_v24 = vld [vmem:[%s1897_s5 + $0x50] sm:$0xf] }
  0x70   : > { %985 = vmatpush.bf16.msra.mxu2 %v1412_v9  ;;  %v1467_v21 = vld [vmem:[%s1897_s5 + $0x1e0] sm:$0xf]  ;;  %v1404_v22 = vor.u32 %v1530_v20, %v1403_v19  ;;  %v1546_v23 = vld [vmem:[%s1897_s5 + $0x1e4] sm:$0xf0]  ;;  %v1496_v25 = vld [vmem:[%s1897_s5 + $0x54] sm:$0xf0] }
  0x71   : > { %998 = vmatpush.bf16.msra.mxu3 %v1476_v13  ;;  %v1468_v26 = vor.u32 %v1546_v23, %v1467_v21  ;;  %v1331_v27 = vld [vmem:[%s1897_s5 + $0xd0] sm:$0xf]  ;;  %v1512_v28 = vld [vmem:[%s1897_s5 + $0xd4] sm:$0xf0]  ;;  %v1268_v30 = vor.u32 %v1496_v25, %v1267_v24  ;;  %v1259_v36 = vld [vmem:[%s1897_s5 + $0x40] sm:$0xf] }
  0x72   : > { %v1395_v29 = vld [vmem:[%s1897_s5 + $0x150] sm:$0xf]  ;;  %960 = vmatpush.bf16.msra.mxu0 %v1276_v17  ;;  %v1528_v31 = vld [vmem:[%s1897_s5 + $0x154] sm:$0xf0]  ;;  %v1332_v34 = vor.u32 %v1512_v28, %v1331_v27  ;;  %v1494_v37 = vld [vmem:[%s1897_s5 + $0x44] sm:$0xf0] }
  0x73   : > { %v1459_v32 = vld [vmem:[%s1897_s5 + $0x1d0] sm:$0xf]  ;;  %v1544_v33 = vld [vmem:[%s1897_s5 + $0x1d4] sm:$0xf0]  ;;  %973 = vmatpush.bf16.msra.mxu1 %v1340_v18  ;;  %v1396_v35 = vor.u32 %v1528_v31, %v1395_v29  ;;  %v1323_v38 = vld [vmem:[%s1897_s5 + $0xc0] sm:$0xf]  ;;  %v1260_v45 = vor.u32 %v1494_v37, %v1259_v36 }
  0x74   : > { %986 = vmatpush.bf16.msra.mxu2 %v1404_v22  ;;  %v1460_v39 = vor.u32 %v1544_v33, %v1459_v32  ;;  %v1510_v40 = vld [vmem:[%s1897_s5 + $0xc4] sm:$0xf0]  ;;  %v1387_v41 = vld [vmem:[%s1897_s5 + $0x140] sm:$0xf]  ;;  %v1251_v48 = vld [vmem:[%s1897_s5 + $0x30] sm:$0xf] }
  0x75   : > { %999 = vmatpush.bf16.msra.mxu3 %v1468_v26  ;;  %v1526_v42 = vld [vmem:[%s1897_s5 + $0x144] sm:$0xf0]  ;;  %v1451_v43 = vld [vmem:[%s1897_s5 + $0x1c0] sm:$0xf]  ;;  %v1324_v46 = vor.u32 %v1510_v40, %v1323_v38  ;;  %v1492_v49 = vld [vmem:[%s1897_s5 + $0x34] sm:$0xf0] }
  0x76   : > { %v1542_v44 = vld [vmem:[%s1897_s5 + $0x1c4] sm:$0xf0]  ;;  %961 = vmatpush.bf16.msra.mxu0 %v1268_v30  ;;  %v1388_v47 = vor.u32 %v1526_v42, %v1387_v41  ;;  %v1315_v50 = vld [vmem:[%s1897_s5 + $0xb0] sm:$0xf]  ;;  %v1508_v52 = vld [vmem:[%s1897_s5 + $0xb4] sm:$0xf0]  ;;  %v1252_v57 = vor.u32 %v1492_v49, %v1251_v48 }
  0x77   : > { %974 = vmatpush.bf16.msra.mxu1 %v1332_v34  ;;  %v1452_v51 = vor.u32 %v1542_v44, %v1451_v43  ;;  %v1379_v53 = vld [vmem:[%s1897_s5 + $0x130] sm:$0xf]  ;;  %v1524_v54 = vld [vmem:[%s1897_s5 + $0x134] sm:$0xf0]  ;;  %v1316_v58 = vor.u32 %v1508_v52, %v1315_v50  ;;  %v1243_v60 = vld [vmem:[%s1897_s5 + $0x20] sm:$0xf] }
  0x78   : > { %987 = vmatpush.bf16.msra.mxu2 %v1396_v35  ;;  %v1443_v55 = vld [vmem:[%s1897_s5 + $0x1b0] sm:$0xf]  ;;  %v1540_v56 = vld [vmem:[%s1897_s5 + $0x1b4] sm:$0xf0]  ;;  %v1380_v59 = vor.u32 %v1524_v54, %v1379_v53  ;;  %v1490_v61 = vld [vmem:[%s1897_s5 + $0x24] sm:$0xf0] }
  0x79   : > { %1000 = vmatpush.bf16.msra.mxu3 %v1460_v39  ;;  %v1307_v62 = vld [vmem:[%s1897_s5 + $0xa0] sm:$0xf]  ;;  %v1444_v63 = vor.u32 %v1540_v56, %v1443_v55  ;;  %v1506_v0 = vld [vmem:[%s1897_s5 + $0xa4] sm:$0xf0]  ;;  %v1244_v5 = vor.u32 %v1490_v61, %v1243_v60  ;;  %v1235_v8 = vld [vmem:[%s1897_s5 + $0x10] sm:$0xf] }
  0x7a   : > { %962 = vmatpush.bf16.msra.mxu0 %v1260_v45  ;;  %v1371_v1 = vld [vmem:[%s1897_s5 + $0x120] sm:$0xf]  ;;  %v1522_v2 = vld [vmem:[%s1897_s5 + $0x124] sm:$0xf0]  ;;  %v1308_v6 = vor.u32 %v1506_v0, %v1307_v62  ;;  %v1488_v9 = vld [vmem:[%s1897_s5 + $0x14] sm:$0xf0] }
  0x7b   : > { %975 = vmatpush.bf16.msra.mxu1 %v1324_v46  ;;  %v1435_v3 = vld [vmem:[%s1897_s5 + $0x1a0] sm:$0xf]  ;;  %v1538_v4 = vld [vmem:[%s1897_s5 + $0x1a4] sm:$0xf0]  ;;  %v1372_v7 = vor.u32 %v1522_v2, %v1371_v1  ;;  %v1299_v10 = vld [vmem:[%s1897_s5 + $0x90] sm:$0xf]  ;;  %v1236_v17 = vor.u32 %v1488_v9, %v1235_v8 }
  0x7c   : > { %988 = vmatpush.bf16.msra.mxu2 %v1388_v47  ;;  %v1436_v11 = vor.u32 %v1538_v4, %v1435_v3  ;;  %v1504_v12 = vld [vmem:[%s1897_s5 + $0x94] sm:$0xf0]  ;;  %v1363_v13 = vld [vmem:[%s1897_s5 + $0x110] sm:$0xf]  ;;  %v1227_v18 = vld [vmem:[%s1897_s5] sm:$0xf] }
  0x7d   : > { %1001 = vmatpush.bf16.msra.mxu3 %v1452_v51  ;;  %v1520_v14 = vld [vmem:[%s1897_s5 + $0x114] sm:$0xf0]  ;;  %v1427_v15 = vld [vmem:[%s1897_s5 + $0x190] sm:$0xf]  ;;  %v1486_v19 = vld [vmem:[%s1897_s5 + $0x4] sm:$0xf0]  ;;  %v1300_v21 = vor.u32 %v1504_v12, %v1299_v10 }
  0x7e   : > { %963 = vmatpush.bf16.msra.mxu0 %v1252_v57  ;;  %v1536_v16 = vld [vmem:[%s1897_s5 + $0x194] sm:$0xf0]  ;;  %v1291_v20 = vld [vmem:[%s1897_s5 + $0x80] sm:$0xf]  ;;  %v1364_v22 = vor.u32 %v1520_v14, %v1363_v13  ;;  %v1502_v23 = vld [vmem:[%s1897_s5 + $0x84] sm:$0xf0]  ;;  %v1228_v33 = vor.u32 %v1486_v19, %v1227_v18 }
  0x7f   : > { %976 = vmatpush.bf16.msra.mxu1 %v1316_v58  ;;  %v1355_v24 = vld [vmem:[%s1897_s5 + $0x100] sm:$0xf]  ;;  %v1518_v25 = vld [vmem:[%s1897_s5 + $0x104] sm:$0xf0]  ;;  %v1428_v26 = vor.u32 %v1536_v16, %v1427_v15  ;;  %v1499_v29 = vld [vmem:[%s1897_s5 + $0x74] sm:$0xf]  ;;  %v1292_v38 = vor.u32 %v1502_v23, %v1291_v20 }
  0x80   : > { %989 = vmatpush.bf16.msra.mxu2 %v1380_v59  ;;  %v1419_v27 = vld [vmem:[%s1897_s5 + $0x180] sm:$0xf]  ;;  %v1534_v28 = vld [vmem:[%s1897_s5 + $0x184] sm:$0xf0]  ;;  %v1285_v30 = vld [vmem:[%s1897_s5 + $0x78] sm:$0xf0]  ;;  %v1356_v39 = vor.u32 %v1518_v25, %v1355_v24 }
  0x81   : > { %1002 = vmatpush.bf16.msra.mxu3 %v1444_v63  ;;  %v1515_v31 = vld [vmem:[%s1897_s5 + $0xf4] sm:$0xf]  ;;  %v560_v32 = vld [vmem:[%s1883_s26 + $0x8] sm:$0xff]  ;;  %v1420_v43 = vor.u32 %v1534_v28, %v1419_v27  ;;  %v1288_v44 = vor.u32 %v1499_v29, %v1285_v30  ;;  %v1497_v48 = vld [vmem:[%s1897_s5 + $0x64] sm:$0xf]  ;;  %p1481_p13 = scmp.ne.s32.totalorder %s1644_s14, 1 }
  0x82   : > { %964 = vmatpush.bf16.msra.mxu0 %v1244_v5  ;;  %v1349_v34 = vld [vmem:[%s1897_s5 + $0xf8] sm:$0xf0]  ;;  %v1531_v35 = vld [vmem:[%s1897_s5 + $0x174] sm:$0xf]  ;;  %v629_v37 = vunpack.c.l.b16 %v560_v32  ;;  %v630_v42 = vunpack.c.h.b16 %v560_v32  ;;  %v1277_v49 = vld [vmem:[%s1897_s5 + $0x68] sm:$0xf0] }
  0x83   : > { %977 = vmatpush.bf16.msra.mxu1 %v1308_v6  ;;  %v1413_v36 = vld [vmem:[%s1897_s5 + $0x178] sm:$0xf0]  ;;  %v1547_v40 = vld [vmem:[%s1897_s5 + $0x1f4] sm:$0xf]  ;;  %v1352_v46 = vor.u32 %v1515_v31, %v1349_v34  ;;  %v1513_v50 = vld [vmem:[%s1897_s5 + $0xe4] sm:$0xf]  ;;  %v1280_v62 = vor.u32 %v1497_v48, %v1277_v49 }
  0x84   : > { %990 = vmatpush.bf16.msra.mxu2 %v1372_v7  ;;  %v1477_v41 = vld [vmem:[%s1897_s5 + $0x1f8] sm:$0xf0]  ;;  %v559_v45 = vld [vmem:[%s1883_s26] sm:$0xff]  ;;  %v1416_v47 = vor.u32 %v1531_v35, %v1413_v36  ;;  %v1341_v54 = vld [vmem:[%s1897_s5 + $0xe8] sm:$0xf0]  ;;  %v1980_v57 = vpack.c.b16 %v629_v37, %v629_v37  ;;  %v1984_v60 = vpack.c.b16 %v630_v42, %v630_v42 }
  0x85   : > { %1003 = vmatpush.bf16.msra.mxu3 %v1436_v11  ;;  %v627_v51 = vunpack.c.l.b16 %v559_v45  ;;  %v628_v52 = vunpack.c.h.b16 %v559_v45  ;;  %v1480_v53 = vor.u32 %v1547_v40, %v1477_v41  ;;  %v1529_v55 = vld [vmem:[%s1897_s5 + $0x164] sm:$0xf]  ;;  %v1405_v56 = vld [vmem:[%s1897_s5 + $0x168] sm:$0xf0]  ;;  %v1344_v0 = vor.u32 %v1513_v50, %v1341_v54  ;;  %v1495_v2 = vld [vmem:[%s1897_s5 + $0x54] sm:$0xf] }
  0x86   : > { %965 = vmatpush.bf16.msra.mxu0 %v1236_v17  ;;  %v1545_v58 = vld [vmem:[%s1897_s5 + $0x1e4] sm:$0xf]  ;;  %v1469_v59 = vld [vmem:[%s1897_s5 + $0x1e8] sm:$0xf0]  ;;  %v1408_v1 = vor.u32 %v1529_v55, %v1405_v56  ;;  %v1269_v3 = vld [vmem:[%s1897_s5 + $0x58] sm:$0xf0] }
  0x87   : > { %978 = vmatpush.bf16.msra.mxu1 %v1300_v21  ;;  %v1986_v61 = vpack.c.b16 %v627_v51, %v627_v51  ;;  %v1988_v63 = vpack.c.b16 %v628_v52, %v628_v52  ;;  %v1511_v4 = vld [vmem:[%s1897_s5 + $0xd4] sm:$0xf]  ;;  %v1472_v5 = vor.u32 %v1545_v58, %v1469_v59  ;;  %v1333_v6 = vld [vmem:[%s1897_s5 + $0xd8] sm:$0xf0]  ;;  %v1272_v11 = vor.u32 %v1495_v2, %v1269_v3  ;;  %v1493_v14 = vld [vmem:[%s1897_s5 + $0x44] sm:$0xf] }
  0x88   : > { %991 = vmatpush.bf16.msra.mxu2 %v1364_v22  ;;  %v1527_v7 = vld [vmem:[%s1897_s5 + $0x154] sm:$0xf]  ;;  %v1397_v8 = vld [vmem:[%s1897_s5 + $0x158] sm:$0xf0]  ;;  %v1336_v12 = vor.u32 %v1511_v4, %v1333_v6  ;;  %v1261_v15 = vld [vmem:[%s1897_s5 + $0x48] sm:$0xf0] }
  0x89   : > { %1004 = vmatpush.bf16.msra.mxu3 %v1428_v26  ;;  %v1543_v9 = vld [vmem:[%s1897_s5 + $0x1d4] sm:$0xf]  ;;  %v1461_v10 = vld [vmem:[%s1897_s5 + $0x1d8] sm:$0xf0]  ;;  %v1400_v13 = vor.u32 %v1527_v7, %v1397_v8  ;;  %v1509_v16 = vld [vmem:[%s1897_s5 + $0xc4] sm:$0xf]  ;;  %v1264_v23 = vor.u32 %v1493_v14, %v1261_v15 }
  0x8a   : > { %966 = vmatpush.bf16.msra.mxu0 %v1228_v33  ;;  %v1464_v17 = vor.u32 %v1543_v9, %v1461_v10  ;;  %v1325_v18 = vld [vmem:[%s1897_s5 + $0xc8] sm:$0xf0]  ;;  %v1525_v19 = vld [vmem:[%s1897_s5 + $0x144] sm:$0xf]  ;;  %v1491_v26 = vld [vmem:[%s1897_s5 + $0x34] sm:$0xf] }
  0x8b   : > { %979 = vmatpush.bf16.msra.mxu1 %v1292_v38  ;;  %v1389_v20 = vld [vmem:[%s1897_s5 + $0x148] sm:$0xf0]  ;;  %v1541_v21 = vld [vmem:[%s1897_s5 + $0x1c4] sm:$0xf]  ;;  %v1328_v24 = vor.u32 %v1509_v16, %v1325_v18  ;;  %v1253_v27 = vld [vmem:[%s1897_s5 + $0x38] sm:$0xf0] }
  0x8c   : > { %992 = vmatpush.bf16.msra.mxu2 %v1356_v39  ;;  %v1453_v22 = vld [vmem:[%s1897_s5 + $0x1c8] sm:$0xf0]  ;;  %v1392_v25 = vor.u32 %v1525_v19, %v1389_v20  ;;  %v1507_v28 = vld [vmem:[%s1897_s5 + $0xb4] sm:$0xf]  ;;  %v1317_v30 = vld [vmem:[%s1897_s5 + $0xb8] sm:$0xf0]  ;;  %v1256_v35 = vor.u32 %v1491_v26, %v1253_v27 }
  0x8d   : > { %1005 = vmatpush.bf16.msra.mxu3 %v1420_v43  ;;  %967 = vmatmul.bf16.vlgmr.msra.gmra.mxu0 %v1986_v61  ;;  %v1456_v29 = vor.u32 %v1541_v21, %v1453_v22  ;;  %v1523_v31 = vld [vmem:[%s1897_s5 + $0x134] sm:$0xf]  ;;  %v1381_v32 = vld [vmem:[%s1897_s5 + $0x138] sm:$0xf0]  ;;  %v1320_v36 = vor.u32 %v1507_v28, %v1317_v30  ;;  %v1489_v38 = vld [vmem:[%s1897_s5 + $0x24] sm:$0xf] }
  0x8e   : > { %1011 = vmatpush.bf16.msrb.mxu0 %v1288_v44  ;;  %980 = vmatmul.bf16.vlgmr.msra.gmra.mxu1 %v1988_v63  ;;  %v1539_v33 = vld [vmem:[%s1897_s5 + $0x1b4] sm:$0xf]  ;;  %v1445_v34 = vld [vmem:[%s1897_s5 + $0x1b8] sm:$0xf0]  ;;  %v1384_v37 = vor.u32 %v1523_v31, %v1381_v32  ;;  %v1245_v39 = vld [vmem:[%s1897_s5 + $0x28] sm:$0xf0] }
  0x8f   : > { %1024 = vmatpush.bf16.msrb.mxu1 %v1352_v46  ;;  %993 = vmatmul.bf16.vlgmr.msra.gmra.mxu2 %v1980_v57  ;;  %v1505_v40 = vld [vmem:[%s1897_s5 + $0xa4] sm:$0xf]  ;;  %v1448_v41 = vor.u32 %v1539_v33, %v1445_v34  ;;  %v1309_v42 = vld [vmem:[%s1897_s5 + $0xa8] sm:$0xf0]  ;;  %v1487_v50 = vld [vmem:[%s1897_s5 + $0x14] sm:$0xf] }
  0x90   : > { %1037 = vmatpush.bf16.msrb.mxu2 %v1416_v47  ;;  %1006 = vmatmul.bf16.vlgmr.msra.gmra.mxu3 %v1984_v60  ;;  %v1521_v43 = vld [vmem:[%s1897_s5 + $0x124] sm:$0xf]  ;;  %v1373_v44 = vld [vmem:[%s1897_s5 + $0x128] sm:$0xf0]  ;;  %v1248_v47 = vor.u32 %v1489_v38, %v1245_v39  ;;  %v1312_v48 = vor.u32 %v1505_v40, %v1309_v42  ;;  %v1237_v51 = vld [vmem:[%s1897_s5 + $0x18] sm:$0xf0] }
  0x91   : > { %1050 = vmatpush.bf16.msrb.mxu3 %v1480_v53  ;;  %v1537_v45 = vld [vmem:[%s1897_s5 + $0x1a4] sm:$0xf]  ;;  %v1437_v46 = vld [vmem:[%s1897_s5 + $0x1a8] sm:$0xf0]  ;;  %v1376_v49 = vor.u32 %v1521_v43, %v1373_v44  ;;  %v1503_v52 = vld [vmem:[%s1897_s5 + $0x94] sm:$0xf] }
  0x92   : > { %1012 = vmatpush.bf16.msrb.mxu0 %v1280_v62  ;;  %v1440_v53 = vor.u32 %v1537_v45, %v1437_v46  ;;  %v1301_v54 = vld [vmem:[%s1897_s5 + $0x98] sm:$0xf0]  ;;  %v1519_v55 = vld [vmem:[%s1897_s5 + $0x114] sm:$0xf]  ;;  %v1240_v62 = vor.u32 %v1487_v50, %v1237_v51  ;;  %v1485_v2 = vld [vmem:[%s1897_s5 + $0x4] sm:$0xf] }
  0x93   : > { %1025 = vmatpush.bf16.msrb.mxu1 %v1344_v0  ;;  %v1365_v56 = vld [vmem:[%s1897_s5 + $0x118] sm:$0xf0]  ;;  %v1535_v58 = vld [vmem:[%s1897_s5 + $0x194] sm:$0xf]  ;;  %v1304_v0 = vor.u32 %v1503_v52, %v1301_v54  ;;  %v1229_v3 = vld [vmem:[%s1897_s5 + $0x8] sm:$0xf0] }
  0x94   : > { %1038 = vmatpush.bf16.msrb.mxu2 %v1408_v1  ;;  %v1429_v59 = vld [vmem:[%s1897_s5 + $0x198] sm:$0xf0]  ;;  %v1368_v1 = vor.u32 %v1519_v55, %v1365_v56  ;;  %v1501_v4 = vld [vmem:[%s1897_s5 + $0x84] sm:$0xf]  ;;  %v1293_v6 = vld [vmem:[%s1897_s5 + $0x88] sm:$0xf0] }
  0x95   : > { %1051 = vmatpush.bf16.msrb.mxu3 %v1472_v5  ;;  %v1432_v5 = vor.u32 %v1535_v58, %v1429_v59  ;;  %v1517_v7 = vld [vmem:[%s1897_s5 + $0x104] sm:$0xf]  ;;  %v1357_v8 = vld [vmem:[%s1897_s5 + $0x108] sm:$0xf0]  ;;  %v557_v21 = vld [vmem:[#allocation2] sm:$0xff] }
  0x96   : > { %1013 = vmatpush.bf16.msrb.mxu0 %v1272_v11  ;;  %v1533_v9 = vld [vmem:[%s1897_s5 + $0x184] sm:$0xf]  ;;  %v1421_v10 = vld [vmem:[%s1897_s5 + $0x188] sm:$0xf0]  ;;  %v1232_v11 = vor.u32 %v1485_v2, %v1229_v3  ;;  %v558_v31 = vld [vmem:[#allocation2 + $0x8] sm:$0xff] }
  0x97   : > { %1026 = vmatpush.bf16.msrb.mxu1 %v1336_v12  ;;  %v1296_v12 = vor.u32 %v1501_v4, %v1293_v6  ;;  %v1424_v14 = vor.u32 %v1533_v9, %v1421_v10 }
  0x98   : > { %1039 = vmatpush.bf16.msrb.mxu2 %v1400_v13  ;;  %v1360_v13 = vor.u32 %v1517_v7, %v1357_v8 }
  0x99   : > { %1052 = vmatpush.bf16.msrb.mxu3 %v1464_v17 }
  0x9a   : > { %1014 = vmatpush.bf16.msrb.mxu0 %v1264_v23 }
  0x9b   : > { %1027 = vmatpush.bf16.msrb.mxu1 %v1328_v24 }
  0x9c   : > { %1040 = vmatpush.bf16.msrb.mxu2 %v1392_v25 }
  0x9d   : > { %1053 = vmatpush.bf16.msrb.mxu3 %v1456_v29 }
  0x9e   : > { %1015 = vmatpush.bf16.msrb.mxu0 %v1256_v35 }
  0x9f   : > { %1028 = vmatpush.bf16.msrb.mxu1 %v1320_v36 }
  0xa0   : > { %1041 = vmatpush.bf16.msrb.mxu2 %v1384_v37 }
  0xa1   : > { %1054 = vmatpush.bf16.msrb.mxu3 %v1448_v41 }
  0xa2   : > { %1016 = vmatpush.bf16.msrb.mxu0 %v1248_v47 }
  0xa3   : > { %1029 = vmatpush.bf16.msrb.mxu1 %v1312_v48 }
  0xa4   : > { %1042 = vmatpush.bf16.msrb.mxu2 %v1376_v49 }
  0xa5   : > { %1055 = vmatpush.bf16.msrb.mxu3 %v1440_v53 }
  0xa6   : > { %1017 = vmatpush.bf16.msrb.mxu0 %v1240_v62 }
  0xa7   : > { %1030 = vmatpush.bf16.msrb.mxu1 %v1304_v0 }
  0xa8   : > { %1043 = vmatpush.bf16.msrb.mxu2 %v1368_v1 }
  0xa9   : > { %1056 = vmatpush.bf16.msrb.mxu3 %v1432_v5 }
  0xaa   : > { %1018 = vmatpush.bf16.msrb.mxu0 %v1232_v11 }
  0xab   : > { %1031 = vmatpush.bf16.msrb.mxu1 %v1296_v12 }
  0xac   : > { %1044 = vmatpush.bf16.msrb.mxu2 %v1360_v13 }
  0xad   : > { %1057 = vmatpush.bf16.msrb.mxu3 %v1424_v14  ;;  %1019 = vmatmul.bf16.vlgmr.msrb.gmra.mxu0 %v1986_v61 }
  0xae   : > { %1032 = vmatmul.bf16.vlgmr.msrb.gmra.mxu1 %v1988_v63 }
  0xaf   : > { %1045 = vmatmul.bf16.vlgmr.msrb.gmra.mxu2 %v1980_v57 }
  0xb0   : > { %1058 = vmatmul.bf16.vlgmr.msrb.gmra.mxu3 %v1984_v60 }
 0x10a   : > { %v968_v15 = vpop.f32.mrf.mxu0 }
 0x10b   : > { %v981_v16 = vpop.f32.mrf.mxu1 }
 0x10c   : > { %v982_v17 = vadd.f32 %v981_v16, %v968_v15 }
 0x112   : > { %v994_v18 = vpop.f32.mrf.mxu2  ;;  %v970_v23 = vpop.f32.mrf.mxu0 }
 0x113   : > { %v995_v19 = vadd.f32 %v994_v18, %v982_v17  ;;  %v1007_v20 = vpop.f32.mrf.mxu3  ;;  %v983_v24 = vpop.f32.mrf.mxu1 }
 0x115   : > { %v1008_v22 = vadd.f32 %v1007_v20, %v995_v19 }
 0x117   : > { %v1063_v25 = vadd.f32 %v1008_v22, %v557_v21 }
 0x119   : > { %1065 = vst [vmem:[#allocation2] sm:$0xff] %v1063_v25 }
 0x11a   : > { %v996_v26 = vpop.f32.mrf.mxu2 }
 0x11b   : > { %v1009_v61 = vpop.f32.mrf.mxu3 }
 0x12a   : > { %v1020_v27 = vpop.f32.mrf.mxu0 }
 0x12b   : > { %v1033_v63 = vpop.f32.mrf.mxu1 }
 0x12c   : > { %v1034_v28 = vadd.f32 %v1033_v63, %v1020_v27 }
 0x132   : > { %v1046_v57 = vpop.f32.mrf.mxu2  ;;  %v1022_v30 = vpop.f32.mrf.mxu0 }
 0x133   : > { %v1047_v29 = vadd.f32 %v1046_v57, %v1034_v28  ;;  %v1059_v60 = vpop.f32.mrf.mxu3  ;;  %v1035_v32 = vpop.f32.mrf.mxu1 }
 0x135   : > { %v1060_v33 = vadd.f32 %v1059_v60, %v1047_v29 }
 0x137   : > { %v1064_v34 = vadd.f32 %v1060_v33, %v558_v31  ;;  %1070 = sbr.rel (%p1481_p13) target bundleno = 328 (0x148), region = 78 }
 0x139   : > { %1066 = vst [vmem:[#allocation2 + $0x8] sm:$0xff] %v1064_v34 }
 0x13a   : > { %v1048_v35 = vpop.f32.mrf.mxu2 }
 0x13b   : > { %v1061_v36 = vpop.f32.mrf.mxu3 }
 0x13c   : > { %v1071_v37 = vld [vmem:[#allocation2] sm:$0xff] }
 0x13d   : > { %v1073_v39 = vld [vmem:[%s539_s12] sm:$0x3] }
 0x13e   : > { %v1075_v40 = vperm.slane %v1073_v39, 0  ;;  %v1076_v41 = vperm.slane %v1073_v39, 1 }
 0x140   : > { %v1072_v38 = vld [vmem:[#allocation2 + $0x8] sm:$0xff]  ;;  %v1079_v42 = vadd.f32 %v1075_v40, %v1071_v37 }
 0x141   : > { %v1080_v43 = vadd.f32 %v1076_v41, %v1072_v38 }
 0x142   : > { %v1081_v44 = vmax.f32 %v1079_v42, 0.0 }
 0x143   : > { %v1082_v45 = vmax.f32 %v1080_v43, 0.0 }
 0x145   : > { %v1083_v46 = vpack.c.bf16 %v1082_v45, %v1081_v44 }
 0x147   : > { %1084 = vst [vmem:[%s1895_s15] sm:$0xff] %v1083_v46 }
 0x148 PF: > { %s13_s18 = sadd.s32 1, %s1660_s18   ;;  %s2078_s12 = smov %s1640_s13 }
 0x149   : > { %p10_p0 = scmp.ge.s32.totalorder %s13_s18, 6   ;;  %s2079_s13 = smov %s1734_s25 }
 0x14a   : > { %s2080_s14 = smov %s1652_s16  ;;  %s2081_s15 = smov %s1656_s17 }
 0x14b   : > { %s2082_s16 = smov %s2085_s19  ;;  %s2083_s17 = smov %s2089_s20 }
 0x14c   :  { %12 = sbr.rel (!%p10_p0) target bundleno = 4 (0x4), region = 119 }

// kernel: _lambda_.39
= control target key start
LH: loop header
LB: loop body
LE: loop exit
PB: predicated region body
PF: predicated region fallthrough
CT: control target
= control target key end

     0   :  { %vm41_vm0 = vcmask 1041409   ;;  %vm43_vm1 = vcmask 1043459   ;;  %vm45_vm2 = vcmask 1045509   ;;  %vm47_vm3 = vcmask 1047559   ;;  %s132_s0 = inlined_call_operand.vmem [shape: bf16[2,1,2048], index: 0, kind: input, shape index: {}]   ;;  %s133_s1 = inlined_call_operand.vmem [shape: f32[2,2048], index: 1, kind: output, shape index: {}]  }
   0x1   :  { %v8_v0 = vld [vmem:[%s132_s0] sm:$0xff]  ;;  %v10_v1 = vld [vmem:[%s132_s0 + $0x10] sm:$0xff]  ;;  %v9_v2 = vld [vmem:[%s132_s0 + $0x8] sm:$0xff] }
   0x2   :  { %v12_v3 = vunpack.c.l.bf16 %v8_v0  ;;  %v16_v4 = vunpack.c.l.bf16 %v10_v1  ;;  %v13_v5 = vunpack.c.h.bf16 %v8_v0  ;;  %v17_v6 = vunpack.c.h.bf16 %v10_v1  ;;  %v11_v7 = vld [vmem:[%s132_s0 + $0x18] sm:$0xff] }
   0x3   :  { %v14_v8 = vunpack.c.l.bf16 %v9_v2  ;;  %v18_v9 = vunpack.c.l.bf16 %v11_v7  ;;  %v15_v10 = vunpack.c.h.bf16 %v9_v2  ;;  %v19_v11 = vunpack.c.h.bf16 %v11_v7 }
   0x4   :  { %v40_v12 = vrot.slane %v16_v4, 7  ;;  %v51_v13 = vrot.slane %v17_v6, 7 }
   0x5   :  { %v58_v14 = vrot.slane %v18_v9, 7  ;;  %v65_v15 = vrot.slane %v19_v11, 7 }
   0x6   :  { %v42_v16 = vsel %vm41_vm0, %v40_v12, %v12_v3  ;;  %v52_v17 = vsel %vm41_vm0, %v51_v13, %v13_v5 }
   0x7   :  { %v44_v18 = vsel %vm43_vm1, %v40_v12, %v42_v16  ;;  %v53_v19 = vsel %vm43_vm1, %v51_v13, %v52_v17  ;;  %v59_v20 = vsel %vm41_vm0, %v58_v14, %v14_v8  ;;  %v66_v21 = vsel %vm41_vm0, %v65_v15, %v15_v10 }
   0x8   :  { %v46_v22 = vsel %vm45_vm2, %v40_v12, %v44_v18  ;;  %v54_v23 = vsel %vm45_vm2, %v51_v13, %v53_v19  ;;  %v60_v24 = vsel %vm43_vm1, %v58_v14, %v59_v20  ;;  %v67_v25 = vsel %vm43_vm1, %v65_v15, %v66_v21 }
   0x9   :  { %v48_v26 = vsel %vm47_vm3, %v40_v12, %v46_v22  ;;  %v55_v27 = vsel %vm47_vm3, %v51_v13, %v54_v23  ;;  %v61_v28 = vsel %vm45_vm2, %v58_v14, %v60_v24  ;;  %v68_v29 = vsel %vm45_vm2, %v65_v15, %v67_v25 }
   0xa   :  { %74 = vst [vmem:[%s133_s1] sm:$0xff] %v48_v26  ;;  %v62_v30 = vsel %vm47_vm3, %v58_v14, %v61_v28  ;;  %v69_v31 = vsel %vm47_vm3, %v65_v15, %v68_v29 }
   0xb   :  { %75 = vst [vmem:[%s133_s1 + $0x8] sm:$0xff] %v55_v27 }
   0xc   :  { %76 = vst [vmem:[%s133_s1 + $0x10] sm:$0xff] %v62_v30 }
   0xd   :  { %77 = vst [vmem:[%s133_s1 + $0x18] sm:$0xff] %v69_v31 }

// kernel: _lambda_.37
= control target key start
LH: loop header
LB: loop body
LE: loop exit
PB: predicated region body
PF: predicated region fallthrough
CT: control target
= control target key end

     0   :  { %s1681_s12 = smov 0   ;;  %s1683_s13 = smov 0   ;;  %s2072_s0 = inlined_call_operand.vmem [shape: bf16[8,1024], index: 0, kind: input, shape index: {}]   ;;  %s2073_s1 = inlined_call_operand.vmem [shape: bf16[1024,2048], index: 1, kind: input, shape index: {}]   ;;  %s2074_s2 = inlined_call_operand.vmem [shape: f32[1,2048], index: 2, kind: input, shape index: {}]   ;;  %s2075_s3 = inlined_call_operand.vmem [shape: bf16[8,2048], index: 3, kind: output, shape index: {}]  }
   0x1   :  { %s1685_s14 = smov 0   ;;  %s1687_s15 = smov 0  }
   0x2   :  { %s1689_s16 = smov 0   ;;  %s1691_s17 = smov 0  }
   0x3   :  { %s1693_s18 = smov 0  }
   0x4 LB: > { %s25_s19 = sadd.s32 1, %s1650_s16  ;;  %s28_s20 = sadd.s32 1, %s1654_s17  ;;  %s1658_s18 = sphi %s1693_s18, %s13_s18   ;;  %s1654_s17 = sphi %s1691_s17, %s2081_s17   ;;  %s1650_s16 = sphi %s1689_s16, %s2080_s16   ;;  %s1646_s15 = sphi %s1687_s15, %s2079_s15   ;;  %s1642_s14 = sphi %s1685_s14, %s2078_s14   ;;  %s1638_s13 = sphi %s1683_s13, %s2077_s13   ;;  %s1634_s12 = sphi %s1681_s12, %s2076_s12  }
   0x5   : > { %p26_p0 = scmp.ge.s32.totalorder %s25_s19, 2  ;;  %p76_p1 = scmp.ne.s32.totalorder %s1638_s13, %s1634_s12 }
   0x6   : > { %p77_p2 = scmp.eq.s32.totalorder %s1658_s18, 0  ;;  %s69_s24 = sadd.s32 1, %s1638_s13 }
   0x7   : > { %s2083_s19 = smov (%p26_p0, %s25_s19), 0  ;;  %s2085_s20 = smov (!%p26_p0, %s28_s20), %s1654_s17 }
   0x8   : > { %p78_p3 = por %p77_p2, %p76_p1  ;;  %p30_p4 = scmp.ge.s32.totalorder %s2085_s20, 8 }
   0x9   : > { %s64_s21 = ssub.s32 %s1650_s16, %s2083_s19  ;;  %p1209_p6 = scmp.ge.s32.totalorder %s1658_s18, 16 }
   0xa   : > { %s2087_s20 = smov (%p30_p4, %s2085_s20), 0 }
   0xb   : > { %s65_s22 = ssub.s32 %s1654_s17, %s2087_s20  ;;  %156 = sbr.rel (%p1209_p6) target bundleno = 87 (0x57), region = 16 }
   0xc   : > { %s66_s23 = sor.u32 %s65_s22, %s64_s21 }
   0xd   : > { %p67_p5 = scmp.eq.s32.totalorder %s66_s23, 0 }
   0xf   : > { %s1732_s25 = scalar_select %p67_p5, %s1638_s13, %s69_s24  }
  0x10   : > { %172 = sbr.rel (!%p78_p3) target bundleno = 87 (0x57), region = 24  ;;  %s174_s26 = sand.u32 (%p78_p3), 1, %s1638_s13  }
  0x11   : > { %s1212_s27 = sshll.u32 (%p78_p3), %s1654_s17, 1  ;;  %s1210_s28 = sshll.u32 (%p78_p3), %s174_s26, 9 }
  0x12   : > { %s1482_s29 = sshll.u32 (%p78_p3), %s1650_s16, 10  ;;  %s1746_s8 = scalar_lea.vmem (%p78_p3), [#allocation3], %s1210_s28 }
  0x13   : > { %s180_s30 = sadd.s32 (%p78_p3), %s1482_s29, %s1212_s27 }
  0x14   : > { %s1214_s4 = sshll.u32 (%p78_p3), %s180_s30, 2 }
  0x15   : > { %s1741_s7 = scalar_lea.vmem %s2073_s1, %s1214_s4 }
  0x16   : > { %v337_v0 = vld [vmem:[%s1741_s7] sm:$0xff] }
  0x17   : > { %v339_v1 = vld [vmem:[%s1741_s7 + $0x40] sm:$0xff]  ;;  %338 = vst [vmem:[%s1746_s8] sm:$0xff] %v337_v0 }
  0x18   : > { %v341_v2 = vld [vmem:[%s1741_s7 + $0x80] sm:$0xff]  ;;  %340 = vst [vmem:[%s1746_s8 + $0x8] sm:$0xff] %v339_v1 }
  0x19   : > { %v343_v3 = vld [vmem:[%s1741_s7 + $0xc0] sm:$0xff]  ;;  %342 = vst [vmem:[%s1746_s8 + $0x10] sm:$0xff] %v341_v2 }
  0x1a   : > { %v345_v4 = vld [vmem:[%s1741_s7 + $0x100] sm:$0xff]  ;;  %344 = vst [vmem:[%s1746_s8 + $0x18] sm:$0xff] %v343_v3 }
  0x1b   : > { %v347_v5 = vld [vmem:[%s1741_s7 + $0x140] sm:$0xff]  ;;  %346 = vst [vmem:[%s1746_s8 + $0x20] sm:$0xff] %v345_v4 }
  0x1c   : > { %v349_v6 = vld [vmem:[%s1741_s7 + $0x180] sm:$0xff]  ;;  %348 = vst [vmem:[%s1746_s8 + $0x28] sm:$0xff] %v347_v5 }
  0x1d   : > { %v351_v7 = vld [vmem:[%s1741_s7 + $0x1c0] sm:$0xff]  ;;  %350 = vst [vmem:[%s1746_s8 + $0x30] sm:$0xff] %v349_v6 }
  0x1e   : > { %v353_v8 = vld [vmem:[%s1741_s7 + $0x200] sm:$0xff]  ;;  %352 = vst [vmem:[%s1746_s8 + $0x38] sm:$0xff] %v351_v7 }
  0x1f   : > { %v355_v9 = vld [vmem:[%s1741_s7 + $0x240] sm:$0xff]  ;;  %354 = vst [vmem:[%s1746_s8 + $0x40] sm:$0xff] %v353_v8 }
  0x20   : > { %v357_v10 = vld [vmem:[%s1741_s7 + $0x280] sm:$0xff]  ;;  %356 = vst [vmem:[%s1746_s8 + $0x48] sm:$0xff] %v355_v9 }
  0x21   : > { %v359_v11 = vld [vmem:[%s1741_s7 + $0x2c0] sm:$0xff]  ;;  %358 = vst [vmem:[%s1746_s8 + $0x50] sm:$0xff] %v357_v10 }
  0x22   : > { %v361_v12 = vld [vmem:[%s1741_s7 + $0x300] sm:$0xff]  ;;  %360 = vst [vmem:[%s1746_s8 + $0x58] sm:$0xff] %v359_v11 }
  0x23   : > { %v363_v13 = vld [vmem:[%s1741_s7 + $0x340] sm:$0xff]  ;;  %362 = vst [vmem:[%s1746_s8 + $0x60] sm:$0xff] %v361_v12 }
  0x24   : > { %v365_v14 = vld [vmem:[%s1741_s7 + $0x380] sm:$0xff]  ;;  %364 = vst [vmem:[%s1746_s8 + $0x68] sm:$0xff] %v363_v13 }
  0x25   : > { %v367_v15 = vld [vmem:[%s1741_s7 + $0x3c0] sm:$0xff]  ;;  %366 = vst [vmem:[%s1746_s8 + $0x70] sm:$0xff] %v365_v14 }
  0x26   : > { %v369_v16 = vld [vmem:[%s1741_s7 + $0x400] sm:$0xff]  ;;  %368 = vst [vmem:[%s1746_s8 + $0x78] sm:$0xff] %v367_v15 }
  0x27   : > { %v371_v17 = vld [vmem:[%s1741_s7 + $0x440] sm:$0xff]  ;;  %370 = vst [vmem:[%s1746_s8 + $0x80] sm:$0xff] %v369_v16 }
  0x28   : > { %v373_v18 = vld [vmem:[%s1741_s7 + $0x480] sm:$0xff]  ;;  %372 = vst [vmem:[%s1746_s8 + $0x88] sm:$0xff] %v371_v17 }
  0x29   : > { %v375_v19 = vld [vmem:[%s1741_s7 + $0x4c0] sm:$0xff]  ;;  %374 = vst [vmem:[%s1746_s8 + $0x90] sm:$0xff] %v373_v18 }
  0x2a   : > { %v377_v20 = vld [vmem:[%s1741_s7 + $0x500] sm:$0xff]  ;;  %376 = vst [vmem:[%s1746_s8 + $0x98] sm:$0xff] %v375_v19 }
  0x2b   : > { %v379_v21 = vld [vmem:[%s1741_s7 + $0x540] sm:$0xff]  ;;  %378 = vst [vmem:[%s1746_s8 + $0xa0] sm:$0xff] %v377_v20 }
  0x2c   : > { %v381_v22 = vld [vmem:[%s1741_s7 + $0x580] sm:$0xff]  ;;  %380 = vst [vmem:[%s1746_s8 + $0xa8] sm:$0xff] %v379_v21 }
  0x2d   : > { %v383_v23 = vld [vmem:[%s1741_s7 + $0x5c0] sm:$0xff]  ;;  %382 = vst [vmem:[%s1746_s8 + $0xb0] sm:$0xff] %v381_v22 }
  0x2e   : > { %v385_v24 = vld [vmem:[%s1741_s7 + $0x600] sm:$0xff]  ;;  %384 = vst [vmem:[%s1746_s8 + $0xb8] sm:$0xff] %v383_v23 }
  0x2f   : > { %v387_v25 = vld [vmem:[%s1741_s7 + $0x640] sm:$0xff]  ;;  %386 = vst [vmem:[%s1746_s8 + $0xc0] sm:$0xff] %v385_v24 }
  0x30   : > { %v389_v26 = vld [vmem:[%s1741_s7 + $0x680] sm:$0xff]  ;;  %388 = vst [vmem:[%s1746_s8 + $0xc8] sm:$0xff] %v387_v25 }
  0x31   : > { %v391_v27 = vld [vmem:[%s1741_s7 + $0x6c0] sm:$0xff]  ;;  %390 = vst [vmem:[%s1746_s8 + $0xd0] sm:$0xff] %v389_v26 }
  0x32   : > { %v393_v28 = vld [vmem:[%s1741_s7 + $0x700] sm:$0xff]  ;;  %392 = vst [vmem:[%s1746_s8 + $0xd8] sm:$0xff] %v391_v27 }
  0x33   : > { %v395_v29 = vld [vmem:[%s1741_s7 + $0x740] sm:$0xff]  ;;  %394 = vst [vmem:[%s1746_s8 + $0xe0] sm:$0xff] %v393_v28 }
  0x34   : > { %v397_v30 = vld [vmem:[%s1741_s7 + $0x780] sm:$0xff]  ;;  %396 = vst [vmem:[%s1746_s8 + $0xe8] sm:$0xff] %v395_v29 }
  0x35   : > { %v399_v31 = vld [vmem:[%s1741_s7 + $0x7c0] sm:$0xff]  ;;  %398 = vst [vmem:[%s1746_s8 + $0xf0] sm:$0xff] %v397_v30 }
  0x36   : > { %v401_v32 = vld [vmem:[%s1741_s7 + $0x800] sm:$0xff]  ;;  %400 = vst [vmem:[%s1746_s8 + $0xf8] sm:$0xff] %v399_v31 }
  0x37   : > { %v403_v33 = vld [vmem:[%s1741_s7 + $0x840] sm:$0xff]  ;;  %402 = vst [vmem:[%s1746_s8 + $0x100] sm:$0xff] %v401_v32 }
  0x38   : > { %v405_v34 = vld [vmem:[%s1741_s7 + $0x880] sm:$0xff]  ;;  %404 = vst [vmem:[%s1746_s8 + $0x108] sm:$0xff] %v403_v33 }
  0x39   : > { %v407_v35 = vld [vmem:[%s1741_s7 + $0x8c0] sm:$0xff]  ;;  %406 = vst [vmem:[%s1746_s8 + $0x110] sm:$0xff] %v405_v34 }
  0x3a   : > { %v409_v36 = vld [vmem:[%s1741_s7 + $0x900] sm:$0xff]  ;;  %408 = vst [vmem:[%s1746_s8 + $0x118] sm:$0xff] %v407_v35 }
  0x3b   : > { %v411_v37 = vld [vmem:[%s1741_s7 + $0x940] sm:$0xff]  ;;  %410 = vst [vmem:[%s1746_s8 + $0x120] sm:$0xff] %v409_v36 }
  0x3c   : > { %v413_v38 = vld [vmem:[%s1741_s7 + $0x980] sm:$0xff]  ;;  %412 = vst [vmem:[%s1746_s8 + $0x128] sm:$0xff] %v411_v37 }
  0x3d   : > { %v415_v39 = vld [vmem:[%s1741_s7 + $0x9c0] sm:$0xff]  ;;  %414 = vst [vmem:[%s1746_s8 + $0x130] sm:$0xff] %v413_v38 }
  0x3e   : > { %v417_v40 = vld [vmem:[%s1741_s7 + $0xa00] sm:$0xff]  ;;  %416 = vst [vmem:[%s1746_s8 + $0x138] sm:$0xff] %v415_v39 }
  0x3f   : > { %v419_v41 = vld [vmem:[%s1741_s7 + $0xa40] sm:$0xff]  ;;  %418 = vst [vmem:[%s1746_s8 + $0x140] sm:$0xff] %v417_v40 }
  0x40   : > { %v421_v42 = vld [vmem:[%s1741_s7 + $0xa80] sm:$0xff]  ;;  %420 = vst [vmem:[%s1746_s8 + $0x148] sm:$0xff] %v419_v41 }
  0x41   : > { %v423_v43 = vld [vmem:[%s1741_s7 + $0xac0] sm:$0xff]  ;;  %422 = vst [vmem:[%s1746_s8 + $0x150] sm:$0xff] %v421_v42 }
  0x42   : > { %v425_v44 = vld [vmem:[%s1741_s7 + $0xb00] sm:$0xff]  ;;  %424 = vst [vmem:[%s1746_s8 + $0x158] sm:$0xff] %v423_v43 }
  0x43   : > { %v427_v45 = vld [vmem:[%s1741_s7 + $0xb40] sm:$0xff]  ;;  %426 = vst [vmem:[%s1746_s8 + $0x160] sm:$0xff] %v425_v44 }
  0x44   : > { %v429_v46 = vld [vmem:[%s1741_s7 + $0xb80] sm:$0xff]  ;;  %428 = vst [vmem:[%s1746_s8 + $0x168] sm:$0xff] %v427_v45 }
  0x45   : > { %v431_v47 = vld [vmem:[%s1741_s7 + $0xbc0] sm:$0xff]  ;;  %430 = vst [vmem:[%s1746_s8 + $0x170] sm:$0xff] %v429_v46 }
  0x46   : > { %v433_v48 = vld [vmem:[%s1741_s7 + $0xc00] sm:$0xff]  ;;  %432 = vst [vmem:[%s1746_s8 + $0x178] sm:$0xff] %v431_v47 }
  0x47   : > { %v435_v49 = vld [vmem:[%s1741_s7 + $0xc40] sm:$0xff]  ;;  %434 = vst [vmem:[%s1746_s8 + $0x180] sm:$0xff] %v433_v48 }
  0x48   : > { %v437_v50 = vld [vmem:[%s1741_s7 + $0xc80] sm:$0xff]  ;;  %436 = vst [vmem:[%s1746_s8 + $0x188] sm:$0xff] %v435_v49 }
  0x49   : > { %v439_v51 = vld [vmem:[%s1741_s7 + $0xcc0] sm:$0xff]  ;;  %438 = vst [vmem:[%s1746_s8 + $0x190] sm:$0xff] %v437_v50 }
  0x4a   : > { %v441_v52 = vld [vmem:[%s1741_s7 + $0xd00] sm:$0xff]  ;;  %440 = vst [vmem:[%s1746_s8 + $0x198] sm:$0xff] %v439_v51 }
  0x4b   : > { %v443_v53 = vld [vmem:[%s1741_s7 + $0xd40] sm:$0xff]  ;;  %442 = vst [vmem:[%s1746_s8 + $0x1a0] sm:$0xff] %v441_v52 }
  0x4c   : > { %v445_v54 = vld [vmem:[%s1741_s7 + $0xd80] sm:$0xff]  ;;  %444 = vst [vmem:[%s1746_s8 + $0x1a8] sm:$0xff] %v443_v53 }
  0x4d   : > { %v447_v55 = vld [vmem:[%s1741_s7 + $0xdc0] sm:$0xff]  ;;  %446 = vst [vmem:[%s1746_s8 + $0x1b0] sm:$0xff] %v445_v54 }
  0x4e   : > { %v449_v56 = vld [vmem:[%s1741_s7 + $0xe00] sm:$0xff]  ;;  %448 = vst [vmem:[%s1746_s8 + $0x1b8] sm:$0xff] %v447_v55 }
  0x4f   : > { %v451_v57 = vld [vmem:[%s1741_s7 + $0xe40] sm:$0xff]  ;;  %450 = vst [vmem:[%s1746_s8 + $0x1c0] sm:$0xff] %v449_v56 }
  0x50   : > { %v453_v58 = vld [vmem:[%s1741_s7 + $0xe80] sm:$0xff]  ;;  %452 = vst [vmem:[%s1746_s8 + $0x1c8] sm:$0xff] %v451_v57 }
  0x51   : > { %v455_v59 = vld [vmem:[%s1741_s7 + $0xec0] sm:$0xff]  ;;  %454 = vst [vmem:[%s1746_s8 + $0x1d0] sm:$0xff] %v453_v58 }
  0x52   : > { %v457_v60 = vld [vmem:[%s1741_s7 + $0xf00] sm:$0xff]  ;;  %456 = vst [vmem:[%s1746_s8 + $0x1d8] sm:$0xff] %v455_v59 }
  0x53   : > { %v459_v61 = vld [vmem:[%s1741_s7 + $0xf40] sm:$0xff]  ;;  %458 = vst [vmem:[%s1746_s8 + $0x1e0] sm:$0xff] %v457_v60 }
  0x54   : > { %v461_v62 = vld [vmem:[%s1741_s7 + $0xf80] sm:$0xff]  ;;  %460 = vst [vmem:[%s1746_s8 + $0x1e8] sm:$0xff] %v459_v61 }
  0x55   : > { %v463_v63 = vld [vmem:[%s1741_s7 + $0xfc0] sm:$0xff]  ;;  %462 = vst [vmem:[%s1746_s8 + $0x1f0] sm:$0xff] %v461_v62 }
  0x56   : > { %464 = vst [vmem:[%s1746_s8 + $0x1f8] sm:$0xff] %v463_v63 }
  0x57 PF: > { %p1215_p7 = scmp.ge.s32.totalorder %s1658_s18, 1  ;;  %p477_p8 = scmp.lt.s32.totalorder %s1658_s18, 17 }
  0x59   : > { %p478_p9 = pnand %p1215_p7, %p477_p8 }
  0x5a   : > { %s484_s9 = sand.u32 (!%p478_p9), 1, %s1634_s12   ;;  %s1217_s10 = sshll.u32 (!%p478_p9), %s1642_s14, 2 }
  0x5b   : > { %481 = sbr.rel (%p478_p9) target bundleno = 326 (0x146), region = 66  ;;  %s1216_s11 = sshll.u32 (!%p478_p9), %s484_s9, 9 }
  0x5c   : > { %p527_p10 = scmp.lt.s32.totalorder (!%p478_p9), %s1217_s10, 7  ;;  %s1219_s21 = sshll.u32 (!%p478_p9), %s1646_s15, 1 }
  0x5d   : > { %p537_p11 = scmp.lt.s32.totalorder (!%p478_p9), %s1219_s21, 15  ;;  %s1895_s5 = scalar_lea.vmem (!%p478_p9), [#allocation3], %s1216_s11 }
  0x5e   : > { %p1222_p12 = scmp.ne.s32.totalorder (!%p478_p9), %s1642_s14, 0 }
  0x60   : > { %s2089_s10 = smov (!%p527_p10, %s1217_s10), 7  ;;  %s2091_s21 = smov (!%p537_p11, %s1219_s21), 15 }
  0x61   : > { %s1218_s22 = sshll.u32 %s2089_s10, 2  ;;  %s539_s12 = scalar_lea.vmem %s2074_s2, %s2091_s21 }
  0x62   : > { %s1881_s26 = scalar_lea.vmem %s2072_s0, %s1218_s22  ;;  %s1221_s29 = sshll.u32 %s2091_s21, 2 }
  0x63   : > { %s1893_s15 = scalar_lea.vmem %s2075_s3, %s1221_s29  ;;  %554 = sbr.rel (%p1222_p12) target bundleno = 107 (0x6b), region = 74 }
  0x68   : > { %v1660_v0 = vmov 0.0  }
  0x69   : > { %555 = vst [vmem:[#allocation2] sm:$0xff] %v1660_v0 }
  0x6a   : > { %556 = vst [vmem:[#allocation2 + $0x8] sm:$0xff] %v1660_v0 }
  0x6b PF: > { %v1281_v1 = vld [vmem:[%s1895_s5 + $0x70] sm:$0xf]  ;;  %v1498_v2 = vld [vmem:[%s1895_s5 + $0x74] sm:$0xf0]  ;;  %v1273_v12 = vld [vmem:[%s1895_s5 + $0x60] sm:$0xf] }
  0x6c   : > { %v1345_v3 = vld [vmem:[%s1895_s5 + $0xf0] sm:$0xf]  ;;  %v1282_v4 = vor.u32 %v1498_v2, %v1281_v1  ;;  %v1514_v5 = vld [vmem:[%s1895_s5 + $0xf4] sm:$0xf0]  ;;  %v1496_v14 = vld [vmem:[%s1895_s5 + $0x64] sm:$0xf0] }
  0x6d   : > { %v1409_v6 = vld [vmem:[%s1895_s5 + $0x170] sm:$0xf]  ;;  %v1530_v7 = vld [vmem:[%s1895_s5 + $0x174] sm:$0xf0]  ;;  %v1346_v8 = vor.u32 %v1514_v5, %v1345_v3  ;;  %v1337_v15 = vld [vmem:[%s1895_s5 + $0xe0] sm:$0xf]  ;;  %v1274_v17 = vor.u32 %v1496_v14, %v1273_v12 }
  0x6e   : > { %v1410_v9 = vor.u32 %v1530_v7, %v1409_v6  ;;  %v1473_v10 = vld [vmem:[%s1895_s5 + $0x1f0] sm:$0xf]  ;;  %v1546_v11 = vld [vmem:[%s1895_s5 + $0x1f4] sm:$0xf0]  ;;  %959 = vmatpush.bf16.msra.mxu0 %v1282_v4  ;;  %v1512_v16 = vld [vmem:[%s1895_s5 + $0xe4] sm:$0xf0] }
  0x6f   : > { %v1474_v13 = vor.u32 %v1546_v11, %v1473_v10  ;;  %972 = vmatpush.bf16.msra.mxu1 %v1346_v8  ;;  %v1338_v18 = vor.u32 %v1512_v16, %v1337_v15  ;;  %v1401_v19 = vld [vmem:[%s1895_s5 + $0x160] sm:$0xf]  ;;  %v1528_v20 = vld [vmem:[%s1895_s5 + $0x164] sm:$0xf0]  ;;  %v1265_v24 = vld [vmem:[%s1895_s5 + $0x50] sm:$0xf] }
  0x70   : > { %985 = vmatpush.bf16.msra.mxu2 %v1410_v9  ;;  %v1465_v21 = vld [vmem:[%s1895_s5 + $0x1e0] sm:$0xf]  ;;  %v1402_v22 = vor.u32 %v1528_v20, %v1401_v19  ;;  %v1544_v23 = vld [vmem:[%s1895_s5 + $0x1e4] sm:$0xf0]  ;;  %v1494_v25 = vld [vmem:[%s1895_s5 + $0x54] sm:$0xf0] }
  0x71   : > { %998 = vmatpush.bf16.msra.mxu3 %v1474_v13  ;;  %v1466_v26 = vor.u32 %v1544_v23, %v1465_v21  ;;  %v1329_v27 = vld [vmem:[%s1895_s5 + $0xd0] sm:$0xf]  ;;  %v1510_v28 = vld [vmem:[%s1895_s5 + $0xd4] sm:$0xf0]  ;;  %v1266_v30 = vor.u32 %v1494_v25, %v1265_v24  ;;  %v1257_v36 = vld [vmem:[%s1895_s5 + $0x40] sm:$0xf] }
  0x72   : > { %v1393_v29 = vld [vmem:[%s1895_s5 + $0x150] sm:$0xf]  ;;  %960 = vmatpush.bf16.msra.mxu0 %v1274_v17  ;;  %v1526_v31 = vld [vmem:[%s1895_s5 + $0x154] sm:$0xf0]  ;;  %v1330_v34 = vor.u32 %v1510_v28, %v1329_v27  ;;  %v1492_v37 = vld [vmem:[%s1895_s5 + $0x44] sm:$0xf0] }
  0x73   : > { %v1457_v32 = vld [vmem:[%s1895_s5 + $0x1d0] sm:$0xf]  ;;  %v1542_v33 = vld [vmem:[%s1895_s5 + $0x1d4] sm:$0xf0]  ;;  %973 = vmatpush.bf16.msra.mxu1 %v1338_v18  ;;  %v1394_v35 = vor.u32 %v1526_v31, %v1393_v29  ;;  %v1321_v38 = vld [vmem:[%s1895_s5 + $0xc0] sm:$0xf]  ;;  %v1258_v45 = vor.u32 %v1492_v37, %v1257_v36 }
  0x74   : > { %986 = vmatpush.bf16.msra.mxu2 %v1402_v22  ;;  %v1458_v39 = vor.u32 %v1542_v33, %v1457_v32  ;;  %v1508_v40 = vld [vmem:[%s1895_s5 + $0xc4] sm:$0xf0]  ;;  %v1385_v41 = vld [vmem:[%s1895_s5 + $0x140] sm:$0xf]  ;;  %v1249_v48 = vld [vmem:[%s1895_s5 + $0x30] sm:$0xf] }
  0x75   : > { %999 = vmatpush.bf16.msra.mxu3 %v1466_v26  ;;  %v1524_v42 = vld [vmem:[%s1895_s5 + $0x144] sm:$0xf0]  ;;  %v1449_v43 = vld [vmem:[%s1895_s5 + $0x1c0] sm:$0xf]  ;;  %v1322_v46 = vor.u32 %v1508_v40, %v1321_v38  ;;  %v1490_v49 = vld [vmem:[%s1895_s5 + $0x34] sm:$0xf0] }
  0x76   : > { %v1540_v44 = vld [vmem:[%s1895_s5 + $0x1c4] sm:$0xf0]  ;;  %961 = vmatpush.bf16.msra.mxu0 %v1266_v30  ;;  %v1386_v47 = vor.u32 %v1524_v42, %v1385_v41  ;;  %v1313_v50 = vld [vmem:[%s1895_s5 + $0xb0] sm:$0xf]  ;;  %v1506_v52 = vld [vmem:[%s1895_s5 + $0xb4] sm:$0xf0]  ;;  %v1250_v57 = vor.u32 %v1490_v49, %v1249_v48 }
  0x77   : > { %974 = vmatpush.bf16.msra.mxu1 %v1330_v34  ;;  %v1450_v51 = vor.u32 %v1540_v44, %v1449_v43  ;;  %v1377_v53 = vld [vmem:[%s1895_s5 + $0x130] sm:$0xf]  ;;  %v1522_v54 = vld [vmem:[%s1895_s5 + $0x134] sm:$0xf0]  ;;  %v1314_v58 = vor.u32 %v1506_v52, %v1313_v50  ;;  %v1241_v60 = vld [vmem:[%s1895_s5 + $0x20] sm:$0xf] }
  0x78   : > { %987 = vmatpush.bf16.msra.mxu2 %v1394_v35  ;;  %v1441_v55 = vld [vmem:[%s1895_s5 + $0x1b0] sm:$0xf]  ;;  %v1538_v56 = vld [vmem:[%s1895_s5 + $0x1b4] sm:$0xf0]  ;;  %v1378_v59 = vor.u32 %v1522_v54, %v1377_v53  ;;  %v1488_v61 = vld [vmem:[%s1895_s5 + $0x24] sm:$0xf0] }
  0x79   : > { %1000 = vmatpush.bf16.msra.mxu3 %v1458_v39  ;;  %v1305_v62 = vld [vmem:[%s1895_s5 + $0xa0] sm:$0xf]  ;;  %v1442_v63 = vor.u32 %v1538_v56, %v1441_v55  ;;  %v1504_v0 = vld [vmem:[%s1895_s5 + $0xa4] sm:$0xf0]  ;;  %v1242_v5 = vor.u32 %v1488_v61, %v1241_v60  ;;  %v1233_v8 = vld [vmem:[%s1895_s5 + $0x10] sm:$0xf] }
  0x7a   : > { %962 = vmatpush.bf16.msra.mxu0 %v1258_v45  ;;  %v1369_v1 = vld [vmem:[%s1895_s5 + $0x120] sm:$0xf]  ;;  %v1520_v2 = vld [vmem:[%s1895_s5 + $0x124] sm:$0xf0]  ;;  %v1306_v6 = vor.u32 %v1504_v0, %v1305_v62  ;;  %v1486_v9 = vld [vmem:[%s1895_s5 + $0x14] sm:$0xf0] }
  0x7b   : > { %975 = vmatpush.bf16.msra.mxu1 %v1322_v46  ;;  %v1433_v3 = vld [vmem:[%s1895_s5 + $0x1a0] sm:$0xf]  ;;  %v1536_v4 = vld [vmem:[%s1895_s5 + $0x1a4] sm:$0xf0]  ;;  %v1370_v7 = vor.u32 %v1520_v2, %v1369_v1  ;;  %v1297_v10 = vld [vmem:[%s1895_s5 + $0x90] sm:$0xf]  ;;  %v1234_v17 = vor.u32 %v1486_v9, %v1233_v8 }
  0x7c   : > { %988 = vmatpush.bf16.msra.mxu2 %v1386_v47  ;;  %v1434_v11 = vor.u32 %v1536_v4, %v1433_v3  ;;  %v1502_v12 = vld [vmem:[%s1895_s5 + $0x94] sm:$0xf0]  ;;  %v1361_v13 = vld [vmem:[%s1895_s5 + $0x110] sm:$0xf]  ;;  %v1225_v18 = vld [vmem:[%s1895_s5] sm:$0xf] }
  0x7d   : > { %1001 = vmatpush.bf16.msra.mxu3 %v1450_v51  ;;  %v1518_v14 = vld [vmem:[%s1895_s5 + $0x114] sm:$0xf0]  ;;  %v1425_v15 = vld [vmem:[%s1895_s5 + $0x190] sm:$0xf]  ;;  %v1484_v19 = vld [vmem:[%s1895_s5 + $0x4] sm:$0xf0]  ;;  %v1298_v21 = vor.u32 %v1502_v12, %v1297_v10 }
  0x7e   : > { %963 = vmatpush.bf16.msra.mxu0 %v1250_v57  ;;  %v1534_v16 = vld [vmem:[%s1895_s5 + $0x194] sm:$0xf0]  ;;  %v1289_v20 = vld [vmem:[%s1895_s5 + $0x80] sm:$0xf]  ;;  %v1362_v22 = vor.u32 %v1518_v14, %v1361_v13  ;;  %v1500_v23 = vld [vmem:[%s1895_s5 + $0x84] sm:$0xf0]  ;;  %v1226_v33 = vor.u32 %v1484_v19, %v1225_v18 }
  0x7f   : > { %976 = vmatpush.bf16.msra.mxu1 %v1314_v58  ;;  %v1353_v24 = vld [vmem:[%s1895_s5 + $0x100] sm:$0xf]  ;;  %v1516_v25 = vld [vmem:[%s1895_s5 + $0x104] sm:$0xf0]  ;;  %v1426_v26 = vor.u32 %v1534_v16, %v1425_v15  ;;  %v1497_v29 = vld [vmem:[%s1895_s5 + $0x74] sm:$0xf]  ;;  %v1290_v38 = vor.u32 %v1500_v23, %v1289_v20 }
  0x80   : > { %989 = vmatpush.bf16.msra.mxu2 %v1378_v59  ;;  %v1417_v27 = vld [vmem:[%s1895_s5 + $0x180] sm:$0xf]  ;;  %v1532_v28 = vld [vmem:[%s1895_s5 + $0x184] sm:$0xf0]  ;;  %v1283_v30 = vld [vmem:[%s1895_s5 + $0x78] sm:$0xf0]  ;;  %v1354_v39 = vor.u32 %v1516_v25, %v1353_v24 }
  0x81   : > { %1002 = vmatpush.bf16.msra.mxu3 %v1442_v63  ;;  %v1513_v31 = vld [vmem:[%s1895_s5 + $0xf4] sm:$0xf]  ;;  %v560_v32 = vld [vmem:[%s1881_s26 + $0x8] sm:$0xff]  ;;  %v1418_v43 = vor.u32 %v1532_v28, %v1417_v27  ;;  %v1286_v44 = vor.u32 %v1497_v29, %v1283_v30  ;;  %v1495_v48 = vld [vmem:[%s1895_s5 + $0x64] sm:$0xf]  ;;  %p1479_p13 = scmp.ne.s32.totalorder %s1642_s14, 1 }
  0x82   : > { %964 = vmatpush.bf16.msra.mxu0 %v1242_v5  ;;  %v1347_v34 = vld [vmem:[%s1895_s5 + $0xf8] sm:$0xf0]  ;;  %v1529_v35 = vld [vmem:[%s1895_s5 + $0x174] sm:$0xf]  ;;  %v629_v37 = vunpack.c.l.b16 %v560_v32  ;;  %v630_v42 = vunpack.c.h.b16 %v560_v32  ;;  %v1275_v49 = vld [vmem:[%s1895_s5 + $0x68] sm:$0xf0] }
  0x83   : > { %977 = vmatpush.bf16.msra.mxu1 %v1306_v6  ;;  %v1411_v36 = vld [vmem:[%s1895_s5 + $0x178] sm:$0xf0]  ;;  %v1545_v40 = vld [vmem:[%s1895_s5 + $0x1f4] sm:$0xf]  ;;  %v1350_v46 = vor.u32 %v1513_v31, %v1347_v34  ;;  %v1511_v50 = vld [vmem:[%s1895_s5 + $0xe4] sm:$0xf]  ;;  %v1278_v62 = vor.u32 %v1495_v48, %v1275_v49 }
  0x84   : > { %990 = vmatpush.bf16.msra.mxu2 %v1370_v7  ;;  %v1475_v41 = vld [vmem:[%s1895_s5 + $0x1f8] sm:$0xf0]  ;;  %v559_v45 = vld [vmem:[%s1881_s26] sm:$0xff]  ;;  %v1414_v47 = vor.u32 %v1529_v35, %v1411_v36  ;;  %v1339_v54 = vld [vmem:[%s1895_s5 + $0xe8] sm:$0xf0]  ;;  %v1978_v57 = vpack.c.b16 %v629_v37, %v629_v37  ;;  %v1982_v60 = vpack.c.b16 %v630_v42, %v630_v42 }
  0x85   : > { %1003 = vmatpush.bf16.msra.mxu3 %v1434_v11  ;;  %v627_v51 = vunpack.c.l.b16 %v559_v45  ;;  %v628_v52 = vunpack.c.h.b16 %v559_v45  ;;  %v1478_v53 = vor.u32 %v1545_v40, %v1475_v41  ;;  %v1527_v55 = vld [vmem:[%s1895_s5 + $0x164] sm:$0xf]  ;;  %v1403_v56 = vld [vmem:[%s1895_s5 + $0x168] sm:$0xf0]  ;;  %v1342_v0 = vor.u32 %v1511_v50, %v1339_v54  ;;  %v1493_v2 = vld [vmem:[%s1895_s5 + $0x54] sm:$0xf] }
  0x86   : > { %965 = vmatpush.bf16.msra.mxu0 %v1234_v17  ;;  %v1543_v58 = vld [vmem:[%s1895_s5 + $0x1e4] sm:$0xf]  ;;  %v1467_v59 = vld [vmem:[%s1895_s5 + $0x1e8] sm:$0xf0]  ;;  %v1406_v1 = vor.u32 %v1527_v55, %v1403_v56  ;;  %v1267_v3 = vld [vmem:[%s1895_s5 + $0x58] sm:$0xf0] }
  0x87   : > { %978 = vmatpush.bf16.msra.mxu1 %v1298_v21  ;;  %v1984_v61 = vpack.c.b16 %v627_v51, %v627_v51  ;;  %v1986_v63 = vpack.c.b16 %v628_v52, %v628_v52  ;;  %v1509_v4 = vld [vmem:[%s1895_s5 + $0xd4] sm:$0xf]  ;;  %v1470_v5 = vor.u32 %v1543_v58, %v1467_v59  ;;  %v1331_v6 = vld [vmem:[%s1895_s5 + $0xd8] sm:$0xf0]  ;;  %v1270_v11 = vor.u32 %v1493_v2, %v1267_v3  ;;  %v1491_v14 = vld [vmem:[%s1895_s5 + $0x44] sm:$0xf] }
  0x88   : > { %991 = vmatpush.bf16.msra.mxu2 %v1362_v22  ;;  %v1525_v7 = vld [vmem:[%s1895_s5 + $0x154] sm:$0xf]  ;;  %v1395_v8 = vld [vmem:[%s1895_s5 + $0x158] sm:$0xf0]  ;;  %v1334_v12 = vor.u32 %v1509_v4, %v1331_v6  ;;  %v1259_v15 = vld [vmem:[%s1895_s5 + $0x48] sm:$0xf0] }
  0x89   : > { %1004 = vmatpush.bf16.msra.mxu3 %v1426_v26  ;;  %v1541_v9 = vld [vmem:[%s1895_s5 + $0x1d4] sm:$0xf]  ;;  %v1459_v10 = vld [vmem:[%s1895_s5 + $0x1d8] sm:$0xf0]  ;;  %v1398_v13 = vor.u32 %v1525_v7, %v1395_v8  ;;  %v1507_v16 = vld [vmem:[%s1895_s5 + $0xc4] sm:$0xf]  ;;  %v1262_v23 = vor.u32 %v1491_v14, %v1259_v15 }
  0x8a   : > { %966 = vmatpush.bf16.msra.mxu0 %v1226_v33  ;;  %v1462_v17 = vor.u32 %v1541_v9, %v1459_v10  ;;  %v1323_v18 = vld [vmem:[%s1895_s5 + $0xc8] sm:$0xf0]  ;;  %v1523_v19 = vld [vmem:[%s1895_s5 + $0x144] sm:$0xf]  ;;  %v1489_v26 = vld [vmem:[%s1895_s5 + $0x34] sm:$0xf] }
  0x8b   : > { %979 = vmatpush.bf16.msra.mxu1 %v1290_v38  ;;  %v1387_v20 = vld [vmem:[%s1895_s5 + $0x148] sm:$0xf0]  ;;  %v1539_v21 = vld [vmem:[%s1895_s5 + $0x1c4] sm:$0xf]  ;;  %v1326_v24 = vor.u32 %v1507_v16, %v1323_v18  ;;  %v1251_v27 = vld [vmem:[%s1895_s5 + $0x38] sm:$0xf0] }
  0x8c   : > { %992 = vmatpush.bf16.msra.mxu2 %v1354_v39  ;;  %v1451_v22 = vld [vmem:[%s1895_s5 + $0x1c8] sm:$0xf0]  ;;  %v1390_v25 = vor.u32 %v1523_v19, %v1387_v20  ;;  %v1505_v28 = vld [vmem:[%s1895_s5 + $0xb4] sm:$0xf]  ;;  %v1315_v30 = vld [vmem:[%s1895_s5 + $0xb8] sm:$0xf0]  ;;  %v1254_v35 = vor.u32 %v1489_v26, %v1251_v27 }
  0x8d   : > { %1005 = vmatpush.bf16.msra.mxu3 %v1418_v43  ;;  %967 = vmatmul.bf16.vlgmr.msra.gmra.mxu0 %v1984_v61  ;;  %v1454_v29 = vor.u32 %v1539_v21, %v1451_v22  ;;  %v1521_v31 = vld [vmem:[%s1895_s5 + $0x134] sm:$0xf]  ;;  %v1379_v32 = vld [vmem:[%s1895_s5 + $0x138] sm:$0xf0]  ;;  %v1318_v36 = vor.u32 %v1505_v28, %v1315_v30  ;;  %v1487_v38 = vld [vmem:[%s1895_s5 + $0x24] sm:$0xf] }
  0x8e   : > { %1011 = vmatpush.bf16.msrb.mxu0 %v1286_v44  ;;  %980 = vmatmul.bf16.vlgmr.msra.gmra.mxu1 %v1986_v63  ;;  %v1537_v33 = vld [vmem:[%s1895_s5 + $0x1b4] sm:$0xf]  ;;  %v1443_v34 = vld [vmem:[%s1895_s5 + $0x1b8] sm:$0xf0]  ;;  %v1382_v37 = vor.u32 %v1521_v31, %v1379_v32  ;;  %v1243_v39 = vld [vmem:[%s1895_s5 + $0x28] sm:$0xf0] }
  0x8f   : > { %1024 = vmatpush.bf16.msrb.mxu1 %v1350_v46  ;;  %993 = vmatmul.bf16.vlgmr.msra.gmra.mxu2 %v1978_v57  ;;  %v1503_v40 = vld [vmem:[%s1895_s5 + $0xa4] sm:$0xf]  ;;  %v1446_v41 = vor.u32 %v1537_v33, %v1443_v34  ;;  %v1307_v42 = vld [vmem:[%s1895_s5 + $0xa8] sm:$0xf0]  ;;  %v1485_v50 = vld [vmem:[%s1895_s5 + $0x14] sm:$0xf] }
  0x90   : > { %1037 = vmatpush.bf16.msrb.mxu2 %v1414_v47  ;;  %1006 = vmatmul.bf16.vlgmr.msra.gmra.mxu3 %v1982_v60  ;;  %v1519_v43 = vld [vmem:[%s1895_s5 + $0x124] sm:$0xf]  ;;  %v1371_v44 = vld [vmem:[%s1895_s5 + $0x128] sm:$0xf0]  ;;  %v1246_v47 = vor.u32 %v1487_v38, %v1243_v39  ;;  %v1310_v48 = vor.u32 %v1503_v40, %v1307_v42  ;;  %v1235_v51 = vld [vmem:[%s1895_s5 + $0x18] sm:$0xf0] }
  0x91   : > { %1050 = vmatpush.bf16.msrb.mxu3 %v1478_v53  ;;  %v1535_v45 = vld [vmem:[%s1895_s5 + $0x1a4] sm:$0xf]  ;;  %v1435_v46 = vld [vmem:[%s1895_s5 + $0x1a8] sm:$0xf0]  ;;  %v1374_v49 = vor.u32 %v1519_v43, %v1371_v44  ;;  %v1501_v52 = vld [vmem:[%s1895_s5 + $0x94] sm:$0xf] }
  0x92   : > { %1012 = vmatpush.bf16.msrb.mxu0 %v1278_v62  ;;  %v1438_v53 = vor.u32 %v1535_v45, %v1435_v46  ;;  %v1299_v54 = vld [vmem:[%s1895_s5 + $0x98] sm:$0xf0]  ;;  %v1517_v55 = vld [vmem:[%s1895_s5 + $0x114] sm:$0xf]  ;;  %v1238_v62 = vor.u32 %v1485_v50, %v1235_v51  ;;  %v1483_v2 = vld [vmem:[%s1895_s5 + $0x4] sm:$0xf] }
  0x93   : > { %1025 = vmatpush.bf16.msrb.mxu1 %v1342_v0  ;;  %v1363_v56 = vld [vmem:[%s1895_s5 + $0x118] sm:$0xf0]  ;;  %v1533_v58 = vld [vmem:[%s1895_s5 + $0x194] sm:$0xf]  ;;  %v1302_v0 = vor.u32 %v1501_v52, %v1299_v54  ;;  %v1227_v3 = vld [vmem:[%s1895_s5 + $0x8] sm:$0xf0] }
  0x94   : > { %1038 = vmatpush.bf16.msrb.mxu2 %v1406_v1  ;;  %v1427_v59 = vld [vmem:[%s1895_s5 + $0x198] sm:$0xf0]  ;;  %v1366_v1 = vor.u32 %v1517_v55, %v1363_v56  ;;  %v1499_v4 = vld [vmem:[%s1895_s5 + $0x84] sm:$0xf]  ;;  %v1291_v6 = vld [vmem:[%s1895_s5 + $0x88] sm:$0xf0] }
  0x95   : > { %1051 = vmatpush.bf16.msrb.mxu3 %v1470_v5  ;;  %v1430_v5 = vor.u32 %v1533_v58, %v1427_v59  ;;  %v1515_v7 = vld [vmem:[%s1895_s5 + $0x104] sm:$0xf]  ;;  %v1355_v8 = vld [vmem:[%s1895_s5 + $0x108] sm:$0xf0]  ;;  %v557_v21 = vld [vmem:[#allocation2] sm:$0xff] }
  0x96   : > { %1013 = vmatpush.bf16.msrb.mxu0 %v1270_v11  ;;  %v1531_v9 = vld [vmem:[%s1895_s5 + $0x184] sm:$0xf]  ;;  %v1419_v10 = vld [vmem:[%s1895_s5 + $0x188] sm:$0xf0]  ;;  %v1230_v11 = vor.u32 %v1483_v2, %v1227_v3  ;;  %v558_v31 = vld [vmem:[#allocation2 + $0x8] sm:$0xff] }
  0x97   : > { %1026 = vmatpush.bf16.msrb.mxu1 %v1334_v12  ;;  %v1294_v12 = vor.u32 %v1499_v4, %v1291_v6  ;;  %v1422_v14 = vor.u32 %v1531_v9, %v1419_v10 }
  0x98   : > { %1039 = vmatpush.bf16.msrb.mxu2 %v1398_v13  ;;  %v1358_v13 = vor.u32 %v1515_v7, %v1355_v8 }
  0x99   : > { %1052 = vmatpush.bf16.msrb.mxu3 %v1462_v17 }
  0x9a   : > { %1014 = vmatpush.bf16.msrb.mxu0 %v1262_v23 }
  0x9b   : > { %1027 = vmatpush.bf16.msrb.mxu1 %v1326_v24 }
  0x9c   : > { %1040 = vmatpush.bf16.msrb.mxu2 %v1390_v25 }
  0x9d   : > { %1053 = vmatpush.bf16.msrb.mxu3 %v1454_v29 }
  0x9e   : > { %1015 = vmatpush.bf16.msrb.mxu0 %v1254_v35 }
  0x9f   : > { %1028 = vmatpush.bf16.msrb.mxu1 %v1318_v36 }
  0xa0   : > { %1041 = vmatpush.bf16.msrb.mxu2 %v1382_v37 }
  0xa1   : > { %1054 = vmatpush.bf16.msrb.mxu3 %v1446_v41 }
  0xa2   : > { %1016 = vmatpush.bf16.msrb.mxu0 %v1246_v47 }
  0xa3   : > { %1029 = vmatpush.bf16.msrb.mxu1 %v1310_v48 }
  0xa4   : > { %1042 = vmatpush.bf16.msrb.mxu2 %v1374_v49 }
  0xa5   : > { %1055 = vmatpush.bf16.msrb.mxu3 %v1438_v53 }
  0xa6   : > { %1017 = vmatpush.bf16.msrb.mxu0 %v1238_v62 }
  0xa7   : > { %1030 = vmatpush.bf16.msrb.mxu1 %v1302_v0 }
  0xa8   : > { %1043 = vmatpush.bf16.msrb.mxu2 %v1366_v1 }
  0xa9   : > { %1056 = vmatpush.bf16.msrb.mxu3 %v1430_v5 }
  0xaa   : > { %1018 = vmatpush.bf16.msrb.mxu0 %v1230_v11 }
  0xab   : > { %1031 = vmatpush.bf16.msrb.mxu1 %v1294_v12 }
  0xac   : > { %1044 = vmatpush.bf16.msrb.mxu2 %v1358_v13 }
  0xad   : > { %1057 = vmatpush.bf16.msrb.mxu3 %v1422_v14  ;;  %1019 = vmatmul.bf16.vlgmr.msrb.gmra.mxu0 %v1984_v61 }
  0xae   : > { %1032 = vmatmul.bf16.vlgmr.msrb.gmra.mxu1 %v1986_v63 }
  0xaf   : > { %1045 = vmatmul.bf16.vlgmr.msrb.gmra.mxu2 %v1978_v57 }
  0xb0   : > { %1058 = vmatmul.bf16.vlgmr.msrb.gmra.mxu3 %v1982_v60 }
 0x10a   : > { %v968_v15 = vpop.f32.mrf.mxu0 }
 0x10b   : > { %v981_v16 = vpop.f32.mrf.mxu1 }
 0x10c   : > { %v982_v17 = vadd.f32 %v981_v16, %v968_v15 }
 0x112   : > { %v994_v18 = vpop.f32.mrf.mxu2  ;;  %v970_v23 = vpop.f32.mrf.mxu0 }
 0x113   : > { %v995_v19 = vadd.f32 %v994_v18, %v982_v17  ;;  %v1007_v20 = vpop.f32.mrf.mxu3  ;;  %v983_v24 = vpop.f32.mrf.mxu1 }
 0x115   : > { %v1008_v22 = vadd.f32 %v1007_v20, %v995_v19 }
 0x117   : > { %v1063_v25 = vadd.f32 %v1008_v22, %v557_v21 }
 0x119   : > { %1065 = vst [vmem:[#allocation2] sm:$0xff] %v1063_v25 }
 0x11a   : > { %v996_v26 = vpop.f32.mrf.mxu2 }
 0x11b   : > { %v1009_v61 = vpop.f32.mrf.mxu3 }
 0x12a   : > { %v1020_v27 = vpop.f32.mrf.mxu0 }
 0x12b   : > { %v1033_v63 = vpop.f32.mrf.mxu1 }
 0x12c   : > { %v1034_v28 = vadd.f32 %v1033_v63, %v1020_v27 }
 0x132   : > { %v1046_v57 = vpop.f32.mrf.mxu2  ;;  %v1022_v30 = vpop.f32.mrf.mxu0 }
 0x133   : > { %v1047_v29 = vadd.f32 %v1046_v57, %v1034_v28  ;;  %v1059_v60 = vpop.f32.mrf.mxu3  ;;  %v1035_v32 = vpop.f32.mrf.mxu1 }
 0x135   : > { %v1060_v33 = vadd.f32 %v1059_v60, %v1047_v29 }
 0x137   : > { %v1064_v34 = vadd.f32 %v1060_v33, %v558_v31  ;;  %1070 = sbr.rel (%p1479_p13) target bundleno = 326 (0x146), region = 78 }
 0x139   : > { %1066 = vst [vmem:[#allocation2 + $0x8] sm:$0xff] %v1064_v34 }
 0x13a   : > { %v1048_v35 = vpop.f32.mrf.mxu2 }
 0x13b   : > { %v1061_v36 = vpop.f32.mrf.mxu3 }
 0x13c   : > { %v1071_v37 = vld [vmem:[#allocation2] sm:$0xff] }
 0x13d   : > { %v1073_v39 = vld [vmem:[%s539_s12] sm:$0x3] }
 0x13e   : > { %v1075_v40 = vperm.slane %v1073_v39, 0  ;;  %v1076_v41 = vperm.slane %v1073_v39, 1 }
 0x140   : > { %v1072_v38 = vld [vmem:[#allocation2 + $0x8] sm:$0xff]  ;;  %v1079_v42 = vadd.f32 %v1075_v40, %v1071_v37 }
 0x141   : > { %v1080_v43 = vadd.f32 %v1076_v41, %v1072_v38 }
 0x143   : > { %v1081_v44 = vpack.c.bf16 %v1080_v43, %v1079_v42 }
 0x145   : > { %1082 = vst [vmem:[%s1893_s15] sm:$0xff] %v1081_v44 }
 0x146 PF: > { %s13_s18 = sadd.s32 1, %s1658_s18   ;;  %s2076_s12 = smov %s1638_s13 }
 0x147   : > { %p10_p0 = scmp.ge.s32.totalorder %s13_s18, 18   ;;  %s2077_s13 = smov %s1732_s25 }
 0x148   : > { %s2078_s14 = smov %s1650_s16  ;;  %s2079_s15 = smov %s1654_s17 }
 0x149   : > { %s2080_s16 = smov %s2083_s19  ;;  %s2081_s17 = smov %s2087_s20 }
 0x14a   :  { %12 = sbr.rel (!%p10_p0) target bundleno = 4 (0x4), region = 119 }

// kernel: _lambda_.40
= control target key start
LH: loop header
LB: loop body
LE: loop exit
PB: predicated region body
PF: predicated region fallthrough
CT: control target
= control target key end

     0   :  { %s604_s12 = smov 0   ;;  %s606_s13 = smov 0   ;;  %s650_s0 = inlined_call_operand.vmem [shape: bf16[8,2176], index: 0, kind: input, shape index: {}]   ;;  %s651_s1 = inlined_call_operand.vmem [shape: bf16[2176,128], index: 1, kind: input, shape index: {}]   ;;  %s652_s2 = inlined_call_operand.vmem [shape: f32[1,128], index: 2, kind: input, shape index: {}]   ;;  %s653_s3 = inlined_call_operand.vmem [shape: f32[8,128], index: 3, kind: output, shape index: {}]  }
   0x1   :  { %s608_s14 = smov 0  }
   0x2 LB: > { %s25_s15 = sadd.s32 1, %s577_s13  ;;  %p479_p0 = scmp.ge.s32.totalorder %s581_s14, 1  ;;  %s581_s14 = sphi %s608_s14, %s13_s14   ;;  %s577_s13 = sphi %s606_s13, %s655_s13   ;;  %s573_s12 = sphi %s604_s12, %s654_s12  }
   0x3   : > { %p26_p1 = scmp.ge.s32.totalorder %s25_s15, 17  ;;  %p187_p2 = scmp.lt.s32.totalorder %s581_s14, 18 }
   0x5   : > { %s657_s15 = smov (%p26_p1, %s25_s15), 0  ;;  %p188_p3 = pnand %p479_p0, %p187_p2 }
   0x6   : > { %p229_p4 = scmp.lt.s32.totalorder (!%p188_p3), %s573_s12, 16  ;;  %s481_s16 = sshll.u32 (!%p188_p3), %s573_s12, 4 }
   0x7   : > { %191 = sbr.rel (%p188_p3) target bundleno = 219 (0xdb), region = 32  ;;  %p236_p5 = scmp.lt.s32.totalorder (!%p188_p3), %s481_s16, 271 }
   0x8   : > { %p483_p6 = scmp.ne.s32.totalorder (!%p188_p3), %s573_s12, 0 }
   0xc   : > { %s230_s17 = scalar_select %p229_p4, %s573_s12, 16 }
   0xd   : > { %s659_s16 = smov (!%p236_p5, %s481_s16), 271  ;;  %257 = sbr.rel (%p483_p6) target bundleno = 20 (0x14), region = 36 }
   0xe   : > { %s480_s18 = sshll.u32 %s230_s17, 2  ;;  %s482_s22 = sshll.u32 %s659_s16, 2 }
   0xf   : > { %s234_s21 = scalar_lea.vmem %s650_s0, %s480_s18  ;;  %s242_s25 = scalar_lea.vmem %s651_s1, %s482_s22 }
  0x12   : > { %v583_v0 = vmov 0.0  }
  0x13   : > { %258 = vst [vmem:[#allocation2] sm:$0xff] %v583_v0 }
  0x14 PF: > { %v528_v1 = vld [vmem:[%s242_s25 + $0x38] sm:$0xff]  ;;  %v527_v2 = vld [vmem:[%s242_s25 + $0x30] sm:$0xff]  ;;  %v526_v3 = vld [vmem:[%s242_s25 + $0x28] sm:$0xff]  ;;  %p516_p7 = scmp.ne.s32.totalorder %s573_s12, 16 }
  0x15   : > { %325 = vmatpush.bf16.msra.mxu0 %v528_v1  ;;  %v525_v4 = vld [vmem:[%s242_s25 + $0x20] sm:$0xff]  ;;  %v524_v5 = vld [vmem:[%s242_s25 + $0x18] sm:$0xff]  ;;  %v523_v6 = vld [vmem:[%s242_s25 + $0x10] sm:$0xff] }
  0x16   : > { %v522_v7 = vld [vmem:[%s242_s25 + $0x8] sm:$0xff]  ;;  %v521_v8 = vld [vmem:[%s242_s25] sm:$0xff] }
  0x17   : > { %v260_v9 = vld [vmem:[%s234_s21] sm:$0xf] }
  0x19   : > { %326 = vmatpush.bf16.msra.mxu0 %v527_v2 }
  0x1a   : > { %v259_v10 = vld [vmem:[#allocation2] sm:$0xff] }
  0x1d   : > { %327 = vmatpush.bf16.msra.mxu0 %v526_v3 }
  0x21   : > { %328 = vmatpush.bf16.msra.mxu0 %v525_v4 }
  0x25   : > { %329 = vmatpush.bf16.msra.mxu0 %v524_v5 }
  0x29   : > { %330 = vmatpush.bf16.msra.mxu0 %v523_v6 }
  0x2d   : > { %331 = vmatpush.bf16.msra.mxu0 %v522_v7 }
  0x31   : > { %332 = vmatpush.bf16.msra.mxu0 %v521_v8 }
  0x34   : > { %333 = vmatmul.bf16.vlgmr.msra.gmra.mxu0 %v260_v9 }
  0xb1   : > { %v334_v11 = vpop.f32.mrf.mxu0 }
  0xb2   : > { %v338_v12 = vadd.f32 %v334_v11, %v259_v10 }
  0xb4   : > { %339 = vst [vmem:[#allocation2] sm:$0xff] %v338_v12 }
  0xb5   : > { %343 = sbr.rel (%p516_p7) target bundleno = 219 (0xdb), region = 40 }
  0xb9   : > { %v336_v13 = vpop.f32.mrf.mxu0 }
  0xba   : > { %v554_v15 = vld [vmem:[%s652_s2] ss:$0 sm:$0xff] }
  0xbb   : > { %v344_v14 = vld [vmem:[#allocation2] sm:$0xff] }
  0xbc   : > { %v349_v16 = vadd.f32 %v554_v15, %v344_v14 }
  0xbe   : > { %v517_v17 = vmul.f32 -1.442695, %v349_v16 }
  0xc0   : > { %555 = vpow2.f32 %v517_v17 }
  0xc6   : > { %v556_v18 = vpop.eup %555 }
  0xc7   : > { %v353_v19 = vadd.f32 1.0, %v556_v18 }
  0xc9   : > { %557 = vrcp.f32 %v353_v19  ;;  %v365_v22 = vand.u32 2147483648, %v353_v19  ;;  %vm359_vm0 = vweird.f32 %v353_v19  ;;  %v363_v24 = vand.u32 2147483647, %v353_v19 }
  0xcb   : > { %v366_v26 = vor.u32 1.1754944e-38, %v365_v22  ;;  %vm364_vm3 = vcmp.eq.f32.partialorder %v363_v24, 8.507059e+37 }
  0xcf   : > { %v558_v20 = vpop.eup %557 }
  0xd0   : > { %v355_v21 = vmul.f32 %v558_v20, %v353_v19  ;;  %vm360_vm1 = vweird.f32 %v558_v20 }
  0xd1   : > { %vm361_vm2 = vmor %vm359_vm0, %vm360_vm1 }
  0xd2   : > { %v356_v23 = vsub.f32 1.0, %v355_v21 }
  0xd4   : > { %v357_v25 = vmul.f32 %v558_v20, %v356_v23 }
  0xd6   : > { %v358_v27 = vadd.f32 %v558_v20, %v357_v25 }
  0xd8   : > { %v362_v28 = vsel %vm361_vm2, %v558_v20, %v358_v27 }
  0xd9   : > { %v367_v29 = vsel %vm364_vm3, %v366_v26, %v362_v28 }
  0xda   : > { %369 = vst [vmem:[%s653_s3] sm:$0xff] %v367_v29 }
  0xdb PF: > { %s13_s14 = sadd.s32 1, %s581_s14   ;;  %s654_s12 = smov %s577_s13 }
  0xdc   : > { %p10_p8 = scmp.ge.s32.totalorder %s13_s14, 19   ;;  %s655_s13 = smov %s657_s15 }
  0xde   :  { %12 = sbr.rel (!%p10_p8) target bundleno = 2 (0x2), region = 76 }

// kernel: _lambda_.38
= control target key start
LH: loop header
LB: loop body
LE: loop exit
PB: predicated region body
PF: predicated region fallthrough
CT: control target
= control target key end

     0   :  { %s1736_s15 = smov 0   ;;  %s1738_s16 = smov 0   ;;  %s2095_s0 = inlined_call_operand.vmem [shape: bf16[8,512], index: 0, kind: input, shape index: {}]   ;;  %s2096_s1 = inlined_call_operand.vmem [shape: bf16[512,2048], index: 1, kind: input, shape index: {}]   ;;  %s2097_s2 = inlined_call_operand.vmem [shape: f32[1,2048], index: 2, kind: input, shape index: {}]   ;;  %s2098_s3 = inlined_call_operand.vmem [shape: bf16[8,2048], index: 3, kind: input, shape index: {}]   ;;  %s2099_s4 = inlined_call_operand.vmem [shape: bf16[8,2048], index: 4, kind: output, shape index: {}]  }
   0x1   :  { %s1740_s17 = smov 0   ;;  %s1742_s18 = smov 0  }
   0x2   :  { %s1744_s19 = smov 0  }
   0x3 LB: > { %s29_s20 = sadd.s32 1, %s1705_s18  ;;  %p77_p1 = scmp.ne.s32.totalorder %s1697_s16, %s1693_s15  ;;  %s1709_s19 = sphi %s1744_s19, %s14_s19   ;;  %s1705_s18 = sphi %s1742_s18, %s2103_s18   ;;  %s1701_s17 = sphi %s1740_s17, %s2102_s17   ;;  %s1697_s16 = sphi %s1738_s16, %s2101_s16   ;;  %s1693_s15 = sphi %s1736_s15, %s2100_s15  }
   0x4   : > { %p31_p0 = scmp.ge.s32.totalorder %s29_s20, 8  ;;  %p78_p2 = scmp.eq.s32.totalorder %s1709_s19, 0 }
   0x5   : > { %s70_s22 = sadd.s32 1, %s1697_s16  ;;  %p1297_p5 = scmp.ge.s32.totalorder %s1709_s19, 8 }
   0x6   : > { %s2105_s20 = smov (%p31_p0, %s29_s20), 0  ;;  %p79_p3 = por %p78_p2, %p77_p1 }
   0x7   : > { %s66_s21 = ssub.s32 %s1705_s18, %s2105_s20  ;;  %198 = sbr.rel (%p1297_p5) target bundleno = 80 (0x50), region = 20 }
   0x8   : > { %p68_p4 = scmp.eq.s32.totalorder %s66_s21, 0 }
   0xa   : > { %s1771_s23 = scalar_select %p68_p4, %s1697_s16, %s70_s22  }
   0xc   : > { %201 = sbr.rel (!%p79_p3) target bundleno = 80 (0x50), region = 24  ;;  %s203_s24 = sand.u32 (%p79_p3), 1, %s1697_s16  }
   0xd   : > { %s1566_s25 = sshll.u32 (%p79_p3), %s1705_s18, 3  ;;  %s1298_s26 = sshll.u32 (%p79_p3), %s203_s24, 9 }
   0xe   : > { %s1779_s29 = scalar_lea.vmem (%p79_p3), %s2096_s1, %s1566_s25  ;;  %s1784_s30 = scalar_lea.vmem (%p79_p3), [#allocation3], %s1298_s26 }
   0xf   : > { %v366_v0 = vld [vmem:[%s1779_s29] sm:$0xff] (%p79_p3) }
  0x10   : > { %v368_v1 = vld [vmem:[%s1779_s29 + $0x40] sm:$0xff] (%p79_p3)  ;;  %367 = vst [vmem:[%s1784_s30] sm:$0xff] (%p79_p3), %v366_v0 }
  0x11   : > { %v370_v2 = vld [vmem:[%s1779_s29 + $0x80] sm:$0xff]  ;;  %369 = vst [vmem:[%s1784_s30 + $0x8] sm:$0xff] %v368_v1 }
  0x12   : > { %v372_v3 = vld [vmem:[%s1779_s29 + $0xc0] sm:$0xff]  ;;  %371 = vst [vmem:[%s1784_s30 + $0x10] sm:$0xff] %v370_v2 }
  0x13   : > { %v374_v4 = vld [vmem:[%s1779_s29 + $0x100] sm:$0xff]  ;;  %373 = vst [vmem:[%s1784_s30 + $0x18] sm:$0xff] %v372_v3 }
  0x14   : > { %v376_v5 = vld [vmem:[%s1779_s29 + $0x140] sm:$0xff]  ;;  %375 = vst [vmem:[%s1784_s30 + $0x20] sm:$0xff] %v374_v4 }
  0x15   : > { %v378_v6 = vld [vmem:[%s1779_s29 + $0x180] sm:$0xff]  ;;  %377 = vst [vmem:[%s1784_s30 + $0x28] sm:$0xff] %v376_v5 }
  0x16   : > { %v380_v7 = vld [vmem:[%s1779_s29 + $0x1c0] sm:$0xff]  ;;  %379 = vst [vmem:[%s1784_s30 + $0x30] sm:$0xff] %v378_v6 }
  0x17   : > { %v382_v8 = vld [vmem:[%s1779_s29 + $0x200] sm:$0xff]  ;;  %381 = vst [vmem:[%s1784_s30 + $0x38] sm:$0xff] %v380_v7 }
  0x18   : > { %v384_v9 = vld [vmem:[%s1779_s29 + $0x240] sm:$0xff]  ;;  %383 = vst [vmem:[%s1784_s30 + $0x40] sm:$0xff] %v382_v8 }
  0x19   : > { %v386_v10 = vld [vmem:[%s1779_s29 + $0x280] sm:$0xff]  ;;  %385 = vst [vmem:[%s1784_s30 + $0x48] sm:$0xff] %v384_v9 }
  0x1a   : > { %v388_v11 = vld [vmem:[%s1779_s29 + $0x2c0] sm:$0xff]  ;;  %387 = vst [vmem:[%s1784_s30 + $0x50] sm:$0xff] %v386_v10 }
  0x1b   : > { %v390_v12 = vld [vmem:[%s1779_s29 + $0x300] sm:$0xff]  ;;  %389 = vst [vmem:[%s1784_s30 + $0x58] sm:$0xff] %v388_v11 }
  0x1c   : > { %v392_v13 = vld [vmem:[%s1779_s29 + $0x340] sm:$0xff]  ;;  %391 = vst [vmem:[%s1784_s30 + $0x60] sm:$0xff] %v390_v12 }
  0x1d   : > { %v394_v14 = vld [vmem:[%s1779_s29 + $0x380] sm:$0xff]  ;;  %393 = vst [vmem:[%s1784_s30 + $0x68] sm:$0xff] %v392_v13 }
  0x1e   : > { %v396_v15 = vld [vmem:[%s1779_s29 + $0x3c0] sm:$0xff]  ;;  %395 = vst [vmem:[%s1784_s30 + $0x70] sm:$0xff] %v394_v14 }
  0x1f   : > { %v398_v16 = vld [vmem:[%s1779_s29 + $0x400] sm:$0xff]  ;;  %397 = vst [vmem:[%s1784_s30 + $0x78] sm:$0xff] %v396_v15 }
  0x20   : > { %v400_v17 = vld [vmem:[%s1779_s29 + $0x440] sm:$0xff]  ;;  %399 = vst [vmem:[%s1784_s30 + $0x80] sm:$0xff] %v398_v16 }
  0x21   : > { %v402_v18 = vld [vmem:[%s1779_s29 + $0x480] sm:$0xff]  ;;  %401 = vst [vmem:[%s1784_s30 + $0x88] sm:$0xff] %v400_v17 }
  0x22   : > { %v404_v19 = vld [vmem:[%s1779_s29 + $0x4c0] sm:$0xff]  ;;  %403 = vst [vmem:[%s1784_s30 + $0x90] sm:$0xff] %v402_v18 }
  0x23   : > { %v406_v20 = vld [vmem:[%s1779_s29 + $0x500] sm:$0xff]  ;;  %405 = vst [vmem:[%s1784_s30 + $0x98] sm:$0xff] %v404_v19 }
  0x24   : > { %v408_v21 = vld [vmem:[%s1779_s29 + $0x540] sm:$0xff]  ;;  %407 = vst [vmem:[%s1784_s30 + $0xa0] sm:$0xff] %v406_v20 }
  0x25   : > { %v410_v22 = vld [vmem:[%s1779_s29 + $0x580] sm:$0xff]  ;;  %409 = vst [vmem:[%s1784_s30 + $0xa8] sm:$0xff] %v408_v21 }
  0x26   : > { %v412_v23 = vld [vmem:[%s1779_s29 + $0x5c0] sm:$0xff]  ;;  %411 = vst [vmem:[%s1784_s30 + $0xb0] sm:$0xff] %v410_v22 }
  0x27   : > { %v414_v24 = vld [vmem:[%s1779_s29 + $0x600] sm:$0xff]  ;;  %413 = vst [vmem:[%s1784_s30 + $0xb8] sm:$0xff] %v412_v23 }
  0x28   : > { %v416_v25 = vld [vmem:[%s1779_s29 + $0x640] sm:$0xff]  ;;  %415 = vst [vmem:[%s1784_s30 + $0xc0] sm:$0xff] %v414_v24 }
  0x29   : > { %v418_v26 = vld [vmem:[%s1779_s29 + $0x680] sm:$0xff]  ;;  %417 = vst [vmem:[%s1784_s30 + $0xc8] sm:$0xff] %v416_v25 }
  0x2a   : > { %v420_v27 = vld [vmem:[%s1779_s29 + $0x6c0] sm:$0xff]  ;;  %419 = vst [vmem:[%s1784_s30 + $0xd0] sm:$0xff] %v418_v26 }
  0x2b   : > { %v422_v28 = vld [vmem:[%s1779_s29 + $0x700] sm:$0xff]  ;;  %421 = vst [vmem:[%s1784_s30 + $0xd8] sm:$0xff] %v420_v27 }
  0x2c   : > { %v424_v29 = vld [vmem:[%s1779_s29 + $0x740] sm:$0xff]  ;;  %423 = vst [vmem:[%s1784_s30 + $0xe0] sm:$0xff] %v422_v28 }
  0x2d   : > { %v426_v30 = vld [vmem:[%s1779_s29 + $0x780] sm:$0xff]  ;;  %425 = vst [vmem:[%s1784_s30 + $0xe8] sm:$0xff] %v424_v29 }
  0x2e   : > { %v428_v31 = vld [vmem:[%s1779_s29 + $0x7c0] sm:$0xff]  ;;  %427 = vst [vmem:[%s1784_s30 + $0xf0] sm:$0xff] %v426_v30 }
  0x2f   : > { %v430_v32 = vld [vmem:[%s1779_s29 + $0x800] sm:$0xff]  ;;  %429 = vst [vmem:[%s1784_s30 + $0xf8] sm:$0xff] %v428_v31 }
  0x30   : > { %v432_v33 = vld [vmem:[%s1779_s29 + $0x840] sm:$0xff]  ;;  %431 = vst [vmem:[%s1784_s30 + $0x100] sm:$0xff] %v430_v32 }
  0x31   : > { %v434_v34 = vld [vmem:[%s1779_s29 + $0x880] sm:$0xff]  ;;  %433 = vst [vmem:[%s1784_s30 + $0x108] sm:$0xff] %v432_v33 }
  0x32   : > { %v436_v35 = vld [vmem:[%s1779_s29 + $0x8c0] sm:$0xff]  ;;  %435 = vst [vmem:[%s1784_s30 + $0x110] sm:$0xff] %v434_v34 }
  0x33   : > { %v438_v36 = vld [vmem:[%s1779_s29 + $0x900] sm:$0xff]  ;;  %437 = vst [vmem:[%s1784_s30 + $0x118] sm:$0xff] %v436_v35 }
  0x34   : > { %v440_v37 = vld [vmem:[%s1779_s29 + $0x940] sm:$0xff]  ;;  %439 = vst [vmem:[%s1784_s30 + $0x120] sm:$0xff] %v438_v36 }
  0x35   : > { %v442_v38 = vld [vmem:[%s1779_s29 + $0x980] sm:$0xff]  ;;  %441 = vst [vmem:[%s1784_s30 + $0x128] sm:$0xff] %v440_v37 }
  0x36   : > { %v444_v39 = vld [vmem:[%s1779_s29 + $0x9c0] sm:$0xff]  ;;  %443 = vst [vmem:[%s1784_s30 + $0x130] sm:$0xff] %v442_v38 }
  0x37   : > { %v446_v40 = vld [vmem:[%s1779_s29 + $0xa00] sm:$0xff]  ;;  %445 = vst [vmem:[%s1784_s30 + $0x138] sm:$0xff] %v444_v39 }
  0x38   : > { %v448_v41 = vld [vmem:[%s1779_s29 + $0xa40] sm:$0xff]  ;;  %447 = vst [vmem:[%s1784_s30 + $0x140] sm:$0xff] %v446_v40 }
  0x39   : > { %v450_v42 = vld [vmem:[%s1779_s29 + $0xa80] sm:$0xff]  ;;  %449 = vst [vmem:[%s1784_s30 + $0x148] sm:$0xff] %v448_v41 }
  0x3a   : > { %v452_v43 = vld [vmem:[%s1779_s29 + $0xac0] sm:$0xff]  ;;  %451 = vst [vmem:[%s1784_s30 + $0x150] sm:$0xff] %v450_v42 }
  0x3b   : > { %v454_v44 = vld [vmem:[%s1779_s29 + $0xb00] sm:$0xff]  ;;  %453 = vst [vmem:[%s1784_s30 + $0x158] sm:$0xff] %v452_v43 }
  0x3c   : > { %v456_v45 = vld [vmem:[%s1779_s29 + $0xb40] sm:$0xff]  ;;  %455 = vst [vmem:[%s1784_s30 + $0x160] sm:$0xff] %v454_v44 }
  0x3d   : > { %v458_v46 = vld [vmem:[%s1779_s29 + $0xb80] sm:$0xff]  ;;  %457 = vst [vmem:[%s1784_s30 + $0x168] sm:$0xff] %v456_v45 }
  0x3e   : > { %v460_v47 = vld [vmem:[%s1779_s29 + $0xbc0] sm:$0xff]  ;;  %459 = vst [vmem:[%s1784_s30 + $0x170] sm:$0xff] %v458_v46 }
  0x3f   : > { %v462_v48 = vld [vmem:[%s1779_s29 + $0xc00] sm:$0xff]  ;;  %461 = vst [vmem:[%s1784_s30 + $0x178] sm:$0xff] %v460_v47 }
  0x40   : > { %v464_v49 = vld [vmem:[%s1779_s29 + $0xc40] sm:$0xff]  ;;  %463 = vst [vmem:[%s1784_s30 + $0x180] sm:$0xff] %v462_v48 }
  0x41   : > { %v466_v50 = vld [vmem:[%s1779_s29 + $0xc80] sm:$0xff]  ;;  %465 = vst [vmem:[%s1784_s30 + $0x188] sm:$0xff] %v464_v49 }
  0x42   : > { %v468_v51 = vld [vmem:[%s1779_s29 + $0xcc0] sm:$0xff]  ;;  %467 = vst [vmem:[%s1784_s30 + $0x190] sm:$0xff] %v466_v50 }
  0x43   : > { %v470_v52 = vld [vmem:[%s1779_s29 + $0xd00] sm:$0xff]  ;;  %469 = vst [vmem:[%s1784_s30 + $0x198] sm:$0xff] %v468_v51 }
  0x44   : > { %v472_v53 = vld [vmem:[%s1779_s29 + $0xd40] sm:$0xff]  ;;  %471 = vst [vmem:[%s1784_s30 + $0x1a0] sm:$0xff] %v470_v52 }
  0x45   : > { %v474_v54 = vld [vmem:[%s1779_s29 + $0xd80] sm:$0xff]  ;;  %473 = vst [vmem:[%s1784_s30 + $0x1a8] sm:$0xff] %v472_v53 }
  0x46   : > { %v476_v55 = vld [vmem:[%s1779_s29 + $0xdc0] sm:$0xff]  ;;  %475 = vst [vmem:[%s1784_s30 + $0x1b0] sm:$0xff] %v474_v54 }
  0x47   : > { %v478_v56 = vld [vmem:[%s1779_s29 + $0xe00] sm:$0xff]  ;;  %477 = vst [vmem:[%s1784_s30 + $0x1b8] sm:$0xff] %v476_v55 }
  0x48   : > { %v480_v57 = vld [vmem:[%s1779_s29 + $0xe40] sm:$0xff]  ;;  %479 = vst [vmem:[%s1784_s30 + $0x1c0] sm:$0xff] %v478_v56 }
  0x49   : > { %v482_v58 = vld [vmem:[%s1779_s29 + $0xe80] sm:$0xff]  ;;  %481 = vst [vmem:[%s1784_s30 + $0x1c8] sm:$0xff] %v480_v57 }
  0x4a   : > { %v484_v59 = vld [vmem:[%s1779_s29 + $0xec0] sm:$0xff]  ;;  %483 = vst [vmem:[%s1784_s30 + $0x1d0] sm:$0xff] %v482_v58 }
  0x4b   : > { %v486_v60 = vld [vmem:[%s1779_s29 + $0xf00] sm:$0xff]  ;;  %485 = vst [vmem:[%s1784_s30 + $0x1d8] sm:$0xff] %v484_v59 }
  0x4c   : > { %v488_v61 = vld [vmem:[%s1779_s29 + $0xf40] sm:$0xff]  ;;  %487 = vst [vmem:[%s1784_s30 + $0x1e0] sm:$0xff] %v486_v60 }
  0x4d   : > { %v490_v62 = vld [vmem:[%s1779_s29 + $0xf80] sm:$0xff]  ;;  %489 = vst [vmem:[%s1784_s30 + $0x1e8] sm:$0xff] %v488_v61 }
  0x4e   : > { %v492_v63 = vld [vmem:[%s1779_s29 + $0xfc0] sm:$0xff]  ;;  %491 = vst [vmem:[%s1784_s30 + $0x1f0] sm:$0xff] %v490_v62 }
  0x4f   : > { %493 = vst [vmem:[%s1784_s30 + $0x1f8] sm:$0xff] %v492_v63 }
  0x50 PF: > { %p1301_p6 = scmp.ge.s32.totalorder %s1709_s19, 1  ;;  %p519_p7 = scmp.lt.s32.totalorder %s1709_s19, 9 }
  0x52   : > { %p520_p8 = pnand %p1301_p6, %p519_p7 }
  0x53   : > { %s526_s5 = sand.u32 (!%p520_p8), 1, %s1693_s15   ;;  %s1303_s12 = sshll.u32 (!%p520_p8), %s1701_s17, 1 }
  0x54   : > { %523 = sbr.rel (%p520_p8) target bundleno = 302 (0x12e), region = 70  ;;  %s1302_s6 = sshll.u32 (!%p520_p8), %s526_s5, 9 }
  0x55   : > { %s1914_s7 = scalar_lea.vmem (!%p520_p8), [#allocation3], %s1302_s6  ;;  %p590_p9 = scmp.lt.s32.totalorder (!%p520_p8), %s1303_s12, 15 }
  0x59   : > { %v1366_v0 = vld [vmem:[%s1914_s7 + $0x70] sm:$0xf]  ;;  %v1582_v1 = vld [vmem:[%s1914_s7 + $0x74] sm:$0xf0]  ;;  %v1358_v11 = vld [vmem:[%s1914_s7 + $0x60] sm:$0xf] }
  0x5a   : > { %v1430_v2 = vld [vmem:[%s1914_s7 + $0xf0] sm:$0xf]  ;;  %v1367_v3 = vor.u32 %v1582_v1, %v1366_v0  ;;  %v1598_v4 = vld [vmem:[%s1914_s7 + $0xf4] sm:$0xf0]  ;;  %v1580_v13 = vld [vmem:[%s1914_s7 + $0x64] sm:$0xf0] }
  0x5b   : > { %v1494_v5 = vld [vmem:[%s1914_s7 + $0x170] sm:$0xf]  ;;  %v1614_v6 = vld [vmem:[%s1914_s7 + $0x174] sm:$0xf0]  ;;  %v1431_v7 = vor.u32 %v1598_v4, %v1430_v2  ;;  %v1422_v14 = vld [vmem:[%s1914_s7 + $0xe0] sm:$0xf]  ;;  %v1359_v16 = vor.u32 %v1580_v13, %v1358_v11 }
  0x5c   : > { %v1495_v8 = vor.u32 %v1614_v6, %v1494_v5  ;;  %v1558_v9 = vld [vmem:[%s1914_s7 + $0x1f0] sm:$0xf]  ;;  %v1630_v10 = vld [vmem:[%s1914_s7 + $0x1f4] sm:$0xf0]  ;;  %1022 = vmatpush.bf16.msra.mxu0 %v1367_v3  ;;  %v1596_v15 = vld [vmem:[%s1914_s7 + $0xe4] sm:$0xf0] }
  0x5d   : > { %v1559_v12 = vor.u32 %v1630_v10, %v1558_v9  ;;  %1035 = vmatpush.bf16.msra.mxu1 %v1431_v7  ;;  %v1423_v17 = vor.u32 %v1596_v15, %v1422_v14  ;;  %v1486_v18 = vld [vmem:[%s1914_s7 + $0x160] sm:$0xf]  ;;  %v1612_v19 = vld [vmem:[%s1914_s7 + $0x164] sm:$0xf0]  ;;  %v1350_v23 = vld [vmem:[%s1914_s7 + $0x50] sm:$0xf] }
  0x5e   : > { %1048 = vmatpush.bf16.msra.mxu2 %v1495_v8  ;;  %v1550_v20 = vld [vmem:[%s1914_s7 + $0x1e0] sm:$0xf]  ;;  %v1487_v21 = vor.u32 %v1612_v19, %v1486_v18  ;;  %v1628_v22 = vld [vmem:[%s1914_s7 + $0x1e4] sm:$0xf0]  ;;  %v1578_v24 = vld [vmem:[%s1914_s7 + $0x54] sm:$0xf0] }
  0x5f   : > { %1061 = vmatpush.bf16.msra.mxu3 %v1559_v12  ;;  %v1551_v25 = vor.u32 %v1628_v22, %v1550_v20  ;;  %v1414_v26 = vld [vmem:[%s1914_s7 + $0xd0] sm:$0xf]  ;;  %v1594_v27 = vld [vmem:[%s1914_s7 + $0xd4] sm:$0xf0]  ;;  %v1351_v29 = vor.u32 %v1578_v24, %v1350_v23  ;;  %v1342_v35 = vld [vmem:[%s1914_s7 + $0x40] sm:$0xf] }
  0x60   : > { %v1478_v28 = vld [vmem:[%s1914_s7 + $0x150] sm:$0xf]  ;;  %1023 = vmatpush.bf16.msra.mxu0 %v1359_v16  ;;  %v1610_v30 = vld [vmem:[%s1914_s7 + $0x154] sm:$0xf0]  ;;  %v1415_v33 = vor.u32 %v1594_v27, %v1414_v26  ;;  %v1576_v36 = vld [vmem:[%s1914_s7 + $0x44] sm:$0xf0] }
  0x61   : > { %v1542_v31 = vld [vmem:[%s1914_s7 + $0x1d0] sm:$0xf]  ;;  %v1626_v32 = vld [vmem:[%s1914_s7 + $0x1d4] sm:$0xf0]  ;;  %1036 = vmatpush.bf16.msra.mxu1 %v1423_v17  ;;  %v1479_v34 = vor.u32 %v1610_v30, %v1478_v28  ;;  %v1406_v37 = vld [vmem:[%s1914_s7 + $0xc0] sm:$0xf]  ;;  %v1343_v44 = vor.u32 %v1576_v36, %v1342_v35 }
  0x62   : > { %1049 = vmatpush.bf16.msra.mxu2 %v1487_v21  ;;  %v1543_v38 = vor.u32 %v1626_v32, %v1542_v31  ;;  %v1592_v39 = vld [vmem:[%s1914_s7 + $0xc4] sm:$0xf0]  ;;  %v1470_v40 = vld [vmem:[%s1914_s7 + $0x140] sm:$0xf]  ;;  %v1334_v47 = vld [vmem:[%s1914_s7 + $0x30] sm:$0xf] }
  0x63   : > { %1062 = vmatpush.bf16.msra.mxu3 %v1551_v25  ;;  %v1608_v41 = vld [vmem:[%s1914_s7 + $0x144] sm:$0xf0]  ;;  %v1534_v42 = vld [vmem:[%s1914_s7 + $0x1c0] sm:$0xf]  ;;  %v1407_v45 = vor.u32 %v1592_v39, %v1406_v37  ;;  %v1574_v48 = vld [vmem:[%s1914_s7 + $0x34] sm:$0xf0] }
  0x64   : > { %v1624_v43 = vld [vmem:[%s1914_s7 + $0x1c4] sm:$0xf0]  ;;  %1024 = vmatpush.bf16.msra.mxu0 %v1351_v29  ;;  %v1471_v46 = vor.u32 %v1608_v41, %v1470_v40  ;;  %v1398_v49 = vld [vmem:[%s1914_s7 + $0xb0] sm:$0xf]  ;;  %v1590_v51 = vld [vmem:[%s1914_s7 + $0xb4] sm:$0xf0]  ;;  %v1335_v56 = vor.u32 %v1574_v48, %v1334_v47 }
  0x65   : > { %1037 = vmatpush.bf16.msra.mxu1 %v1415_v33  ;;  %v1535_v50 = vor.u32 %v1624_v43, %v1534_v42  ;;  %v1462_v52 = vld [vmem:[%s1914_s7 + $0x130] sm:$0xf]  ;;  %v1606_v53 = vld [vmem:[%s1914_s7 + $0x134] sm:$0xf0]  ;;  %v1399_v57 = vor.u32 %v1590_v51, %v1398_v49  ;;  %v1326_v59 = vld [vmem:[%s1914_s7 + $0x20] sm:$0xf] }
  0x66   : > { %1050 = vmatpush.bf16.msra.mxu2 %v1479_v34  ;;  %v1526_v54 = vld [vmem:[%s1914_s7 + $0x1b0] sm:$0xf]  ;;  %v1622_v55 = vld [vmem:[%s1914_s7 + $0x1b4] sm:$0xf0]  ;;  %v1463_v58 = vor.u32 %v1606_v53, %v1462_v52  ;;  %v1572_v60 = vld [vmem:[%s1914_s7 + $0x24] sm:$0xf0] }
  0x67   : > { %1063 = vmatpush.bf16.msra.mxu3 %v1543_v38  ;;  %v1390_v61 = vld [vmem:[%s1914_s7 + $0xa0] sm:$0xf]  ;;  %v1527_v62 = vor.u32 %v1622_v55, %v1526_v54  ;;  %v1588_v63 = vld [vmem:[%s1914_s7 + $0xa4] sm:$0xf0]  ;;  %v1327_v4 = vor.u32 %v1572_v60, %v1326_v59  ;;  %v1318_v7 = vld [vmem:[%s1914_s7 + $0x10] sm:$0xf] }
  0x68   : > { %1025 = vmatpush.bf16.msra.mxu0 %v1343_v44  ;;  %v1454_v0 = vld [vmem:[%s1914_s7 + $0x120] sm:$0xf]  ;;  %v1604_v1 = vld [vmem:[%s1914_s7 + $0x124] sm:$0xf0]  ;;  %v1391_v5 = vor.u32 %v1588_v63, %v1390_v61  ;;  %v1570_v8 = vld [vmem:[%s1914_s7 + $0x14] sm:$0xf0] }
  0x69   : > { %1038 = vmatpush.bf16.msra.mxu1 %v1407_v45  ;;  %v1518_v2 = vld [vmem:[%s1914_s7 + $0x1a0] sm:$0xf]  ;;  %v1620_v3 = vld [vmem:[%s1914_s7 + $0x1a4] sm:$0xf0]  ;;  %v1455_v6 = vor.u32 %v1604_v1, %v1454_v0  ;;  %v1382_v9 = vld [vmem:[%s1914_s7 + $0x90] sm:$0xf]  ;;  %v1319_v16 = vor.u32 %v1570_v8, %v1318_v7 }
  0x6a   : > { %1051 = vmatpush.bf16.msra.mxu2 %v1471_v46  ;;  %v1519_v10 = vor.u32 %v1620_v3, %v1518_v2  ;;  %v1586_v11 = vld [vmem:[%s1914_s7 + $0x94] sm:$0xf0]  ;;  %v1446_v12 = vld [vmem:[%s1914_s7 + $0x110] sm:$0xf]  ;;  %v1310_v17 = vld [vmem:[%s1914_s7] sm:$0xf] }
  0x6b   : > { %1064 = vmatpush.bf16.msra.mxu3 %v1535_v50  ;;  %v1602_v13 = vld [vmem:[%s1914_s7 + $0x114] sm:$0xf0]  ;;  %v1510_v14 = vld [vmem:[%s1914_s7 + $0x190] sm:$0xf]  ;;  %v1568_v18 = vld [vmem:[%s1914_s7 + $0x4] sm:$0xf0]  ;;  %v1383_v20 = vor.u32 %v1586_v11, %v1382_v9 }
  0x6c   : > { %1026 = vmatpush.bf16.msra.mxu0 %v1335_v56  ;;  %v1618_v15 = vld [vmem:[%s1914_s7 + $0x194] sm:$0xf0]  ;;  %v1374_v19 = vld [vmem:[%s1914_s7 + $0x80] sm:$0xf]  ;;  %v1447_v21 = vor.u32 %v1602_v13, %v1446_v12  ;;  %v1584_v22 = vld [vmem:[%s1914_s7 + $0x84] sm:$0xf0]  ;;  %v1311_v32 = vor.u32 %v1568_v18, %v1310_v17 }
  0x6d   : > { %1039 = vmatpush.bf16.msra.mxu1 %v1399_v57  ;;  %v1438_v23 = vld [vmem:[%s1914_s7 + $0x100] sm:$0xf]  ;;  %v1600_v24 = vld [vmem:[%s1914_s7 + $0x104] sm:$0xf0]  ;;  %v1511_v25 = vor.u32 %v1618_v15, %v1510_v14  ;;  %v1581_v28 = vld [vmem:[%s1914_s7 + $0x74] sm:$0xf]  ;;  %v1375_v37 = vor.u32 %v1584_v22, %v1374_v19 }
  0x6e   : > { %1052 = vmatpush.bf16.msra.mxu2 %v1463_v58  ;;  %v1502_v26 = vld [vmem:[%s1914_s7 + $0x180] sm:$0xf]  ;;  %v1616_v27 = vld [vmem:[%s1914_s7 + $0x184] sm:$0xf0]  ;;  %v1368_v29 = vld [vmem:[%s1914_s7 + $0x78] sm:$0xf0]  ;;  %v1439_v38 = vor.u32 %v1600_v24, %v1438_v23 }
  0x6f   : > { %1065 = vmatpush.bf16.msra.mxu3 %v1527_v62  ;;  %v1597_v30 = vld [vmem:[%s1914_s7 + $0xf4] sm:$0xf]  ;;  %v623_v31 = vld [vmem:[%s2095_s0 + $0x8] sm:$0xff]  ;;  %v1432_v33 = vld [vmem:[%s1914_s7 + $0xf8] sm:$0xf0]  ;;  %v1503_v42 = vor.u32 %v1616_v27, %v1502_v26  ;;  %v1371_v43 = vor.u32 %v1581_v28, %v1368_v29  ;;  %s2107_s12 = smov (!%p590_p9, %s1303_s12), 15 }
  0x70   : > { %1027 = vmatpush.bf16.msra.mxu0 %v1327_v4  ;;  %v1613_v34 = vld [vmem:[%s1914_s7 + $0x174] sm:$0xf]  ;;  %v1496_v35 = vld [vmem:[%s1914_s7 + $0x178] sm:$0xf0]  ;;  %v692_v36 = vunpack.c.l.b16 %v623_v31  ;;  %v693_v41 = vunpack.c.h.b16 %v623_v31  ;;  %v622_v44 = vld [vmem:[%s2095_s0] sm:$0xff]  ;;  %v1435_v45 = vor.u32 %v1597_v30, %v1432_v33  ;;  %s592_s15 = scalar_lea.vmem %s2097_s2, %s2107_s12  ;;  %s1305_s21 = sshll.u32 %s2107_s12, 2 }
  0x71   : > { %1040 = vmatpush.bf16.msra.mxu1 %v1391_v5  ;;  %v1629_v39 = vld [vmem:[%s1914_s7 + $0x1f4] sm:$0xf]  ;;  %v1560_v40 = vld [vmem:[%s1914_s7 + $0x1f8] sm:$0xf0]  ;;  %v1499_v46 = vor.u32 %v1613_v34, %v1496_v35  ;;  %v1579_v47 = vld [vmem:[%s1914_s7 + $0x64] sm:$0xf]  ;;  %v690_v50 = vunpack.c.l.b16 %v622_v44  ;;  %v691_v51 = vunpack.c.h.b16 %v622_v44  ;;  %s602_s25 = scalar_lea.vmem %s2098_s3, %s1305_s21  ;;  %s612_s27 = scalar_lea.vmem %s2099_s4, %s1305_s21 }
  0x72   : > { %1053 = vmatpush.bf16.msra.mxu2 %v1455_v6  ;;  %v1360_v48 = vld [vmem:[%s1914_s7 + $0x68] sm:$0xf0]  ;;  %v1595_v49 = vld [vmem:[%s1914_s7 + $0xe4] sm:$0xf]  ;;  %v1563_v52 = vor.u32 %v1629_v39, %v1560_v40  ;;  %v2000_v56 = vpack.c.b16 %v692_v36, %v692_v36  ;;  %v2004_v59 = vpack.c.b16 %v693_v41, %v693_v41  ;;  %v1577_v1 = vld [vmem:[%s1914_s7 + $0x54] sm:$0xf] }
  0x73   : > { %1066 = vmatpush.bf16.msra.mxu3 %v1519_v10  ;;  %v1424_v53 = vld [vmem:[%s1914_s7 + $0xe8] sm:$0xf0]  ;;  %v1611_v54 = vld [vmem:[%s1914_s7 + $0x164] sm:$0xf]  ;;  %v2006_v60 = vpack.c.b16 %v690_v50, %v690_v50  ;;  %v1363_v61 = vor.u32 %v1579_v47, %v1360_v48  ;;  %v2008_v62 = vpack.c.b16 %v691_v51, %v691_v51  ;;  %v1352_v2 = vld [vmem:[%s1914_s7 + $0x58] sm:$0xf0] }
  0x74   : > { %1028 = vmatpush.bf16.msra.mxu0 %v1319_v16  ;;  %v1488_v55 = vld [vmem:[%s1914_s7 + $0x168] sm:$0xf0]  ;;  %v1627_v57 = vld [vmem:[%s1914_s7 + $0x1e4] sm:$0xf]  ;;  %v1427_v63 = vor.u32 %v1595_v49, %v1424_v53  ;;  %v1593_v3 = vld [vmem:[%s1914_s7 + $0xd4] sm:$0xf]  ;;  %v1355_v10 = vor.u32 %v1577_v1, %v1352_v2 }
  0x75   : > { %1041 = vmatpush.bf16.msra.mxu1 %v1383_v20  ;;  %v1552_v58 = vld [vmem:[%s1914_s7 + $0x1e8] sm:$0xf0]  ;;  %v1491_v0 = vor.u32 %v1611_v54, %v1488_v55  ;;  %v1416_v5 = vld [vmem:[%s1914_s7 + $0xd8] sm:$0xf0]  ;;  %v1609_v6 = vld [vmem:[%s1914_s7 + $0x154] sm:$0xf] }
  0x76   : > { %1054 = vmatpush.bf16.msra.mxu2 %v1447_v21  ;;  %v1555_v4 = vor.u32 %v1627_v57, %v1552_v58  ;;  %v1480_v7 = vld [vmem:[%s1914_s7 + $0x158] sm:$0xf0]  ;;  %v1625_v8 = vld [vmem:[%s1914_s7 + $0x1d4] sm:$0xf]  ;;  %v1419_v11 = vor.u32 %v1593_v3, %v1416_v5  ;;  %v1575_v13 = vld [vmem:[%s1914_s7 + $0x44] sm:$0xf] }
  0x77   : > { %1067 = vmatpush.bf16.msra.mxu3 %v1511_v25  ;;  %v1544_v9 = vld [vmem:[%s1914_s7 + $0x1d8] sm:$0xf0]  ;;  %v1483_v12 = vor.u32 %v1609_v6, %v1480_v7  ;;  %v1344_v14 = vld [vmem:[%s1914_s7 + $0x48] sm:$0xf0]  ;;  %v1591_v15 = vld [vmem:[%s1914_s7 + $0xc4] sm:$0xf] }
  0x78   : > { %1029 = vmatpush.bf16.msra.mxu0 %v1311_v32  ;;  %v1547_v16 = vor.u32 %v1625_v8, %v1544_v9  ;;  %v1408_v17 = vld [vmem:[%s1914_s7 + $0xc8] sm:$0xf0]  ;;  %v1607_v18 = vld [vmem:[%s1914_s7 + $0x144] sm:$0xf]  ;;  %v1347_v22 = vor.u32 %v1575_v13, %v1344_v14  ;;  %v1573_v25 = vld [vmem:[%s1914_s7 + $0x34] sm:$0xf] }
  0x79   : > { %1042 = vmatpush.bf16.msra.mxu1 %v1375_v37  ;;  %v1472_v19 = vld [vmem:[%s1914_s7 + $0x148] sm:$0xf0]  ;;  %v1623_v20 = vld [vmem:[%s1914_s7 + $0x1c4] sm:$0xf]  ;;  %v1411_v23 = vor.u32 %v1591_v15, %v1408_v17  ;;  %v1336_v26 = vld [vmem:[%s1914_s7 + $0x38] sm:$0xf0] }
  0x7a   : > { %1055 = vmatpush.bf16.msra.mxu2 %v1439_v38  ;;  %v1536_v21 = vld [vmem:[%s1914_s7 + $0x1c8] sm:$0xf0]  ;;  %v1475_v24 = vor.u32 %v1607_v18, %v1472_v19  ;;  %v1589_v27 = vld [vmem:[%s1914_s7 + $0xb4] sm:$0xf]  ;;  %v1400_v29 = vld [vmem:[%s1914_s7 + $0xb8] sm:$0xf0]  ;;  %v1339_v34 = vor.u32 %v1573_v25, %v1336_v26 }
  0x7b   : > { %1068 = vmatpush.bf16.msra.mxu3 %v1503_v42  ;;  %1030 = vmatmul.bf16.vlgmr.msra.gmra.mxu0 %v2006_v60  ;;  %v1539_v28 = vor.u32 %v1623_v20, %v1536_v21  ;;  %v1605_v30 = vld [vmem:[%s1914_s7 + $0x134] sm:$0xf]  ;;  %v1464_v31 = vld [vmem:[%s1914_s7 + $0x138] sm:$0xf0]  ;;  %v1403_v35 = vor.u32 %v1589_v27, %v1400_v29  ;;  %v1571_v37 = vld [vmem:[%s1914_s7 + $0x24] sm:$0xf] }
  0x7c   : > { %1074 = vmatpush.bf16.msrb.mxu0 %v1371_v43  ;;  %1043 = vmatmul.bf16.vlgmr.msra.gmra.mxu1 %v2008_v62  ;;  %v1621_v32 = vld [vmem:[%s1914_s7 + $0x1b4] sm:$0xf]  ;;  %v1528_v33 = vld [vmem:[%s1914_s7 + $0x1b8] sm:$0xf0]  ;;  %v1467_v36 = vor.u32 %v1605_v30, %v1464_v31  ;;  %v1328_v38 = vld [vmem:[%s1914_s7 + $0x28] sm:$0xf0] }
  0x7d   : > { %1087 = vmatpush.bf16.msrb.mxu1 %v1435_v45  ;;  %1056 = vmatmul.bf16.vlgmr.msra.gmra.mxu2 %v2000_v56  ;;  %v1587_v39 = vld [vmem:[%s1914_s7 + $0xa4] sm:$0xf]  ;;  %v1531_v40 = vor.u32 %v1621_v32, %v1528_v33  ;;  %v1392_v41 = vld [vmem:[%s1914_s7 + $0xa8] sm:$0xf0]  ;;  %v1569_v49 = vld [vmem:[%s1914_s7 + $0x14] sm:$0xf] }
  0x7e   : > { %1100 = vmatpush.bf16.msrb.mxu2 %v1499_v46  ;;  %1069 = vmatmul.bf16.vlgmr.msra.gmra.mxu3 %v2004_v59  ;;  %v1603_v42 = vld [vmem:[%s1914_s7 + $0x124] sm:$0xf]  ;;  %v1456_v43 = vld [vmem:[%s1914_s7 + $0x128] sm:$0xf0]  ;;  %v1331_v46 = vor.u32 %v1571_v37, %v1328_v38  ;;  %v1395_v47 = vor.u32 %v1587_v39, %v1392_v41  ;;  %v1320_v50 = vld [vmem:[%s1914_s7 + $0x18] sm:$0xf0] }
  0x7f   : > { %1113 = vmatpush.bf16.msrb.mxu3 %v1563_v52  ;;  %v1619_v44 = vld [vmem:[%s1914_s7 + $0x1a4] sm:$0xf]  ;;  %v1520_v45 = vld [vmem:[%s1914_s7 + $0x1a8] sm:$0xf0]  ;;  %v1459_v48 = vor.u32 %v1603_v42, %v1456_v43  ;;  %v1585_v51 = vld [vmem:[%s1914_s7 + $0x94] sm:$0xf] }
  0x80   : > { %1075 = vmatpush.bf16.msrb.mxu0 %v1363_v61  ;;  %v1523_v52 = vor.u32 %v1619_v44, %v1520_v45  ;;  %v1384_v53 = vld [vmem:[%s1914_s7 + $0x98] sm:$0xf0]  ;;  %v1601_v54 = vld [vmem:[%s1914_s7 + $0x114] sm:$0xf]  ;;  %v1323_v61 = vor.u32 %v1569_v49, %v1320_v50  ;;  %v1567_v1 = vld [vmem:[%s1914_s7 + $0x4] sm:$0xf] }
  0x81   : > { %1088 = vmatpush.bf16.msrb.mxu1 %v1427_v63  ;;  %v1448_v55 = vld [vmem:[%s1914_s7 + $0x118] sm:$0xf0]  ;;  %v1617_v57 = vld [vmem:[%s1914_s7 + $0x194] sm:$0xf]  ;;  %v1387_v63 = vor.u32 %v1585_v51, %v1384_v53  ;;  %v1312_v2 = vld [vmem:[%s1914_s7 + $0x8] sm:$0xf0] }
  0x82   : > { %1101 = vmatpush.bf16.msrb.mxu2 %v1491_v0  ;;  %v1512_v58 = vld [vmem:[%s1914_s7 + $0x198] sm:$0xf0]  ;;  %v1451_v0 = vor.u32 %v1601_v54, %v1448_v55  ;;  %v1583_v3 = vld [vmem:[%s1914_s7 + $0x84] sm:$0xf]  ;;  %v1376_v5 = vld [vmem:[%s1914_s7 + $0x88] sm:$0xf0] }
  0x83   : > { %1114 = vmatpush.bf16.msrb.mxu3 %v1555_v4  ;;  %v1515_v4 = vor.u32 %v1617_v57, %v1512_v58  ;;  %v1599_v6 = vld [vmem:[%s1914_s7 + $0x104] sm:$0xf]  ;;  %v1440_v7 = vld [vmem:[%s1914_s7 + $0x108] sm:$0xf0] }
  0x84   : > { %1076 = vmatpush.bf16.msrb.mxu0 %v1355_v10  ;;  %v1615_v8 = vld [vmem:[%s1914_s7 + $0x184] sm:$0xf]  ;;  %v1504_v9 = vld [vmem:[%s1914_s7 + $0x188] sm:$0xf0]  ;;  %v1315_v10 = vor.u32 %v1567_v1, %v1312_v2 }
  0x85   : > { %1089 = vmatpush.bf16.msrb.mxu1 %v1419_v11  ;;  %v1379_v11 = vor.u32 %v1583_v3, %v1376_v5  ;;  %v1507_v13 = vor.u32 %v1615_v8, %v1504_v9  ;;  %v1143_v26 = vld [vmem:[%s602_s25] sm:$0xff] }
  0x86   : > { %1102 = vmatpush.bf16.msrb.mxu2 %v1483_v12  ;;  %v1443_v12 = vor.u32 %v1599_v6, %v1440_v7  ;;  %v1144_v29 = vunpack.c.l.bf16 %v1143_v26 }
  0x87   : > { %1115 = vmatpush.bf16.msrb.mxu3 %v1547_v16 }
  0x88   : > { %1077 = vmatpush.bf16.msrb.mxu0 %v1347_v22 }
  0x89   : > { %1090 = vmatpush.bf16.msrb.mxu1 %v1411_v23 }
  0x8a   : > { %1103 = vmatpush.bf16.msrb.mxu2 %v1475_v24 }
  0x8b   : > { %1116 = vmatpush.bf16.msrb.mxu3 %v1539_v28 }
  0x8c   : > { %1078 = vmatpush.bf16.msrb.mxu0 %v1339_v34 }
  0x8d   : > { %1091 = vmatpush.bf16.msrb.mxu1 %v1403_v35 }
  0x8e   : > { %1104 = vmatpush.bf16.msrb.mxu2 %v1467_v36  ;;  %v1145_v36 = vunpack.c.h.bf16 %v1143_v26 }
  0x8f   : > { %1117 = vmatpush.bf16.msrb.mxu3 %v1531_v40 }
  0x90   : > { %1079 = vmatpush.bf16.msrb.mxu0 %v1331_v46 }
  0x91   : > { %1092 = vmatpush.bf16.msrb.mxu1 %v1395_v47 }
  0x92   : > { %1105 = vmatpush.bf16.msrb.mxu2 %v1459_v48 }
  0x93   : > { %1118 = vmatpush.bf16.msrb.mxu3 %v1523_v52 }
  0x94   : > { %1080 = vmatpush.bf16.msrb.mxu0 %v1323_v61 }
  0x95   : > { %1093 = vmatpush.bf16.msrb.mxu1 %v1387_v63 }
  0x96   : > { %1106 = vmatpush.bf16.msrb.mxu2 %v1451_v0 }
  0x97   : > { %1119 = vmatpush.bf16.msrb.mxu3 %v1515_v4 }
  0x98   : > { %1081 = vmatpush.bf16.msrb.mxu0 %v1315_v10 }
  0x99   : > { %1094 = vmatpush.bf16.msrb.mxu1 %v1379_v11 }
  0x9a   : > { %1107 = vmatpush.bf16.msrb.mxu2 %v1443_v12 }
  0x9b   : > { %1120 = vmatpush.bf16.msrb.mxu3 %v1507_v13  ;;  %1082 = vmatmul.bf16.vlgmr.msrb.gmra.mxu0 %v2006_v60 }
  0x9c   : > { %1095 = vmatmul.bf16.vlgmr.msrb.gmra.mxu1 %v2008_v62  ;;  %v1135_v62 = vld [vmem:[%s592_s15] sm:$0x3] }
  0x9d   : > { %1108 = vmatmul.bf16.vlgmr.msrb.gmra.mxu2 %v2000_v56  ;;  %v1137_v24 = vperm.slane %v1135_v62, 0  ;;  %v1138_v32 = vperm.slane %v1135_v62, 1 }
  0x9e   : > { %1121 = vmatmul.bf16.vlgmr.msrb.gmra.mxu3 %v2004_v59 }
  0xf8   : > { %v1031_v14 = vpop.f32.mrf.mxu0 }
  0xf9   : > { %v1044_v15 = vpop.f32.mrf.mxu1 }
  0xfa   : > { %v1045_v60 = vadd.f32 %v1044_v15, %v1031_v14 }
 0x100   : > { %v1057_v16 = vpop.f32.mrf.mxu2  ;;  %v1033_v18 = vpop.f32.mrf.mxu0 }
 0x101   : > { %v1070_v17 = vpop.f32.mrf.mxu3  ;;  %v1046_v19 = vpop.f32.mrf.mxu1  ;;  %v1058_v56 = vadd.f32 %v1057_v16, %v1045_v60 }
 0x103   : > { %v1071_v23 = vadd.f32 %v1070_v17, %v1058_v56 }
 0x105   : > { %v1141_v28 = vadd.f32 %v1137_v24, %v1071_v23 }
 0x107   : > { %v1146_v37 = vadd.f32 %v1144_v29, %v1141_v28 }
 0x108   : > { %v1059_v20 = vpop.f32.mrf.mxu2 }
 0x109   : > { %v1072_v21 = vpop.f32.mrf.mxu3  ;;  %v1148_v41 = vmax.f32 %v1146_v37, 0.0 }
 0x118   : > { %v1083_v59 = vpop.f32.mrf.mxu0 }
 0x119   : > { %v1096_v22 = vpop.f32.mrf.mxu1 }
 0x11a   : > { %v1097_v25 = vadd.f32 %v1096_v22, %v1083_v59 }
 0x120   : > { %v1109_v27 = vpop.f32.mrf.mxu2  ;;  %v1085_v33 = vpop.f32.mrf.mxu0 }
 0x121   : > { %v1110_v30 = vadd.f32 %v1109_v27, %v1097_v25  ;;  %v1122_v31 = vpop.f32.mrf.mxu3  ;;  %v1098_v34 = vpop.f32.mrf.mxu1 }
 0x123   : > { %v1123_v35 = vadd.f32 %v1122_v31, %v1110_v30 }
 0x125   : > { %v1142_v38 = vadd.f32 %v1138_v32, %v1123_v35 }
 0x127   : > { %v1147_v39 = vadd.f32 %v1145_v36, %v1142_v38 }
 0x128   : > { %v1111_v40 = vpop.f32.mrf.mxu2 }
 0x129   : > { %v1149_v42 = vmax.f32 %v1147_v39, 0.0  ;;  %v1124_v43 = vpop.f32.mrf.mxu3 }
 0x12b   : > { %v1150_v44 = vpack.c.bf16 %v1149_v42, %v1148_v41 }
 0x12d   : > { %1151 = vst [vmem:[%s612_s27] sm:$0xff] %v1150_v44 }
 0x12e PF: > { %s14_s19 = sadd.s32 1, %s1709_s19   ;;  %s2100_s15 = smov %s1697_s16 }
 0x12f   : > { %p11_p10 = scmp.ge.s32.totalorder %s14_s19, 10   ;;  %s2101_s16 = smov %s1771_s23 }
 0x130   : > { %s2102_s17 = smov %s1705_s18  ;;  %s2103_s18 = smov %s2105_s20 }
 0x131   :  { %13 = sbr.rel (!%p11_p10) target bundleno = 3 (0x3), region = 126 }

// kernel: _lambda_.41
= control target key start
LH: loop header
LB: loop body
LE: loop exit
PB: predicated region body
PF: predicated region fallthrough
CT: control target
= control target key end

     0   :  { %s208_s1 = inlined_call_operand.vmem [shape: bf16[128,128], index: 1, kind: input, shape index: {}]   ;;  %s209_s2 = inlined_call_operand.vmem [shape: f32[1,128], index: 2, kind: input, shape index: {}]   ;;  %s210_s0 = inlined_call_operand.vmem [shape: bf16[8,128], index: 0, kind: input, shape index: {}]   ;;  %s211_s3 = inlined_call_operand.vmem [shape: f32[8,128], index: 3, kind: output, shape index: {}]  }
   0x1   :  { %v153_v0 = vld [vmem:[%s208_s1 + $0x38] sm:$0xff]  ;;  %v152_v1 = vld [vmem:[%s208_s1 + $0x30] sm:$0xff]  ;;  %v151_v2 = vld [vmem:[%s208_s1 + $0x28] sm:$0xff] }
   0x2   :  { %85 = vmatpush.bf16.msra.mxu0 %v153_v0  ;;  %v150_v3 = vld [vmem:[%s208_s1 + $0x20] sm:$0xff]  ;;  %v149_v4 = vld [vmem:[%s208_s1 + $0x18] sm:$0xff]  ;;  %v148_v5 = vld [vmem:[%s208_s1 + $0x10] sm:$0xff] }
   0x3   :  { %v147_v6 = vld [vmem:[%s208_s1 + $0x8] sm:$0xff]  ;;  %v146_v7 = vld [vmem:[%s208_s1] sm:$0xff] }
   0x4   :  { %v20_v8 = vld [vmem:[%s210_s0] sm:$0xf] }
   0x5   :  { %v154_v9 = vld [vmem:[%s209_s2] ss:$0 sm:$0xff] }
   0x6   :  { %86 = vmatpush.bf16.msra.mxu0 %v152_v1 }
   0xa   :  { %87 = vmatpush.bf16.msra.mxu0 %v151_v2 }
   0xe   :  { %88 = vmatpush.bf16.msra.mxu0 %v150_v3 }
  0x12   :  { %89 = vmatpush.bf16.msra.mxu0 %v149_v4 }
  0x16   :  { %90 = vmatpush.bf16.msra.mxu0 %v148_v5 }
  0x1a   :  { %91 = vmatpush.bf16.msra.mxu0 %v147_v6 }
  0x1e   :  { %92 = vmatpush.bf16.msra.mxu0 %v146_v7 }
  0x21   :  { %93 = vmatmul.bf16.vlgmr.msra.gmra.mxu0 %v20_v8 }
  0x9e   :  { %v94_v10 = vpop.f32.mrf.mxu0 }
  0x9f   :  { %v108_v11 = vadd.f32 %v154_v9, %v94_v10 }
  0xa1   :  { %109 = vst [vmem:[%s211_s3] sm:$0xff] %v108_v11 }
  0xa6   :  { %v96_v12 = vpop.f32.mrf.mxu0 }

</bundles_post_ra>
